<compile_context>
chip_gen: v5e
topology: v5e:2x2
jax: 0.10.0
libtpu: 0.0.40
codegen_flags: <defaults>
</compile_context>

<pallas_src>
import math

import jax
import jax.numpy as jnp
from jax.experimental import pallas as pl
from jax.experimental.pallas import tpu as pltpu


# ---------------------------------------------------------------------------
# Kernel 1: batch-invariant conv stack (conv -> bias -> SiLU per layer).
# ---------------------------------------------------------------------------
def _build_mu_kernel(layer_dims, H, W, K):
    """layer_dims: list of (cin, cout, apply_act).

    Flat padded-activation layout: row r = hp * Wp + wp over the spatially
    zero-padded image (Hp x Wp).  For output position q = h * Wp + w the conv
    tap (kh, kw) reads row q + kh*Wp + kw, so each tap is a contiguous static
    row-slice of length S_out = H*Wp starting at kh*Wp + kw.  Columns with
    w >= W are "junk" pad columns: they are zeroed (keep mask) before being
    re-embedded into the next layer's slab and dropped at the model boundary.
    """
    p = (K - 1) // 2
    Wp = W + 2 * p
    S_out = H * Wp                       # rows of one layer's (junk-padded) output
    S_ext = S_out + (K - 1) * (Wp + 1)   # slab rows (covers the largest tap offset)
    pad_off = p * Wp + p                 # where output row q lands in the next slab
    L = len(layer_dims)

    def kernel(*refs):
        x0_ref = refs[0]                 # (S_ext, C0) padded flat input
        keep_ref = refs[1]               # (S_out, 1) valid-column mask
        wb = refs[2:2 + 2 * L]           # per layer: (K*K*cin, cout) f32, (1, cout) f32
        o_ref = refs[2 + 2 * L]          # (S_out, c_last) mu output
        stk_ref = refs[3 + 2 * L]        # (S_out, K*K*cin_max) im2col scratch
        act_bufs = refs[4 + 2 * L:]      # L-1 VMEM slabs for inter-layer activations

        # Pad rows of the inter-layer slabs must read as zeros (one-time cost).
        for buf in act_bufs:
            buf[...] = jnp.zeros_like(buf)

        src = x0_ref
        for li, (cin, cout, act) in enumerate(layer_dims):
            w_ref = wb[2 * li]
            b_ref = wb[2 * li + 1]
            kkc = K * K * cin
            # im2col: stack the K*K shifted tap slices along the lane dim.
            for kh in range(K):
                for kw in range(K):
                    j = kh * K + kw
                    off = kh * Wp + kw
                    stk_ref[:, j * cin:(j + 1) * cin] = src[off:off + S_out, :]
            # One fused matmul per layer: (S_out, K*K*cin) @ (K*K*cin, cout).
            acc = jnp.dot(stk_ref[:, :kkc], w_ref[...],
                          preferred_element_type=jnp.float32)
            acc = acc + b_ref[...]                       # (1, cout) broadcast
            if act:
                acc = acc * jax.nn.sigmoid(acc)          # SiLU (f32, EUP)
            if li + 1 < L:
                if p > 0:                                # zero junk (pad) columns
                    acc = acc * keep_ref[...]
                # re-embed into the next layer's zero-padded flat slab
                act_bufs[li][pad_off:pad_off + S_out, :] = acc
                src = act_bufs[li]
            else:
                o_ref[...] = acc

    return kernel


# ---------------------------------------------------------------------------
# Kernel 2: lane-dense sampling epilogue  out = mu + sigma * eps  (or mu).
# ---------------------------------------------------------------------------
def _build_sample_kernel(sigma, use_mean):
    if use_mean:
        def kernel(mu_ref, o_ref):
            o_ref[...] = jnp.broadcast_to(mu_ref[...], o_ref.shape)
    else:
        def kernel(mu_ref, eps_ref, o_ref):
            o_ref[...] = mu_ref[...] + sigma * eps_ref[...]
    return kernel


# ---------------------------------------------------------------------------
# GenerativeConvNet (JAX / Pallas, forward only)
# ---------------------------------------------------------------------------
class GenerativeConvNetPallas:
    def __init__(self, hidden_sizes, shape, kernel_size, activate_output=False,
                 distribution_base='normal', fixed_stddev=0.4, use_mean=False,
                 scale=1, key=None):
        if distribution_base != 'normal':
            # TODO(synk): Laplace rsample path not implemented (normal only).
            raise ValueError(f'Unsupported distribution base: {distribution_base}')
        if kernel_size % 2 != 1:
            # TODO(synk): even kernel_size needs asymmetric 'same' padding.
            raise ValueError('kernel_size must be odd')
        if key is None:
            key = jax.random.PRNGKey(0)

        self.shape = tuple(shape)            # (C, H, W)
        self.hidden_sizes = list(hidden_sizes)
        self.activate_output = activate_output
        self.fixed_stddev = fixed_stddev
        self.kernel_size = kernel_size
        self.use_mean = use_mean
        self.scale = scale

        if self.hidden_sizes and self.hidden_sizes[0] != self.shape[0]:
            raise ValueError('hidden_sizes[0] must equal shape[0] (input channels)')

        # learned "input" parameter: clipped gaussian noise of shape `shape`
        key, k_in = jax.random.split(key)
        noise = jax.random.normal(k_in, self.shape, dtype=jnp.float32) * (scale / 4.0)
        self.input = jnp.clip(noise, -1.0, 1.0)

        output_channels = self.shape[0] if fixed_stddev else 2 * self.shape[0]
        sizes = self.hidden_sizes + [output_channels]

        layer_dims = []
        if len(sizes) == 1:
            layer_dims.append((sizes[0], sizes[0], False))
        else:
            for i in range(len(sizes) - 1):
                act = (i < len(sizes) - 2) or activate_output
                layer_dims.append((sizes[i], sizes[i + 1], act))
        self.layer_dims = layer_dims

        # Conv parameters (PyTorch nn.Conv2d default init), stored tap-stacked
        # for the fused im2col matmul:
        #   w_stk[(kh*K+kw)*cin + ci, co] = w_torch[co, ci, kh, kw]
        K = kernel_size
        self.layers = []
        for (cin, cout, act) in layer_dims:
            key, k_w, k_b = jax.random.split(key, 3)
            bound = 1.0 / math.sqrt(cin * K * K)
            w = jax.random.uniform(k_w, (cout, cin, K, K), jnp.float32, -bound, bound)
            b = jax.random.uniform(k_b, (cout,), jnp.float32, -bound, bound)
            w_stk = jnp.transpose(w, (2, 3, 1, 0)).reshape(K * K * cin, cout)
            self.layers.append((w_stk.astype(jnp.float32),
                                b.reshape(1, cout).astype(jnp.float32),
                                act))

        # Geometry of the flat padded-activation slab used inside the kernel.
        C0, H, W = self.shape
        p = (K - 1) // 2
        self._p, self._H, self._W = p, H, W
        self._Hp, self._Wp = H + 2 * p, W + 2 * p
        self._S_out = H * self._Wp
        self._S_ext = self._S_out + (K - 1) * (self._Wp + 1)
        self._c_last = layer_dims[-1][1]
        self._kkc_max = max(K * K * cin for (cin, _co, _a) in layer_dims)

        # Flattened, zero-padded input parameter (S_ext, C0), channels-last.
        xp = jnp.pad(self.input, ((0, 0), (p, p), (p, p)))              # (C0, Hp, Wp)
        x_flat = jnp.transpose(xp, (1, 2, 0)).reshape(self._Hp * self._Wp, C0)
        extra = self._S_ext - self._Hp * self._Wp
        self._input_flat = jnp.pad(x_flat, ((0, extra), (0, 0)))

        # Valid-column mask over the junk-padded flat output rows.
        q = jnp.arange(self._S_out)
        self._keep = ((q % self._Wp) < W).astype(jnp.float32).reshape(-1, 1)

    # -- batch-invariant conv stack, computed once -------------------------
    def _compute_mu(self):
        K = self.kernel_size
        L = len(self.layer_dims)
        S_out, S_ext = self._S_out, self._S_ext
        C0 = self.shape[0]
        c_last = self._c_last

        mu_kernel = _build_mu_kernel(self.layer_dims, self._H, self._W, K)

        in_specs = [
            pl.BlockSpec((S_ext, C0), lambda i: (0, 0)),     # padded input
            pl.BlockSpec((S_out, 1), lambda i: (0, 0)),      # column mask
        ]
        operands = [self._input_flat, self._keep]
        for (w_stk, b2, _act) in self.layers:
            in_specs.append(pl.BlockSpec(w_stk.shape, lambda i: (0, 0)))
            in_specs.append(pl.BlockSpec(b2.shape, lambda i: (0, 0)))
            operands.extend((w_stk, b2))

        mu_flat = pl.pallas_call(
            mu_kernel,
            out_shape=jax.ShapeDtypeStruct((S_out, c_last), jnp.float32),
            grid=(1,),
            in_specs=in_specs,
            out_specs=pl.BlockSpec((S_out, c_last), lambda i: (0, 0)),
            scratch_shapes=[pltpu.VMEM((S_out, self._kkc_max), jnp.float32)]
                         + [pltpu.VMEM((S_ext, self.layer_dims[i][1]), jnp.float32)
                            for i in range(L - 1)],
            compiler_params=pltpu.CompilerParams(
                dimension_semantics=("arbitrary",)),
        )(*operands)

        # Tiny XLA glue: drop junk pad columns, go to flat NCHW row (1, C*H*W).
        mu_img = mu_flat.reshape(self._H, self._Wp, c_last)[:, :self._W, :]
        mu_row = jnp.transpose(mu_img, (2, 0, 1)).reshape(1, c_last * self._H * self._W)
        return mu_row

    # -- forward ------------------------------------------------------------
    def forward(self, batch_size, sample_key, use_mean=False):
        if not self.fixed_stddev:
            # TODO(synk): learned-stddev path (mu/sigma chunked from 2*C channels).
            raise NotImplementedError
        B = int(batch_size)
        take_mean = bool(use_mean or self.use_mean)
        N = self._c_last * self._H * self._W

        mu_row = self._compute_mu()                       # (1, N), batch-invariant

        # Lane-dense sampling epilogue over batch tiles.
        Bt = min(B, 128)
        nb = (B + Bt - 1) // Bt
        Bpad = nb * Bt

        sample_kernel = _build_sample_kernel(float(self.fixed_stddev), take_mean)

        if take_mean:
            in_specs = [pl.BlockSpec((1, N), lambda b: (0, 0))]
            operands = (mu_row,)
        else:
            # TODO(synk): could generate eps in-kernel with pltpu.prng_* to skip
            # the HBM eps input entirely; kept host-side for determinism.
            eps = jax.random.normal(sample_key, (Bpad, N), dtype=jnp.float32)
            in_specs = [pl.BlockSpec((1, N), lambda b: (0, 0)),
                        pl.BlockSpec((Bt, N), lambda b: (b, 0))]
            operands = (mu_row, eps)

        out = pl.pallas_call(
            sample_kernel,
            out_shape=jax.ShapeDtypeStruct((Bpad, N), jnp.float32),
            grid=(nb,),
            in_specs=in_specs,
            out_specs=pl.BlockSpec((Bt, N), lambda b: (b, 0)),
            compiler_params=pltpu.CompilerParams(
                dimension_semantics=("parallel",)),       # megacore-safe on v7x
        )(*operands)

        return out[:B].reshape((B,) + self.shape)


# ---------------------------------------------------------------------------
# Pure-JAX reference for the conv stack (correctness check of kernel 1).
# ---------------------------------------------------------------------------
def _reference_mu(net):
    x = net.input[None]                                   # (1, C, H, W)
    K = net.kernel_size
    for (w_stk, b2, act), (cin, cout, _a) in zip(net.layers, net.layer_dims):
        w = w_stk.reshape(K, K, cin, cout).transpose(3, 2, 0, 1)   # (cout,cin,K,K)
        x = jax.lax.conv_general_dilated(
            x, w, window_strides=(1, 1), padding='SAME',
            dimension_numbers=('NCHW', 'OIHW', 'NCHW'),
            precision=jax.lax.Precision.HIGHEST)
        x = x + b2.reshape(1, cout, 1, 1)
        if act:
            x = jax.nn.silu(x)
    return x[0]                                           # (C, H, W)


# ---------------------------------------------------------------------------
# Demo
# ---------------------------------------------------------------------------
if __name__ == "__main__":
    key = jax.random.PRNGKey(0)
    net = GenerativeConvNetPallas(
        hidden_sizes=[4, 8],          # hidden_sizes[0] must equal shape[0]
        shape=(4, 16, 16),
        kernel_size=3,
        activate_output=False,
        distribution_base='normal',
        fixed_stddev=0.4,
        use_mean=False,
        scale=1,
        key=key,
    )

    sample_key = jax.random.PRNGKey(1)

    # Sampling path.
    out = net.forward(batch_size=2, sample_key=sample_key, use_mean=False)
    out = jax.block_until_ready(out)
    assert out.shape == (2, 4, 16, 16), out.shape
    assert out.dtype == jnp.float32
    assert bool(jnp.all(jnp.isfinite(out)))

    # Mean path + check the fused conv stack against a pure-JAX reference.
    mean_out = jax.block_until_ready(
        net.forward(batch_size=2, sample_key=sample_key, use_mean=True))
    ref_mu = _reference_mu(net)
    err = float(jnp.max(jnp.abs(mean_out[0] - ref_mu)))
    assert err < 2e-2, f"conv stack mismatch vs reference: {err}"
    assert bool(jnp.allclose(mean_out[0], mean_out[1]))

    print("KERNEL_OK")
</pallas_src>

<mosaic_0001>
module attributes {stable_mosaic.version = 11 : i64} {
  func.func @kernel(%arg0: i32, %arg1: memref<326x4xf32, #tpu.memory_space<vmem>>, %arg2: memref<288x1xf32, #tpu.memory_space<vmem>>, %arg3: memref<36x8xf32, #tpu.memory_space<vmem>>, %arg4: memref<1x8xf32, #tpu.memory_space<vmem>>, %arg5: memref<72x4xf32, #tpu.memory_space<vmem>>, %arg6: memref<1x4xf32, #tpu.memory_space<vmem>>, %arg7: memref<288x4xf32, #tpu.memory_space<vmem>>, %arg8: memref<288x72xf32, #tpu.memory_space<vmem>>, %arg9: memref<326x8xf32, #tpu.memory_space<vmem>>) attributes {dimension_semantics = [#tpu.dimension_semantics<arbitrary>], iteration_bounds = array<i64: 1>, scalar_prefetch = 0 : i64, scratch_operands = 2 : i64, tpu.core_type = #tpu.core_type<tc>, window_params = [{pipeline_mode = #tpu.pipeline_mode<synchronous>, transform_indices = @transform_0, window_bounds = array<i64: 326, 4>}, {pipeline_mode = #tpu.pipeline_mode<synchronous>, transform_indices = @transform_1, window_bounds = array<i64: 288, 1>}, {pipeline_mode = #tpu.pipeline_mode<synchronous>, transform_indices = @transform_2, window_bounds = array<i64: 36, 8>}, {pipeline_mode = #tpu.pipeline_mode<synchronous>, transform_indices = @transform_3, window_bounds = array<i64: 1, 8>}, {pipeline_mode = #tpu.pipeline_mode<synchronous>, transform_indices = @transform_4, window_bounds = array<i64: 72, 4>}, {pipeline_mode = #tpu.pipeline_mode<synchronous>, transform_indices = @transform_5, window_bounds = array<i64: 1, 4>}, {pipeline_mode = #tpu.pipeline_mode<synchronous>, transform_indices = @transform_6, window_bounds = array<i64: 288, 4>}]} {
    %cst = arith.constant 0.000000e+00 : f32
    %0 = vector.broadcast %cst : f32 to vector<326x8xf32>
    %c0 = arith.constant 0 : index
    %c0_0 = arith.constant 0 : index
    %1 = vector.load %arg9[%c0, %c0_0] : memref<326x8xf32, #tpu.memory_space<vmem>>, vector<326x8xf32>
    tpu.vector_store %arg9[%c0, %c0_0], %0 {strides = array<i32>} : memref<326x8xf32, #tpu.memory_space<vmem>>, vector<326x8xf32>,
    %c0_1 = arith.constant 0 : index
    %c0_2 = arith.constant 0 : index
    %2 = vector.load %arg1[%c0_1, %c0_2] : memref<326x4xf32, #tpu.memory_space<vmem>>, vector<288x4xf32>
    %c0_3 = arith.constant 0 : index
    %c0_4 = arith.constant 0 : index
    %3 = vector.load %arg8[%c0_3, %c0_4] : memref<288x72xf32, #tpu.memory_space<vmem>>, vector<288x4xf32>
    tpu.vector_store %arg8[%c0_3, %c0_4], %2 {strides = array<i32>} : memref<288x72xf32, #tpu.memory_space<vmem>>, vector<288x4xf32>,
    %c1 = arith.constant 1 : index
    %c0_5 = arith.constant 0 : index
    %4 = vector.load %arg1[%c1, %c0_5] : memref<326x4xf32, #tpu.memory_space<vmem>>, vector<288x4xf32>
    %c0_6 = arith.constant 0 : index
    %c4 = arith.constant 4 : index
    %5 = vector.load %arg8[%c0_6, %c4] : memref<288x72xf32, #tpu.memory_space<vmem>>, vector<288x4xf32>
    tpu.vector_store %arg8[%c0_6, %c4], %4 {strides = array<i32>} : memref<288x72xf32, #tpu.memory_space<vmem>>, vector<288x4xf32>,
    %c2 = arith.constant 2 : index
    %c0_7 = arith.constant 0 : index
    %6 = vector.load %arg1[%c2, %c0_7] : memref<326x4xf32, #tpu.memory_space<vmem>>, vector<288x4xf32>
    %c0_8 = arith.constant 0 : index
    %c8 = arith.constant 8 : index
    %7 = vector.load %arg8[%c0_8, %c8] : memref<288x72xf32, #tpu.memory_space<vmem>>, vector<288x4xf32>
    tpu.vector_store %arg8[%c0_8, %c8], %6 {strides = array<i32>} : memref<288x72xf32, #tpu.memory_space<vmem>>, vector<288x4xf32>,
    %c18 = arith.constant 18 : index
    %c0_9 = arith.constant 0 : index
    %8 = vector.load %arg1[%c18, %c0_9] : memref<326x4xf32, #tpu.memory_space<vmem>>, vector<288x4xf32>
    %c0_10 = arith.constant 0 : index
    %c12 = arith.constant 12 : index
    %9 = vector.load %arg8[%c0_10, %c12] : memref<288x72xf32, #tpu.memory_space<vmem>>, vector<288x4xf32>
    tpu.vector_store %arg8[%c0_10, %c12], %8 {strides = array<i32>} : memref<288x72xf32, #tpu.memory_space<vmem>>, vector<288x4xf32>,
    %c19 = arith.constant 19 : index
    %c0_11 = arith.constant 0 : index
    %10 = vector.load %arg1[%c19, %c0_11] : memref<326x4xf32, #tpu.memory_space<vmem>>, vector<288x4xf32>
    %c0_12 = arith.constant 0 : index
    %c16 = arith.constant 16 : index
    %11 = vector.load %arg8[%c0_12, %c16] : memref<288x72xf32, #tpu.memory_space<vmem>>, vector<288x4xf32>
    tpu.vector_store %arg8[%c0_12, %c16], %10 {strides = array<i32>} : memref<288x72xf32, #tpu.memory_space<vmem>>, vector<288x4xf32>,
    %c20 = arith.constant 20 : index
    %c0_13 = arith.constant 0 : index
    %12 = vector.load %arg1[%c20, %c0_13] : memref<326x4xf32, #tpu.memory_space<vmem>>, vector<288x4xf32>
    %c0_14 = arith.constant 0 : index
    %c20_15 = arith.constant 20 : index
    %13 = vector.load %arg8[%c0_14, %c20_15] : memref<288x72xf32, #tpu.memory_space<vmem>>, vector<288x4xf32>
    tpu.vector_store %arg8[%c0_14, %c20_15], %12 {strides = array<i32>} : memref<288x72xf32, #tpu.memory_space<vmem>>, vector<288x4xf32>,
    %c36 = arith.constant 36 : index
    %c0_16 = arith.constant 0 : index
    %14 = vector.load %arg1[%c36, %c0_16] : memref<326x4xf32, #tpu.memory_space<vmem>>, vector<288x4xf32>
    %c0_17 = arith.constant 0 : index
    %c24 = arith.constant 24 : index
    %15 = vector.load %arg8[%c0_17, %c24] : memref<288x72xf32, #tpu.memory_space<vmem>>, vector<288x4xf32>
    tpu.vector_store %arg8[%c0_17, %c24], %14 {strides = array<i32>} : memref<288x72xf32, #tpu.memory_space<vmem>>, vector<288x4xf32>,
    %c37 = arith.constant 37 : index
    %c0_18 = arith.constant 0 : index
    %16 = vector.load %arg1[%c37, %c0_18] : memref<326x4xf32, #tpu.memory_space<vmem>>, vector<288x4xf32>
    %c0_19 = arith.constant 0 : index
    %c28 = arith.constant 28 : index
    %17 = vector.load %arg8[%c0_19, %c28] : memref<288x72xf32, #tpu.memory_space<vmem>>, vector<288x4xf32>
    tpu.vector_store %arg8[%c0_19, %c28], %16 {strides = array<i32>} : memref<288x72xf32, #tpu.memory_space<vmem>>, vector<288x4xf32>,
    %c38 = arith.constant 38 : index
    %c0_20 = arith.constant 0 : index
    %18 = vector.load %arg1[%c38, %c0_20] : memref<326x4xf32, #tpu.memory_space<vmem>>, vector<288x4xf32>
    %c0_21 = arith.constant 0 : index
    %c32 = arith.constant 32 : index
    %19 = vector.load %arg8[%c0_21, %c32] : memref<288x72xf32, #tpu.memory_space<vmem>>, vector<288x4xf32>
    tpu.vector_store %arg8[%c0_21, %c32], %18 {strides = array<i32>} : memref<288x72xf32, #tpu.memory_space<vmem>>, vector<288x4xf32>,
    %c0_22 = arith.constant 0 : index
    %c0_23 = arith.constant 0 : index
    %20 = vector.load %arg8[%c0_22, %c0_23] : memref<288x72xf32, #tpu.memory_space<vmem>>, vector<288x36xf32>
    %c0_24 = arith.constant 0 : index
    %c0_25 = arith.constant 0 : index
    %21 = vector.load %arg3[%c0_24, %c0_25] : memref<36x8xf32, #tpu.memory_space<vmem>>, vector<36x8xf32>
    %cst_26 = arith.constant dense<0.000000e+00> : vector<288x8xf32>
    %22 = tpu.matmul %20, %21, %cst_26 {dimension_numbers = #tpu.dot_dimension_numbers<[1], [0], [0], [1], [0, 0, 1, 1], [], []>} : vector<288x36xf32>, vector<36x8xf32>, vector<288x8xf32> -> vector<288x8xf32>
    %c0_27 = arith.constant 0 : index
    %c0_28 = arith.constant 0 : index
    %23 = vector.load %arg4[%c0_27, %c0_28] : memref<1x8xf32, #tpu.memory_space<vmem>>, vector<1x8xf32>
    %24 = vector.broadcast %23 : vector<1x8xf32> to vector<288x8xf32>
    %25 = arith.addf %22, %24 : vector<288x8xf32>
    %26 = arith.negf %25 : vector<288x8xf32>
    %27 = math.exp %26 : vector<288x8xf32>
    %cst_29 = arith.constant 1.000000e+00 : f32
    %28 = vector.broadcast %cst_29 : f32 to vector<288x8xf32>
    %29 = arith.addf %28, %27 : vector<288x8xf32>
    %30 = arith.divf %28, %29 : vector<288x8xf32>
    %31 = arith.mulf %25, %30 : vector<288x8xf32>
    %c0_30 = arith.constant 0 : index
    %c0_31 = arith.constant 0 : index
    %32 = vector.load %arg2[%c0_30, %c0_31] : memref<288x1xf32, #tpu.memory_space<vmem>>, vector<288x1xf32>
    %33 = vector.broadcast %32 : vector<288x1xf32> to vector<288x8xf32>
    %34 = arith.mulf %31, %33 : vector<288x8xf32>
    %c19_32 = arith.constant 19 : index
    %c0_33 = arith.constant 0 : index
    %35 = vector.load %arg9[%c19_32, %c0_33] : memref<326x8xf32, #tpu.memory_space<vmem>>, vector<288x8xf32>
    tpu.vector_store %arg9[%c19_32, %c0_33], %34 {strides = array<i32>} : memref<326x8xf32, #tpu.memory_space<vmem>>, vector<288x8xf32>,
    %c0_34 = arith.constant 0 : index
    %c0_35 = arith.constant 0 : index
    %36 = vector.load %arg9[%c0_34, %c0_35] : memref<326x8xf32, #tpu.memory_space<vmem>>, vector<288x8xf32>
    %c0_36 = arith.constant 0 : index
    %c0_37 = arith.constant 0 : index
    %37 = vector.load %arg8[%c0_36, %c0_37] : memref<288x72xf32, #tpu.memory_space<vmem>>, vector<288x8xf32>
    tpu.vector_store %arg8[%c0_36, %c0_37], %36 {strides = array<i32>} : memref<288x72xf32, #tpu.memory_space<vmem>>, vector<288x8xf32>,
    %c1_38 = arith.constant 1 : index
    %c0_39 = arith.constant 0 : index
    %38 = vector.load %arg9[%c1_38, %c0_39] : memref<326x8xf32, #tpu.memory_space<vmem>>, vector<288x8xf32>
    %c0_40 = arith.constant 0 : index
    %c8_41 = arith.constant 8 : index
    %39 = vector.load %arg8[%c0_40, %c8_41] : memref<288x72xf32, #tpu.memory_space<vmem>>, vector<288x8xf32>
    tpu.vector_store %arg8[%c0_40, %c8_41], %38 {strides = array<i32>} : memref<288x72xf32, #tpu.memory_space<vmem>>, vector<288x8xf32>,
    %c2_42 = arith.constant 2 : index
    %c0_43 = arith.constant 0 : index
    %40 = vector.load %arg9[%c2_42, %c0_43] : memref<326x8xf32, #tpu.memory_space<vmem>>, vector<288x8xf32>
    %c0_44 = arith.constant 0 : index
    %c16_45 = arith.constant 16 : index
    %41 = vector.load %arg8[%c0_44, %c16_45] : memref<288x72xf32, #tpu.memory_space<vmem>>, vector<288x8xf32>
    tpu.vector_store %arg8[%c0_44, %c16_45], %40 {strides = array<i32>} : memref<288x72xf32, #tpu.memory_space<vmem>>, vector<288x8xf32>,
    %c18_46 = arith.constant 18 : index
    %c0_47 = arith.constant 0 : index
    %42 = vector.load %arg9[%c18_46, %c0_47] : memref<326x8xf32, #tpu.memory_space<vmem>>, vector<288x8xf32>
    %c0_48 = arith.constant 0 : index
    %c24_49 = arith.constant 24 : index
    %43 = vector.load %arg8[%c0_48, %c24_49] : memref<288x72xf32, #tpu.memory_space<vmem>>, vector<288x8xf32>
    tpu.vector_store %arg8[%c0_48, %c24_49], %42 {strides = array<i32>} : memref<288x72xf32, #tpu.memory_space<vmem>>, vector<288x8xf32>,
    %c19_50 = arith.constant 19 : index
    %c0_51 = arith.constant 0 : index
    %44 = vector.load %arg9[%c19_50, %c0_51] : memref<326x8xf32, #tpu.memory_space<vmem>>, vector<288x8xf32>
    %c0_52 = arith.constant 0 : index
    %c32_53 = arith.constant 32 : index
    %45 = vector.load %arg8[%c0_52, %c32_53] : memref<288x72xf32, #tpu.memory_space<vmem>>, vector<288x8xf32>
    tpu.vector_store %arg8[%c0_52, %c32_53], %44 {strides = array<i32>} : memref<288x72xf32, #tpu.memory_space<vmem>>, vector<288x8xf32>,
    %c20_54 = arith.constant 20 : index
    %c0_55 = arith.constant 0 : index
    %46 = vector.load %arg9[%c20_54, %c0_55] : memref<326x8xf32, #tpu.memory_space<vmem>>, vector<288x8xf32>
    %c0_56 = arith.constant 0 : index
    %c40 = arith.constant 40 : index
    %47 = vector.load %arg8[%c0_56, %c40] : memref<288x72xf32, #tpu.memory_space<vmem>>, vector<288x8xf32>
    tpu.vector_store %arg8[%c0_56, %c40], %46 {strides = array<i32>} : memref<288x72xf32, #tpu.memory_space<vmem>>, vector<288x8xf32>,
    %c36_57 = arith.constant 36 : index
    %c0_58 = arith.constant 0 : index
    %48 = vector.load %arg9[%c36_57, %c0_58] : memref<326x8xf32, #tpu.memory_space<vmem>>, vector<288x8xf32>
    %c0_59 = arith.constant 0 : index
    %c48 = arith.constant 48 : index
    %49 = vector.load %arg8[%c0_59, %c48] : memref<288x72xf32, #tpu.memory_space<vmem>>, vector<288x8xf32>
    tpu.vector_store %arg8[%c0_59, %c48], %48 {strides = array<i32>} : memref<288x72xf32, #tpu.memory_space<vmem>>, vector<288x8xf32>,
    %c37_60 = arith.constant 37 : index
    %c0_61 = arith.constant 0 : index
    %50 = vector.load %arg9[%c37_60, %c0_61] : memref<326x8xf32, #tpu.memory_space<vmem>>, vector<288x8xf32>
    %c0_62 = arith.constant 0 : index
    %c56 = arith.constant 56 : index
    %51 = vector.load %arg8[%c0_62, %c56] : memref<288x72xf32, #tpu.memory_space<vmem>>, vector<288x8xf32>
    tpu.vector_store %arg8[%c0_62, %c56], %50 {strides = array<i32>} : memref<288x72xf32, #tpu.memory_space<vmem>>, vector<288x8xf32>,
    %c38_63 = arith.constant 38 : index
    %c0_64 = arith.constant 0 : index
    %52 = vector.load %arg9[%c38_63, %c0_64] : memref<326x8xf32, #tpu.memory_space<vmem>>, vector<288x8xf32>
    %c0_65 = arith.constant 0 : index
    %c64 = arith.constant 64 : index
    %53 = vector.load %arg8[%c0_65, %c64] : memref<288x72xf32, #tpu.memory_space<vmem>>, vector<288x8xf32>
    tpu.vector_store %arg8[%c0_65, %c64], %52 {strides = array<i32>} : memref<288x72xf32, #tpu.memory_space<vmem>>, vector<288x8xf32>,
    %c0_66 = arith.constant 0 : index
    %c0_67 = arith.constant 0 : index
    %54 = vector.load %arg8[%c0_66, %c0_67] : memref<288x72xf32, #tpu.memory_space<vmem>>, vector<288x72xf32>
    %c0_68 = arith.constant 0 : index
    %c0_69 = arith.constant 0 : index
    %55 = vector.load %arg5[%c0_68, %c0_69] : memref<72x4xf32, #tpu.memory_space<vmem>>, vector<72x4xf32>
    %cst_70 = arith.constant dense<0.000000e+00> : vector<288x4xf32>
    %56 = tpu.matmul %54, %55, %cst_70 {dimension_numbers = #tpu.dot_dimension_numbers<[1], [0], [0], [1], [0, 0, 1, 1], [], []>} : vector<288x72xf32>, vector<72x4xf32>, vector<288x4xf32> -> vector<288x4xf32>
    %c0_71 = arith.constant 0 : index
    %c0_72 = arith.constant 0 : index
    %57 = vector.load %arg6[%c0_71, %c0_72] : memref<1x4xf32, #tpu.memory_space<vmem>>, vector<1x4xf32>
    %58 = vector.broadcast %57 : vector<1x4xf32> to vector<288x4xf32>
    %59 = arith.addf %56, %58 : vector<288x4xf32>
    %c0_73 = arith.constant 0 : index
    %c0_74 = arith.constant 0 : index
    %60 = vector.load %arg7[%c0_73, %c0_74] : memref<288x4xf32, #tpu.memory_space<vmem>>, vector<288x4xf32>
    tpu.vector_store %arg7[%c0_73, %c0_74], %59 {strides = array<i32>} : memref<288x4xf32, #tpu.memory_space<vmem>>, vector<288x4xf32>,
    return
  }
  func.func @transform_0(%arg0: i32) -> (i32, i32) {
    %c0_i32 = arith.constant 0 : i32
    %c0_i32_0 = arith.constant 0 : i32
    %c0_i32_1 = arith.constant 0 : i32
    return %c0_i32, %c0_i32_0 : i32, i32
  }
  func.func @transform_1(%arg0: i32) -> (i32, i32) {
    %c0_i32 = arith.constant 0 : i32
    %c0_i32_0 = arith.constant 0 : i32
    %c0_i32_1 = arith.constant 0 : i32
    return %c0_i32, %c0_i32_0 : i32, i32
  }
  func.func @transform_2(%arg0: i32) -> (i32, i32) {
    %c0_i32 = arith.constant 0 : i32
    %c0_i32_0 = arith.constant 0 : i32
    %c0_i32_1 = arith.constant 0 : i32
    return %c0_i32, %c0_i32_0 : i32, i32
  }
  func.func @transform_3(%arg0: i32) -> (i32, i32) {
    %c0_i32 = arith.constant 0 : i32
    %c0_i32_0 = arith.constant 0 : i32
    %c0_i32_1 = arith.constant 0 : i32
    return %c0_i32, %c0_i32_0 : i32, i32
  }
  func.func @transform_4(%arg0: i32) -> (i32, i32) {
    %c0_i32 = arith.constant 0 : i32
    %c0_i32_0 = arith.constant 0 : i32
    %c0_i32_1 = arith.constant 0 : i32
    return %c0_i32, %c0_i32_0 : i32, i32
  }
  func.func @transform_5(%arg0: i32) -> (i32, i32) {
    %c0_i32 = arith.constant 0 : i32
    %c0_i32_0 = arith.constant 0 : i32
    %c0_i32_1 = arith.constant 0 : i32
    return %c0_i32, %c0_i32_0 : i32, i32
  }
  func.func @transform_6(%arg0: i32) -> (i32, i32) {
    %c0_i32 = arith.constant 0 : i32
    %c0_i32_0 = arith.constant 0 : i32
    %c0_i32_1 = arith.constant 0 : i32
    return %c0_i32, %c0_i32_0 : i32, i32
  }
}

</mosaic_0001>

<bundles_post_ra>
// kernel: tpu_custom_call.1
= control target key start
LH: loop header
LB: loop body
LE: loop exit
PB: predicated region body
PF: predicated region fallthrough
CT: control target
= control target key end

     0   :  { %s5584_s25 = smov 4   ;;  %vm102_vm0 = vcmask 31744   ;;  %vm319_vm1 = vcmask 64544   ;;  %s5585_s15 = smov 8   ;;  %vm536_vm2 = vcmask 97344   ;;  %vm753_vm3 = vcmask 130144   ;;  %s9665_s0 = inlined_call_operand.vmem [shape: f32[326,4], index: 0, kind: input, shape index: {}]   ;;  %s9666_s2 = inlined_call_operand.vmem [shape: f32[36,8], index: 2, kind: input, shape index: {}]   ;;  %s9667_s3 = inlined_call_operand.vmem [shape: f32[1,8], index: 3, kind: input, shape index: {}]   ;;  %s9668_s1 = inlined_call_operand.vmem [shape: f32[288,1], index: 1, kind: input, shape index: {}]   ;;  %s9669_s4 = inlined_call_operand.vmem [shape: f32[72,4], index: 4, kind: input, shape index: {}]   ;;  %s9670_s5 = inlined_call_operand.vmem [shape: f32[1,4], index: 5, kind: input, shape index: {}]   ;;  %s9671_s6 = inlined_call_operand.vmem [shape: f32[288,4], index: 6, kind: output, shape index: {}]  }
   0x1   :  { %v141_v0 = vld [vmem:[%s9665_s0 + $0x11] sm:$0xff]  ;;  %v139_v1 = vld [vmem:[%s9665_s0 + $0x1] sm:$0xff]  ;;  %v142_v3 = vld [vmem:[%s9665_s0 + $0x19] sm:$0xff]  ;;  %s5586_s7 = smov 12   ;;  %s5587_s16 = smov 16   ;;  %vm970_vm4 = vcmask 162944  }
   0x2   :  { %215 = vrot.lane.b32.xlu1 %v141_v0, %s5584_s25  ;;  %211 = vrot.lane.b32.xlu0 %v139_v1, %s5584_s25  ;;  %v143_v2 = vld [vmem:[%s9665_s0 + $0x21] sm:$0xff]  ;;  %v140_v4 = vld [vmem:[%s9665_s0 + $0x9] sm:$0xff]  ;;  %s5588_s23 = smov 20   ;;  %vm1187_vm5 = vcmask 195744   ;;  %s5589_s30 = smov 24   ;;  %vm1404_vm6 = vcmask 228544  }
   0x3   :  { %219 = vrot.lane.b32.xlu2 %v143_v2, %s5584_s25  ;;  %v144_v5 = vld [vmem:[%s9665_s0 + $0x29] sm:$0xff]  ;;  %v146_v6 = vld [vmem:[%s9665_s0 + $0x39] sm:$0xff]  ;;  %v145_v7 = vld [vmem:[%s9665_s0 + $0x31] sm:$0xff]  ;;  %s5590_s14 = smov 28   ;;  %vm1621_vm7 = vcmask 261344   ;;  %vm2029_vm8 = vcmask 1043456  }
   0x4   :  { %v147_v8 = vld [vmem:[%s9665_s0 + $0x41] sm:$0xff]  ;;  %v149_v9 = vld [vmem:[%s9665_s0 + $0x51] sm:$0xff]  ;;  %v148_v10 = vld [vmem:[%s9665_s0 + $0x49] sm:$0xff]  ;;  %vm1838_vm9 = vcmask 294144   ;;  %vm1920_vm10 = vcmask 293888   ;;  %vm23_vm11 = vcmask 64512  }
   0x5   :  { %v150_v11 = vld [vmem:[%s9665_s0 + $0x59] sm:$0xff]  ;;  %v152_v12 = vld [vmem:[%s9665_s0 + $0x69] sm:$0xff]  ;;  %v151_v13 = vld [vmem:[%s9665_s0 + $0x61] sm:$0xff] }
   0x6   :  { %v153_v14 = vld [vmem:[%s9665_s0 + $0x71] sm:$0xff]  ;;  %v155_v15 = vld [vmem:[%s9665_s0 + $0x81] sm:$0xff]  ;;  %v154_v16 = vld [vmem:[%s9665_s0 + $0x79] sm:$0xff] }
   0x7   :  { %v156_v17 = vld [vmem:[%s9665_s0 + $0x89] sm:$0xff]  ;;  %v158_v18 = vld [vmem:[%s9665_s0 + $0x99] sm:$0xff]  ;;  %v157_v19 = vld [vmem:[%s9665_s0 + $0x91] sm:$0xff] }
   0x8   :  { %v159_v20 = vld [vmem:[%s9665_s0 + $0xa1] sm:$0xff]  ;;  %v161_v21 = vld [vmem:[%s9665_s0 + $0xb1] sm:$0xff]  ;;  %v160_v22 = vld [vmem:[%s9665_s0 + $0xa9] sm:$0xff] }
   0x9   :  { %v162_v23 = vld [vmem:[%s9665_s0 + $0xb9] sm:$0xff]  ;;  %v164_v24 = vld [vmem:[%s9665_s0 + $0xc9] sm:$0xff]  ;;  %v163_v25 = vld [vmem:[%s9665_s0 + $0xc1] sm:$0xff] }
   0xa   :  { %217 = vrot.lane.b32.xlu1 %v142_v3, %s5584_s25  ;;  %213 = vrot.lane.b32.xlu0 %v140_v4, %s5584_s25  ;;  %v165_v26 = vld [vmem:[%s9665_s0 + $0xd1] sm:$0xff]  ;;  %v167_v27 = vld [vmem:[%s9665_s0 + $0xe1] sm:$0xff] }
   0xb   :  { %221 = vrot.lane.b32.xlu2 %v144_v5, %s5584_s25  ;;  %v166_v28 = vld [vmem:[%s9665_s0 + $0xd9] sm:$0xff]  ;;  %v168_v29 = vld [vmem:[%s9665_s0 + $0xe9] sm:$0xff]  ;;  %v169_v31 = vld [vmem:[%s9665_s0 + $0xf1] sm:$0xff] }
   0xc   :  { %v170_v30 = vld [vmem:[%s9665_s0 + $0xf9] sm:$0xff]  ;;  %v171_v32 = vld [vmem:[%s9665_s0 + $0x101] sm:$0xff]  ;;  %v68_v34 = vld [vmem:[%s9665_s0 + $0x10] sm:$0xff] }
   0xd   :  { %v66_v33 = vld [vmem:[%s9665_s0] sm:$0xff]  ;;  %105 = vst.msk [vmem:[#allocation2 + $0x10] sm:$0xff] %vm102_vm0, %v68_v34  ;;  %v173_v35 = vld [vmem:[%s9665_s0 + $0x111] sm:$0xff]  ;;  %v172_v36 = vld [vmem:[%s9665_s0 + $0x109] sm:$0xff] }
   0xe   :  { %103 = vst.msk [vmem:[#allocation2] sm:$0xff] %vm102_vm0, %v66_v33  ;;  %v174_v37 = vld [vmem:[%s9665_s0 + $0x119] sm:$0xff]  ;;  %v67_v40 = vld [vmem:[%s9665_s0 + $0x8] sm:$0xff]  ;;  %v72_v47 = vld [vmem:[%s9665_s0 + $0x30] sm:$0xff] }
   0xf   :  { %v70_v38 = vld [vmem:[%s9665_s0 + $0x20] sm:$0xff]  ;;  %v69_v39 = vld [vmem:[%s9665_s0 + $0x18] sm:$0xff]  ;;  %104 = vst.msk [vmem:[#allocation2 + $0x8] sm:$0xff] %vm102_vm0, %v67_v40  ;;  %v357_v41 = vld [vmem:[%s9665_s0 + $0xa] sm:$0xff] }
  0x10   :  { %107 = vst.msk [vmem:[#allocation2 + $0x20] sm:$0xff] %vm102_vm0, %v70_v38  ;;  %v356_v42 = vld [vmem:[%s9665_s0 + $0x2] sm:$0xff]  ;;  %v5809_v44 = vld [vmem:[%s9665_s0 + $0x12] sm:$0xff]  ;;  %v5833_v49 = vld [vmem:[%s9665_s0 + $0x1a] sm:$0xff] }
  0x11   :  { %106 = vst.msk [vmem:[#allocation2 + $0x18] sm:$0xff] %vm102_vm0, %v69_v39  ;;  %v71_v45 = vld [vmem:[%s9665_s0 + $0x28] sm:$0xff]  ;;  %v73_v46 = vld [vmem:[%s9665_s0 + $0x38] sm:$0xff]  ;;  %v74_v52 = vld [vmem:[%s9665_s0 + $0x40] sm:$0xff] }
  0x12   :  { %225 = vrot.lane.b32.xlu1 %v146_v6, %s5584_s25  ;;  %223 = vrot.lane.b32.xlu0 %v145_v7, %s5584_s25  ;;  %108 = vst.msk [vmem:[#allocation2 + $0x28] sm:$0xff] %vm102_vm0, %v71_v45  ;;  %v5828_v48 = vld [vmem:[%s9665_s0 + $0x22] sm:$0xff]  ;;  %v5843_v51 = vld [vmem:[%s9665_s0 + $0x2a] sm:$0xff] }
  0x13   :  { %227 = vrot.lane.b32.xlu2 %v147_v8, %s5584_s25  ;;  %110 = vst.msk [vmem:[#allocation2 + $0x38] sm:$0xff] %vm102_vm0, %v73_v46  ;;  %v76_v53 = vld [vmem:[%s9665_s0 + $0x50] sm:$0xff]  ;;  %v75_v54 = vld [vmem:[%s9665_s0 + $0x48] sm:$0xff]  ;;  %v5862_v55 = vld [vmem:[%s9665_s0 + $0x3a] sm:$0xff] }
  0x14   :  { %109 = vst.msk [vmem:[#allocation2 + $0x30] sm:$0xff] %vm102_vm0, %v72_v47  ;;  %v5867_v56 = vld [vmem:[%s9665_s0 + $0x32] sm:$0xff]  ;;  %v5877_v58 = vld [vmem:[%s9665_s0 + $0x42] sm:$0xff]  ;;  %v5901_v1 = vld [vmem:[%s9665_s0 + $0x4a] sm:$0xff] }
  0x15   :  { %111 = vst.msk [vmem:[#allocation2 + $0x40] sm:$0xff] %vm102_vm0, %v74_v52  ;;  %v77_v59 = vld [vmem:[%s9665_s0 + $0x58] sm:$0xff]  ;;  %v79_v62 = vld [vmem:[%s9665_s0 + $0x68] sm:$0xff]  ;;  %v78_v63 = vld [vmem:[%s9665_s0 + $0x60] sm:$0xff] }
  0x16   :  { %113 = vst.msk [vmem:[#allocation2 + $0x50] sm:$0xff] %vm102_vm0, %v76_v53  ;;  %v5896_v0 = vld [vmem:[%s9665_s0 + $0x52] sm:$0xff]  ;;  %v5913_v3 = vld [vmem:[%s9665_s0 + $0x5a] sm:$0xff]  ;;  %v91_v34 = vld [vmem:[%s9665_s0 + $0xc8] sm:$0xff] }
  0x17   :  { %112 = vst.msk [vmem:[#allocation2 + $0x48] sm:$0xff] %vm102_vm0, %v75_v54  ;;  %v80_v4 = vld [vmem:[%s9665_s0 + $0x70] sm:$0xff]  ;;  %v82_v7 = vld [vmem:[%s9665_s0 + $0x80] sm:$0xff]  ;;  %v81_v8 = vld [vmem:[%s9665_s0 + $0x78] sm:$0xff] }
  0x18   :  { %114 = vst.msk [vmem:[#allocation2 + $0x58] sm:$0xff] %vm102_vm0, %v77_v59  ;;  %v6057_v39 = vld [vmem:[%s9665_s0 + $0xba] sm:$0xff]  ;;  %v92_v40 = vld [vmem:[%s9665_s0 + $0xd0] sm:$0xff]  ;;  %v6081_v47 = vld [vmem:[%s9665_s0 + $0xc2] sm:$0xff] }
  0x19   :  { %116 = vst.msk [vmem:[#allocation2 + $0x68] sm:$0xff] %vm102_vm0, %v79_v62  ;;  %v93_v45 = vld [vmem:[%s9665_s0 + $0xd8] sm:$0xff]  ;;  %v6076_v46 = vld [vmem:[%s9665_s0 + $0xca] sm:$0xff] }
  0x1a   :  { %231 = vrot.lane.b32.xlu1 %v149_v9, %s5584_s25  ;;  %229 = vrot.lane.b32.xlu0 %v148_v10, %s5584_s25  ;;  %115 = vst.msk [vmem:[#allocation2 + $0x60] sm:$0xff] %vm102_vm0, %v78_v63  ;;  %v5932_v9 = vld [vmem:[%s9665_s0 + $0x6a] sm:$0xff]  ;;  %v5937_v10 = vld [vmem:[%s9665_s0 + $0x62] sm:$0xff] }
  0x1b   :  { %233 = vrot.lane.b32.xlu2 %v150_v11, %s5584_s25  ;;  %117 = vst.msk [vmem:[#allocation2 + $0x70] sm:$0xff] %vm102_vm0, %v80_v4  ;;  %v6093_v52 = vld [vmem:[%s9665_s0 + $0xd2] sm:$0xff]  ;;  %v95_v53 = vld [vmem:[%s9665_s0 + $0xe8] sm:$0xff]  ;;  %v6117_v62 = vld [vmem:[%s9665_s0 + $0xda] sm:$0xff] }
  0x1c   :  { %119 = vst.msk [vmem:[#allocation2 + $0x80] sm:$0xff] %vm102_vm0, %v82_v7  ;;  %v97_v59 = vld [vmem:[%s9665_s0 + $0xf8] sm:$0xff]  ;;  %v98_v4 = vld [vmem:[%s9665_s0 + $0x100] sm:$0xff]  ;;  %v100_v7 = vld [vmem:[%s9665_s0 + $0x110] sm:$0xff] }
  0x1d   :  { %118 = vst.msk [vmem:[#allocation2 + $0x78] sm:$0xff] %vm102_vm0, %v81_v8  ;;  %v99_v8 = vld [vmem:[%s9665_s0 + $0x108] sm:$0xff] }
  0x1e   :  { %128 = vst.msk [vmem:[#allocation2 + $0xc8] sm:$0xff] %vm102_vm0, %v91_v34 }
  0x1f   :  { %129 = vst.msk [vmem:[#allocation2 + $0xd0] sm:$0xff] %vm102_vm0, %v92_v40 }
  0x20   :  { %130 = vst.msk [vmem:[#allocation2 + $0xd8] sm:$0xff] %vm102_vm0, %v93_v45 }
  0x21   :  { %132 = vst.msk [vmem:[#allocation2 + $0xe8] sm:$0xff] %vm102_vm0, %v95_v53 }
  0x22   :  { %237 = vrot.lane.b32.xlu1 %v152_v12, %s5584_s25  ;;  %235 = vrot.lane.b32.xlu0 %v151_v13, %s5584_s25  ;;  %v5949_v12 = vld [vmem:[%s9665_s0 + $0x72] sm:$0xff]  ;;  %v83_v13 = vld [vmem:[%s9665_s0 + $0x88] sm:$0xff]  ;;  %134 = vst.msk [vmem:[#allocation2 + $0xf8] sm:$0xff] %vm102_vm0, %v97_v59 }
  0x23   :  { %239 = vrot.lane.b32.xlu2 %v153_v14, %s5584_s25  ;;  %120 = vst.msk [vmem:[#allocation2 + $0x88] sm:$0xff] %vm102_vm0, %v83_v13  ;;  %v6153_v13 = vld [vmem:[%s9665_s0 + $0xf2] sm:$0xff] }
  0x24   :  { %135 = vst.msk [vmem:[#allocation2 + $0x100] sm:$0xff] %vm102_vm0, %v98_v4 }
  0x25   :  { %137 = vst.msk [vmem:[#allocation2 + $0x110] sm:$0xff] %vm102_vm0, %v100_v7 }
  0x26   :  { %136 = vst.msk [vmem:[#allocation2 + $0x108] sm:$0xff] %vm102_vm0, %v99_v8  ;;  %v797_v8 = vld [vmem:[%s9665_s0 + $0x4b] sm:$0xff] }
  0x2a   :  { %243 = vrot.lane.b32.xlu1 %v155_v15, %s5584_s25  ;;  %241 = vrot.lane.b32.xlu0 %v154_v16, %s5584_s25  ;;  %v85_v16 = vld [vmem:[%s9665_s0 + $0x98] sm:$0xff] }
  0x2b   :  { %245 = vrot.lane.b32.xlu2 %v156_v17, %s5584_s25  ;;  %v84_v17 = vld [vmem:[%s9665_s0 + $0x90] sm:$0xff]  ;;  %122 = vst.msk [vmem:[#allocation2 + $0x98] sm:$0xff] %vm102_vm0, %v85_v16  ;;  %v101_v16 = vld [vmem:[%s9665_s0 + $0x118] sm:$0xff] }
  0x2c   :  { %121 = vst.msk [vmem:[#allocation2 + $0x90] sm:$0xff] %vm102_vm0, %v84_v17 }
  0x2d   :  { %138 = vst.msk [vmem:[#allocation2 + $0x118] sm:$0xff] %vm102_vm0, %v101_v16 }
  0x32   :  { %249 = vrot.lane.b32.xlu1 %v158_v18, %s5584_s25  ;;  %247 = vrot.lane.b32.xlu0 %v157_v19, %s5584_s25  ;;  %v5968_v18 = vld [vmem:[%s9665_s0 + $0x82] sm:$0xff]  ;;  %v5973_v19 = vld [vmem:[%s9665_s0 + $0x7a] sm:$0xff] }
  0x33   :  { %251 = vrot.lane.b32.xlu2 %v159_v20, %s5584_s25 }
  0x3a   :  { %255 = vrot.lane.b32.xlu1 %v161_v21, %s5584_s25  ;;  %253 = vrot.lane.b32.xlu0 %v160_v22, %s5584_s25  ;;  %v5985_v21 = vld [vmem:[%s9665_s0 + $0x8a] sm:$0xff]  ;;  %v86_v22 = vld [vmem:[%s9665_s0 + $0xa0] sm:$0xff] }
  0x3b   :  { %257 = vrot.lane.b32.xlu2 %v162_v23, %s5584_s25  ;;  %123 = vst.msk [vmem:[#allocation2 + $0xa0] sm:$0xff] %vm102_vm0, %v86_v22  ;;  %v6178_v22 = vld [vmem:[%s9665_s0 + $0x112] sm:$0xff] }
  0x42   :  { %261 = vrot.lane.b32.xlu1 %v164_v24, %s5584_s25  ;;  %259 = vrot.lane.b32.xlu0 %v163_v25, %s5584_s25  ;;  %v88_v25 = vld [vmem:[%s9665_s0 + $0xb0] sm:$0xff] }
  0x43   :  { %263 = vrot.lane.b32.xlu2 %v165_v26, %s5584_s25  ;;  %v87_v26 = vld [vmem:[%s9665_s0 + $0xa8] sm:$0xff]  ;;  %125 = vst.msk [vmem:[#allocation2 + $0xb0] sm:$0xff] %vm102_vm0, %v88_v25  ;;  %v6193_v25 = vld [vmem:[%s9665_s0 + $0x11a] sm:$0xff] }
  0x44   :  { %124 = vst.msk [vmem:[#allocation2 + $0xa8] sm:$0xff] %vm102_vm0, %v87_v26 }
  0x4a   :  { %267 = vrot.lane.b32.xlu1 %v167_v27, %s5584_s25  ;;  %265 = vrot.lane.b32.xlu0 %v166_v28, %s5584_s25  ;;  %v6004_v27 = vld [vmem:[%s9665_s0 + $0x9a] sm:$0xff]  ;;  %v6009_v28 = vld [vmem:[%s9665_s0 + $0x92] sm:$0xff] }
  0x4b   :  { %269 = vrot.lane.b32.xlu2 %v168_v29, %s5584_s25 }
  0x52   :  { %273 = vrot.lane.b32.xlu1 %v170_v30, %s5584_s25  ;;  %271 = vrot.lane.b32.xlu0 %v169_v31, %s5584_s25  ;;  %v6021_v30 = vld [vmem:[%s9665_s0 + $0xa2] sm:$0xff]  ;;  %v89_v31 = vld [vmem:[%s9665_s0 + $0xb8] sm:$0xff] }
  0x53   :  { %275 = vrot.lane.b32.xlu2 %v171_v32, %s5584_s25  ;;  %126 = vst.msk [vmem:[#allocation2 + $0xb8] sm:$0xff] %vm102_vm0, %v89_v31 }
  0x5a   :  { %279 = vrot.lane.b32.xlu1 %v173_v35, %s5584_s25  ;;  %277 = vrot.lane.b32.xlu0 %v172_v36, %s5584_s25  ;;  %v90_v35 = vld [vmem:[%s9665_s0 + $0xc0] sm:$0xff]  ;;  %v6040_v36 = vld [vmem:[%s9665_s0 + $0xb2] sm:$0xff] }
  0x5b   :  { %281 = vrot.lane.b32.xlu2 %v174_v37, %s5584_s25  ;;  %v6045_v37 = vld [vmem:[%s9665_s0 + $0xaa] sm:$0xff]  ;;  %127 = vst.msk [vmem:[#allocation2 + $0xc0] sm:$0xff] %vm102_vm0, %v90_v35 }
  0x5d   :  { %v220_v43 = vpop.permute.xlu2 %219 }
  0x5e   :  { %324 = vst.msk [vmem:[#allocation2 + $0x20] sm:$0xff] %vm319_vm1, %v220_v43  ;;  %v94_v43 = vld [vmem:[%s9665_s0 + $0xe0] sm:$0xff] }
  0x5f   :  { %131 = vst.msk [vmem:[#allocation2 + $0xe0] sm:$0xff] %vm102_vm0, %v94_v43 }
  0x62   :  { %430 = vrot.lane.b32.xlu1 %v357_v41, %s5585_s15  ;;  %428 = vrot.lane.b32.xlu0 %v356_v42, %s5585_s15 }
  0x63   :  { %432 = vrot.lane.b32.xlu2 %v5809_v44, %s5585_s15 }
  0x65   :  { %v222_v50 = vpop.permute.xlu2 %221 }
  0x66   :  { %325 = vst.msk [vmem:[#allocation2 + $0x28] sm:$0xff] %vm319_vm1, %v222_v50 }
  0x6a   :  { %436 = vrot.lane.b32.xlu1 %v5828_v48, %s5585_s15  ;;  %434 = vrot.lane.b32.xlu0 %v5833_v49, %s5585_s15 }
  0x6b   :  { %438 = vrot.lane.b32.xlu2 %v5843_v51, %s5585_s15 }
  0x6d   :  { %v228_v57 = vpop.permute.xlu2 %227 }
  0x6e   :  { %328 = vst.msk [vmem:[#allocation2 + $0x40] sm:$0xff] %vm319_vm1, %v228_v57 }
  0x72   :  { %442 = vrot.lane.b32.xlu1 %v5862_v55, %s5585_s15  ;;  %440 = vrot.lane.b32.xlu0 %v5867_v56, %s5585_s15 }
  0x73   :  { %444 = vrot.lane.b32.xlu2 %v5877_v58, %s5585_s15 }
  0x74   :  { %v216_v60 = vpop.permute.xlu1 %215  ;;  %v212_v61 = vpop.permute.xlu0 %211 }
  0x75   :  { %322 = vst.msk [vmem:[#allocation2 + $0x10] sm:$0xff] %vm319_vm1, %v216_v60  ;;  %v234_v2 = vpop.permute.xlu2 %233  ;;  %v96_v60 = vld [vmem:[%s9665_s0 + $0xf0] sm:$0xff] }
  0x76   :  { %320 = vst.msk [vmem:[#allocation2] sm:$0xff] %vm319_vm1, %v212_v61  ;;  %v6112_v61 = vld [vmem:[%s9665_s0 + $0xe2] sm:$0xff] }
  0x77   :  { %331 = vst.msk [vmem:[#allocation2 + $0x58] sm:$0xff] %vm319_vm1, %v234_v2  ;;  %v6129_v2 = vld [vmem:[%s9665_s0 + $0xea] sm:$0xff] }
  0x78   :  { %133 = vst.msk [vmem:[#allocation2 + $0xf0] sm:$0xff] %vm102_vm0, %v96_v60  ;;  %v792_v60 = vld [vmem:[%s9665_s0 + $0x23] sm:$0xff] }
  0x7a   :  { %448 = vrot.lane.b32.xlu1 %v5896_v0, %s5585_s15  ;;  %446 = vrot.lane.b32.xlu0 %v5901_v1, %s5585_s15 }
  0x7b   :  { %450 = vrot.lane.b32.xlu2 %v5913_v3, %s5585_s15 }
  0x7c   :  { %v218_v5 = vpop.permute.xlu1 %217  ;;  %v214_v6 = vpop.permute.xlu0 %213 }
  0x7d   :  { %323 = vst.msk [vmem:[#allocation2 + $0x18] sm:$0xff] %vm319_vm1, %v218_v5  ;;  %v240_v11 = vpop.permute.xlu2 %239 }
  0x7e   :  { %321 = vst.msk [vmem:[#allocation2 + $0x8] sm:$0xff] %vm319_vm1, %v214_v6 }
  0x7f   :  { %334 = vst.msk [vmem:[#allocation2 + $0x70] sm:$0xff] %vm319_vm1, %v240_v11  ;;  %v6148_v11 = vld [vmem:[%s9665_s0 + $0xfa] sm:$0xff] }
  0x82   :  { %454 = vrot.lane.b32.xlu1 %v5932_v9, %s5585_s15  ;;  %452 = vrot.lane.b32.xlu0 %v5937_v10, %s5585_s15 }
  0x83   :  { %456 = vrot.lane.b32.xlu2 %v5949_v12, %s5585_s15 }
  0x84   :  { %v226_v14 = vpop.permute.xlu1 %225  ;;  %v224_v15 = vpop.permute.xlu0 %223 }
  0x85   :  { %327 = vst.msk [vmem:[#allocation2 + $0x38] sm:$0xff] %vm319_vm1, %v226_v14  ;;  %v246_v20 = vpop.permute.xlu2 %245 }
  0x86   :  { %326 = vst.msk [vmem:[#allocation2 + $0x30] sm:$0xff] %vm319_vm1, %v224_v15  ;;  %v6165_v15 = vld [vmem:[%s9665_s0 + $0x102] sm:$0xff] }
  0x87   :  { %337 = vst.msk [vmem:[#allocation2 + $0x88] sm:$0xff] %vm319_vm1, %v246_v20 }
  0x8a   :  { %460 = vrot.lane.b32.xlu1 %v5968_v18, %s5585_s15  ;;  %458 = vrot.lane.b32.xlu0 %v5973_v19, %s5585_s15 }
  0x8b   :  { %462 = vrot.lane.b32.xlu2 %v5985_v21, %s5585_s15 }
  0x8c   :  { %v232_v23 = vpop.permute.xlu1 %231  ;;  %v230_v24 = vpop.permute.xlu0 %229 }
  0x8d   :  { %330 = vst.msk [vmem:[#allocation2 + $0x50] sm:$0xff] %vm319_vm1, %v232_v23  ;;  %v252_v29 = vpop.permute.xlu2 %251  ;;  %v6183_v23 = vld [vmem:[%s9665_s0 + $0x10a] sm:$0xff] }
  0x8e   :  { %329 = vst.msk [vmem:[#allocation2 + $0x48] sm:$0xff] %vm319_vm1, %v230_v24 }
  0x8f   :  { %340 = vst.msk [vmem:[#allocation2 + $0xa0] sm:$0xff] %vm319_vm1, %v252_v29 }
  0x92   :  { %466 = vrot.lane.b32.xlu1 %v6004_v27, %s5585_s15  ;;  %464 = vrot.lane.b32.xlu0 %v6009_v28, %s5585_s15 }
  0x93   :  { %468 = vrot.lane.b32.xlu2 %v6021_v30, %s5585_s15 }
  0x94   :  { %v238_v32 = vpop.permute.xlu1 %237  ;;  %v236_v33 = vpop.permute.xlu0 %235 }
  0x95   :  { %333 = vst.msk [vmem:[#allocation2 + $0x68] sm:$0xff] %vm319_vm1, %v238_v32  ;;  %v258_v38 = vpop.permute.xlu2 %257 }
  0x96   :  { %332 = vst.msk [vmem:[#allocation2 + $0x60] sm:$0xff] %vm319_vm1, %v236_v33 }
  0x97   :  { %343 = vst.msk [vmem:[#allocation2 + $0xb8] sm:$0xff] %vm319_vm1, %v258_v38 }
  0x9a   :  { %472 = vrot.lane.b32.xlu1 %v6040_v36, %s5585_s15  ;;  %470 = vrot.lane.b32.xlu0 %v6045_v37, %s5585_s15 }
  0x9b   :  { %474 = vrot.lane.b32.xlu2 %v6057_v39, %s5585_s15 }
  0x9c   :  { %v244_v41 = vpop.permute.xlu1 %243  ;;  %v242_v42 = vpop.permute.xlu0 %241 }
  0x9d   :  { %336 = vst.msk [vmem:[#allocation2 + $0x80] sm:$0xff] %vm319_vm1, %v244_v41  ;;  %v264_v50 = vpop.permute.xlu2 %263 }
  0x9e   :  { %335 = vst.msk [vmem:[#allocation2 + $0x78] sm:$0xff] %vm319_vm1, %v242_v42 }
  0x9f   :  { %346 = vst.msk [vmem:[#allocation2 + $0xd0] sm:$0xff] %vm319_vm1, %v264_v50  ;;  %v608_v50 = vld [vmem:[%s9665_s0 + $0x12a] sm:$0xff] }
  0xa2   :  { %478 = vrot.lane.b32.xlu1 %v6076_v46, %s5585_s15  ;;  %476 = vrot.lane.b32.xlu0 %v6081_v47, %s5585_s15 }
  0xa3   :  { %480 = vrot.lane.b32.xlu2 %v6093_v52, %s5585_s15 }
  0xa4   :  { %v250_v54 = vpop.permute.xlu1 %249  ;;  %v248_v57 = vpop.permute.xlu0 %247 }
  0xa5   :  { %339 = vst.msk [vmem:[#allocation2 + $0x98] sm:$0xff] %vm319_vm1, %v250_v54  ;;  %v270_v63 = vpop.permute.xlu2 %269  ;;  %v791_v54 = vld [vmem:[%s9665_s0 + $0x1b] sm:$0xff] }
  0xa6   :  { %338 = vst.msk [vmem:[#allocation2 + $0x90] sm:$0xff] %vm319_vm1, %v248_v57  ;;  %v790_v57 = vld [vmem:[%s9665_s0 + $0x13] sm:$0xff] }
  0xa7   :  { %349 = vst.msk [vmem:[#allocation2 + $0xe8] sm:$0xff] %vm319_vm1, %v270_v63  ;;  %v794_v63 = vld [vmem:[%s9665_s0 + $0x33] sm:$0xff] }
  0xaa   :  { %484 = vrot.lane.b32.xlu1 %v6112_v61, %s5585_s15  ;;  %482 = vrot.lane.b32.xlu0 %v6117_v62, %s5585_s15 }
  0xab   :  { %486 = vrot.lane.b32.xlu2 %v6129_v2, %s5585_s15 }
  0xac   :  { %v256_v5 = vpop.permute.xlu1 %255  ;;  %v254_v6 = vpop.permute.xlu0 %253 }
  0xad   :  { %342 = vst.msk [vmem:[#allocation2 + $0xb0] sm:$0xff] %vm319_vm1, %v256_v5  ;;  %v276_v14 = vpop.permute.xlu2 %275  ;;  %v795_v5 = vld [vmem:[%s9665_s0 + $0x3b] sm:$0xff] }
  0xae   :  { %341 = vst.msk [vmem:[#allocation2 + $0xa8] sm:$0xff] %vm319_vm1, %v254_v6 }
  0xaf   :  { %352 = vst.msk [vmem:[#allocation2 + $0x100] sm:$0xff] %vm319_vm1, %v276_v14  ;;  %v798_v14 = vld [vmem:[%s9665_s0 + $0x53] sm:$0xff] }
  0xb2   :  { %490 = vrot.lane.b32.xlu1 %v6148_v11, %s5585_s15  ;;  %488 = vrot.lane.b32.xlu0 %v6153_v13, %s5585_s15 }
  0xb3   :  { %492 = vrot.lane.b32.xlu2 %v6165_v15, %s5585_s15 }
  0xb4   :  { %v262_v17 = vpop.permute.xlu1 %261  ;;  %v260_v20 = vpop.permute.xlu0 %259 }
  0xb5   :  { %345 = vst.msk [vmem:[#allocation2 + $0xc8] sm:$0xff] %vm319_vm1, %v262_v17  ;;  %v282_v24 = vpop.permute.xlu2 %281  ;;  %v800_v17 = vld [vmem:[%s9665_s0 + $0x63] sm:$0xff] }
  0xb6   :  { %344 = vst.msk [vmem:[#allocation2 + $0xc0] sm:$0xff] %vm319_vm1, %v260_v20  ;;  %v799_v20 = vld [vmem:[%s9665_s0 + $0x5b] sm:$0xff] }
  0xb7   :  { %355 = vst.msk [vmem:[#allocation2 + $0x118] sm:$0xff] %vm319_vm1, %v282_v24 }
  0xba   :  { %496 = vrot.lane.b32.xlu1 %v6178_v22, %s5585_s15  ;;  %494 = vrot.lane.b32.xlu0 %v6183_v23, %s5585_s15 }
  0xbb   :  { %498 = vrot.lane.b32.xlu2 %v6193_v25, %s5585_s15 }
  0xbc   :  { %v268_v26 = vpop.permute.xlu1 %267  ;;  %v266_v29 = vpop.permute.xlu0 %265 }
  0xbd   :  { %348 = vst.msk [vmem:[#allocation2 + $0xe0] sm:$0xff] %vm319_vm1, %v268_v26  ;;  %v433_v31 = vpop.permute.xlu2 %432  ;;  %v803_v26 = vld [vmem:[%s9665_s0 + $0x7b] sm:$0xff] }
  0xbe   :  { %347 = vst.msk [vmem:[#allocation2 + $0xd8] sm:$0xff] %vm319_vm1, %v266_v29  ;;  %v802_v29 = vld [vmem:[%s9665_s0 + $0x73] sm:$0xff] }
  0xbf   :  { %539 = vst.msk [vmem:[#allocation2 + $0x10] sm:$0xff] %vm536_vm2, %v433_v31 }
  0xc2   :  { %647 = vrot.lane.b32.xlu1 %v5833_v49, %s5586_s7  ;;  %645 = vrot.lane.b32.xlu0 %v5809_v44, %s5586_s7 }
  0xc3   :  { %649 = vrot.lane.b32.xlu2 %v5828_v48, %s5586_s7 }
  0xc4   :  { %v274_v32 = vpop.permute.xlu1 %273  ;;  %v272_v33 = vpop.permute.xlu0 %271 }
  0xc5   :  { %351 = vst.msk [vmem:[#allocation2 + $0xf8] sm:$0xff] %vm319_vm1, %v274_v32  ;;  %v439_v34 = vpop.permute.xlu2 %438  ;;  %v804_v32 = vld [vmem:[%s9665_s0 + $0x83] sm:$0xff] }
  0xc6   :  { %350 = vst.msk [vmem:[#allocation2 + $0xf0] sm:$0xff] %vm319_vm1, %v272_v33 }
  0xc7   :  { %542 = vst.msk [vmem:[#allocation2 + $0x28] sm:$0xff] %vm536_vm2, %v439_v34 }
  0xca   :  { %653 = vrot.lane.b32.xlu1 %v5867_v56, %s5586_s7  ;;  %651 = vrot.lane.b32.xlu0 %v5843_v51, %s5586_s7 }
  0xcb   :  { %655 = vrot.lane.b32.xlu2 %v5862_v55, %s5586_s7 }
  0xcc   :  { %v280_v49 = vpop.permute.xlu1 %279  ;;  %v278_v44 = vpop.permute.xlu0 %277 }
  0xcd   :  { %354 = vst.msk [vmem:[#allocation2 + $0x110] sm:$0xff] %vm319_vm1, %v280_v49  ;;  %v445_v48 = vpop.permute.xlu2 %444  ;;  %v806_v49 = vld [vmem:[%s9665_s0 + $0x93] sm:$0xff] }
  0xce   :  { %353 = vst.msk [vmem:[#allocation2 + $0x108] sm:$0xff] %vm319_vm1, %v278_v44  ;;  %v805_v44 = vld [vmem:[%s9665_s0 + $0x8b] sm:$0xff] }
  0xcf   :  { %545 = vst.msk [vmem:[#allocation2 + $0x40] sm:$0xff] %vm536_vm2, %v445_v48 }
  0xd2   :  { %659 = vrot.lane.b32.xlu1 %v5901_v1, %s5586_s7  ;;  %657 = vrot.lane.b32.xlu0 %v5877_v58, %s5586_s7 }
  0xd3   :  { %661 = vrot.lane.b32.xlu2 %v5896_v0, %s5586_s7 }
  0xd4   :  { %v431_v56 = vpop.permute.xlu1 %430  ;;  %v429_v51 = vpop.permute.xlu0 %428 }
  0xd5   :  { %538 = vst.msk [vmem:[#allocation2 + $0x8] sm:$0xff] %vm536_vm2, %v431_v56  ;;  %v451_v55 = vpop.permute.xlu2 %450  ;;  %v807_v56 = vld [vmem:[%s9665_s0 + $0x9b] sm:$0xff] }
  0xd6   :  { %537 = vst.msk [vmem:[#allocation2] sm:$0xff] %vm536_vm2, %v429_v51 }
  0xd7   :  { %548 = vst.msk [vmem:[#allocation2 + $0x58] sm:$0xff] %vm536_vm2, %v451_v55 }
  0xda   :  { %665 = vrot.lane.b32.xlu1 %v5937_v10, %s5586_s7  ;;  %663 = vrot.lane.b32.xlu0 %v5913_v3, %s5586_s7 }
  0xdb   :  { %667 = vrot.lane.b32.xlu2 %v5932_v9, %s5586_s7 }
  0xdc   :  { %v437_v1 = vpop.permute.xlu1 %436  ;;  %v435_v58 = vpop.permute.xlu0 %434 }
  0xdd   :  { %541 = vst.msk [vmem:[#allocation2 + $0x20] sm:$0xff] %vm536_vm2, %v437_v1  ;;  %v457_v0 = vpop.permute.xlu2 %456  ;;  %v809_v1 = vld [vmem:[%s9665_s0 + $0xab] sm:$0xff] }
  0xde   :  { %540 = vst.msk [vmem:[#allocation2 + $0x18] sm:$0xff] %vm536_vm2, %v435_v58  ;;  %v808_v58 = vld [vmem:[%s9665_s0 + $0xa3] sm:$0xff] }
  0xdf   :  { %551 = vst.msk [vmem:[#allocation2 + $0x70] sm:$0xff] %vm536_vm2, %v457_v0 }
  0xe2   :  { %671 = vrot.lane.b32.xlu1 %v5973_v19, %s5586_s7  ;;  %669 = vrot.lane.b32.xlu0 %v5949_v12, %s5586_s7 }
  0xe3   :  { %673 = vrot.lane.b32.xlu2 %v5968_v18, %s5586_s7 }
  0xe4   :  { %v443_v10 = vpop.permute.xlu1 %442  ;;  %v441_v3 = vpop.permute.xlu0 %440 }
  0xe5   :  { %544 = vst.msk [vmem:[#allocation2 + $0x38] sm:$0xff] %vm536_vm2, %v443_v10  ;;  %v463_v9 = vpop.permute.xlu2 %462  ;;  %v810_v10 = vld [vmem:[%s9665_s0 + $0xb3] sm:$0xff] }
  0xe6   :  { %543 = vst.msk [vmem:[#allocation2 + $0x30] sm:$0xff] %vm536_vm2, %v441_v3 }
  0xe7   :  { %554 = vst.msk [vmem:[#allocation2 + $0x88] sm:$0xff] %vm536_vm2, %v463_v9 }
  0xea   :  { %677 = vrot.lane.b32.xlu1 %v6009_v28, %s5586_s7  ;;  %675 = vrot.lane.b32.xlu0 %v5985_v21, %s5586_s7 }
  0xeb   :  { %679 = vrot.lane.b32.xlu2 %v6004_v27, %s5586_s7 }
  0xec   :  { %v449_v19 = vpop.permute.xlu1 %448  ;;  %v447_v12 = vpop.permute.xlu0 %446 }
  0xed   :  { %547 = vst.msk [vmem:[#allocation2 + $0x50] sm:$0xff] %vm536_vm2, %v449_v19  ;;  %v469_v18 = vpop.permute.xlu2 %468  ;;  %v812_v19 = vld [vmem:[%s9665_s0 + $0xc3] sm:$0xff] }
  0xee   :  { %546 = vst.msk [vmem:[#allocation2 + $0x48] sm:$0xff] %vm536_vm2, %v447_v12  ;;  %v811_v12 = vld [vmem:[%s9665_s0 + $0xbb] sm:$0xff] }
  0xef   :  { %557 = vst.msk [vmem:[#allocation2 + $0xa0] sm:$0xff] %vm536_vm2, %v469_v18 }
  0xf2   :  { %683 = vrot.lane.b32.xlu1 %v6045_v37, %s5586_s7  ;;  %681 = vrot.lane.b32.xlu0 %v6021_v30, %s5586_s7 }
  0xf3   :  { %685 = vrot.lane.b32.xlu2 %v6040_v36, %s5586_s7 }
  0xf4   :  { %v455_v28 = vpop.permute.xlu1 %454  ;;  %v453_v21 = vpop.permute.xlu0 %452 }
  0xf5   :  { %550 = vst.msk [vmem:[#allocation2 + $0x68] sm:$0xff] %vm536_vm2, %v455_v28  ;;  %v475_v27 = vpop.permute.xlu2 %474  ;;  %v813_v28 = vld [vmem:[%s9665_s0 + $0xcb] sm:$0xff] }
  0xf6   :  { %549 = vst.msk [vmem:[#allocation2 + $0x60] sm:$0xff] %vm536_vm2, %v453_v21 }
  0xf7   :  { %560 = vst.msk [vmem:[#allocation2 + $0xb8] sm:$0xff] %vm536_vm2, %v475_v27 }
  0xfa   :  { %689 = vrot.lane.b32.xlu1 %v6081_v47, %s5586_s7  ;;  %687 = vrot.lane.b32.xlu0 %v6057_v39, %s5586_s7 }
  0xfb   :  { %691 = vrot.lane.b32.xlu2 %v6076_v46, %s5586_s7  ;;  %v607_v46 = vld [vmem:[%s9665_s0 + $0x122] sm:$0xff] }
  0xfc   :  { %v461_v35 = vpop.permute.xlu1 %460  ;;  %v459_v30 = vpop.permute.xlu0 %458 }
  0xfd   :  { %553 = vst.msk [vmem:[#allocation2 + $0x80] sm:$0xff] %vm536_vm2, %v461_v35  ;;  %v481_v36 = vpop.permute.xlu2 %480  ;;  %v815_v35 = vld [vmem:[%s9665_s0 + $0xdb] sm:$0xff] }
  0xfe   :  { %552 = vst.msk [vmem:[#allocation2 + $0x78] sm:$0xff] %vm536_vm2, %v459_v30  ;;  %v814_v30 = vld [vmem:[%s9665_s0 + $0xd3] sm:$0xff] }
  0xff   :  { %563 = vst.msk [vmem:[#allocation2 + $0xd0] sm:$0xff] %vm536_vm2, %v481_v36 }
 0x102   :  { %695 = vrot.lane.b32.xlu1 %v6117_v62, %s5586_s7  ;;  %693 = vrot.lane.b32.xlu0 %v6093_v52, %s5586_s7 }
 0x103   :  { %697 = vrot.lane.b32.xlu2 %v6112_v61, %s5586_s7 }
 0x104   :  { %v467_v37 = vpop.permute.xlu1 %466  ;;  %v465_v38 = vpop.permute.xlu0 %464 }
 0x105   :  { %556 = vst.msk [vmem:[#allocation2 + $0x98] sm:$0xff] %vm536_vm2, %v467_v37  ;;  %v487_v39 = vpop.permute.xlu2 %486  ;;  %v816_v37 = vld [vmem:[%s9665_s0 + $0xe3] sm:$0xff] }
 0x106   :  { %555 = vst.msk [vmem:[#allocation2 + $0x90] sm:$0xff] %vm536_vm2, %v465_v38 }
 0x107   :  { %566 = vst.msk [vmem:[#allocation2 + $0xe8] sm:$0xff] %vm536_vm2, %v487_v39 }
 0x10a   :  { %701 = vrot.lane.b32.xlu1 %v6153_v13, %s5586_s7  ;;  %699 = vrot.lane.b32.xlu0 %v6129_v2, %s5586_s7  ;;  %v793_v2 = vld [vmem:[%s9665_s0 + $0x2b] sm:$0xff] }
 0x10b   :  { %703 = vrot.lane.b32.xlu2 %v6148_v11, %s5586_s7  ;;  %v796_v11 = vld [vmem:[%s9665_s0 + $0x43] sm:$0xff] }
 0x10c   :  { %v473_v40 = vpop.permute.xlu1 %472  ;;  %v471_v41 = vpop.permute.xlu0 %470 }
 0x10d   :  { %559 = vst.msk [vmem:[#allocation2 + $0xb0] sm:$0xff] %vm536_vm2, %v473_v40  ;;  %v493_v42 = vpop.permute.xlu2 %492  ;;  %v818_v40 = vld [vmem:[%s9665_s0 + $0xf3] sm:$0xff] }
 0x10e   :  { %558 = vst.msk [vmem:[#allocation2 + $0xa8] sm:$0xff] %vm536_vm2, %v471_v41  ;;  %v817_v41 = vld [vmem:[%s9665_s0 + $0xeb] sm:$0xff] }
 0x10f   :  { %569 = vst.msk [vmem:[#allocation2 + $0x100] sm:$0xff] %vm536_vm2, %v493_v42 }
 0x112   :  { %707 = vrot.lane.b32.xlu1 %v6183_v23, %s5586_s7  ;;  %705 = vrot.lane.b32.xlu0 %v6165_v15, %s5586_s7  ;;  %v801_v23 = vld [vmem:[%s9665_s0 + $0x6b] sm:$0xff] }
 0x113   :  { %709 = vrot.lane.b32.xlu2 %v6178_v22, %s5586_s7 }
 0x114   :  { %v479_v43 = vpop.permute.xlu1 %478  ;;  %v477_v45 = vpop.permute.xlu0 %476 }
 0x115   :  { %562 = vst.msk [vmem:[#allocation2 + $0xc8] sm:$0xff] %vm536_vm2, %v479_v43  ;;  %v499_v47 = vpop.permute.xlu2 %498  ;;  %v819_v43 = vld [vmem:[%s9665_s0 + $0xfb] sm:$0xff] }
 0x116   :  { %561 = vst.msk [vmem:[#allocation2 + $0xc0] sm:$0xff] %vm536_vm2, %v477_v45 }
 0x117   :  { %572 = vst.msk [vmem:[#allocation2 + $0x118] sm:$0xff] %vm536_vm2, %v499_v47  ;;  %v821_v47 = vld [vmem:[%s9665_s0 + $0x10b] sm:$0xff] }
 0x11a   :  { %713 = vrot.lane.b32.xlu1 %v607_v46, %s5586_s7  ;;  %711 = vrot.lane.b32.xlu0 %v6193_v25, %s5586_s7 }
 0x11b   :  { %715 = vrot.lane.b32.xlu2 %v608_v50, %s5586_s7  ;;  %v820_v50 = vld [vmem:[%s9665_s0 + $0x103] sm:$0xff] }
 0x11c   :  { %v485_v52 = vpop.permute.xlu1 %484  ;;  %v483_v53 = vpop.permute.xlu0 %482 }
 0x11d   :  { %565 = vst.msk [vmem:[#allocation2 + $0xe0] sm:$0xff] %vm536_vm2, %v485_v52  ;;  %v650_v59 = vpop.permute.xlu2 %649 }
 0x11e   :  { %564 = vst.msk [vmem:[#allocation2 + $0xd8] sm:$0xff] %vm536_vm2, %v483_v53  ;;  %v822_v53 = vld [vmem:[%s9665_s0 + $0x113] sm:$0xff] }
 0x11f   :  { %756 = vst.msk [vmem:[#allocation2 + $0x10] sm:$0xff] %vm753_vm3, %v650_v59  ;;  %v824_v59 = vld [vmem:[%s9665_s0 + $0x123] sm:$0xff] }
 0x122   :  { %864 = vrot.lane.b32.xlu1 %v791_v54, %s5587_s16  ;;  %862 = vrot.lane.b32.xlu0 %v790_v57, %s5587_s16 }
 0x123   :  { %866 = vrot.lane.b32.xlu2 %v792_v60, %s5587_s16  ;;  %v823_v60 = vld [vmem:[%s9665_s0 + $0x11b] sm:$0xff] }
 0x124   :  { %v491_v61 = vpop.permute.xlu1 %490  ;;  %v489_v62 = vpop.permute.xlu0 %488 }
 0x125   :  { %568 = vst.msk [vmem:[#allocation2 + $0xf8] sm:$0xff] %vm536_vm2, %v491_v61  ;;  %v656_v4 = vpop.permute.xlu2 %655 }
 0x126   :  { %567 = vst.msk [vmem:[#allocation2 + $0xf0] sm:$0xff] %vm536_vm2, %v489_v62  ;;  %v825_v62 = vld [vmem:[%s9665_s0 + $0x12b] sm:$0xff] }
 0x127   :  { %759 = vst.msk [vmem:[#allocation2 + $0x28] sm:$0xff] %vm753_vm3, %v656_v4  ;;  %v1008_v4 = vld [vmem:[%s9665_s0 + $0x1c] sm:$0xff] }
 0x12a   :  { %870 = vrot.lane.b32.xlu1 %v794_v63, %s5587_s16  ;;  %868 = vrot.lane.b32.xlu0 %v793_v2, %s5587_s16 }
 0x12b   :  { %872 = vrot.lane.b32.xlu2 %v795_v5, %s5587_s16  ;;  %v1007_v5 = vld [vmem:[%s9665_s0 + $0x14] sm:$0xff] }
 0x12c   :  { %v497_v6 = vpop.permute.xlu1 %496  ;;  %v495_v7 = vpop.permute.xlu0 %494 }
 0x12d   :  { %571 = vst.msk [vmem:[#allocation2 + $0x110] sm:$0xff] %vm536_vm2, %v497_v6  ;;  %v662_v13 = vpop.permute.xlu2 %661 }
 0x12e   :  { %570 = vst.msk [vmem:[#allocation2 + $0x108] sm:$0xff] %vm536_vm2, %v495_v7  ;;  %v6503_v7 = vld [vmem:[%s9665_s0 + $0x24] sm:$0xff] }
 0x12f   :  { %762 = vst.msk [vmem:[#allocation2 + $0x40] sm:$0xff] %vm753_vm3, %v662_v13  ;;  %v6512_v13 = vld [vmem:[%s9665_s0 + $0x34] sm:$0xff] }
 0x132   :  { %876 = vrot.lane.b32.xlu1 %v797_v8, %s5587_s16  ;;  %874 = vrot.lane.b32.xlu0 %v796_v11, %s5587_s16 }
 0x133   :  { %878 = vrot.lane.b32.xlu2 %v798_v14, %s5587_s16  ;;  %v6517_v14 = vld [vmem:[%s9665_s0 + $0x2c] sm:$0xff] }
 0x134   :  { %v648_v15 = vpop.permute.xlu1 %647  ;;  %v646_v16 = vpop.permute.xlu0 %645 }
 0x135   :  { %755 = vst.msk [vmem:[#allocation2 + $0x8] sm:$0xff] %vm753_vm3, %v648_v15  ;;  %v668_v22 = vpop.permute.xlu2 %667 }
 0x136   :  { %754 = vst.msk [vmem:[#allocation2] sm:$0xff] %vm753_vm3, %v646_v16  ;;  %v6527_v16 = vld [vmem:[%s9665_s0 + $0x3c] sm:$0xff] }
 0x137   :  { %765 = vst.msk [vmem:[#allocation2 + $0x58] sm:$0xff] %vm753_vm3, %v668_v22  ;;  %v6536_v22 = vld [vmem:[%s9665_s0 + $0x4c] sm:$0xff] }
 0x13a   :  { %882 = vrot.lane.b32.xlu1 %v800_v17, %s5587_s16  ;;  %880 = vrot.lane.b32.xlu0 %v799_v20, %s5587_s16 }
 0x13b   :  { %884 = vrot.lane.b32.xlu2 %v801_v23, %s5587_s16  ;;  %v6541_v23 = vld [vmem:[%s9665_s0 + $0x44] sm:$0xff] }
 0x13c   :  { %v654_v24 = vpop.permute.xlu1 %653  ;;  %v652_v25 = vpop.permute.xlu0 %651 }
 0x13d   :  { %758 = vst.msk [vmem:[#allocation2 + $0x20] sm:$0xff] %vm753_vm3, %v654_v24  ;;  %v674_v31 = vpop.permute.xlu2 %673 }
 0x13e   :  { %757 = vst.msk [vmem:[#allocation2 + $0x18] sm:$0xff] %vm753_vm3, %v652_v25  ;;  %v6551_v25 = vld [vmem:[%s9665_s0 + $0x54] sm:$0xff] }
 0x13f   :  { %768 = vst.msk [vmem:[#allocation2 + $0x70] sm:$0xff] %vm753_vm3, %v674_v31  ;;  %v6560_v31 = vld [vmem:[%s9665_s0 + $0x64] sm:$0xff] }
 0x142   :  { %888 = vrot.lane.b32.xlu1 %v803_v26, %s5587_s16  ;;  %886 = vrot.lane.b32.xlu0 %v802_v29, %s5587_s16 }
 0x143   :  { %890 = vrot.lane.b32.xlu2 %v804_v32, %s5587_s16  ;;  %v6565_v32 = vld [vmem:[%s9665_s0 + $0x5c] sm:$0xff] }
 0x144   :  { %v660_v33 = vpop.permute.xlu1 %659  ;;  %v658_v34 = vpop.permute.xlu0 %657 }
 0x145   :  { %761 = vst.msk [vmem:[#allocation2 + $0x38] sm:$0xff] %vm753_vm3, %v660_v33  ;;  %v680_v48 = vpop.permute.xlu2 %679 }
 0x146   :  { %760 = vst.msk [vmem:[#allocation2 + $0x30] sm:$0xff] %vm753_vm3, %v658_v34  ;;  %v6575_v34 = vld [vmem:[%s9665_s0 + $0x6c] sm:$0xff] }
 0x147   :  { %771 = vst.msk [vmem:[#allocation2 + $0x88] sm:$0xff] %vm753_vm3, %v680_v48  ;;  %v6584_v48 = vld [vmem:[%s9665_s0 + $0x7c] sm:$0xff] }
 0x14a   :  { %894 = vrot.lane.b32.xlu1 %v806_v49, %s5587_s16  ;;  %892 = vrot.lane.b32.xlu0 %v805_v44, %s5587_s16 }
 0x14b   :  { %896 = vrot.lane.b32.xlu2 %v807_v56, %s5587_s16  ;;  %v6589_v56 = vld [vmem:[%s9665_s0 + $0x74] sm:$0xff] }
 0x14c   :  { %v666_v51 = vpop.permute.xlu1 %665  ;;  %v664_v55 = vpop.permute.xlu0 %663 }
 0x14d   :  { %764 = vst.msk [vmem:[#allocation2 + $0x50] sm:$0xff] %vm753_vm3, %v666_v51  ;;  %v686_v0 = vpop.permute.xlu2 %685 }
 0x14e   :  { %763 = vst.msk [vmem:[#allocation2 + $0x48] sm:$0xff] %vm753_vm3, %v664_v55  ;;  %v6599_v55 = vld [vmem:[%s9665_s0 + $0x84] sm:$0xff] }
 0x14f   :  { %774 = vst.msk [vmem:[#allocation2 + $0xa0] sm:$0xff] %vm753_vm3, %v686_v0  ;;  %v6608_v0 = vld [vmem:[%s9665_s0 + $0x94] sm:$0xff] }
 0x152   :  { %900 = vrot.lane.b32.xlu1 %v809_v1, %s5587_s16  ;;  %898 = vrot.lane.b32.xlu0 %v808_v58, %s5587_s16 }
 0x153   :  { %902 = vrot.lane.b32.xlu2 %v810_v10, %s5587_s16  ;;  %v6613_v10 = vld [vmem:[%s9665_s0 + $0x8c] sm:$0xff] }
 0x154   :  { %v672_v3 = vpop.permute.xlu1 %671  ;;  %v670_v9 = vpop.permute.xlu0 %669 }
 0x155   :  { %767 = vst.msk [vmem:[#allocation2 + $0x68] sm:$0xff] %vm753_vm3, %v672_v3  ;;  %v692_v18 = vpop.permute.xlu2 %691 }
 0x156   :  { %766 = vst.msk [vmem:[#allocation2 + $0x60] sm:$0xff] %vm753_vm3, %v670_v9  ;;  %v6623_v9 = vld [vmem:[%s9665_s0 + $0x9c] sm:$0xff] }
 0x157   :  { %777 = vst.msk [vmem:[#allocation2 + $0xb8] sm:$0xff] %vm753_vm3, %v692_v18  ;;  %v6632_v18 = vld [vmem:[%s9665_s0 + $0xac] sm:$0xff] }
 0x15a   :  { %906 = vrot.lane.b32.xlu1 %v812_v19, %s5587_s16  ;;  %904 = vrot.lane.b32.xlu0 %v811_v12, %s5587_s16 }
 0x15b   :  { %908 = vrot.lane.b32.xlu2 %v813_v28, %s5587_s16  ;;  %v6637_v28 = vld [vmem:[%s9665_s0 + $0xa4] sm:$0xff] }
 0x15c   :  { %v678_v21 = vpop.permute.xlu1 %677  ;;  %v676_v27 = vpop.permute.xlu0 %675 }
 0x15d   :  { %770 = vst.msk [vmem:[#allocation2 + $0x80] sm:$0xff] %vm753_vm3, %v678_v21  ;;  %v698_v36 = vpop.permute.xlu2 %697 }
 0x15e   :  { %769 = vst.msk [vmem:[#allocation2 + $0x78] sm:$0xff] %vm753_vm3, %v676_v27  ;;  %v6647_v27 = vld [vmem:[%s9665_s0 + $0xb4] sm:$0xff] }
 0x15f   :  { %780 = vst.msk [vmem:[#allocation2 + $0xd0] sm:$0xff] %vm753_vm3, %v698_v36  ;;  %v6656_v36 = vld [vmem:[%s9665_s0 + $0xc4] sm:$0xff] }
 0x162   :  { %912 = vrot.lane.b32.xlu1 %v815_v35, %s5587_s16  ;;  %910 = vrot.lane.b32.xlu0 %v814_v30, %s5587_s16 }
 0x163   :  { %914 = vrot.lane.b32.xlu2 %v816_v37, %s5587_s16  ;;  %v6661_v37 = vld [vmem:[%s9665_s0 + $0xbc] sm:$0xff] }
 0x164   :  { %v684_v38 = vpop.permute.xlu1 %683  ;;  %v682_v39 = vpop.permute.xlu0 %681 }
 0x165   :  { %773 = vst.msk [vmem:[#allocation2 + $0x98] sm:$0xff] %vm753_vm3, %v684_v38  ;;  %v704_v42 = vpop.permute.xlu2 %703 }
 0x166   :  { %772 = vst.msk [vmem:[#allocation2 + $0x90] sm:$0xff] %vm753_vm3, %v682_v39  ;;  %v6671_v39 = vld [vmem:[%s9665_s0 + $0xcc] sm:$0xff] }
 0x167   :  { %783 = vst.msk [vmem:[#allocation2 + $0xe8] sm:$0xff] %vm753_vm3, %v704_v42  ;;  %v6680_v42 = vld [vmem:[%s9665_s0 + $0xdc] sm:$0xff] }
 0x16a   :  { %918 = vrot.lane.b32.xlu1 %v818_v40, %s5587_s16  ;;  %916 = vrot.lane.b32.xlu0 %v817_v41, %s5587_s16 }
 0x16b   :  { %920 = vrot.lane.b32.xlu2 %v819_v43, %s5587_s16  ;;  %v6685_v43 = vld [vmem:[%s9665_s0 + $0xd4] sm:$0xff] }
 0x16c   :  { %v690_v45 = vpop.permute.xlu1 %689  ;;  %v688_v46 = vpop.permute.xlu0 %687 }
 0x16d   :  { %776 = vst.msk [vmem:[#allocation2 + $0xb0] sm:$0xff] %vm753_vm3, %v690_v45  ;;  %v710_v52 = vpop.permute.xlu2 %709 }
 0x16e   :  { %775 = vst.msk [vmem:[#allocation2 + $0xa8] sm:$0xff] %vm753_vm3, %v688_v46  ;;  %v6695_v46 = vld [vmem:[%s9665_s0 + $0xe4] sm:$0xff] }
 0x16f   :  { %786 = vst.msk [vmem:[#allocation2 + $0x100] sm:$0xff] %vm753_vm3, %v710_v52  ;;  %v6704_v52 = vld [vmem:[%s9665_s0 + $0xf4] sm:$0xff] }
 0x172   :  { %924 = vrot.lane.b32.xlu1 %v821_v47, %s5587_s16  ;;  %922 = vrot.lane.b32.xlu0 %v820_v50, %s5587_s16 }
 0x173   :  { %926 = vrot.lane.b32.xlu2 %v822_v53, %s5587_s16  ;;  %v6709_v53 = vld [vmem:[%s9665_s0 + $0xec] sm:$0xff] }
 0x174   :  { %v696_v54 = vpop.permute.xlu1 %695  ;;  %v694_v57 = vpop.permute.xlu0 %693 }
 0x175   :  { %779 = vst.msk [vmem:[#allocation2 + $0xc8] sm:$0xff] %vm753_vm3, %v696_v54  ;;  %v716_v61 = vpop.permute.xlu2 %715 }
 0x176   :  { %778 = vst.msk [vmem:[#allocation2 + $0xc0] sm:$0xff] %vm753_vm3, %v694_v57  ;;  %v6719_v57 = vld [vmem:[%s9665_s0 + $0xfc] sm:$0xff] }
 0x177   :  { %789 = vst.msk [vmem:[#allocation2 + $0x118] sm:$0xff] %vm753_vm3, %v716_v61  ;;  %v6728_v61 = vld [vmem:[%s9665_s0 + $0x10c] sm:$0xff] }
 0x17a   :  { %930 = vrot.lane.b32.xlu1 %v824_v59, %s5587_s16  ;;  %928 = vrot.lane.b32.xlu0 %v823_v60, %s5587_s16 }
 0x17b   :  { %932 = vrot.lane.b32.xlu2 %v825_v62, %s5587_s16  ;;  %v6733_v62 = vld [vmem:[%s9665_s0 + $0x104] sm:$0xff] }
 0x17c   :  { %v702_v63 = vpop.permute.xlu1 %701  ;;  %v700_v2 = vpop.permute.xlu0 %699 }
 0x17d   :  { %782 = vst.msk [vmem:[#allocation2 + $0xe0] sm:$0xff] %vm753_vm3, %v702_v63  ;;  %v867_v6 = vpop.permute.xlu2 %866 }
 0x17e   :  { %781 = vst.msk [vmem:[#allocation2 + $0xd8] sm:$0xff] %vm753_vm3, %v700_v2  ;;  %v6743_v2 = vld [vmem:[%s9665_s0 + $0x114] sm:$0xff] }
 0x17f   :  { %973 = vst.msk [vmem:[#allocation2 + $0x10] sm:$0xff] %vm970_vm4, %v867_v6  ;;  %v6752_v6 = vld [vmem:[%s9665_s0 + $0x124] sm:$0xff] }
 0x182   :  { %1081 = vrot.lane.b32.xlu1 %v1008_v4, %s5588_s23  ;;  %1079 = vrot.lane.b32.xlu0 %v1007_v5, %s5588_s23 }
 0x183   :  { %1083 = vrot.lane.b32.xlu2 %v6503_v7, %s5588_s23 }
 0x184   :  { %v708_v8 = vpop.permute.xlu1 %707  ;;  %v706_v11 = vpop.permute.xlu0 %705 }
 0x185   :  { %785 = vst.msk [vmem:[#allocation2 + $0xf8] sm:$0xff] %vm753_vm3, %v708_v8  ;;  %v873_v15 = vpop.permute.xlu2 %872  ;;  %v6757_v8 = vld [vmem:[%s9665_s0 + $0x11c] sm:$0xff] }
 0x186   :  { %784 = vst.msk [vmem:[#allocation2 + $0xf0] sm:$0xff] %vm753_vm3, %v706_v11 }
 0x187   :  { %976 = vst.msk [vmem:[#allocation2 + $0x28] sm:$0xff] %vm970_vm4, %v873_v15  ;;  %v6767_v15 = vld [vmem:[%s9665_s0 + $0x12c] sm:$0xff] }
 0x18a   :  { %1087 = vrot.lane.b32.xlu1 %v6512_v13, %s5588_s23  ;;  %1085 = vrot.lane.b32.xlu0 %v6517_v14, %s5588_s23 }
 0x18b   :  { %1089 = vrot.lane.b32.xlu2 %v6527_v16, %s5588_s23 }
 0x18c   :  { %v714_v17 = vpop.permute.xlu1 %713  ;;  %v712_v20 = vpop.permute.xlu0 %711 }
 0x18d   :  { %788 = vst.msk [vmem:[#allocation2 + $0x110] sm:$0xff] %vm753_vm3, %v714_v17  ;;  %v879_v24 = vpop.permute.xlu2 %878 }
 0x18e   :  { %787 = vst.msk [vmem:[#allocation2 + $0x108] sm:$0xff] %vm753_vm3, %v712_v20 }
 0x18f   :  { %979 = vst.msk [vmem:[#allocation2 + $0x40] sm:$0xff] %vm970_vm4, %v879_v24 }
 0x192   :  { %1093 = vrot.lane.b32.xlu1 %v6536_v22, %s5588_s23  ;;  %1091 = vrot.lane.b32.xlu0 %v6541_v23, %s5588_s23 }
 0x193   :  { %1095 = vrot.lane.b32.xlu2 %v6551_v25, %s5588_s23 }
 0x194   :  { %v865_v26 = vpop.permute.xlu1 %864  ;;  %v863_v29 = vpop.permute.xlu0 %862 }
 0x195   :  { %972 = vst.msk [vmem:[#allocation2 + $0x8] sm:$0xff] %vm970_vm4, %v865_v26  ;;  %v885_v33 = vpop.permute.xlu2 %884 }
 0x196   :  { %971 = vst.msk [vmem:[#allocation2] sm:$0xff] %vm970_vm4, %v863_v29 }
 0x197   :  { %982 = vst.msk [vmem:[#allocation2 + $0x58] sm:$0xff] %vm970_vm4, %v885_v33 }
 0x19a   :  { %1099 = vrot.lane.b32.xlu1 %v6560_v31, %s5588_s23  ;;  %1097 = vrot.lane.b32.xlu0 %v6565_v32, %s5588_s23 }
 0x19b   :  { %1101 = vrot.lane.b32.xlu2 %v6575_v34, %s5588_s23 }
 0x19c   :  { %v871_v49 = vpop.permute.xlu1 %870  ;;  %v869_v44 = vpop.permute.xlu0 %868 }
 0x19d   :  { %975 = vst.msk [vmem:[#allocation2 + $0x20] sm:$0xff] %vm970_vm4, %v871_v49  ;;  %v891_v51 = vpop.permute.xlu2 %890 }
 0x19e   :  { %974 = vst.msk [vmem:[#allocation2 + $0x18] sm:$0xff] %vm970_vm4, %v869_v44 }
 0x19f   :  { %985 = vst.msk [vmem:[#allocation2 + $0x70] sm:$0xff] %vm970_vm4, %v891_v51 }
 0x1a2   :  { %1105 = vrot.lane.b32.xlu1 %v6584_v48, %s5588_s23  ;;  %1103 = vrot.lane.b32.xlu0 %v6589_v56, %s5588_s23 }
 0x1a3   :  { %1107 = vrot.lane.b32.xlu2 %v6599_v55, %s5588_s23 }
 0x1a4   :  { %v877_v1 = vpop.permute.xlu1 %876  ;;  %v875_v58 = vpop.permute.xlu0 %874 }
 0x1a5   :  { %978 = vst.msk [vmem:[#allocation2 + $0x38] sm:$0xff] %vm970_vm4, %v877_v1  ;;  %v897_v3 = vpop.permute.xlu2 %896 }
 0x1a6   :  { %977 = vst.msk [vmem:[#allocation2 + $0x30] sm:$0xff] %vm970_vm4, %v875_v58 }
 0x1a7   :  { %988 = vst.msk [vmem:[#allocation2 + $0x88] sm:$0xff] %vm970_vm4, %v897_v3 }
 0x1aa   :  { %1111 = vrot.lane.b32.xlu1 %v6608_v0, %s5588_s23  ;;  %1109 = vrot.lane.b32.xlu0 %v6613_v10, %s5588_s23 }
 0x1ab   :  { %1113 = vrot.lane.b32.xlu2 %v6623_v9, %s5588_s23 }
 0x1ac   :  { %v883_v19 = vpop.permute.xlu1 %882  ;;  %v881_v12 = vpop.permute.xlu0 %880 }
 0x1ad   :  { %981 = vst.msk [vmem:[#allocation2 + $0x50] sm:$0xff] %vm970_vm4, %v883_v19  ;;  %v903_v21 = vpop.permute.xlu2 %902 }
 0x1ae   :  { %980 = vst.msk [vmem:[#allocation2 + $0x48] sm:$0xff] %vm970_vm4, %v881_v12 }
 0x1af   :  { %991 = vst.msk [vmem:[#allocation2 + $0xa0] sm:$0xff] %vm970_vm4, %v903_v21 }
 0x1b2   :  { %1117 = vrot.lane.b32.xlu1 %v6632_v18, %s5588_s23  ;;  %1115 = vrot.lane.b32.xlu0 %v6637_v28, %s5588_s23 }
 0x1b3   :  { %1119 = vrot.lane.b32.xlu2 %v6647_v27, %s5588_s23 }
 0x1b4   :  { %v889_v35 = vpop.permute.xlu1 %888  ;;  %v887_v30 = vpop.permute.xlu0 %886 }
 0x1b5   :  { %984 = vst.msk [vmem:[#allocation2 + $0x68] sm:$0xff] %vm970_vm4, %v889_v35  ;;  %v909_v38 = vpop.permute.xlu2 %908 }
 0x1b6   :  { %983 = vst.msk [vmem:[#allocation2 + $0x60] sm:$0xff] %vm970_vm4, %v887_v30  ;;  %v1258_v30 = vld [vmem:[%s9665_s0 + $0x134] sm:$0xff] }
 0x1b7   :  { %994 = vst.msk [vmem:[#allocation2 + $0xb8] sm:$0xff] %vm970_vm4, %v909_v38 }
 0x1ba   :  { %1123 = vrot.lane.b32.xlu1 %v6656_v36, %s5588_s23  ;;  %1121 = vrot.lane.b32.xlu0 %v6661_v37, %s5588_s23 }
 0x1bb   :  { %1125 = vrot.lane.b32.xlu2 %v6671_v39, %s5588_s23 }
 0x1bc   :  { %v895_v40 = vpop.permute.xlu1 %894  ;;  %v893_v41 = vpop.permute.xlu0 %892 }
 0x1bd   :  { %987 = vst.msk [vmem:[#allocation2 + $0x80] sm:$0xff] %vm970_vm4, %v895_v40  ;;  %v915_v45 = vpop.permute.xlu2 %914  ;;  %v1442_v40 = vld [vmem:[%s9665_s0 + $0x2d] sm:$0xff] }
 0x1be   :  { %986 = vst.msk [vmem:[#allocation2 + $0x78] sm:$0xff] %vm970_vm4, %v893_v41  ;;  %v1441_v41 = vld [vmem:[%s9665_s0 + $0x25] sm:$0xff] }
 0x1bf   :  { %997 = vst.msk [vmem:[#allocation2 + $0xd0] sm:$0xff] %vm970_vm4, %v915_v45 }
 0x1c2   :  { %1129 = vrot.lane.b32.xlu1 %v6680_v42, %s5588_s23  ;;  %1127 = vrot.lane.b32.xlu0 %v6685_v43, %s5588_s23 }
 0x1c3   :  { %1131 = vrot.lane.b32.xlu2 %v6695_v46, %s5588_s23 }
 0x1c4   :  { %v901_v47 = vpop.permute.xlu1 %900  ;;  %v899_v50 = vpop.permute.xlu0 %898 }
 0x1c5   :  { %990 = vst.msk [vmem:[#allocation2 + $0x98] sm:$0xff] %vm970_vm4, %v901_v47  ;;  %v921_v54 = vpop.permute.xlu2 %920  ;;  %v1445_v47 = vld [vmem:[%s9665_s0 + $0x45] sm:$0xff] }
 0x1c6   :  { %989 = vst.msk [vmem:[#allocation2 + $0x90] sm:$0xff] %vm970_vm4, %v899_v50  ;;  %v1444_v50 = vld [vmem:[%s9665_s0 + $0x3d] sm:$0xff] }
 0x1c7   :  { %1000 = vst.msk [vmem:[#allocation2 + $0xe8] sm:$0xff] %vm970_vm4, %v921_v54 }
 0x1ca   :  { %1135 = vrot.lane.b32.xlu1 %v6704_v52, %s5588_s23  ;;  %1133 = vrot.lane.b32.xlu0 %v6709_v53, %s5588_s23 }
 0x1cb   :  { %1137 = vrot.lane.b32.xlu2 %v6719_v57, %s5588_s23 }
 0x1cc   :  { %v907_v59 = vpop.permute.xlu1 %906  ;;  %v905_v60 = vpop.permute.xlu0 %904 }
 0x1cd   :  { %993 = vst.msk [vmem:[#allocation2 + $0xb0] sm:$0xff] %vm970_vm4, %v907_v59  ;;  %v927_v63 = vpop.permute.xlu2 %926  ;;  %v1448_v59 = vld [vmem:[%s9665_s0 + $0x5d] sm:$0xff] }
 0x1ce   :  { %992 = vst.msk [vmem:[#allocation2 + $0xa8] sm:$0xff] %vm970_vm4, %v905_v60  ;;  %v1447_v60 = vld [vmem:[%s9665_s0 + $0x55] sm:$0xff] }
 0x1cf   :  { %1003 = vst.msk [vmem:[#allocation2 + $0x100] sm:$0xff] %vm970_vm4, %v927_v63 }
 0x1d2   :  { %1141 = vrot.lane.b32.xlu1 %v6728_v61, %s5588_s23  ;;  %1139 = vrot.lane.b32.xlu0 %v6733_v62, %s5588_s23 }
 0x1d3   :  { %1143 = vrot.lane.b32.xlu2 %v6743_v2, %s5588_s23 }
 0x1d4   :  { %v913_v4 = vpop.permute.xlu1 %912  ;;  %v911_v5 = vpop.permute.xlu0 %910 }
 0x1d5   :  { %996 = vst.msk [vmem:[#allocation2 + $0xc8] sm:$0xff] %vm970_vm4, %v913_v4  ;;  %v933_v11 = vpop.permute.xlu2 %932  ;;  %v1451_v4 = vld [vmem:[%s9665_s0 + $0x75] sm:$0xff] }
 0x1d6   :  { %995 = vst.msk [vmem:[#allocation2 + $0xc0] sm:$0xff] %vm970_vm4, %v911_v5  ;;  %v1450_v5 = vld [vmem:[%s9665_s0 + $0x6d] sm:$0xff] }
 0x1d7   :  { %1006 = vst.msk [vmem:[#allocation2 + $0x118] sm:$0xff] %vm970_vm4, %v933_v11 }
 0x1da   :  { %1147 = vrot.lane.b32.xlu1 %v6752_v6, %s5588_s23  ;;  %1145 = vrot.lane.b32.xlu0 %v6757_v8, %s5588_s23 }
 0x1db   :  { %1149 = vrot.lane.b32.xlu2 %v6767_v15, %s5588_s23  ;;  %s5591_s23 = smov 32  }
 0x1dc   :  { %v919_v17 = vpop.permute.xlu1 %918  ;;  %v917_v20 = vpop.permute.xlu0 %916 }
 0x1dd   :  { %999 = vst.msk [vmem:[#allocation2 + $0xe0] sm:$0xff] %vm970_vm4, %v919_v17  ;;  %v1084_v24 = vpop.permute.xlu2 %1083  ;;  %v1454_v17 = vld [vmem:[%s9665_s0 + $0x8d] sm:$0xff] }
 0x1de   :  { %998 = vst.msk [vmem:[#allocation2 + $0xd8] sm:$0xff] %vm970_vm4, %v917_v20  ;;  %v1453_v20 = vld [vmem:[%s9665_s0 + $0x85] sm:$0xff] }
 0x1df   :  { %1190 = vst.msk [vmem:[#allocation2 + $0x10] sm:$0xff] %vm1187_vm5, %v1084_v24 }
 0x1e2   :  { %1298 = vrot.lane.b32.xlu1 %v6517_v14, %s5589_s30  ;;  %1296 = vrot.lane.b32.xlu0 %v6503_v7, %s5589_s30 }
 0x1e3   :  { %1300 = vrot.lane.b32.xlu2 %v6512_v13, %s5589_s30 }
 0x1e4   :  { %v925_v26 = vpop.permute.xlu1 %924  ;;  %v923_v29 = vpop.permute.xlu0 %922 }
 0x1e5   :  { %1002 = vst.msk [vmem:[#allocation2 + $0xf8] sm:$0xff] %vm970_vm4, %v925_v26  ;;  %v1090_v33 = vpop.permute.xlu2 %1089  ;;  %v1455_v26 = vld [vmem:[%s9665_s0 + $0x95] sm:$0xff] }
 0x1e6   :  { %1001 = vst.msk [vmem:[#allocation2 + $0xf0] sm:$0xff] %vm970_vm4, %v923_v29 }
 0x1e7   :  { %1193 = vst.msk [vmem:[#allocation2 + $0x28] sm:$0xff] %vm1187_vm5, %v1090_v33 }
 0x1ea   :  { %1304 = vrot.lane.b32.xlu1 %v6541_v23, %s5589_s30  ;;  %1302 = vrot.lane.b32.xlu0 %v6527_v16, %s5589_s30 }
 0x1eb   :  { %1306 = vrot.lane.b32.xlu2 %v6536_v22, %s5589_s30 }
 0x1ec   :  { %v931_v14 = vpop.permute.xlu1 %930  ;;  %v929_v7 = vpop.permute.xlu0 %928 }
 0x1ed   :  { %1005 = vst.msk [vmem:[#allocation2 + $0x110] sm:$0xff] %vm970_vm4, %v931_v14  ;;  %v1096_v13 = vpop.permute.xlu2 %1095  ;;  %v1457_v14 = vld [vmem:[%s9665_s0 + $0xa5] sm:$0xff] }
 0x1ee   :  { %1004 = vst.msk [vmem:[#allocation2 + $0x108] sm:$0xff] %vm970_vm4, %v929_v7  ;;  %v1456_v7 = vld [vmem:[%s9665_s0 + $0x9d] sm:$0xff] }
 0x1ef   :  { %1196 = vst.msk [vmem:[#allocation2 + $0x40] sm:$0xff] %vm1187_vm5, %v1096_v13 }
 0x1f2   :  { %1310 = vrot.lane.b32.xlu1 %v6565_v32, %s5589_s30  ;;  %1308 = vrot.lane.b32.xlu0 %v6551_v25, %s5589_s30 }
 0x1f3   :  { %1312 = vrot.lane.b32.xlu2 %v6560_v31, %s5589_s30 }
 0x1f4   :  { %v1082_v23 = vpop.permute.xlu1 %1081  ;;  %v1080_v16 = vpop.permute.xlu0 %1079 }
 0x1f5   :  { %1189 = vst.msk [vmem:[#allocation2 + $0x8] sm:$0xff] %vm1187_vm5, %v1082_v23  ;;  %v1102_v22 = vpop.permute.xlu2 %1101  ;;  %v1458_v23 = vld [vmem:[%s9665_s0 + $0xad] sm:$0xff] }
 0x1f6   :  { %1188 = vst.msk [vmem:[#allocation2] sm:$0xff] %vm1187_vm5, %v1080_v16 }
 0x1f7   :  { %1199 = vst.msk [vmem:[#allocation2 + $0x58] sm:$0xff] %vm1187_vm5, %v1102_v22 }
 0x1fa   :  { %1316 = vrot.lane.b32.xlu1 %v6589_v56, %s5589_s30  ;;  %1314 = vrot.lane.b32.xlu0 %v6575_v34, %s5589_s30 }
 0x1fb   :  { %1318 = vrot.lane.b32.xlu2 %v6584_v48, %s5589_s30 }
 0x1fc   :  { %v1088_v32 = vpop.permute.xlu1 %1087  ;;  %v1086_v25 = vpop.permute.xlu0 %1085 }
 0x1fd   :  { %1192 = vst.msk [vmem:[#allocation2 + $0x20] sm:$0xff] %vm1187_vm5, %v1088_v32  ;;  %v1108_v31 = vpop.permute.xlu2 %1107  ;;  %v1460_v32 = vld [vmem:[%s9665_s0 + $0xbd] sm:$0xff] }
 0x1fe   :  { %1191 = vst.msk [vmem:[#allocation2 + $0x18] sm:$0xff] %vm1187_vm5, %v1086_v25  ;;  %v1459_v25 = vld [vmem:[%s9665_s0 + $0xb5] sm:$0xff] }
 0x1ff   :  { %1202 = vst.msk [vmem:[#allocation2 + $0x70] sm:$0xff] %vm1187_vm5, %v1108_v31 }
 0x202   :  { %1322 = vrot.lane.b32.xlu1 %v6613_v10, %s5589_s30  ;;  %1320 = vrot.lane.b32.xlu0 %v6599_v55, %s5589_s30 }
 0x203   :  { %1324 = vrot.lane.b32.xlu2 %v6608_v0, %s5589_s30 }
 0x204   :  { %v1094_v49 = vpop.permute.xlu1 %1093  ;;  %v1092_v34 = vpop.permute.xlu0 %1091 }
 0x205   :  { %1195 = vst.msk [vmem:[#allocation2 + $0x38] sm:$0xff] %vm1187_vm5, %v1094_v49  ;;  %v1114_v44 = vpop.permute.xlu2 %1113  ;;  %v1461_v49 = vld [vmem:[%s9665_s0 + $0xc5] sm:$0xff] }
 0x206   :  { %1194 = vst.msk [vmem:[#allocation2 + $0x30] sm:$0xff] %vm1187_vm5, %v1092_v34 }
 0x207   :  { %1205 = vst.msk [vmem:[#allocation2 + $0x88] sm:$0xff] %vm1187_vm5, %v1114_v44 }
 0x20a   :  { %1328 = vrot.lane.b32.xlu1 %v6637_v28, %s5589_s30  ;;  %1326 = vrot.lane.b32.xlu0 %v6623_v9, %s5589_s30 }
 0x20b   :  { %1330 = vrot.lane.b32.xlu2 %v6632_v18, %s5589_s30 }
 0x20c   :  { %v1100_v48 = vpop.permute.xlu1 %1099  ;;  %v1098_v56 = vpop.permute.xlu0 %1097 }
 0x20d   :  { %1198 = vst.msk [vmem:[#allocation2 + $0x50] sm:$0xff] %vm1187_vm5, %v1100_v48  ;;  %v1120_v51 = vpop.permute.xlu2 %1119  ;;  %v1463_v48 = vld [vmem:[%s9665_s0 + $0xd5] sm:$0xff] }
 0x20e   :  { %1197 = vst.msk [vmem:[#allocation2 + $0x48] sm:$0xff] %vm1187_vm5, %v1098_v56  ;;  %v1462_v56 = vld [vmem:[%s9665_s0 + $0xcd] sm:$0xff] }
 0x20f   :  { %1208 = vst.msk [vmem:[#allocation2 + $0xa0] sm:$0xff] %vm1187_vm5, %v1120_v51 }
 0x212   :  { %1334 = vrot.lane.b32.xlu1 %v6661_v37, %s5589_s30  ;;  %1332 = vrot.lane.b32.xlu0 %v6647_v27, %s5589_s30  ;;  %v1259_v37 = vld [vmem:[%s9665_s0 + $0x13c] sm:$0xff] }
 0x213   :  { %1336 = vrot.lane.b32.xlu2 %v6656_v36, %s5589_s30 }
 0x214   :  { %v1106_v55 = vpop.permute.xlu1 %1105  ;;  %v1104_v1 = vpop.permute.xlu0 %1103 }
 0x215   :  { %1201 = vst.msk [vmem:[#allocation2 + $0x68] sm:$0xff] %vm1187_vm5, %v1106_v55  ;;  %v1126_v58 = vpop.permute.xlu2 %1125  ;;  %v1464_v55 = vld [vmem:[%s9665_s0 + $0xdd] sm:$0xff] }
 0x216   :  { %1200 = vst.msk [vmem:[#allocation2 + $0x60] sm:$0xff] %vm1187_vm5, %v1104_v1 }
 0x217   :  { %1211 = vst.msk [vmem:[#allocation2 + $0xb8] sm:$0xff] %vm1187_vm5, %v1126_v58 }
 0x21a   :  { %1340 = vrot.lane.b32.xlu1 %v6685_v43, %s5589_s30  ;;  %1338 = vrot.lane.b32.xlu0 %v6671_v39, %s5589_s30  ;;  %v1443_v43 = vld [vmem:[%s9665_s0 + $0x35] sm:$0xff] }
 0x21b   :  { %1342 = vrot.lane.b32.xlu2 %v6680_v42, %s5589_s30 }
 0x21c   :  { %v1112_v0 = vpop.permute.xlu1 %1111  ;;  %v1110_v10 = vpop.permute.xlu0 %1109 }
 0x21d   :  { %1204 = vst.msk [vmem:[#allocation2 + $0x80] sm:$0xff] %vm1187_vm5, %v1112_v0  ;;  %v1132_v3 = vpop.permute.xlu2 %1131  ;;  %v1466_v0 = vld [vmem:[%s9665_s0 + $0xed] sm:$0xff] }
 0x21e   :  { %1203 = vst.msk [vmem:[#allocation2 + $0x78] sm:$0xff] %vm1187_vm5, %v1110_v10  ;;  %v1465_v10 = vld [vmem:[%s9665_s0 + $0xe5] sm:$0xff] }
 0x21f   :  { %1214 = vst.msk [vmem:[#allocation2 + $0xd0] sm:$0xff] %vm1187_vm5, %v1132_v3 }
 0x222   :  { %1346 = vrot.lane.b32.xlu1 %v6709_v53, %s5589_s30  ;;  %1344 = vrot.lane.b32.xlu0 %v6695_v46, %s5589_s30  ;;  %v1446_v53 = vld [vmem:[%s9665_s0 + $0x4d] sm:$0xff] }
 0x223   :  { %1348 = vrot.lane.b32.xlu2 %v6704_v52, %s5589_s30 }
 0x224   :  { %v1118_v9 = vpop.permute.xlu1 %1117  ;;  %v1116_v19 = vpop.permute.xlu0 %1115 }
 0x225   :  { %1207 = vst.msk [vmem:[#allocation2 + $0x98] sm:$0xff] %vm1187_vm5, %v1118_v9  ;;  %v1138_v12 = vpop.permute.xlu2 %1137  ;;  %v1467_v9 = vld [vmem:[%s9665_s0 + $0xf5] sm:$0xff] }
 0x226   :  { %1206 = vst.msk [vmem:[#allocation2 + $0x90] sm:$0xff] %vm1187_vm5, %v1116_v19 }
 0x227   :  { %1217 = vst.msk [vmem:[#allocation2 + $0xe8] sm:$0xff] %vm1187_vm5, %v1138_v12 }
 0x22a   :  { %1352 = vrot.lane.b32.xlu1 %v6733_v62, %s5589_s30  ;;  %1350 = vrot.lane.b32.xlu0 %v6719_v57, %s5589_s30  ;;  %v1449_v62 = vld [vmem:[%s9665_s0 + $0x65] sm:$0xff] }
 0x22b   :  { %1354 = vrot.lane.b32.xlu2 %v6728_v61, %s5589_s30 }
 0x22c   :  { %v1124_v18 = vpop.permute.xlu1 %1123  ;;  %v1122_v28 = vpop.permute.xlu0 %1121 }
 0x22d   :  { %1210 = vst.msk [vmem:[#allocation2 + $0xb0] sm:$0xff] %vm1187_vm5, %v1124_v18  ;;  %v1144_v21 = vpop.permute.xlu2 %1143  ;;  %v1469_v18 = vld [vmem:[%s9665_s0 + $0x105] sm:$0xff] }
 0x22e   :  { %1209 = vst.msk [vmem:[#allocation2 + $0xa8] sm:$0xff] %vm1187_vm5, %v1122_v28  ;;  %v1468_v28 = vld [vmem:[%s9665_s0 + $0xfd] sm:$0xff] }
 0x22f   :  { %1220 = vst.msk [vmem:[#allocation2 + $0x100] sm:$0xff] %vm1187_vm5, %v1144_v21 }
 0x232   :  { %1358 = vrot.lane.b32.xlu1 %v6757_v8, %s5589_s30  ;;  %1356 = vrot.lane.b32.xlu0 %v6743_v2, %s5589_s30  ;;  %v1452_v8 = vld [vmem:[%s9665_s0 + $0x7d] sm:$0xff] }
 0x233   :  { %1360 = vrot.lane.b32.xlu2 %v6752_v6, %s5589_s30 }
 0x234   :  { %v1130_v27 = vpop.permute.xlu1 %1129  ;;  %v1128_v35 = vpop.permute.xlu0 %1127 }
 0x235   :  { %1213 = vst.msk [vmem:[#allocation2 + $0xc8] sm:$0xff] %vm1187_vm5, %v1130_v27  ;;  %v1150_v36 = vpop.permute.xlu2 %1149  ;;  %v1470_v27 = vld [vmem:[%s9665_s0 + $0x10d] sm:$0xff] }
 0x236   :  { %1212 = vst.msk [vmem:[#allocation2 + $0xc0] sm:$0xff] %vm1187_vm5, %v1128_v35 }
 0x237   :  { %1223 = vst.msk [vmem:[#allocation2 + $0x118] sm:$0xff] %vm1187_vm5, %v1150_v36  ;;  %v1472_v36 = vld [vmem:[%s9665_s0 + $0x11d] sm:$0xff] }
 0x23a   :  { %1364 = vrot.lane.b32.xlu1 %v1258_v30, %s5589_s30  ;;  %1362 = vrot.lane.b32.xlu0 %v6767_v15, %s5589_s30 }
 0x23b   :  { %1366 = vrot.lane.b32.xlu2 %v1259_v37, %s5589_s30  ;;  %v1471_v37 = vld [vmem:[%s9665_s0 + $0x115] sm:$0xff] }
 0x23c   :  { %v1136_v38 = vpop.permute.xlu1 %1135  ;;  %v1134_v39 = vpop.permute.xlu0 %1133 }
 0x23d   :  { %1216 = vst.msk [vmem:[#allocation2 + $0xe0] sm:$0xff] %vm1187_vm5, %v1136_v38  ;;  %v1301_v42 = vpop.permute.xlu2 %1300 }
 0x23e   :  { %1215 = vst.msk [vmem:[#allocation2 + $0xd8] sm:$0xff] %vm1187_vm5, %v1134_v39  ;;  %v1473_v39 = vld [vmem:[%s9665_s0 + $0x125] sm:$0xff] }
 0x23f   :  { %1407 = vst.msk [vmem:[#allocation2 + $0x10] sm:$0xff] %vm1404_vm6, %v1301_v42  ;;  %v1475_v42 = vld [vmem:[%s9665_s0 + $0x135] sm:$0xff] }
 0x242   :  { %1515 = vrot.lane.b32.xlu1 %v1442_v40, %s5590_s14  ;;  %1513 = vrot.lane.b32.xlu0 %v1441_v41, %s5590_s14 }
 0x243   :  { %1517 = vrot.lane.b32.xlu2 %v1443_v43, %s5590_s14  ;;  %v1474_v43 = vld [vmem:[%s9665_s0 + $0x12d] sm:$0xff] }
 0x244   :  { %v1142_v45 = vpop.permute.xlu1 %1141  ;;  %v1140_v46 = vpop.permute.xlu0 %1139 }
 0x245   :  { %1219 = vst.msk [vmem:[#allocation2 + $0xf8] sm:$0xff] %vm1187_vm5, %v1142_v45  ;;  %v1307_v52 = vpop.permute.xlu2 %1306 }
 0x246   :  { %1218 = vst.msk [vmem:[#allocation2 + $0xf0] sm:$0xff] %vm1187_vm5, %v1140_v46  ;;  %v1476_v46 = vld [vmem:[%s9665_s0 + $0x13d] sm:$0xff] }
 0x247   :  { %1410 = vst.msk [vmem:[#allocation2 + $0x28] sm:$0xff] %vm1404_vm6, %v1307_v52  ;;  %v1659_v52 = vld [vmem:[%s9665_s0 + $0x2e] sm:$0xff] }
 0x24a   :  { %1521 = vrot.lane.b32.xlu1 %v1445_v47, %s5590_s14  ;;  %1519 = vrot.lane.b32.xlu0 %v1444_v50, %s5590_s14 }
 0x24b   :  { %1523 = vrot.lane.b32.xlu2 %v1446_v53, %s5590_s14  ;;  %v1658_v53 = vld [vmem:[%s9665_s0 + $0x26] sm:$0xff] }
 0x24c   :  { %v1148_v54 = vpop.permute.xlu1 %1147  ;;  %v1146_v57 = vpop.permute.xlu0 %1145 }
 0x24d   :  { %1222 = vst.msk [vmem:[#allocation2 + $0x110] sm:$0xff] %vm1187_vm5, %v1148_v54  ;;  %v1313_v61 = vpop.permute.xlu2 %1312 }
 0x24e   :  { %1221 = vst.msk [vmem:[#allocation2 + $0x108] sm:$0xff] %vm1187_vm5, %v1146_v57  ;;  %v1660_v57 = vld [vmem:[%s9665_s0 + $0x36] sm:$0xff] }
 0x24f   :  { %1413 = vst.msk [vmem:[#allocation2 + $0x40] sm:$0xff] %vm1404_vm6, %v1313_v61  ;;  %v1662_v61 = vld [vmem:[%s9665_s0 + $0x46] sm:$0xff] }
 0x252   :  { %1527 = vrot.lane.b32.xlu1 %v1448_v59, %s5590_s14  ;;  %1525 = vrot.lane.b32.xlu0 %v1447_v60, %s5590_s14 }
 0x253   :  { %1529 = vrot.lane.b32.xlu2 %v1449_v62, %s5590_s14  ;;  %v1661_v62 = vld [vmem:[%s9665_s0 + $0x3e] sm:$0xff] }
 0x254   :  { %v1299_v63 = vpop.permute.xlu1 %1298  ;;  %v1297_v2 = vpop.permute.xlu0 %1296 }
 0x255   :  { %1406 = vst.msk [vmem:[#allocation2 + $0x8] sm:$0xff] %vm1404_vm6, %v1299_v63  ;;  %v1319_v6 = vpop.permute.xlu2 %1318 }
 0x256   :  { %1405 = vst.msk [vmem:[#allocation2] sm:$0xff] %vm1404_vm6, %v1297_v2  ;;  %v1663_v2 = vld [vmem:[%s9665_s0 + $0x4e] sm:$0xff] }
 0x257   :  { %1416 = vst.msk [vmem:[#allocation2 + $0x58] sm:$0xff] %vm1404_vm6, %v1319_v6  ;;  %v1665_v6 = vld [vmem:[%s9665_s0 + $0x5e] sm:$0xff] }
 0x25a   :  { %1533 = vrot.lane.b32.xlu1 %v1451_v4, %s5590_s14  ;;  %1531 = vrot.lane.b32.xlu0 %v1450_v5, %s5590_s14 }
 0x25b   :  { %1535 = vrot.lane.b32.xlu2 %v1452_v8, %s5590_s14  ;;  %v1664_v8 = vld [vmem:[%s9665_s0 + $0x56] sm:$0xff] }
 0x25c   :  { %v1305_v11 = vpop.permute.xlu1 %1304  ;;  %v1303_v15 = vpop.permute.xlu0 %1302 }
 0x25d   :  { %1409 = vst.msk [vmem:[#allocation2 + $0x20] sm:$0xff] %vm1404_vm6, %v1305_v11  ;;  %v1325_v24 = vpop.permute.xlu2 %1324 }
 0x25e   :  { %1408 = vst.msk [vmem:[#allocation2 + $0x18] sm:$0xff] %vm1404_vm6, %v1303_v15  ;;  %v1666_v15 = vld [vmem:[%s9665_s0 + $0x66] sm:$0xff] }
 0x25f   :  { %1419 = vst.msk [vmem:[#allocation2 + $0x70] sm:$0xff] %vm1404_vm6, %v1325_v24  ;;  %v1668_v24 = vld [vmem:[%s9665_s0 + $0x76] sm:$0xff] }
 0x262   :  { %1539 = vrot.lane.b32.xlu1 %v1454_v17, %s5590_s14  ;;  %1537 = vrot.lane.b32.xlu0 %v1453_v20, %s5590_s14 }
 0x263   :  { %1541 = vrot.lane.b32.xlu2 %v1455_v26, %s5590_s14  ;;  %v1667_v26 = vld [vmem:[%s9665_s0 + $0x6e] sm:$0xff] }
 0x264   :  { %v1311_v29 = vpop.permute.xlu1 %1310  ;;  %v1309_v33 = vpop.permute.xlu0 %1308 }
 0x265   :  { %1412 = vst.msk [vmem:[#allocation2 + $0x38] sm:$0xff] %vm1404_vm6, %v1311_v29  ;;  %v1331_v13 = vpop.permute.xlu2 %1330 }
 0x266   :  { %1411 = vst.msk [vmem:[#allocation2 + $0x30] sm:$0xff] %vm1404_vm6, %v1309_v33  ;;  %v1669_v33 = vld [vmem:[%s9665_s0 + $0x7e] sm:$0xff] }
 0x267   :  { %1422 = vst.msk [vmem:[#allocation2 + $0x88] sm:$0xff] %vm1404_vm6, %v1331_v13  ;;  %v1671_v13 = vld [vmem:[%s9665_s0 + $0x8e] sm:$0xff] }
 0x26a   :  { %1545 = vrot.lane.b32.xlu1 %v1457_v14, %s5590_s14  ;;  %1543 = vrot.lane.b32.xlu0 %v1456_v7, %s5590_s14 }
 0x26b   :  { %1547 = vrot.lane.b32.xlu2 %v1458_v23, %s5590_s14  ;;  %v1670_v23 = vld [vmem:[%s9665_s0 + $0x86] sm:$0xff] }
 0x26c   :  { %v1317_v16 = vpop.permute.xlu1 %1316  ;;  %v1315_v22 = vpop.permute.xlu0 %1314 }
 0x26d   :  { %1415 = vst.msk [vmem:[#allocation2 + $0x50] sm:$0xff] %vm1404_vm6, %v1317_v16  ;;  %v1337_v31 = vpop.permute.xlu2 %1336 }
 0x26e   :  { %1414 = vst.msk [vmem:[#allocation2 + $0x48] sm:$0xff] %vm1404_vm6, %v1315_v22  ;;  %v1672_v22 = vld [vmem:[%s9665_s0 + $0x96] sm:$0xff] }
 0x26f   :  { %1425 = vst.msk [vmem:[#allocation2 + $0xa0] sm:$0xff] %vm1404_vm6, %v1337_v31  ;;  %v1674_v31 = vld [vmem:[%s9665_s0 + $0xa6] sm:$0xff] }
 0x272   :  { %1551 = vrot.lane.b32.xlu1 %v1460_v32, %s5590_s14  ;;  %1549 = vrot.lane.b32.xlu0 %v1459_v25, %s5590_s14 }
 0x273   :  { %1553 = vrot.lane.b32.xlu2 %v1461_v49, %s5590_s14  ;;  %v1673_v49 = vld [vmem:[%s9665_s0 + $0x9e] sm:$0xff] }
 0x274   :  { %v1323_v34 = vpop.permute.xlu1 %1322  ;;  %v1321_v44 = vpop.permute.xlu0 %1320 }
 0x275   :  { %1418 = vst.msk [vmem:[#allocation2 + $0x68] sm:$0xff] %vm1404_vm6, %v1323_v34  ;;  %v1343_v51 = vpop.permute.xlu2 %1342 }
 0x276   :  { %1417 = vst.msk [vmem:[#allocation2 + $0x60] sm:$0xff] %vm1404_vm6, %v1321_v44  ;;  %v1675_v44 = vld [vmem:[%s9665_s0 + $0xae] sm:$0xff] }
 0x277   :  { %1428 = vst.msk [vmem:[#allocation2 + $0xb8] sm:$0xff] %vm1404_vm6, %v1343_v51  ;;  %v1677_v51 = vld [vmem:[%s9665_s0 + $0xbe] sm:$0xff] }
 0x27a   :  { %1557 = vrot.lane.b32.xlu1 %v1463_v48, %s5590_s14  ;;  %1555 = vrot.lane.b32.xlu0 %v1462_v56, %s5590_s14 }
 0x27b   :  { %1559 = vrot.lane.b32.xlu2 %v1464_v55, %s5590_s14  ;;  %v1676_v55 = vld [vmem:[%s9665_s0 + $0xb6] sm:$0xff] }
 0x27c   :  { %v1329_v1 = vpop.permute.xlu1 %1328  ;;  %v1327_v58 = vpop.permute.xlu0 %1326 }
 0x27d   :  { %1421 = vst.msk [vmem:[#allocation2 + $0x80] sm:$0xff] %vm1404_vm6, %v1329_v1  ;;  %v1349_v3 = vpop.permute.xlu2 %1348 }
 0x27e   :  { %1420 = vst.msk [vmem:[#allocation2 + $0x78] sm:$0xff] %vm1404_vm6, %v1327_v58  ;;  %v1678_v58 = vld [vmem:[%s9665_s0 + $0xc6] sm:$0xff] }
 0x27f   :  { %1431 = vst.msk [vmem:[#allocation2 + $0xd0] sm:$0xff] %vm1404_vm6, %v1349_v3  ;;  %v1679_v3 = vld [vmem:[%s9665_s0 + $0xce] sm:$0xff] }
 0x282   :  { %1563 = vrot.lane.b32.xlu1 %v1466_v0, %s5590_s14  ;;  %1561 = vrot.lane.b32.xlu0 %v1465_v10, %s5590_s14 }
 0x283   :  { %1565 = vrot.lane.b32.xlu2 %v1467_v9, %s5590_s14  ;;  %v1680_v9 = vld [vmem:[%s9665_s0 + $0xd6] sm:$0xff] }
 0x284   :  { %v1335_v19 = vpop.permute.xlu1 %1334  ;;  %v1333_v12 = vpop.permute.xlu0 %1332 }
 0x285   :  { %1424 = vst.msk [vmem:[#allocation2 + $0x98] sm:$0xff] %vm1404_vm6, %v1335_v19  ;;  %v1355_v21 = vpop.permute.xlu2 %1354 }
 0x286   :  { %1423 = vst.msk [vmem:[#allocation2 + $0x90] sm:$0xff] %vm1404_vm6, %v1333_v12 }
 0x287   :  { %1434 = vst.msk [vmem:[#allocation2 + $0xe8] sm:$0xff] %vm1404_vm6, %v1355_v21 }
 0x28a   :  { %1569 = vrot.lane.b32.xlu1 %v1469_v18, %s5590_s14  ;;  %1567 = vrot.lane.b32.xlu0 %v1468_v28, %s5590_s14  ;;  %v1682_v28 = vld [vmem:[%s9665_s0 + $0xe6] sm:$0xff] }
 0x28b   :  { %1571 = vrot.lane.b32.xlu2 %v1470_v27, %s5590_s14  ;;  %v1683_v27 = vld [vmem:[%s9665_s0 + $0xee] sm:$0xff] }
 0x28c   :  { %v1341_v35 = vpop.permute.xlu1 %1340  ;;  %v1339_v30 = vpop.permute.xlu0 %1338 }
 0x28d   :  { %1427 = vst.msk [vmem:[#allocation2 + $0xb0] sm:$0xff] %vm1404_vm6, %v1341_v35  ;;  %v1361_v38 = vpop.permute.xlu2 %1360 }
 0x28e   :  { %1426 = vst.msk [vmem:[#allocation2 + $0xa8] sm:$0xff] %vm1404_vm6, %v1339_v30 }
 0x28f   :  { %1437 = vst.msk [vmem:[#allocation2 + $0x100] sm:$0xff] %vm1404_vm6, %v1361_v38 }
 0x292   :  { %1575 = vrot.lane.b32.xlu1 %v1472_v36, %s5590_s14  ;;  %1573 = vrot.lane.b32.xlu0 %v1471_v37, %s5590_s14  ;;  %v1681_v36 = vld [vmem:[%s9665_s0 + $0xde] sm:$0xff] }
 0x293   :  { %1577 = vrot.lane.b32.xlu2 %v1473_v39, %s5590_s14 }
 0x294   :  { %v1347_v40 = vpop.permute.xlu1 %1346  ;;  %v1345_v41 = vpop.permute.xlu0 %1344 }
 0x295   :  { %1430 = vst.msk [vmem:[#allocation2 + $0xc8] sm:$0xff] %vm1404_vm6, %v1347_v40  ;;  %v1367_v45 = vpop.permute.xlu2 %1366  ;;  %v1685_v40 = vld [vmem:[%s9665_s0 + $0xfe] sm:$0xff] }
 0x296   :  { %1429 = vst.msk [vmem:[#allocation2 + $0xc0] sm:$0xff] %vm1404_vm6, %v1345_v41  ;;  %v1915_v41 = vld [vmem:[%s9666_s2 + $0x20] sm:$0xf] }
 0x297   :  { %1440 = vst.msk [vmem:[#allocation2 + $0x118] sm:$0xff] %vm1404_vm6, %v1367_v45  ;;  %5297 = vmatpush.msk.msra.mxu0 %vm2029_vm8, %v1915_v41  ;;  %5406 = vmatpush.msk.msra.mxu3 %vm2029_vm8, %v1915_v41 }
 0x29a   :  { %1581 = vrot.lane.b32.xlu1 %v1475_v42, %s5590_s14  ;;  %1579 = vrot.lane.b32.xlu0 %v1474_v43, %s5590_s14 }
 0x29b   :  { %1583 = vrot.lane.b32.xlu2 %v1476_v46, %s5590_s14  ;;  %v1914_v46 = vld [vmem:[%s9666_s2 + $0x18] sm:$0xff] }
 0x29c   :  { %v1353_v47 = vpop.permute.xlu1 %1352  ;;  %v1351_v50 = vpop.permute.xlu0 %1350  ;;  %2045 = vmatpush.msra.mxu0 %v1914_v46  ;;  %5407 = vmatpush.msra.mxu3 %v1914_v46  ;;  %v2892_v46 = vld [vmem:[%s9668_s1 + $0x70] sm:$0xff] }
 0x29d   :  { %1433 = vst.msk [vmem:[#allocation2 + $0xe0] sm:$0xff] %vm1404_vm6, %v1353_v47  ;;  %v1518_v54 = vpop.permute.xlu2 %1517  ;;  %v1913_v47 = vld [vmem:[%s9666_s2 + $0x10] sm:$0xff] }
 0x29e   :  { %1432 = vst.msk [vmem:[#allocation2 + $0xd8] sm:$0xff] %vm1404_vm6, %v1351_v50  ;;  %2046 = vmatpush.msra.mxu0 %v1913_v47  ;;  %5408 = vmatpush.msra.mxu3 %v1913_v47 }
 0x29f   :  { %1624 = vst.msk [vmem:[#allocation2 + $0x10] sm:$0xff] %vm1621_vm7, %v1518_v54  ;;  %v1911_v54 = vld [vmem:[%s9666_s2] sm:$0xff] }
 0x2a2   :  { %1732 = vrot.lane.b32.xlu1 %v1659_v52, %s5591_s23  ;;  %1730 = vrot.lane.b32.xlu0 %v1658_v53, %s5591_s23  ;;  %v1686_v52 = vld [vmem:[%s9665_s0 + $0x106] sm:$0xff] }
 0x2a3   :  { %1734 = vrot.lane.b32.xlu2 %v1660_v57, %s5591_s23  ;;  %v1912_v53 = vld [vmem:[%s9666_s2 + $0x8] sm:$0xff] }
 0x2a4   :  { %v1359_v59 = vpop.permute.xlu1 %1358  ;;  %v1357_v60 = vpop.permute.xlu0 %1356  ;;  %2047 = vmatpush.msra.mxu0 %v1912_v53  ;;  %5409 = vmatpush.msra.mxu3 %v1912_v53 }
 0x2a5   :  { %1436 = vst.msk [vmem:[#allocation2 + $0xf8] sm:$0xff] %vm1404_vm6, %v1359_v59  ;;  %v1524_v63 = vpop.permute.xlu2 %1523 }
 0x2a6   :  { %1435 = vst.msk [vmem:[#allocation2 + $0xf0] sm:$0xff] %vm1404_vm6, %v1357_v60  ;;  %2048 = vmatpush.msra.mxu0 %v1911_v54  ;;  %5410 = vmatpush.msra.mxu3 %v1911_v54  ;;  %v1684_v60 = vld [vmem:[%s9665_s0 + $0xf6] sm:$0xff] }
 0x2a7   :  { %1627 = vst.msk [vmem:[#allocation2 + $0x28] sm:$0xff] %vm1621_vm7, %v1524_v63  ;;  %v2885_v54 = vld [vmem:[%s9668_s1 + $0x38] sm:$0xff] }
 0x2aa   :  { %1738 = vrot.lane.b32.xlu1 %v1662_v61, %s5591_s23  ;;  %1736 = vrot.lane.b32.xlu0 %v1661_v62, %s5591_s23 }
 0x2ab   :  { %1740 = vrot.lane.b32.xlu2 %v1663_v2, %s5591_s23  ;;  %v1688_v2 = vld [vmem:[%s9665_s0 + $0x116] sm:$0xff] }
 0x2ac   :  { %v1365_v4 = vpop.permute.xlu1 %1364  ;;  %v1363_v5 = vpop.permute.xlu0 %1362 }
 0x2ad   :  { %1439 = vst.msk [vmem:[#allocation2 + $0x110] sm:$0xff] %vm1404_vm6, %v1365_v4  ;;  %v1530_v11 = vpop.permute.xlu2 %1529 }
 0x2ae   :  { %1438 = vst.msk [vmem:[#allocation2 + $0x108] sm:$0xff] %vm1404_vm6, %v1363_v5 }
 0x2af   :  { %1630 = vst.msk [vmem:[#allocation2 + $0x40] sm:$0xff] %vm1621_vm7, %v1530_v11 }
 0x2b2   :  { %1744 = vrot.lane.b32.xlu1 %v1665_v6, %s5591_s23  ;;  %1742 = vrot.lane.b32.xlu0 %v1664_v8, %s5591_s23  ;;  %v1689_v8 = vld [vmem:[%s9665_s0 + $0x11e] sm:$0xff] }
 0x2b3   :  { %1746 = vrot.lane.b32.xlu2 %v1666_v15, %s5591_s23 }
 0x2b4   :  { %v1516_v17 = vpop.permute.xlu1 %1515  ;;  %v1514_v20 = vpop.permute.xlu0 %1513 }
 0x2b5   :  { %1623 = vst.msk [vmem:[#allocation2 + $0x8] sm:$0xff] %vm1621_vm7, %v1516_v17  ;;  %v1536_v29 = vpop.permute.xlu2 %1535 }
 0x2b6   :  { %1622 = vst.msk [vmem:[#allocation2] sm:$0xff] %vm1621_vm7, %v1514_v20  ;;  %v1687_v20 = vld [vmem:[%s9665_s0 + $0x10e] sm:$0xff] }
 0x2b7   :  { %1633 = vst.msk [vmem:[#allocation2 + $0x58] sm:$0xff] %vm1621_vm7, %v1536_v29 }
 0x2ba   :  { %1750 = vrot.lane.b32.xlu1 %v1668_v24, %s5591_s23  ;;  %1748 = vrot.lane.b32.xlu0 %v1667_v26, %s5591_s23 }
 0x2bb   :  { %1752 = vrot.lane.b32.xlu2 %v1669_v33, %s5591_s23 }
 0x2bc   :  { %v1522_v14 = vpop.permute.xlu1 %1521  ;;  %v1520_v7 = vpop.permute.xlu0 %1519 }
 0x2bd   :  { %1626 = vst.msk [vmem:[#allocation2 + $0x20] sm:$0xff] %vm1621_vm7, %v1522_v14  ;;  %v1542_v16 = vpop.permute.xlu2 %1541  ;;  %v1691_v14 = vld [vmem:[%s9665_s0 + $0x12e] sm:$0xff] }
 0x2be   :  { %1625 = vst.msk [vmem:[#allocation2 + $0x18] sm:$0xff] %vm1621_vm7, %v1520_v7 }
 0x2bf   :  { %1636 = vst.msk [vmem:[#allocation2 + $0x70] sm:$0xff] %vm1621_vm7, %v1542_v16 }
 0x2c2   :  { %1756 = vrot.lane.b32.xlu1 %v1671_v13, %s5591_s23  ;;  %1754 = vrot.lane.b32.xlu0 %v1670_v23, %s5591_s23 }
 0x2c3   :  { %1758 = vrot.lane.b32.xlu2 %v1672_v22, %s5591_s23  ;;  %v1692_v22 = vld [vmem:[%s9665_s0 + $0x136] sm:$0xff] }
 0x2c4   :  { %v1528_v32 = vpop.permute.xlu1 %1527  ;;  %v1526_v25 = vpop.permute.xlu0 %1525 }
 0x2c5   :  { %1629 = vst.msk [vmem:[#allocation2 + $0x38] sm:$0xff] %vm1621_vm7, %v1528_v32  ;;  %v1548_v34 = vpop.permute.xlu2 %1547  ;;  %v2878_v32 = vld [vmem:[%s9668_s1] sm:$0xff] }
 0x2c6   :  { %1628 = vst.msk [vmem:[#allocation2 + $0x30] sm:$0xff] %vm1621_vm7, %v1526_v25 }
 0x2c7   :  { %1639 = vst.msk [vmem:[#allocation2 + $0x88] sm:$0xff] %vm1621_vm7, %v1548_v34 }
 0x2ca   :  { %1762 = vrot.lane.b32.xlu1 %v1674_v31, %s5591_s23  ;;  %1760 = vrot.lane.b32.xlu0 %v1673_v49, %s5591_s23  ;;  %v5592_v31 = vmov 0  }
 0x2cb   :  { %1764 = vrot.lane.b32.xlu2 %v1675_v44, %s5591_s23  ;;  %5434 = vset.pattern.permute.xlu0 %v5592_v31 }
 0x2cc   :  { %v1534_v48 = vpop.permute.xlu1 %1533  ;;  %v1532_v56 = vpop.permute.xlu0 %1531  ;;  %5435 = vset.pattern.permute.xlu1 %v5592_v31  ;;  %5436 = vset.pattern.permute.xlu2 %v5592_v31 }
 0x2cd   :  { %1632 = vst.msk [vmem:[#allocation2 + $0x50] sm:$0xff] %vm1621_vm7, %v1534_v48  ;;  %v1554_v1 = vpop.permute.xlu2 %1553  ;;  %v2879_v48 = vld [vmem:[%s9668_s1 + $0x8] sm:$0xff] }
 0x2ce   :  { %1631 = vst.msk [vmem:[#allocation2 + $0x48] sm:$0xff] %vm1621_vm7, %v1532_v56  ;;  %v1690_v56 = vld [vmem:[%s9665_s0 + $0x126] sm:$0xff] }
 0x2cf   :  { %1642 = vst.msk [vmem:[#allocation2 + $0xa0] sm:$0xff] %vm1621_vm7, %v1554_v1 }
 0x2d2   :  { %1768 = vrot.lane.b32.xlu1 %v1677_v51, %s5591_s23  ;;  %1766 = vrot.lane.b32.xlu0 %v1676_v55, %s5591_s23 }
 0x2d3   :  { %1770 = vrot.lane.b32.xlu2 %v1678_v58, %s5591_s23 }
 0x2d4   :  { %v1540_v0 = vpop.permute.xlu1 %1539  ;;  %v1538_v10 = vpop.permute.xlu0 %1537 }
 0x2d5   :  { %1635 = vst.msk [vmem:[#allocation2 + $0x68] sm:$0xff] %vm1621_vm7, %v1540_v0  ;;  %v1560_v19 = vpop.permute.xlu2 %1559  ;;  %v2881_v0 = vld [vmem:[%s9668_s1 + $0x18] sm:$0xff] }
 0x2d6   :  { %1634 = vst.msk [vmem:[#allocation2 + $0x60] sm:$0xff] %vm1621_vm7, %v1538_v10  ;;  %v2883_v10 = vld [vmem:[%s9668_s1 + $0x28] sm:$0xff] }
 0x2d7   :  { %1645 = vst.msk [vmem:[#allocation2 + $0xb8] sm:$0xff] %vm1621_vm7, %v1560_v19 }
 0x2da   :  { %1772 = vrot.lane.b32.xlu0 %v1679_v3, %s5591_s23  ;;  %1774 = vrot.lane.b32.xlu1 %v1680_v9, %s5591_s23 }
 0x2db   :  { %1776 = vrot.lane.b32.xlu2 %v1681_v36, %s5591_s23  ;;  %v2880_v36 = vld [vmem:[%s9668_s1 + $0x10] sm:$0xff] }
 0x2dc   :  { %v1546_v12 = vpop.permute.xlu1 %1545  ;;  %v1544_v18 = vpop.permute.xlu0 %1543 }
 0x2dd   :  { %1638 = vst.msk [vmem:[#allocation2 + $0x80] sm:$0xff] %vm1621_vm7, %v1546_v12  ;;  %v1566_v21 = vpop.permute.xlu2 %1565  ;;  %v1693_v12 = vld [vmem:[%s9665_s0 + $0x13e] sm:$0xff] }
 0x2de   :  { %1637 = vst.msk [vmem:[#allocation2 + $0x78] sm:$0xff] %vm1621_vm7, %v1544_v18  ;;  %v2884_v18 = vld [vmem:[%s9668_s1 + $0x30] sm:$0xff] }
 0x2df   :  { %1648 = vst.msk [vmem:[#allocation2 + $0xd0] sm:$0xff] %vm1621_vm7, %v1566_v21 }
 0x2e2   :  { %1778 = vrot.lane.b32.xlu0 %v1682_v28, %s5591_s23  ;;  %1780 = vrot.lane.b32.xlu1 %v1683_v27, %s5591_s23  ;;  %v2886_v28 = vld [vmem:[%s9668_s1 + $0x40] sm:$0xff] }
 0x2e3   :  { %1782 = vrot.lane.b32.xlu2 %v1684_v60, %s5591_s23 }
 0x2e4   :  { %v1552_v35 = vpop.permute.xlu1 %1551  ;;  %v1550_v30 = vpop.permute.xlu0 %1549 }
 0x2e5   :  { %1641 = vst.msk [vmem:[#allocation2 + $0x98] sm:$0xff] %vm1621_vm7, %v1552_v35  ;;  %v1572_v37 = vpop.permute.xlu2 %1571 }
 0x2e6   :  { %1640 = vst.msk [vmem:[#allocation2 + $0x90] sm:$0xff] %vm1621_vm7, %v1550_v30 }
 0x2e7   :  { %1651 = vst.msk [vmem:[#allocation2 + $0xe8] sm:$0xff] %vm1621_vm7, %v1572_v37  ;;  %v2887_v37 = vld [vmem:[%s9668_s1 + $0x48] sm:$0xff] }
 0x2ea   :  { %1784 = vrot.lane.b32.xlu0 %v1685_v40, %s5591_s23  ;;  %1786 = vrot.lane.b32.xlu1 %v1686_v52, %s5591_s23 }
 0x2eb   :  { %1788 = vrot.lane.b32.xlu2 %v1687_v20, %s5591_s23 }
 0x2ec   :  { %v1558_v38 = vpop.permute.xlu1 %1557  ;;  %v1556_v39 = vpop.permute.xlu0 %1555 }
 0x2ed   :  { %1644 = vst.msk [vmem:[#allocation2 + $0xb0] sm:$0xff] %vm1621_vm7, %v1558_v38  ;;  %v1578_v42 = vpop.permute.xlu2 %1577  ;;  %v2889_v38 = vld [vmem:[%s9668_s1 + $0x58] sm:$0xff] }
 0x2ee   :  { %1643 = vst.msk [vmem:[#allocation2 + $0xa8] sm:$0xff] %vm1621_vm7, %v1556_v39 }
 0x2ef   :  { %1654 = vst.msk [vmem:[#allocation2 + $0x100] sm:$0xff] %vm1621_vm7, %v1578_v42 }
 0x2f2   :  { %1790 = vrot.lane.b32.xlu0 %v1688_v2, %s5591_s23  ;;  %1792 = vrot.lane.b32.xlu1 %v1689_v8, %s5591_s23  ;;  %v2896_v2 = vld [vmem:[%s9668_s1 + $0x90] sm:$0xff] }
 0x2f3   :  { %1794 = vrot.lane.b32.xlu2 %v1690_v56, %s5591_s23 }
 0x2f4   :  { %v1564_v43 = vpop.permute.xlu1 %1563  ;;  %v1562_v45 = vpop.permute.xlu0 %1561 }
 0x2f5   :  { %1647 = vst.msk [vmem:[#allocation2 + $0xc8] sm:$0xff] %vm1621_vm7, %v1564_v43  ;;  %v1584_v50 = vpop.permute.xlu2 %1583  ;;  %v2882_v43 = vld [vmem:[%s9668_s1 + $0x20] sm:$0xff] }
 0x2f6   :  { %1646 = vst.msk [vmem:[#allocation2 + $0xc0] sm:$0xff] %vm1621_vm7, %v1562_v45  ;;  %v2890_v45 = vld [vmem:[%s9668_s1 + $0x60] sm:$0xff] }
 0x2f7   :  { %1657 = vst.msk [vmem:[#allocation2 + $0x118] sm:$0xff] %vm1621_vm7, %v1584_v50 }
 0x2fa   :  { %1796 = vrot.lane.b32.xlu0 %v1691_v14, %s5591_s23  ;;  %1798 = vrot.lane.b32.xlu1 %v1692_v22, %s5591_s23  ;;  %v2904_v14 = vld [vmem:[%s9668_s1 + $0xd0] sm:$0xff]  ;;  %v2905_v22 = vld [vmem:[%s9668_s1 + $0xd8] sm:$0xff] }
 0x2fb   :  { %1800 = vrot.lane.b32.xlu2 %v1693_v12, %s5591_s23 }
 0x2fc   :  { %v1570_v57 = vpop.permute.xlu1 %1569  ;;  %v1568_v59 = vpop.permute.xlu0 %1567 }
 0x2fd   :  { %1650 = vst.msk [vmem:[#allocation2 + $0xe0] sm:$0xff] %vm1621_vm7, %v1570_v57  ;;  %v1735_v61 = vpop.permute.xlu2 %1734  ;;  %v2893_v57 = vld [vmem:[%s9668_s1 + $0x78] sm:$0xff] }
 0x2fe   :  { %1649 = vst.msk [vmem:[#allocation2 + $0xd8] sm:$0xff] %vm1621_vm7, %v1568_v59  ;;  %v2895_v59 = vld [vmem:[%s9668_s1 + $0x88] sm:$0xff] }
 0x2ff   :  { %1841 = vst.msk [vmem:[#allocation2 + $0x10] sm:$0xff] %vm1838_vm9, %v1735_v61 }
 0x302   :  { %2916 = vperm.xlu0 %5434, %v2878_v32   ;;  %2921 = vperm.xlu1 %5435, %v2879_v48   ;;  %v2907_v32 = vld [vmem:[%s9668_s1 + $0xe8] sm:$0xff] }
 0x303   :  { %2926 = vperm.xlu2 %5436, %v2880_v36  }
 0x304   :  { %v1576_v62 = vpop.permute.xlu1 %1575  ;;  %v1574_v63 = vpop.permute.xlu0 %1573 }
 0x305   :  { %1653 = vst.msk [vmem:[#allocation2 + $0xf8] sm:$0xff] %vm1621_vm7, %v1576_v62  ;;  %v1741_v4 = vpop.permute.xlu2 %1740 }
 0x306   :  { %1652 = vst.msk [vmem:[#allocation2 + $0xf0] sm:$0xff] %vm1621_vm7, %v1574_v63  ;;  %v1877_v49 = vld [vmem:[#allocation2 + $0x10] sm:$0xff] }
 0x307   :  { %1844 = vst.msk [vmem:[#allocation2 + $0x28] sm:$0xff] %vm1838_vm9, %v1741_v4  ;;  %v2888_v63 = vld [vmem:[%s9668_s1 + $0x50] sm:$0xff]  ;;  %v2898_v4 = vld [vmem:[%s9668_s1 + $0xa0] sm:$0xff] }
 0x30a   :  { %2931 = vperm.xlu1 %5435, %v2881_v0   ;;  %2941 = vperm.xlu0 %5434, %v2883_v10  }
 0x30b   :  { %2936 = vperm.xlu2 %5436, %v2882_v43  }
 0x30c   :  { %v1582_v5 = vpop.permute.xlu1 %1581  ;;  %v1580_v6 = vpop.permute.xlu0 %1579 }
 0x30d   :  { %1656 = vst.msk [vmem:[#allocation2 + $0x110] sm:$0xff] %vm1621_vm7, %v1582_v5  ;;  %v1747_v11 = vpop.permute.xlu2 %1746 }
 0x30e   :  { %1655 = vst.msk [vmem:[#allocation2 + $0x108] sm:$0xff] %vm1621_vm7, %v1580_v6  ;;  %v1880_v30 = vld [vmem:[#allocation2 + $0x28] sm:$0xff] }
 0x30f   :  { %1847 = vst.msk [vmem:[#allocation2 + $0x40] sm:$0xff] %vm1838_vm9, %v1747_v11  ;;  %v2891_v11 = vld [vmem:[%s9668_s1 + $0x68] sm:$0xff] }
 0x312   :  { %2946 = vperm.xlu1 %5435, %v2884_v18   ;;  %2956 = vperm.xlu0 %5434, %v2886_v28   ;;  %v2906_v28 = vld [vmem:[%s9668_s1 + $0xe0] sm:$0xff] }
 0x313   :  { %2951 = vperm.xlu2 %5436, %v2885_v54  }
 0x314   :  { %v1733_v15 = vpop.permute.xlu1 %1732  ;;  %v1731_v17 = vpop.permute.xlu0 %1730 }
 0x315   :  { %1840 = vst.msk [vmem:[#allocation2 + $0x8] sm:$0xff] %vm1838_vm9, %v1733_v15  ;;  %v1753_v24 = vpop.permute.xlu2 %1752  ;;  %v2899_v15 = vld [vmem:[%s9668_s1 + $0xa8] sm:$0xff] }
 0x316   :  { %1839 = vst.msk [vmem:[#allocation2] sm:$0xff] %vm1838_vm9, %v1731_v17  ;;  %v1883_v62 = vld [vmem:[#allocation2 + $0x40] sm:$0xff]  ;;  %v2901_v17 = vld [vmem:[%s9668_s1 + $0xb8] sm:$0xff] }
 0x317   :  { %1850 = vst.msk [vmem:[#allocation2 + $0x58] sm:$0xff] %vm1838_vm9, %v1753_v24 }
 0x31a   :  { %2961 = vperm.xlu1 %5435, %v2887_v37   ;;  %2971 = vperm.xlu0 %5434, %v2889_v38  }
 0x31b   :  { %2966 = vperm.xlu2 %5436, %v2888_v63  }
 0x31c   :  { %v1739_v26 = vpop.permute.xlu1 %1738  ;;  %v1737_v29 = vpop.permute.xlu0 %1736  ;;  %v1876_v13 = vld [vmem:[#allocation2 + $0x8] sm:$0xff] }
 0x31d   :  { %1843 = vst.msk [vmem:[#allocation2 + $0x20] sm:$0xff] %vm1838_vm9, %v1739_v26  ;;  %v1875_v33 = vld [vmem:[#allocation2] sm:$0xff]  ;;  %v1759_v7 = vpop.permute.xlu2 %1758 }
 0x31e   :  { %5298 = vmatmul.msk.f32.vlgmr.msra.gmra.mxu0 %vm1920_vm10, %v1875_v33  ;;  %1842 = vst.msk [vmem:[#allocation2 + $0x18] sm:$0xff] %vm1838_vm9, %v1737_v29  ;;  %v2894_v29 = vld [vmem:[%s9668_s1 + $0x80] sm:$0xff] }
 0x31f   :  { %1853 = vst.msk [vmem:[#allocation2 + $0x70] sm:$0xff] %vm1838_vm9, %v1759_v7  ;;  %v2902_v33 = vld [vmem:[%s9668_s1 + $0xc0] sm:$0xff] }
 0x322   :  { %2976 = vperm.xlu1 %5435, %v2890_v45   ;;  %2986 = vperm.xlu0 %5434, %v2892_v46  }
 0x323   :  { %2981 = vperm.xlu2 %5436, %v2891_v11  }
 0x324   :  { %v1745_v23 = vpop.permute.xlu1 %1744  ;;  %v1743_v16 = vpop.permute.xlu0 %1742  ;;  %v1879_v19 = vld [vmem:[#allocation2 + $0x20] sm:$0xff] }
 0x325   :  { %1846 = vst.msk [vmem:[#allocation2 + $0x38] sm:$0xff] %vm1838_vm9, %v1745_v23  ;;  %v1765_v25 = vpop.permute.xlu2 %1764  ;;  %v1878_v55 = vld [vmem:[#allocation2 + $0x18] sm:$0xff] }
 0x326   :  { %5299 = vmatmul.msk.f32.gmra.mxu0 %vm1920_vm10, %v1876_v13  ;;  %1845 = vst.msk [vmem:[#allocation2 + $0x30] sm:$0xff] %vm1838_vm9, %v1743_v16  ;;  %v1886_v23 = vld [vmem:[#allocation2 + $0x58] sm:$0xff]  ;;  %v1889_v10 = vld [vmem:[#allocation2 + $0x70] sm:$0xff] }
 0x327   :  { %1856 = vst.msk [vmem:[#allocation2 + $0x88] sm:$0xff] %vm1838_vm9, %v1765_v25  ;;  %v2897_v16 = vld [vmem:[%s9668_s1 + $0x98] sm:$0xff] }
 0x32a   :  { %2991 = vperm.xlu1 %5435, %v2893_v57   ;;  %3001 = vperm.xlu0 %5434, %v2895_v59  }
 0x32b   :  { %2996 = vperm.xlu2 %5436, %v2894_v29  }
 0x32c   :  { %v1751_v34 = vpop.permute.xlu1 %1750  ;;  %v1749_v44 = vpop.permute.xlu0 %1748  ;;  %v1882_v53 = vld [vmem:[#allocation2 + $0x38] sm:$0xff] }
 0x32d   :  { %1849 = vst.msk [vmem:[#allocation2 + $0x50] sm:$0xff] %vm1838_vm9, %v1751_v34  ;;  %v1771_v51 = vpop.permute.xlu2 %1770  ;;  %v1881_v42 = vld [vmem:[#allocation2 + $0x30] sm:$0xff] }
 0x32e   :  { %5300 = vmatmul.msk.f32.gmra.mxu0 %vm1920_vm10, %v1877_v49  ;;  %1848 = vst.msk [vmem:[#allocation2 + $0x48] sm:$0xff] %vm1838_vm9, %v1749_v44  ;;  %v2908_v34 = vld [vmem:[%s9668_s1 + $0xf0] sm:$0xff]  ;;  %v2910_v44 = vld [vmem:[%s9668_s1 + $0x100] sm:$0xff]  ;;  %v1892_v46 = vld [vmem:[#allocation2 + $0x88] sm:$0xff] }
 0x32f   :  { %1859 = vst.msk [vmem:[#allocation2 + $0xa0] sm:$0xff] %vm1838_vm9, %v1771_v51 }
 0x332   :  { %3006 = vperm.xlu1 %5435, %v2896_v2   ;;  %3016 = vperm.xlu0 %5434, %v2898_v4  }
 0x333   :  { %3011 = vperm.xlu2 %5436, %v2897_v16  }
 0x334   :  { %v1757_v1 = vpop.permute.xlu1 %1756  ;;  %v1755_v58 = vpop.permute.xlu0 %1754  ;;  %v1885_v26 = vld [vmem:[#allocation2 + $0x50] sm:$0xff] }
 0x335   :  { %1852 = vst.msk [vmem:[#allocation2 + $0x68] sm:$0xff] %vm1838_vm9, %v1757_v1  ;;  %v1777_v21 = vpop.permute.xlu2 %1776  ;;  %v1884_v8 = vld [vmem:[#allocation2 + $0x48] sm:$0xff] }
 0x336   :  { %5301 = vmatmul.msk.f32.gmra.mxu0 %vm1920_vm10, %v1878_v55  ;;  %1851 = vst.msk [vmem:[#allocation2 + $0x60] sm:$0xff] %vm1838_vm9, %v1755_v58  ;;  %v1895_v47 = vld [vmem:[#allocation2 + $0xa0] sm:$0xff]  ;;  %v2900_v55 = vld [vmem:[%s9668_s1 + $0xb0] sm:$0xff]  ;;  %v2911_v1 = vld [vmem:[%s9668_s1 + $0x108] sm:$0xff] }
 0x337   :  { %1862 = vst.msk [vmem:[#allocation2 + $0xb8] sm:$0xff] %vm1838_vm9, %v1777_v21  ;;  %v2913_v58 = vld [vmem:[%s9668_s1 + $0x118] sm:$0xff]  ;;  %v7429_v21 = vld [vmem:[%s9667_s3] ss:$0 sm:$0xff] }
 0x33a   :  { %3021 = vperm.xlu1 %5435, %v2899_v15   ;;  %3031 = vperm.xlu0 %5434, %v2901_v17  }
 0x33b   :  { %3026 = vperm.xlu2 %5436, %v2900_v55  }
 0x33c   :  { %v1763_v3 = vpop.permute.xlu1 %1762  ;;  %v1761_v9 = vpop.permute.xlu0 %1760  ;;  %v1888_v56 = vld [vmem:[#allocation2 + $0x68] sm:$0xff] }
 0x33d   :  { %1855 = vst.msk [vmem:[#allocation2 + $0x80] sm:$0xff] %vm1838_vm9, %v1763_v3  ;;  %v1783_v60 = vpop.permute.xlu2 %1782  ;;  %v1887_v31 = vld [vmem:[#allocation2 + $0x60] sm:$0xff] }
 0x33e   :  { %5302 = vmatmul.msk.f32.gmra.mxu0 %vm1920_vm10, %v1879_v19  ;;  %1854 = vst.msk [vmem:[#allocation2 + $0x78] sm:$0xff] %vm1838_vm9, %v1761_v9  ;;  %v1898_v20 = vld [vmem:[#allocation2 + $0xb8] sm:$0xff]  ;;  %v2903_v9 = vld [vmem:[%s9668_s1 + $0xc8] sm:$0xff] }
 0x33f   :  { %1865 = vst.msk [vmem:[#allocation2 + $0xd0] sm:$0xff] %vm1838_vm9, %v1783_v60 }
 0x342   :  { %3036 = vperm.xlu1 %5435, %v2902_v33   ;;  %3046 = vperm.xlu0 %5434, %v2904_v14  }
 0x343   :  { %3041 = vperm.xlu2 %5436, %v2903_v9  }
 0x344   :  { %v1769_v27 = vpop.permute.xlu1 %1768  ;;  %v1767_v35 = vpop.permute.xlu0 %1766  ;;  %v1891_v38 = vld [vmem:[#allocation2 + $0x80] sm:$0xff] }
 0x345   :  { %1858 = vst.msk [vmem:[#allocation2 + $0x98] sm:$0xff] %vm1838_vm9, %v1769_v27  ;;  %v1789_v7 = vpop.permute.xlu2 %1788  ;;  %v1890_v18 = vld [vmem:[#allocation2 + $0x78] sm:$0xff] }
 0x346   :  { %5303 = vmatmul.msk.f32.gmra.mxu0 %vm1920_vm10, %v1880_v30  ;;  %1857 = vst.msk [vmem:[#allocation2 + $0x90] sm:$0xff] %vm1838_vm9, %v1767_v35  ;;  %v1901_v48 = vld [vmem:[#allocation2 + $0xd0] sm:$0xff] }
 0x347   :  { %1868 = vst.msk [vmem:[#allocation2 + $0xe8] sm:$0xff] %vm1838_vm9, %v1789_v7 }
 0x34a   :  { %3051 = vperm.xlu1 %5435, %v2905_v22   ;;  %3061 = vperm.xlu0 %5434, %v2907_v32  }
 0x34b   :  { %3056 = vperm.xlu2 %5436, %v2906_v28  }
 0x34c   :  { %v1894_v39 = vld [vmem:[#allocation2 + $0x98] sm:$0xff]  ;;  %v1773_v40 = vpop.permute.xlu0 %1772  ;;  %v1775_v41 = vpop.permute.xlu1 %1774 }
 0x34d   :  { %5317 = vmatmul.msk.f32.vlgmr.msra.gmra.mxu3 %vm1920_vm10, %v1894_v39  ;;  %1860 = vst.msk [vmem:[#allocation2 + $0xa8] sm:$0xff] %vm1838_vm9, %v1773_v40  ;;  %v1795_v3 = vpop.permute.xlu2 %1794  ;;  %v5593_v40 = vmov 0.0  }
 0x34e   :  { %5304 = vmatmul.msk.f32.gmra.mxu0 %vm1920_vm10, %v1881_v42  ;;  %1861 = vst.msk [vmem:[#allocation2 + $0xb0] sm:$0xff] %vm1838_vm9, %v1775_v41  ;;  %v1904_v27 = vld [vmem:[#allocation2 + $0xe8] sm:$0xff]  ;;  %v2909_v41 = vld [vmem:[%s9668_s1 + $0xf8] sm:$0xff] }
 0x34f   :  { %1871 = vst.msk [vmem:[#allocation2 + $0x100] sm:$0xff] %vm1838_vm9, %v1795_v3 }
 0x350   :  { %26 = vst.msk [vmem:[#allocation3 + $0x10] sm:$0xff] %vm23_vm11, %v5593_v40 }
 0x351   :  { %27 = vst.msk [vmem:[#allocation3 + $0x18] sm:$0xff] %vm23_vm11, %v5593_v40 }
 0x352   :  { %3066 = vperm.xlu1 %5435, %v2908_v34   ;;  %3076 = vperm.xlu0 %5434, %v2910_v44   ;;  %24 = vst.msk [vmem:[#allocation3] sm:$0xff] %vm23_vm11, %v5593_v40 }
 0x353   :  { %3071 = vperm.xlu2 %5436, %v2909_v41   ;;  %25 = vst.msk [vmem:[#allocation3 + $0x8] sm:$0xff] %vm23_vm11, %v5593_v40 }
 0x354   :  { %v1779_v50 = vpop.permute.xlu0 %1778  ;;  %v1781_v52 = vpop.permute.xlu1 %1780  ;;  %v1896_v61 = vld [vmem:[#allocation2 + $0xa8] sm:$0xff]  ;;  %28 = vst.msk [vmem:[#allocation3 + $0x20] sm:$0xff] %vm23_vm11, %v5593_v40 }
 0x355   :  { %5318 = vmatmul.msk.f32.gmra.mxu3 %vm1920_vm10, %v1895_v47  ;;  %1863 = vst.msk [vmem:[#allocation2 + $0xc0] sm:$0xff] %vm1838_vm9, %v1779_v50  ;;  %v1897_v6 = vld [vmem:[#allocation2 + $0xb0] sm:$0xff]  ;;  %v1801_v35 = vpop.permute.xlu2 %1800 }
 0x356   :  { %5305 = vmatmul.msk.f32.gmra.mxu0 %vm1920_vm10, %v1882_v53  ;;  %1864 = vst.msk [vmem:[#allocation2 + $0xc8] sm:$0xff] %vm1838_vm9, %v1781_v52  ;;  %v2912_v52 = vld [vmem:[%s9668_s1 + $0x110] sm:$0xff]  ;;  %v1907_v15 = vld [vmem:[#allocation2 + $0x100] sm:$0xff] }
 0x357   :  { %1874 = vst.msk [vmem:[#allocation2 + $0x118] sm:$0xff] %vm1838_vm9, %v1801_v35 }
 0x358   :  { %29 = vst.msk [vmem:[#allocation3 + $0x28] sm:$0xff] %vm23_vm11, %v5593_v40 }
 0x359   :  { %30 = vst.msk [vmem:[#allocation3 + $0x30] sm:$0xff] %vm23_vm11, %v5593_v40 }
 0x35a   :  { %3081 = vperm.xlu1 %5435, %v2911_v1   ;;  %3091 = vperm.xlu0 %5434, %v2913_v58   ;;  %31 = vst.msk [vmem:[#allocation3 + $0x38] sm:$0xff] %vm23_vm11, %v5593_v40  ;;  %v3238_v54 = vld [vmem:[#allocation3 + $0x1] sm:$0xff]  ;;  %v3239_v2 = vld [vmem:[#allocation3 + $0x9] sm:$0xff] }
 0x35b   :  { %32 = vst.msk [vmem:[#allocation3 + $0x40] sm:$0xff] %vm23_vm11, %v5593_v40  ;;  %3086 = vperm.xlu2 %5436, %v2912_v52  }
 0x35c   :  { %v1785_v5 = vpop.permute.xlu0 %1784  ;;  %v1787_v24 = vpop.permute.xlu1 %1786  ;;  %v1899_v13 = vld [vmem:[#allocation2 + $0xc0] sm:$0xff]  ;;  %33 = vst.msk [vmem:[#allocation3 + $0x48] sm:$0xff] %vm23_vm11, %v5593_v40 }
 0x35d   :  { %5319 = vmatmul.msk.f32.gmra.mxu3 %vm1920_vm10, %v1896_v61  ;;  %1866 = vst.msk [vmem:[#allocation2 + $0xd8] sm:$0xff] %vm1838_vm9, %v1785_v5  ;;  %v1900_v25 = vld [vmem:[#allocation2 + $0xc8] sm:$0xff]  ;;  %v1893_v61 = vld [vmem:[#allocation2 + $0x90] sm:$0xff] }
 0x35e   :  { %5306 = vmatmul.msk.f32.gmra.mxu0 %vm1920_vm10, %v1883_v62  ;;  %1867 = vst.msk [vmem:[#allocation2 + $0xe0] sm:$0xff] %vm1838_vm9, %v1787_v24 }
 0x35f   :  { %34 = vst.msk [vmem:[#allocation3 + $0x50] sm:$0xff] %vm23_vm11, %v5593_v40 }
 0x360   :  { %35 = vst.msk [vmem:[#allocation3 + $0x58] sm:$0xff] %vm23_vm11, %v5593_v40 }
 0x361   :  { %36 = vst.msk [vmem:[#allocation3 + $0x60] sm:$0xff] %vm23_vm11, %v5593_v40 }
 0x362   :  { %3310 = vrot.lane.b32.xlu1 %v3238_v54, %s5585_s15  ;;  %37 = vst.msk [vmem:[#allocation3 + $0x68] sm:$0xff] %vm23_vm11, %v5593_v40 }
 0x363   :  { %38 = vst.msk [vmem:[#allocation3 + $0x70] sm:$0xff] %vm23_vm11, %v5593_v40  ;;  %3312 = vrot.lane.b32.xlu2 %v3239_v2, %s5585_s15 }
 0x364   :  { %v1791_v49 = vpop.permute.xlu0 %1790  ;;  %v1793_v51 = vpop.permute.xlu1 %1792  ;;  %v1902_v0 = vld [vmem:[#allocation2 + $0xd8] sm:$0xff]  ;;  %39 = vst.msk [vmem:[#allocation3 + $0x78] sm:$0xff] %vm23_vm11, %v5593_v40 }
 0x365   :  { %5320 = vmatmul.msk.f32.gmra.mxu3 %vm1920_vm10, %v1897_v6  ;;  %1869 = vst.msk [vmem:[#allocation2 + $0xf0] sm:$0xff] %vm1838_vm9, %v1791_v49  ;;  %v1903_v19 = vld [vmem:[#allocation2 + $0xe0] sm:$0xff] }
 0x366   :  { %5307 = vmatmul.msk.f32.gmra.mxu0 %vm1920_vm10, %v1884_v8  ;;  %1870 = vst.msk [vmem:[#allocation2 + $0xf8] sm:$0xff] %vm1838_vm9, %v1793_v51  ;;  %v7499_v8 = vpop.permute.xlu2 %2926 }
 0x367   :  { %40 = vst.msk [vmem:[#allocation3 + $0x80] sm:$0xff] %vm23_vm11, %v5593_v40 }
 0x368   :  { %41 = vst.msk [vmem:[#allocation3 + $0x88] sm:$0xff] %vm23_vm11, %v5593_v40 }
 0x369   :  { %42 = vst.msk [vmem:[#allocation3 + $0x90] sm:$0xff] %vm23_vm11, %v5593_v40 }
 0x36a   :  { %43 = vst.msk [vmem:[#allocation3 + $0x98] sm:$0xff] %vm23_vm11, %v5593_v40 }
 0x36b   :  { %44 = vst.msk [vmem:[#allocation3 + $0xa0] sm:$0xff] %vm23_vm11, %v5593_v40 }
 0x36c   :  { %v1797_v12 = vpop.permute.xlu0 %1796  ;;  %v1799_v37 = vpop.permute.xlu1 %1798  ;;  %v1905_v42 = vld [vmem:[#allocation2 + $0xf0] sm:$0xff]  ;;  %45 = vst.msk [vmem:[#allocation3 + $0xa8] sm:$0xff] %vm23_vm11, %v5593_v40 }
 0x36d   :  { %5321 = vmatmul.msk.f32.gmra.mxu3 %vm1920_vm10, %v1898_v20  ;;  %1872 = vst.msk [vmem:[#allocation2 + $0x108] sm:$0xff] %vm1838_vm9, %v1797_v12  ;;  %v1906_v57 = vld [vmem:[#allocation2 + $0xf8] sm:$0xff] }
 0x36e   :  { %5308 = vmatmul.msk.f32.gmra.mxu0 %vm1920_vm10, %v1885_v26  ;;  %1873 = vst.msk [vmem:[#allocation2 + $0x110] sm:$0xff] %vm1838_vm9, %v1799_v37 }
 0x36f   :  { %46 = vst.msk [vmem:[#allocation3 + $0xb0] sm:$0xff] %vm23_vm11, %v5593_v40 }
 0x370   :  { %47 = vst.msk [vmem:[#allocation3 + $0xb8] sm:$0xff] %vm23_vm11, %v5593_v40 }
 0x371   :  { %48 = vst.msk [vmem:[#allocation3 + $0xc0] sm:$0xff] %vm23_vm11, %v5593_v40 }
 0x372   :  { %49 = vst.msk [vmem:[#allocation3 + $0xc8] sm:$0xff] %vm23_vm11, %v5593_v40 }
 0x373   :  { %50 = vst.msk [vmem:[#allocation3 + $0xd0] sm:$0xff] %vm23_vm11, %v5593_v40 }
 0x374   :  { %51 = vst.msk [vmem:[#allocation3 + $0xd8] sm:$0xff] %vm23_vm11, %v5593_v40  ;;  %v1908_v44 = vld [vmem:[#allocation2 + $0x108] sm:$0xff]  ;;  %v2922_v35 = vpop.permute.xlu1 %2921 }
 0x375   :  { %5322 = vmatmul.msk.f32.gmra.mxu3 %vm1920_vm10, %v1899_v13  ;;  %52 = vst.msk [vmem:[#allocation3 + $0xe0] sm:$0xff] %vm23_vm11, %v5593_v40 }
 0x376   :  { %5309 = vmatmul.msk.f32.gmra.mxu0 %vm1920_vm10, %v1886_v23  ;;  %53 = vst.msk [vmem:[#allocation3 + $0xe8] sm:$0xff] %vm23_vm11, %v5593_v40 }
 0x377   :  { %54 = vst.msk [vmem:[#allocation3 + $0xf0] sm:$0xff] %vm23_vm11, %v5593_v40 }
 0x378   :  { %55 = vst.msk [vmem:[#allocation3 + $0xf8] sm:$0xff] %vm23_vm11, %v5593_v40 }
 0x379   :  { %56 = vst.msk [vmem:[#allocation3 + $0x100] sm:$0xff] %vm23_vm11, %v5593_v40 }
 0x37a   :  { %57 = vst.msk [vmem:[#allocation3 + $0x108] sm:$0xff] %vm23_vm11, %v5593_v40 }
 0x37b   :  { %58 = vst.msk [vmem:[#allocation3 + $0x110] sm:$0xff] %vm23_vm11, %v5593_v40 }
 0x37c   :  { %59 = vst.msk [vmem:[#allocation3 + $0x118] sm:$0xff] %vm23_vm11, %v5593_v40 }
 0x37d   :  { %5323 = vmatmul.msk.f32.gmra.mxu3 %vm1920_vm10, %v1900_v25  ;;  %60 = vst.msk [vmem:[#allocation3 + $0x120] sm:$0xff] %vm23_vm11, %v5593_v40 }
 0x37e   :  { %5310 = vmatmul.msk.f32.gmra.mxu0 %vm1920_vm10, %v1887_v31  ;;  %v2917_v31 = vpop.permute.xlu0 %2916  ;;  %61 = vst.msk [vmem:[#allocation3 + $0x128] sm:$0xff] %vm23_vm11, %v5593_v40 }
 0x37f   :  { %62 = vst.msk [vmem:[#allocation3 + $0x130] sm:$0xff] %vm23_vm11, %v5593_v40 }
 0x380   :  { %63 = vst.msk [vmem:[#allocation3 + $0x138] sm:$0xff] %vm23_vm11, %v5593_v40 }
 0x385   :  { %5324 = vmatmul.msk.f32.gmra.mxu3 %vm1920_vm10, %v1901_v48  ;;  %v7532_v48 = vpop.permute.xlu2 %2936 }
 0x386   :  { %5311 = vmatmul.msk.f32.gmra.mxu0 %vm1920_vm10, %v1888_v56 }
 0x38d   :  { %5325 = vmatmul.msk.f32.gmra.mxu3 %vm1920_vm10, %v1902_v0 }
 0x38e   :  { %5312 = vmatmul.msk.f32.gmra.mxu0 %vm1920_vm10, %v1889_v10 }
 0x395   :  { %5326 = vmatmul.msk.f32.gmra.mxu3 %vm1920_vm10, %v1903_v19 }
 0x396   :  { %5313 = vmatmul.msk.f32.gmra.mxu0 %vm1920_vm10, %v1890_v18 }
 0x39b   :  { %v2050_v30 = vpop.f32.mrf.mxu0 }
 0x39c   :  { %v7433_v36 = vadd.f32 %v7429_v21, %v2050_v30 }
 0x39d   :  { %5327 = vmatmul.msk.f32.gmra.mxu3 %vm1920_vm10, %v1904_v27 }
 0x39e   :  { %v5334_v39 = vmul.f32 -1.442695, %v7433_v36  ;;  %5314 = vmatmul.msk.f32.gmra.mxu0 %vm1920_vm10, %v1891_v38  ;;  %v1909_v38 = vld [vmem:[#allocation2 + $0x110] sm:$0xff] }
 0x3a0   :  { %5439 = vpow2.f32 %v5334_v39 }
 0x3a3   :  { %v2053_v43 = vpop.f32.mrf.mxu0 }
 0x3a4   :  { %v7455_v45 = vadd.f32 %v7429_v21, %v2053_v43 }
 0x3a5   :  { %5328 = vmatmul.msk.f32.gmra.mxu3 %vm1920_vm10, %v1905_v42 }
 0x3a6   :  { %v5440_v47 = vpop.eup %5439  ;;  %v5335_v50 = vmul.f32 -1.442695, %v7455_v45  ;;  %5315 = vmatmul.msk.f32.gmra.mxu0 %vm1920_vm10, %v1892_v46 }
 0x3a7   :  { %v2266_v53 = vadd.f32 1.0, %v5440_v47  ;;  %v7571_v47 = vpop.permute.xlu2 %2951 }
 0x3a8   :  { %5441 = vpow2.f32 %v5335_v50 }
 0x3a9   :  { %5443 = vrcp.f32 %v2266_v53  ;;  %v2313_v17 = vand.u32 2147483648, %v2266_v53  ;;  %v2311_v26 = vand.u32 2147483647, %v2266_v53  ;;  %vm2307_vm13 = vweird.f32 %v2266_v53 }
 0x3ab   :  { %v2056_v59 = vpop.f32.mrf.mxu0  ;;  %v2314_v23 = vor.u32 1.1754944e-38, %v2313_v17  ;;  %vm2312_vm15 = vcmp.eq.f32.partialorder %v2311_v26, 8.507059e+37 }
 0x3ac   :  { %v7481_v60 = vadd.f32 %v7429_v21, %v2056_v59 }
 0x3ad   :  { %5329 = vmatmul.msk.f32.gmra.mxu3 %vm1920_vm10, %v1906_v57 }
 0x3ae   :  { %v5442_v62 = vpop.eup %5441  ;;  %v5336_v63 = vmul.f32 -1.442695, %v7481_v60  ;;  %5316 = vmatmul.msk.f32.gmra.mxu0 %vm1920_vm10, %v1893_v61 }
 0x3af   :  { %v5444_v4 = vpop.eup %5443  ;;  %v7492_v5 = vadd.f32 1.0, %v5442_v62 }
 0x3b0   :  { %v2303_v6 = vmul.f32 %v5444_v4, %v2266_v53  ;;  %5445 = vpow2.f32 %v5336_v63  ;;  %vm2308_vm12 = vweird.f32 %v5444_v4 }
 0x3b1   :  { %5447 = vrcp.f32 %v7492_v5  ;;  %vm2309_vm14 = vmor %vm2307_vm13, %vm2308_vm12  ;;  %v2326_v56 = vand.u32 2147483647, %v7492_v5  ;;  %v2328_v51 = vand.u32 2147483648, %v7492_v5  ;;  %vm2322_vm2 = vweird.f32 %v7492_v5 }
 0x3b2   :  { %v2304_v11 = vsub.f32 1.0, %v2303_v6 }
 0x3b3   :  { %v2059_v20 = vpop.f32.mrf.mxu0  ;;  %v2329_v12 = vor.u32 1.1754944e-38, %v2328_v51  ;;  %vm2327_vm4 = vcmp.eq.f32.partialorder %v2326_v56, 8.507059e+37 }
 0x3b4   :  { %v2305_v24 = vmul.f32 %v5444_v4, %v2304_v11  ;;  %v7509_v29 = vadd.f32 %v7429_v21, %v2059_v20  ;;  %v2932_v11 = vpop.permute.xlu1 %2931 }
 0x3b5   :  { %5330 = vmatmul.msk.f32.gmra.mxu3 %vm1920_vm10, %v1907_v15  ;;  %v1910_v15 = vld [vmem:[#allocation2 + $0x118] sm:$0xff] }
 0x3b6   :  { %v5446_v33 = vpop.eup %5445  ;;  %v2306_v14 = vadd.f32 %v5444_v4, %v2305_v24  ;;  %v5337_v7 = vmul.f32 -1.442695, %v7509_v29  ;;  %v7591_v24 = vpop.permute.xlu0 %2941 }
 0x3b7   :  { %v5448_v13 = vpop.eup %5447  ;;  %v7519_v16 = vadd.f32 1.0, %v5446_v33 }
 0x3b8   :  { %v2310_v22 = vsel %vm2309_vm14, %v5444_v4, %v2306_v14  ;;  %v2318_v32 = vmul.f32 %v5448_v13, %v7492_v5  ;;  %5449 = vpow2.f32 %v5337_v7  ;;  %vm2323_vm1 = vweird.f32 %v5448_v13 }
 0x3b9   :  { %v2315_v25 = vsel %vm2312_vm15, %v2314_v23, %v2310_v22  ;;  %5451 = vrcp.f32 %v7519_v16  ;;  %vm2324_vm3 = vmor %vm2322_vm2, %vm2323_vm1  ;;  %v2341_v39 = vand.u32 2147483647, %v7519_v16  ;;  %v2343_v41 = vand.u32 2147483648, %v7519_v16  ;;  %v7601_v22 = vpop.permute.xlu2 %2966 }
 0x3ba   :  { %v2842_v49 = vmul.f32 %v2315_v25, %v7433_v36  ;;  %v2319_v34 = vsub.f32 1.0, %v2318_v32  ;;  %vm2337_vm6 = vweird.f32 %v7519_v16 }
 0x3bb   :  { %v2062_v55 = vpop.f32.mrf.mxu0  ;;  %v2344_v61 = vor.u32 1.1754944e-38, %v2343_v41  ;;  %vm2342_vm8 = vcmp.eq.f32.partialorder %v2341_v39, 8.507059e+37 }
 0x3bc   :  { %v2320_v1 = vmul.f32 %v5448_v13, %v2319_v34  ;;  %v3094_v58 = vmul.f32 %v2917_v31, %v2842_v49  ;;  %v7541_v0 = vadd.f32 %v7429_v21, %v2062_v55 }
 0x3bd   :  { %5331 = vmatmul.msk.f32.gmra.mxu3 %vm1920_vm10, %v1908_v44 }
 0x3be   :  { %v5450_v10 = vpop.eup %5449  ;;  %v2321_v3 = vadd.f32 %v5448_v13, %v2320_v1  ;;  %3130 = vst.msk [vmem:[#allocation3 + $0x13] sm:$0xff] %vm23_vm11, %v3094_v58  ;;  %v5338_v9 = vmul.f32 -1.442695, %v7541_v0 }
 0x3bf   :  { %v5452_v19 = vpop.eup %5451  ;;  %v7549_v18 = vadd.f32 1.0, %v5450_v10 }
 0x3c0   :  { %v2325_v28 = vsel %vm2324_vm3, %v5448_v13, %v2321_v3  ;;  %v2333_v27 = vmul.f32 %v5452_v19, %v7519_v16  ;;  %5453 = vpow2.f32 %v5338_v9  ;;  %vm2338_vm5 = vweird.f32 %v5452_v19 }
 0x3c1   :  { %v2330_v30 = vsel %vm2327_vm4, %v2329_v12, %v2325_v28  ;;  %5455 = vrcp.f32 %v7549_v18  ;;  %vm2339_vm7 = vmor %vm2337_vm6, %vm2338_vm5  ;;  %v2356_v17 = vand.u32 2147483647, %v7549_v18  ;;  %v2358_v20 = vand.u32 2147483648, %v7549_v18  ;;  %v7618_v28 = vpop.permute.xlu0 %2956 }
 0x3c2   :  { %v2843_v36 = vmul.f32 %v2330_v30, %v7455_v45  ;;  %v2334_v37 = vsub.f32 1.0, %v2333_v27  ;;  %vm2352_vm12 = vweird.f32 %v7549_v18 }
 0x3c3   :  { %v2065_v42 = vpop.f32.mrf.mxu0 }
 0x3c4   :  { %v2335_v43 = vmul.f32 %v5452_v19, %v2334_v37  ;;  %v3095_v46 = vmul.f32 %v2922_v35, %v2843_v36  ;;  %v7569_v45 = vadd.f32 %v7429_v21, %v2065_v42 }
 0x3c5   :  { %5332 = vmatmul.msk.f32.gmra.mxu3 %vm1920_vm10, %v1909_v38  ;;  %v3240_v50 = vld [vmem:[#allocation3 + $0x11] sm:$0xff] }
 0x3c6   :  { %v3168_v52 = vld [vmem:[#allocation3 + $0x10] sm:$0xff]  ;;  %v5454_v53 = vpop.eup %5453  ;;  %v2336_v54 = vadd.f32 %v5452_v19, %v2335_v43  ;;  %v5339_v57 = vmul.f32 -1.442695, %v7569_v45  ;;  %3314 = vrot.lane.b32.xlu0 %v3240_v50, %s5585_s15  ;;  %3131 = vst.msk [vmem:[#allocation3 + $0x1b] sm:$0xff] %vm23_vm11, %v3095_v46  ;;  %v7632_v50 = vpop.permute.xlu2 %2981 }
 0x3c7   :  { %v5456_v59 = vpop.eup %5455  ;;  %v7582_v62 = vadd.f32 1.0, %v5454_v53  ;;  %3204 = vst.msk [vmem:[#allocation2 + $0x10] sm:$0xff] %vm23_vm11, %v3168_v52 }
 0x3c8   :  { %v2340_v63 = vsel %vm2339_vm7, %v5452_v19, %v2336_v54  ;;  %v2348_v2 = vmul.f32 %v5456_v59, %v7549_v18  ;;  %5457 = vpow2.f32 %v5339_v57  ;;  %vm2353_vm9 = vweird.f32 %v5456_v59  ;;  %v7616_v18 = vpop.permute.xlu1 %2946 }
 0x3c9   :  { %v2345_v4 = vsel %vm2342_vm8, %v2344_v61, %v2340_v63  ;;  %5459 = vrcp.f32 %v7582_v62  ;;  %vm2354_vm13 = vmor %vm2352_vm12, %vm2353_vm9  ;;  %v2371_v58 = vand.u32 2147483647, %v7582_v62  ;;  %v2373_v10 = vand.u32 2147483648, %v7582_v62 }
 0x3ca   :  { %v2844_v5 = vmul.f32 %v2345_v4, %v7481_v60  ;;  %v2349_v6 = vsub.f32 1.0, %v2348_v2  ;;  %vm2367_vm15 = vweird.f32 %v7582_v62 }
 0x3cb   :  { %v2068_v26 = vpop.f32.mrf.mxu0  ;;  %v2374_v38 = vor.u32 1.1754944e-38, %v2373_v10  ;;  %vm2372_vm2 = vcmp.eq.f32.partialorder %v2371_v58, 8.507059e+37 }
 0x3cc   :  { %v2350_v33 = vmul.f32 %v5456_v59, %v2349_v6  ;;  %v3096_v14 = vmul.f32 %v7499_v8, %v2844_v5  ;;  %v7595_v7 = vadd.f32 %v7429_v21, %v2068_v26  ;;  %v2359_v8 = vor.u32 1.1754944e-38, %v2358_v20 }
 0x3cd   :  { %5333 = vmatmul.msk.f32.gmra.mxu3 %vm1920_vm10, %v1910_v15  ;;  %v3241_v16 = vld [vmem:[#allocation3 + $0x19] sm:$0xff]  ;;  %vm2357_vm10 = vcmp.eq.f32.partialorder %v2356_v17, 8.507059e+37 }
 0x3ce   :  { %v5458_v60 = vpop.eup %5457  ;;  %v2351_v13 = vadd.f32 %v5456_v59, %v2350_v33  ;;  %3132 = vst.msk [vmem:[#allocation3 + $0x23] sm:$0xff] %vm23_vm11, %v3096_v14  ;;  %v5340_v23 = vmul.f32 -1.442695, %v7595_v7  ;;  %v3169_v32 = vld [vmem:[#allocation3 + $0x18] sm:$0xff]  ;;  %3316 = vrot.lane.b32.xlu1 %v3241_v16, %s5585_s15  ;;  %v7655_v14 = vpop.permute.xlu0 %2971 }
 0x3cf   :  { %v5460_v25 = vpop.eup %5459  ;;  %v7603_v31 = vadd.f32 1.0, %v5458_v60  ;;  %3205 = vst.msk [vmem:[#allocation2 + $0x18] sm:$0xff] %vm23_vm11, %v3169_v32 }
 0x3d0   :  { %v2355_v49 = vsel %vm2354_vm13, %v5456_v59, %v2351_v13  ;;  %v2363_v34 = vmul.f32 %v5460_v25, %v7582_v62  ;;  %5461 = vpow2.f32 %v5340_v23  ;;  %v2107_v44 = vpop.f32.mrf.mxu3  ;;  %vm2368_vm14 = vweird.f32 %v5460_v25  ;;  %v7650_v20 = vpop.permute.xlu1 %2961 }
 0x3d1   :  { %v2360_v56 = vsel %vm2357_vm10, %v2359_v8, %v2355_v49  ;;  %5463 = vrcp.f32 %v7603_v31  ;;  %v7611_v1 = vadd.f32 %v7429_v21, %v2107_v44  ;;  %vm2369_vm1 = vmor %vm2367_vm15, %vm2368_vm14  ;;  %v2386_v57 = vand.u32 2147483647, %v7603_v31 }
 0x3d2   :  { %v2845_v51 = vmul.f32 %v2360_v56, %v7509_v29  ;;  %v2364_v55 = vsub.f32 1.0, %v2363_v34  ;;  %v2388_v59 = vand.u32 2147483648, %v7603_v31  ;;  %vm2382_vm4 = vweird.f32 %v7603_v31  ;;  %v7665_v34 = vpop.permute.xlu2 %2996 }
 0x3d3   :  { %v2071_v3 = vpop.f32.mrf.mxu0  ;;  %v5353_v12 = vmul.f32 -1.442695, %v7611_v1  ;;  %vm2387_vm6 = vcmp.eq.f32.partialorder %v2386_v57, 8.507059e+37 }
 0x3d4   :  { %v2365_v9 = vmul.f32 %v5460_v25, %v2364_v55  ;;  %v3097_v19 = vmul.f32 %v2932_v11, %v2845_v51  ;;  %v7621_v29 = vadd.f32 %v7429_v21, %v2071_v3  ;;  %v2389_v33 = vor.u32 1.1754944e-38, %v2388_v59 }
 0x3d5   :  { %v3242_v27 = vld [vmem:[#allocation3 + $0x21] sm:$0xff]  ;;  %5465 = vpow2.f32 %v5353_v12 }
 0x3d6   :  { %v3170_v35 = vld [vmem:[#allocation3 + $0x20] sm:$0xff]  ;;  %v5462_v30 = vpop.eup %5461  ;;  %v2366_v36 = vadd.f32 %v5460_v25, %v2365_v9  ;;  %3133 = vst.msk [vmem:[#allocation3 + $0x2b] sm:$0xff] %vm23_vm11, %v3097_v19  ;;  %3318 = vrot.lane.b32.xlu2 %v3242_v27, %s5585_s15  ;;  %v5341_v41 = vmul.f32 -1.442695, %v7621_v29 }
 0x3d7   :  { %v5464_v37 = vpop.eup %5463  ;;  %v7627_v39 = vadd.f32 1.0, %v5462_v30  ;;  %3206 = vst.msk [vmem:[#allocation2 + $0x20] sm:$0xff] %vm23_vm11, %v3170_v35 }
 0x3d8   :  { %v2370_v42 = vsel %vm2369_vm1, %v5460_v25, %v2366_v36  ;;  %v2378_v43 = vmul.f32 %v5464_v37, %v7603_v31  ;;  %v2110_v46 = vpop.f32.mrf.mxu3  ;;  %vm2383_vm3 = vweird.f32 %v5464_v37 }
 0x3d9   :  { %v2375_v52 = vsel %vm2372_vm2, %v2374_v38, %v2370_v42  ;;  %5467 = vrcp.f32 %v7627_v39  ;;  %v7639_v61 = vadd.f32 %v7429_v21, %v2110_v46  ;;  %vm2384_vm5 = vmor %vm2382_vm4, %vm2383_vm3  ;;  %v2401_v44 = vand.u32 2147483647, %v7627_v39  ;;  %v7690_v42 = vpop.permute.xlu1 %2976 }
 0x3da   :  { %v2846_v53 = vmul.f32 %v2375_v52, %v7541_v0  ;;  %v2379_v54 = vsub.f32 1.0, %v2378_v43  ;;  %5469 = vpow2.f32 %v5341_v41  ;;  %v2403_v56 = vand.u32 2147483648, %v7627_v39 }
 0x3db   :  { %v2074_v62 = vpop.f32.mrf.mxu0  ;;  %v5466_v63 = vpop.eup %5465  ;;  %v5354_v0 = vmul.f32 -1.442695, %v7639_v61  ;;  %vm2397_vm8 = vweird.f32 %v7627_v39  ;;  %vm2402_vm12 = vcmp.eq.f32.partialorder %v2401_v44, 8.507059e+37 }
 0x3dc   :  { %v2380_v2 = vmul.f32 %v5464_v37, %v2379_v54  ;;  %v3098_v4 = vmul.f32 %v7532_v48, %v2846_v53  ;;  %v7643_v5 = vadd.f32 %v7429_v21, %v2074_v62  ;;  %v7645_v6 = vadd.f32 1.0, %v5466_v63  ;;  %v7694_v54 = vpop.permute.xlu0 %2986 }
 0x3dd   :  { %v3243_v11 = vld [vmem:[#allocation3 + $0x29] sm:$0xff]  ;;  %v2404_v30 = vor.u32 1.1754944e-38, %v2403_v56 }
 0x3de   :  { %v3171_v15 = vld [vmem:[#allocation3 + $0x28] sm:$0xff]  ;;  %v2381_v17 = vadd.f32 %v5464_v37, %v2380_v2  ;;  %3134 = vst.msk [vmem:[#allocation3 + $0x33] sm:$0xff] %vm23_vm11, %v3098_v4  ;;  %v5342_v26 = vmul.f32 -1.442695, %v7643_v5  ;;  %3320 = vrot.lane.b32.xlu0 %v3243_v11, %s5585_s15  ;;  %5471 = vrcp.f32 %v7645_v6  ;;  %vm2592_vm13 = vweird.f32 %v7645_v6 }
 0x3df   :  { %v5468_v48 = vpop.eup %5467  ;;  %3207 = vst.msk [vmem:[#allocation2 + $0x28] sm:$0xff] %vm23_vm11, %v3171_v15  ;;  %5473 = vpow2.f32 %v5354_v0  ;;  %v2596_v53 = vand.u32 2147483647, %v7645_v6 }
 0x3e0   :  { %v5470_v60 = vpop.eup %5469  ;;  %v2385_v13 = vsel %vm2384_vm5, %v5464_v37, %v2381_v17  ;;  %v2393_v23 = vmul.f32 %v5468_v48, %v7627_v39  ;;  %v2113_v16 = vpop.f32.mrf.mxu3  ;;  %5475 = vpow2.f32 %v5342_v26  ;;  %vm2398_vm7 = vweird.f32 %v5468_v48 }
 0x3e1   :  { %v2390_v32 = vsel %vm2387_vm6, %v2389_v33, %v2385_v13  ;;  %v7659_v25 = vadd.f32 1.0, %v5470_v60  ;;  %v7663_v49 = vadd.f32 %v7429_v21, %v2113_v16  ;;  %vm2399_vm9 = vmor %vm2397_vm8, %vm2398_vm7  ;;  %v7712_v33 = vpop.permute.xlu2 %3011  ;;  %vm7714_vm15 = vcmp.eq.f32.partialorder %v2596_v53, 8.507059e+37 }
 0x3e2   :  { %v2847_v8 = vmul.f32 %v2390_v32, %v7569_v45  ;;  %v2394_v31 = vsub.f32 1.0, %v2393_v23 }
 0x3e3   :  { %5477 = vrcp.f32 %v7659_v25  ;;  %v2077_v51 = vpop.f32.mrf.mxu0  ;;  %v5355_v45 = vmul.f32 -1.442695, %v7663_v49  ;;  %v2416_v4 = vand.u32 2147483647, %v7659_v25  ;;  %v2418_v0 = vand.u32 2147483648, %v7659_v25 }
 0x3e4   :  { %v3099_v55 = vmul.f32 %v7591_v24, %v2847_v8  ;;  %v2395_v58 = vmul.f32 %v5468_v48, %v2394_v31  ;;  %v7673_v10 = vadd.f32 %v7429_v21, %v2077_v51  ;;  %v7675_v3 = vpop.eup %5471  ;;  %v2598_v24 = vand.u32 2147483648, %v7645_v6 }
 0x3e5   :  { %v3244_v9 = vld [vmem:[#allocation3 + $0x31] sm:$0xff]  ;;  %v5474_v12 = vpop.eup %5473  ;;  %v2588_v35 = vmul.f32 %v7675_v3, %v7645_v6  ;;  %5479 = vpow2.f32 %v5355_v45  ;;  %vm2593_vm10 = vweird.f32 %v7675_v3  ;;  %vm2412_vm1 = vweird.f32 %v7659_v25 }
 0x3e6   :  { %v3172_v19 = vld [vmem:[#allocation3 + $0x30] sm:$0xff]  ;;  %3135 = vst.msk [vmem:[#allocation3 + $0x3b] sm:$0xff] %vm23_vm11, %v3099_v55  ;;  %v2396_v27 = vadd.f32 %v5468_v48, %v2395_v58  ;;  %3322 = vrot.lane.b32.xlu1 %v3244_v9, %s5585_s15  ;;  %v7684_v36 = vadd.f32 1.0, %v5474_v12  ;;  %v5343_v37 = vmul.f32 -1.442695, %v7673_v10  ;;  %v5476_v38 = vpop.eup %5475  ;;  %v2599_v62 = vor.u32 1.1754944e-38, %v2598_v24  ;;  %vm7699_vm14 = vmor %vm2592_vm13, %vm2593_vm10 }
 0x3e7   :  { %3208 = vst.msk [vmem:[#allocation2 + $0x30] sm:$0xff] %vm23_vm11, %v3172_v19  ;;  %v2589_v41 = vsub.f32 1.0, %v2588_v35  ;;  %v7705_v6 = vadd.f32 1.0, %v5476_v38  ;;  %vm7728_vm3 = vcmp.eq.f32.partialorder %v2416_v4, 8.507059e+37  ;;  %v2419_v56 = vor.u32 1.1754944e-38, %v2418_v0  ;;  %v7753_v38 = vpop.permute.xlu1 %2991 }
 0x3e8   :  { %v2400_v39 = vsel %vm2399_vm9, %v5468_v48, %v2396_v27  ;;  %v2116_v43 = vpop.f32.mrf.mxu3  ;;  %5481 = vrcp.f32 %v7684_v36  ;;  %v2611_v13 = vand.u32 2147483647, %v7684_v36  ;;  %v2613_v9 = vand.u32 2147483648, %v7684_v36 }
 0x3e9   :  { %v5478_v46 = vpop.eup %5477  ;;  %v2405_v52 = vsel %vm2402_vm12, %v2404_v30, %v2400_v39  ;;  %v2590_v59 = vmul.f32 %v7675_v3, %v2589_v41  ;;  %5483 = vpow2.f32 %v5343_v37  ;;  %v7710_v48 = vadd.f32 %v7429_v21, %v2116_v43  ;;  %v7758_v43 = vpop.permute.xlu0 %3001 }
 0x3ea   :  { %v2848_v57 = vmul.f32 %v2405_v52, %v7595_v7  ;;  %v2408_v63 = vmul.f32 %v5478_v46, %v7659_v25  ;;  %5485 = vrcp.f32 %v7705_v6  ;;  %vm2413_vm2 = vweird.f32 %v5478_v46 }
 0x3eb   :  { %v2080_v11 = vpop.f32.mrf.mxu0  ;;  %v5480_v15 = vpop.eup %5479  ;;  %v2591_v7 = vadd.f32 %v7675_v3, %v2590_v59  ;;  %v5356_v51 = vmul.f32 -1.442695, %v7710_v48  ;;  %vm2414_vm4 = vmor %vm2412_vm1, %vm2413_vm2  ;;  %vm2607_vm5 = vweird.f32 %v7684_v36  ;;  %vm7745_vm6 = vcmp.eq.f32.partialorder %v2611_v13, 8.507059e+37 }
 0x3ec   :  { %v3100_v17 = vmul.f32 %v7616_v18, %v2848_v57  ;;  %v2409_v26 = vsub.f32 1.0, %v2408_v63  ;;  %v7725_v8 = vadd.f32 1.0, %v5480_v15  ;;  %v7734_v55 = vadd.f32 %v7429_v21, %v2080_v11  ;;  %v7763_v63 = vpop.permute.xlu2 %3026 }
 0x3ed   :  { %v3245_v23 = vld [vmem:[#allocation3 + $0x39] sm:$0xff]  ;;  %v2595_v18 = vsel %vm7699_vm14, %v7675_v3, %v2591_v7  ;;  %v2431_v35 = vand.u32 2147483647, %v7705_v6  ;;  %v2614_v59 = vor.u32 1.1754944e-38, %v2613_v9  ;;  %vm2427_vm9 = vweird.f32 %v7705_v6 }
 0x3ee   :  { %v3173_v16 = vld [vmem:[#allocation3 + $0x38] sm:$0xff]  ;;  %3136 = vst.msk [vmem:[#allocation3 + $0x43] sm:$0xff] %vm23_vm11, %v3100_v17  ;;  %v2410_v32 = vmul.f32 %v5478_v46, %v2409_v26  ;;  %3324 = vrot.lane.b32.xlu2 %v3245_v23, %s5585_s15  ;;  %v5482_v31 = vpop.eup %5481  ;;  %v2600_v58 = vsel %vm7714_vm15, %v2599_v62, %v2595_v18  ;;  %5487 = vrcp.f32 %v7725_v8  ;;  %v5344_v52 = vmul.f32 -1.442695, %v7734_v55 }
 0x3ef   :  { %3209 = vst.msk [vmem:[#allocation2 + $0x38] sm:$0xff] %vm23_vm11, %v3173_v16  ;;  %v2603_v3 = vmul.f32 %v5482_v31, %v7684_v36  ;;  %v5484_v12 = vpop.eup %5483  ;;  %vm2608_vm7 = vweird.f32 %v5482_v31  ;;  %v2861_v25 = vmul.f32 %v2600_v58, %v7611_v1  ;;  %5489 = vpow2.f32 %v5356_v51 }
 0x3f0   :  { %v2411_v45 = vadd.f32 %v5478_v46, %v2410_v32  ;;  %v2119_v19 = vpop.f32.mrf.mxu3  ;;  %v7751_v37 = vadd.f32 1.0, %v5484_v12  ;;  %v5486_v39 = vpop.eup %5485  ;;  %vm7768_vm8 = vmor %vm2607_vm5, %vm2608_vm7  ;;  %vm7773_vm12 = vcmp.eq.f32.partialorder %v2431_v35, 8.507059e+37  ;;  %vm2622_vm13 = vweird.f32 %v7725_v8 }
 0x3f1   :  { %v2604_v30 = vsub.f32 1.0, %v2603_v3  ;;  %v2423_v62 = vmul.f32 %v5486_v39, %v7705_v6  ;;  %v2626_v17 = vand.u32 2147483647, %v7725_v8  ;;  %v3113_v26 = vmul.f32 %v7712_v33, %v2861_v25  ;;  %v7812_v25 = vpop.permute.xlu1 %3006 }
 0x3f2   :  { %v2415_v24 = vsel %vm2414_vm4, %v5478_v46, %v2411_v45  ;;  %5491 = vrcp.f32 %v7751_v37  ;;  %v7786_v60 = vadd.f32 %v7429_v21, %v2119_v19  ;;  %vm2428_vm10 = vweird.f32 %v5486_v39 }
 0x3f3   :  { %v2420_v41 = vsel %vm7728_vm3, %v2419_v56, %v2415_v24  ;;  %v2083_v53 = vpop.f32.mrf.mxu0  ;;  %v2605_v57 = vmul.f32 %v5482_v31, %v2604_v30  ;;  %v2424_v36 = vsub.f32 1.0, %v2423_v62  ;;  %5493 = vpow2.f32 %v5344_v52  ;;  %3149 = vst.msk [vmem:[#allocation3 + $0xab] sm:$0xff] %vm23_vm11, %v3113_v26  ;;  %vm2429_vm15 = vmor %vm2427_vm9, %vm2428_vm10 }
 0x3f4   :  { %v2849_v46 = vmul.f32 %v2420_v41, %v7621_v29  ;;  %v2433_v29 = vand.u32 2147483648, %v7705_v6  ;;  %v5488_v7 = vpop.eup %5487  ;;  %v2628_v44 = vand.u32 2147483648, %v7725_v8  ;;  %v5357_v33 = vmul.f32 -1.442695, %v7786_v60  ;;  %v7827_v1 = vpop.permute.xlu2 %3041 }
 0x3f5   :  { %v3246_v4 = vld [vmem:[#allocation3 + $0x41] sm:$0xff]  ;;  %v2606_v15 = vadd.f32 %v5482_v31, %v2605_v57  ;;  %v2425_v13 = vmul.f32 %v5486_v39, %v2424_v36  ;;  %v2618_v23 = vmul.f32 %v5488_v7, %v7725_v8  ;;  %v5490_v18 = vpop.eup %5489  ;;  %v7798_v56 = vadd.f32 %v7429_v21, %v2083_v53  ;;  %v3017_v53 = vpop.permute.xlu0 %3016 }
 0x3f6   :  { %v3174_v0 = vld [vmem:[#allocation3 + $0x40] sm:$0xff]  ;;  %v3101_v11 = vmul.f32 %v7571_v47, %v2849_v46  ;;  %3326 = vrot.lane.b32.xlu0 %v3246_v4, %s5585_s15  ;;  %vm2623_vm14 = vweird.f32 %v5488_v7  ;;  %v7800_v58 = vadd.f32 1.0, %v5490_v18  ;;  %v2434_v9 = vor.u32 1.1754944e-38, %v2433_v29 }
 0x3f7   :  { %3210 = vst.msk [vmem:[#allocation2 + $0x40] sm:$0xff] %vm23_vm11, %v3174_v0  ;;  %v2610_v47 = vsel %vm7768_vm8, %v5482_v31, %v2606_v15  ;;  %v2426_v51 = vadd.f32 %v5486_v39, %v2425_v13  ;;  %v2619_v31 = vsub.f32 1.0, %v2618_v23  ;;  %5495 = vpow2.f32 %v5357_v33  ;;  %vm7819_vm2 = vmor %vm2622_vm13, %vm2623_vm14 }
 0x3f8   :  { %3137 = vst.msk [vmem:[#allocation3 + $0x4b] sm:$0xff] %vm23_vm11, %v3101_v11  ;;  %v2122_v16 = vpop.f32.mrf.mxu3  ;;  %v2615_v32 = vsel %vm7745_vm6, %v2614_v59, %v2610_v47  ;;  %v5492_v45 = vpop.eup %5491  ;;  %v5345_v19 = vmul.f32 -1.442695, %v7798_v56  ;;  %vm7807_vm1 = vcmp.eq.f32.partialorder %v2626_v17, 8.507059e+37  ;;  %v2446_v52 = vand.u32 2147483647, %v7751_v37 }
 0x3f9   :  { %v2862_v3 = vmul.f32 %v2615_v32, %v7639_v61  ;;  %v2430_v27 = vsel %vm2429_vm15, %v5486_v39, %v2426_v51  ;;  %v2620_v35 = vmul.f32 %v5488_v7, %v2619_v31  ;;  %v2438_v30 = vmul.f32 %v5492_v45, %v7751_v37  ;;  %v5494_v61 = vpop.eup %5493 }
 0x3fa   :  { %v2435_v6 = vsel %vm7773_vm12, %v2434_v9, %v2430_v27  ;;  %v2629_v39 = vor.u32 1.1754944e-38, %v2628_v44  ;;  %5497 = vrcp.f32 %v7800_v58  ;;  %v2448_v62 = vand.u32 2147483648, %v7751_v37  ;;  %v3022_v27 = vpop.permute.xlu1 %3021 }
 0x3fb   :  { %v2086_v12 = vpop.f32.mrf.mxu0  ;;  %v2850_v46 = vmul.f32 %v2435_v6, %v7643_v5  ;;  %v2621_v57 = vadd.f32 %v5488_v7, %v2620_v35  ;;  %v2439_v59 = vsub.f32 1.0, %v2438_v30  ;;  %v7829_v2 = vadd.f32 1.0, %v5494_v61 }
 0x3fc   :  { %v3114_v8 = vmul.f32 %v3017_v53, %v2862_v3  ;;  %5499 = vpow2.f32 %v5345_v19  ;;  %v7832_v29 = vadd.f32 %v7429_v21, %v2122_v16  ;;  %vm2443_vm3 = vweird.f32 %v5492_v45 }
 0x3fd   :  { %v3102_v11 = vmul.f32 %v7618_v28, %v2850_v46  ;;  %v2625_v5 = vsel %vm7819_vm2, %v5488_v7, %v2621_v57  ;;  %v2440_v15 = vmul.f32 %v5492_v45, %v2439_v59  ;;  %v5496_v17 = vpop.eup %5495  ;;  %vm2442_vm4 = vweird.f32 %v7751_v37  ;;  %v7872_v30 = vpop.permute.xlu0 %3031 }
 0x3fe   :  { %v2630_v26 = vsel %vm7807_vm1, %v2629_v39, %v2625_v5  ;;  %5501 = vrcp.f32 %v7829_v2  ;;  %3150 = vst.msk [vmem:[#allocation3 + $0xb3] sm:$0xff] %vm23_vm11, %v3114_v8  ;;  %vm2447_vm5 = vcmp.eq.f32.partialorder %v2446_v52, 8.507059e+37  ;;  %v2641_v7 = vand.u32 2147483647, %v7800_v58  ;;  %vm2444_vm6 = vmor %vm2442_vm4, %vm2443_vm3  ;;  %v7890_v57 = vpop.permute.xlu2 %3056 }
 0x3ff   :  { %v3247_v4 = vld [vmem:[#allocation3 + $0x49] sm:$0xff]  ;;  %3138 = vst.msk [vmem:[#allocation3 + $0x53] sm:$0xff] %vm23_vm11, %v3102_v11  ;;  %v2441_v28 = vadd.f32 %v5492_v45, %v2440_v15  ;;  %v7846_v47 = vadd.f32 1.0, %v5496_v17  ;;  %v2863_v23 = vmul.f32 %v2630_v26, %v7663_v49  ;;  %v2449_v16 = vor.u32 1.1754944e-38, %v2448_v62  ;;  %v7912_v15 = vld [vmem:[%s9667_s3] ss:$0 sm:$0xff] }
 0x400   :  { %v3175_v0 = vld [vmem:[#allocation3 + $0x48] sm:$0xff]  ;;  %3328 = vrot.lane.b32.xlu1 %v3247_v4, %s5585_s15  ;;  %v2125_v36 = vpop.f32.mrf.mxu3  ;;  %v7848_v13 = vpop.eup %5497  ;;  %v5358_v37 = vmul.f32 -1.442695, %v7832_v29  ;;  %v7854_v18 = vadd.f32 %v7429_v21, %v2086_v12  ;;  %vm2637_vm7 = vweird.f32 %v7800_v58  ;;  %v2643_v51 = vand.u32 2147483648, %v7800_v58  ;;  %s5594_s3 = smov 40  }
 0x401   :  { %3211 = vst.msk [vmem:[#allocation2 + $0x48] sm:$0xff] %vm23_vm11, %v3175_v0  ;;  %v2445_v44 = vsel %vm2444_vm6, %v5492_v45, %v2441_v28  ;;  %v2633_v33 = vmul.f32 %v7848_v13, %v7800_v58  ;;  %vm2638_vm8 = vweird.f32 %v7848_v13  ;;  %v2461_v49 = vand.u32 2147483647, %v7829_v2 }
 0x402   :  { %v5500_v31 = vpop.eup %5499  ;;  %v2450_v3 = vsel %vm2447_vm5, %v2449_v16, %v2445_v44  ;;  %5503 = vrcp.f32 %v7846_v47  ;;  %vm7864_vm9 = vcmp.eq.f32.partialorder %v2641_v7, 8.507059e+37  ;;  %v3115_v24 = vmul.f32 %v3022_v27, %v2863_v23  ;;  %vm7884_vm12 = vmor %vm2637_vm7, %vm2638_vm8 }
 0x403   :  { %v2089_v32 = vpop.f32.mrf.mxu0  ;;  %v2851_v9 = vmul.f32 %v2450_v3, %v7673_v10  ;;  %v2634_v19 = vsub.f32 1.0, %v2633_v33  ;;  %v7868_v12 = vadd.f32 1.0, %v5500_v31  ;;  %5505 = vpow2.f32 %v5358_v37 }
 0x404   :  { %v7870_v35 = vpop.eup %5501  ;;  %v5346_v61 = vmul.f32 -1.442695, %v7854_v18  ;;  %v7876_v6 = vadd.f32 %v7429_v21, %v2125_v36  ;;  %v2644_v52 = vor.u32 1.1754944e-38, %v2643_v51  ;;  %vm2457_vm13 = vweird.f32 %v7829_v2  ;;  %3151 = vst.msk [vmem:[#allocation3 + $0xbb] sm:$0xff] %vm23_vm11, %v3115_v24 }
 0x405   :  { %v3103_v10 = vmul.f32 %v7650_v20, %v2851_v9  ;;  %v2635_v41 = vmul.f32 %v7848_v13, %v2634_v19  ;;  %v2453_v53 = vmul.f32 %v7870_v35, %v7829_v2  ;;  %vm7893_vm10 = vcmp.eq.f32.partialorder %v2461_v49, 8.507059e+37  ;;  %v3188_v62 = vld [vmem:[#allocation3 + $0xb0] sm:$0xff] }
 0x406   :  { %v2463_v20 = vand.u32 2147483648, %v7829_v2  ;;  %5507 = vrcp.f32 %v7868_v12  ;;  %v3248_v58 = vld [vmem:[#allocation3 + $0x51] sm:$0xff]  ;;  %vm2652_vm14 = vweird.f32 %v7846_v47  ;;  %vm2458_vm15 = vweird.f32 %v7870_v35  ;;  %3224 = vst.msk [vmem:[#allocation2 + $0xb0] sm:$0xff] %vm23_vm11, %v3188_v62 }
 0x407   :  { %v3176_v59 = vld [vmem:[#allocation3 + $0x50] sm:$0xff]  ;;  %3139 = vst.msk [vmem:[#allocation3 + $0x5b] sm:$0xff] %vm23_vm11, %v3103_v10  ;;  %v2636_v8 = vadd.f32 %v7848_v13, %v2635_v41  ;;  %v2454_v4 = vsub.f32 1.0, %v2453_v53  ;;  %5509 = vpow2.f32 %v5346_v61  ;;  %3330 = vrot.lane.b32.xlu2 %v3248_v58, %s5585_s15  ;;  %v2656_v11 = vand.u32 2147483647, %v7846_v47  ;;  %vm2459_vm2 = vmor %vm2457_vm13, %vm2458_vm15  ;;  %v7968_v53 = vpop.permute.xlu0 %3046 }
 0x408   :  { %v2128_v46 = vpop.f32.mrf.mxu3  ;;  %v7904_v0 = vpop.eup %5503  ;;  %v5359_v5 = vmul.f32 -1.442695, %v7876_v6  ;;  %v7915_v36 = vadd.f32 %v7912_v15, %v2089_v32  ;;  %3212 = vst.msk [vmem:[#allocation2 + $0x50] sm:$0xff] %vm23_vm11, %v3176_v59  ;;  %v2658_v32 = vand.u32 2147483648, %v7846_v47  ;;  %v2464_v49 = vor.u32 1.1754944e-38, %v2463_v20 }
 0x409   :  { %v2640_v26 = vsel %vm7884_vm12, %v7848_v13, %v2636_v8  ;;  %v2455_v28 = vmul.f32 %v7870_v35, %v2454_v4  ;;  %v2648_v7 = vmul.f32 %v7904_v0, %v7846_v47  ;;  %v7925_v23 = vadd.f32 %v7912_v15, %v2128_v46  ;;  %v5506_v16 = vpop.eup %5505  ;;  %v7975_v59 = vpop.permute.xlu2 %3071 }
 0x40a   :  { %v2645_v37 = vsel %vm7864_vm9, %v2644_v52, %v2640_v26  ;;  %5511 = vpow2.f32 %v5359_v5  ;;  %v5347_v44 = vmul.f32 -1.442695, %v7915_v36  ;;  %vm2653_vm1 = vweird.f32 %v7904_v0  ;;  %v7966_v52 = vpop.permute.xlu1 %3036 }
 0x40b   :  { %v2092_v17 = vpop.f32.mrf.mxu0  ;;  %v2456_v13 = vadd.f32 %v7870_v35, %v2455_v28  ;;  %v2649_v33 = vsub.f32 1.0, %v2648_v7  ;;  %v7934_v51 = vadd.f32 1.0, %v5506_v16  ;;  %v2864_v3 = vmul.f32 %v2645_v37, %v7710_v48  ;;  %v3189_v2 = vld [vmem:[#allocation3 + $0xb8] sm:$0xff]  ;;  %vm7960_vm4 = vmor %vm2652_vm14, %vm2653_vm1 }
 0x40c   :  { %v7936_v31 = vpop.eup %5507  ;;  %vm7943_vm3 = vcmp.eq.f32.partialorder %v2656_v11, 8.507059e+37  ;;  %5513 = vpow2.f32 %v5347_v44  ;;  %v5360_v48 = vmul.f32 -1.442695, %v7925_v23  ;;  %v2476_v39 = vand.u32 2147483647, %v7868_v12  ;;  %3225 = vst.msk [vmem:[#allocation2 + $0xb8] sm:$0xff] %vm23_vm11, %v3189_v2 }
 0x40d   :  { %v5510_v19 = vpop.eup %5509  ;;  %v2460_v45 = vsel %vm2459_vm2, %v7870_v35, %v2456_v13  ;;  %v2650_v27 = vmul.f32 %v7904_v0, %v2649_v33  ;;  %v2468_v24 = vmul.f32 %v7936_v31, %v7868_v12  ;;  %v2659_v35 = vor.u32 1.1754944e-38, %v2658_v32 }
 0x40e   :  { %v2465_v10 = vsel %vm7893_vm10, %v2464_v49, %v2460_v45  ;;  %5515 = vrcp.f32 %v7934_v51  ;;  %v3249_v46 = vld [vmem:[#allocation3 + $0x59] sm:$0xff]  ;;  %vm2472_vm5 = vweird.f32 %v7868_v12  ;;  %vm2473_vm6 = vweird.f32 %v7936_v31 }
 0x40f   :  { %v3177_v21 = vld [vmem:[#allocation3 + $0x58] sm:$0xff]  ;;  %v2852_v20 = vmul.f32 %v2465_v10, %v7734_v55  ;;  %v2651_v47 = vadd.f32 %v7904_v0, %v2650_v27  ;;  %v2469_v58 = vsub.f32 1.0, %v2468_v24  ;;  %3332 = vrot.lane.b32.xlu0 %v3249_v46, %s5585_s15  ;;  %v2478_v8 = vand.u32 2147483648, %v7868_v12  ;;  %vm2474_vm8 = vmor %vm2472_vm5, %vm2473_vm6 }
 0x410   :  { %v7952_v61 = vpop.f32.mrf.mxu3  ;;  %3213 = vst.msk [vmem:[#allocation2 + $0x58] sm:$0xff] %vm23_vm11, %v3177_v21  ;;  %v5512_v62 = vpop.eup %5511  ;;  %v7980_v4 = vadd.f32 1.0, %v5510_v19  ;;  %v3116_v55 = vmul.f32 %v7763_v63, %v2864_v3  ;;  %5517 = vpow2.f32 %v5360_v48  ;;  %vm7992_vm7 = vcmp.eq.f32.partialorder %v2476_v39, 8.507059e+37 }
 0x411   :  { %v3104_v11 = vmul.f32 %v7601_v22, %v2852_v20  ;;  %v2655_v5 = vsel %vm7960_vm4, %v7904_v0, %v2651_v47  ;;  %v2470_v26 = vmul.f32 %v7936_v31, %v2469_v58  ;;  %v7999_v22 = vadd.f32 %v7912_v15, %v2092_v17  ;;  %v8042_v39 = vpop.permute.xlu0 %3061 }
 0x412   :  { %v5514_v7 = vpop.eup %5513  ;;  %v2660_v16 = vsel %vm7943_vm3, %v2659_v35, %v2655_v5  ;;  %5519 = vrcp.f32 %v7980_v4  ;;  %3152 = vst.msk [vmem:[#allocation3 + $0xc3] sm:$0xff] %vm23_vm11, %v3116_v55  ;;  %v2671_v32 = vand.u32 2147483647, %v7934_v51  ;;  %v8005_v44 = vadd.f32 1.0, %v5512_v62  ;;  %v8040_v35 = vpop.permute.xlu1 %3051 }
 0x413   :  { %v7988_v28 = vpop.f32.mrf.mxu0  ;;  %3140 = vst.msk [vmem:[#allocation3 + $0x63] sm:$0xff] %vm23_vm11, %v3104_v11  ;;  %v2865_v63 = vmul.f32 %v2660_v16, %v7786_v60  ;;  %v2471_v0 = vadd.f32 %v7936_v31, %v2470_v26  ;;  %v2479_v33 = vor.u32 1.1754944e-38, %v2478_v8  ;;  %vm2667_vm9 = vweird.f32 %v7934_v51  ;;  %v8061_v62 = vpop.permute.xlu2 %3086 }
 0x414   :  { %v8007_v13 = vpop.eup %5515  ;;  %v2673_v17 = vand.u32 2147483648, %v7934_v51  ;;  %v8015_v3 = vadd.f32 1.0, %v5514_v7  ;;  %v2491_v19 = vand.u32 2147483647, %v7980_v4  ;;  %v2493_v27 = vand.u32 2147483648, %v7980_v4 }
 0x415   :  { %v2475_v60 = vsel %vm2474_vm8, %v7936_v31, %v2471_v0  ;;  %v2663_v49 = vmul.f32 %v8007_v13, %v7934_v51  ;;  %v3117_v9 = vmul.f32 %v7872_v30, %v2865_v63  ;;  %vm2668_vm12 = vweird.f32 %v8007_v13 }
 0x416   :  { %v2480_v12 = vsel %vm7992_vm7, %v2479_v33, %v2475_v60  ;;  %5521 = vrcp.f32 %v8005_v44  ;;  %v5518_v24 = vpop.eup %5517  ;;  %vm8030_vm13 = vcmp.eq.f32.partialorder %v2671_v32, 8.507059e+37  ;;  %v5348_v30 = vmul.f32 -1.442695, %v7999_v22  ;;  %vm8054_vm14 = vmor %vm2667_vm9, %vm2668_vm12 }
 0x417   :  { %v2853_v31 = vmul.f32 %v2480_v12, %v7798_v56  ;;  %v2664_v48 = vsub.f32 1.0, %v2663_v49  ;;  %3153 = vst.msk [vmem:[#allocation3 + $0xcb] sm:$0xff] %vm23_vm11, %v3117_v9  ;;  %v2674_v41 = vor.u32 1.1754944e-38, %v2673_v17  ;;  %vm2487_vm10 = vweird.f32 %v7980_v4 }
 0x418   :  { %v8022_v45 = vpop.f32.mrf.mxu3  ;;  %v8036_v10 = vpop.eup %5519  ;;  %5523 = vrcp.f32 %v8015_v3  ;;  %v8046_v56 = vadd.f32 %v7912_v15, %v7952_v61  ;;  %v2686_v58 = vand.u32 2147483647, %v8005_v44  ;;  %vm8063_vm15 = vcmp.eq.f32.partialorder %v2491_v19, 8.507059e+37 }
 0x419   :  { %v3105_v46 = vmul.f32 %v7655_v14, %v2853_v31  ;;  %v2665_v21 = vmul.f32 %v8007_v13, %v2664_v48  ;;  %v2483_v47 = vmul.f32 %v8036_v10, %v7980_v4  ;;  %v2494_v14 = vor.u32 1.1754944e-38, %v2493_v27  ;;  %v3190_v11 = vld [vmem:[#allocation3 + $0xc0] sm:$0xff] }
 0x41a   :  { %vm2682_vm1 = vweird.f32 %v8005_v44  ;;  %v2688_v51 = vand.u32 2147483648, %v8005_v44  ;;  %v3250_v8 = vld [vmem:[#allocation3 + $0x61] sm:$0xff]  ;;  %v8071_v7 = vadd.f32 1.0, %v5518_v24  ;;  %5525 = vpow2.f32 %v5348_v30  ;;  %3226 = vst.msk [vmem:[#allocation2 + $0xc0] sm:$0xff] %vm23_vm11, %v3190_v11 }
 0x41b   :  { %v3178_v55 = vld [vmem:[#allocation3 + $0x60] sm:$0xff]  ;;  %3141 = vst.msk [vmem:[#allocation3 + $0x6b] sm:$0xff] %vm23_vm11, %v3105_v46  ;;  %v2666_v5 = vadd.f32 %v8007_v13, %v2665_v21  ;;  %v2484_v26 = vsub.f32 1.0, %v2483_v47  ;;  %3334 = vrot.lane.b32.xlu1 %v3250_v8, %s5585_s15  ;;  %v2098_v16 = vpop.f32.mrf.mxu0  ;;  %vm2488_vm2 = vweird.f32 %v8036_v10  ;;  %v2506_v63 = vand.u32 2147483647, %v8015_v3  ;;  %v8130_v8 = vpop.permute.xlu1 %3066 }
 0x41c   :  { %v8074_v37 = vpop.eup %5521  ;;  %v2508_v0 = vand.u32 2147483648, %v8015_v3  ;;  %v5361_v32 = vmul.f32 -1.442695, %v8046_v56  ;;  %3214 = vst.msk [vmem:[#allocation2 + $0x60] sm:$0xff] %vm23_vm11, %v3178_v55  ;;  %vm8087_vm3 = vcmp.eq.f32.partialorder %v2686_v58, 8.507059e+37  ;;  %vm2502_vm4 = vweird.f32 %v8015_v3  ;;  %vm2489_vm6 = vmor %vm2487_vm10, %vm2488_vm2 }
 0x41d   :  { %v2670_v33 = vsel %vm8054_vm14, %v8007_v13, %v2666_v5  ;;  %v2485_v17 = vmul.f32 %v8036_v10, %v2484_v26  ;;  %v2678_v60 = vmul.f32 %v8074_v37, %v8005_v44  ;;  %vm2683_vm5 = vweird.f32 %v8074_v37  ;;  %v8145_v26 = vpop.permute.xlu2 %3312 }
 0x41e   :  { %v5524_v19 = vpop.eup %5523  ;;  %v2675_v12 = vsel %vm8030_vm13, %v2674_v41, %v2670_v33  ;;  %v2689_v13 = vor.u32 1.1754944e-38, %v2688_v51  ;;  %5527 = vrcp.f32 %v8071_v7  ;;  %v3191_v27 = vld [vmem:[#allocation3 + $0xc8] sm:$0xff]  ;;  %vm8107_vm7 = vcmp.eq.f32.partialorder %v2506_v63, 8.507059e+37  ;;  %vm8124_vm8 = vmor %vm2682_vm1, %vm2683_vm5 }
 0x41f   :  { %v2866_v24 = vmul.f32 %v2675_v12, %v7832_v29  ;;  %v2486_v31 = vadd.f32 %v8036_v10, %v2485_v17  ;;  %v2679_v48 = vsub.f32 1.0, %v2678_v60  ;;  %v2498_v30 = vmul.f32 %v5524_v19, %v8015_v3  ;;  %3227 = vst.msk [vmem:[#allocation2 + $0xc8] sm:$0xff] %vm23_vm11, %v3191_v27 }
 0x420   :  { %v8092_v9 = vpop.f32.mrf.mxu3  ;;  %v2509_v41 = vor.u32 1.1754944e-38, %v2508_v0  ;;  %5529 = vpow2.f32 %v5361_v32  ;;  %v8113_v29 = vadd.f32 %v7912_v15, %v7988_v28  ;;  %v5526_v46 = vpop.eup %5525  ;;  %v8139_v61 = vadd.f32 %v7912_v15, %v2098_v16 }
 0x421   :  { %v2490_v21 = vsel %vm2489_vm6, %v8036_v10, %v2486_v31  ;;  %v2680_v20 = vmul.f32 %v8074_v37, %v2679_v48  ;;  %v3118_v47 = vmul.f32 %v7966_v52, %v2866_v24  ;;  %v2499_v58 = vsub.f32 1.0, %v2498_v30  ;;  %v8132_v10 = vpop.permute.xlu0 %3076 }
 0x422   :  { %v2495_v4 = vsel %vm8063_vm15, %v2494_v14, %v2490_v21  ;;  %v8128_v28 = vadd.f32 1.0, %v5526_v46  ;;  %v8136_v52 = vadd.f32 %v7912_v15, %v8022_v45  ;;  %v3251_v14 = vld [vmem:[#allocation3 + $0x69] sm:$0xff]  ;;  %vm2503_vm9 = vweird.f32 %v5524_v19 }
 0x423   :  { %v3179_v55 = vld [vmem:[#allocation3 + $0x68] sm:$0xff]  ;;  %v2854_v44 = vmul.f32 %v2495_v4, %v7854_v18  ;;  %v2681_v11 = vadd.f32 %v8074_v37, %v2680_v20  ;;  %3154 = vst.msk [vmem:[#allocation3 + $0xd3] sm:$0xff] %vm23_vm11, %v3118_v47  ;;  %v2500_v5 = vmul.f32 %v5524_v19, %v2499_v58  ;;  %3336 = vrot.lane.b32.xlu2 %v3251_v14, %s5585_s15  ;;  %vm2697_vm12 = vweird.f32 %v8071_v7  ;;  %v2101_v17 = vpop.f32.mrf.mxu0  ;;  %vm2504_vm13 = vmor %vm2502_vm4, %vm2503_vm9  ;;  %v8200_v4 = vpop.permute.xlu1 %3081 }
 0x424   :  { %v5528_v63 = vpop.eup %5527  ;;  %v2701_v45 = vand.u32 2147483647, %v8071_v7  ;;  %5531 = vrcp.f32 %v8128_v28  ;;  %v5349_v16 = vmul.f32 -1.442695, %v8113_v29  ;;  %3215 = vst.msk [vmem:[#allocation2 + $0x68] sm:$0xff] %vm23_vm11, %v3179_v55  ;;  %vm2517_vm1 = vweird.f32 %v8128_v28 }
 0x425   :  { %v3106_v18 = vmul.f32 %v7690_v42, %v2854_v44  ;;  %v2685_v0 = vsel %vm8124_vm8, %v8074_v37, %v2681_v11  ;;  %v2501_v32 = vadd.f32 %v5524_v19, %v2500_v5  ;;  %v2693_v33 = vmul.f32 %v5528_v63, %v8071_v7 }
 0x426   :  { %v5530_v12 = vpop.eup %5529  ;;  %v2690_v27 = vsel %vm8087_vm3, %v2689_v13, %v2685_v0  ;;  %vm2698_vm10 = vweird.f32 %v5528_v63  ;;  %v2703_v42 = vand.u32 2147483648, %v8071_v7  ;;  %v5362_v24 = vmul.f32 -1.442695, %v8136_v52 }
 0x427   :  { %3142 = vst.msk [vmem:[#allocation3 + $0x73] sm:$0xff] %vm23_vm11, %v3106_v18  ;;  %v2867_v37 = vmul.f32 %v2690_v27, %v7876_v6  ;;  %v2505_v31 = vsel %vm2504_vm13, %v5524_v19, %v2501_v32  ;;  %v2694_v48 = vsub.f32 1.0, %v2693_v33  ;;  %v8168_v30 = vadd.f32 1.0, %v5530_v12  ;;  %vm8185_vm14 = vmor %vm2697_vm12, %vm2698_vm10 }
 0x428   :  { %v8157_v60 = vpop.f32.mrf.mxu3  ;;  %v2510_v49 = vsel %vm8107_vm7, %v2509_v41, %v2505_v31  ;;  %5533 = vpow2.f32 %v5349_v16  ;;  %v5350_v3 = vmul.f32 -1.442695, %v8139_v61  ;;  %v8175_v13 = vadd.f32 %v7912_v15, %v8092_v9 }
 0x429   :  { %v2855_v46 = vmul.f32 %v2510_v49, %v7915_v36  ;;  %v3119_v21 = vmul.f32 %v7827_v1, %v2867_v37  ;;  %v2695_v20 = vmul.f32 %v5528_v63, %v2694_v48  ;;  %5535 = vrcp.f32 %v8168_v30  ;;  %v8202_v51 = vpop.permute.xlu0 %3091 }
 0x42a   :  { %v8180_v6 = vpop.eup %5531  ;;  %v2704_v2 = vor.u32 1.1754944e-38, %v2703_v42  ;;  %v2523_v9 = vand.u32 2147483648, %v8128_v28  ;;  %5537 = vpow2.f32 %v5362_v24  ;;  %v3192_v41 = vld [vmem:[#allocation3 + $0xd0] sm:$0xff]  ;;  %vm8192_vm15 = vcmp.eq.f32.partialorder %v2701_v45, 8.507059e+37 }
 0x42b   :  { %v3107_v36 = vmul.f32 %v7632_v50, %v2855_v46  ;;  %3155 = vst.msk [vmem:[#allocation3 + $0xdb] sm:$0xff] %vm23_vm11, %v3119_v21  ;;  %v2696_v1 = vadd.f32 %v5528_v63, %v2695_v20  ;;  %v2513_v7 = vmul.f32 %v8180_v6, %v8128_v28  ;;  %v2521_v58 = vand.u32 2147483647, %v8128_v28  ;;  %v2104_v42 = vpop.f32.mrf.mxu0  ;;  %v8257_v47 = vpop.permute.xlu1 %3310 }
 0x42c   :  { %5539 = vpow2.f32 %v5350_v3  ;;  %v5363_v50 = vmul.f32 -1.442695, %v8175_v13  ;;  %3228 = vst.msk [vmem:[#allocation2 + $0xd0] sm:$0xff] %vm23_vm11, %v3192_v41  ;;  %v8210_v44 = vadd.f32 %v7912_v15, %v2101_v17  ;;  %vm3418_vm2 = vcmask 130112  }
 0x42d   :  { %3143 = vst.msk [vmem:[#allocation3 + $0x7b] sm:$0xff] %vm23_vm11, %v3107_v36  ;;  %v2700_v14 = vsel %vm8185_vm14, %v5528_v63, %v2696_v1  ;;  %v2514_v55 = vsub.f32 1.0, %v2513_v7  ;;  %vm2518_vm3 = vweird.f32 %v8180_v6  ;;  %v2524_v18 = vor.u32 1.1754944e-38, %v2523_v9 }
 0x42e   :  { %v5534_v45 = vpop.eup %5533  ;;  %v2705_v16 = vsel %vm8192_vm15, %v2704_v2, %v2700_v14  ;;  %vm2712_vm4 = vweird.f32 %v8168_v30  ;;  %v3252_v0 = vld [vmem:[#allocation3 + $0x71] sm:$0xff]  ;;  %v5351_v27 = vmul.f32 -1.442695, %v8210_v44  ;;  %v2716_v31 = vand.u32 2147483647, %v8168_v30  ;;  %vm2519_vm5 = vmor %vm2517_vm1, %vm2518_vm3  ;;  %v3167_v2 = vld [vmem:[#allocation3 + $0x8] sm:$0xff] }
 0x42f   :  { %v3180_v63 = vld [vmem:[#allocation3 + $0x70] sm:$0xff]  ;;  %v8219_v32 = vpop.eup %5535  ;;  %v2868_v33 = vmul.f32 %v2705_v16, %v7925_v23  ;;  %v2515_v17 = vmul.f32 %v8180_v6, %v2514_v55  ;;  %v8223_v12 = vadd.f32 1.0, %v5534_v45  ;;  %3338 = vrot.lane.b32.xlu0 %v3252_v0, %s5585_s15  ;;  %v2718_v48 = vand.u32 2147483648, %v8168_v30  ;;  %3203 = vst.msk [vmem:[#allocation2 + $0x8] sm:$0xff] %vm23_vm11, %v3167_v2 }
 0x430   :  { %v3319_v11 = vpop.permute.xlu2 %3318  ;;  %v8212_v5 = vpop.f32.mrf.mxu3  ;;  %3216 = vst.msk [vmem:[#allocation2 + $0x70] sm:$0xff] %vm23_vm11, %v3180_v63  ;;  %v2708_v37 = vmul.f32 %v8219_v32, %v8168_v30  ;;  %5541 = vpow2.f32 %v5363_v50  ;;  %v8237_v3 = vadd.f32 %v7912_v15, %v8157_v60  ;;  %vm2713_vm6 = vweird.f32 %v8219_v32 }
 0x431   :  { %3423 = vst.msk [vmem:[#allocation2 + $0x20] sm:$0xff] %vm3418_vm2, %v3319_v11  ;;  %v5538_v24 = vpop.eup %5537  ;;  %v3120_v23 = vmul.f32 %v7968_v53, %v2868_v33  ;;  %v2516_v49 = vadd.f32 %v8180_v6, %v2515_v17  ;;  %5543 = vrcp.f32 %v8223_v12  ;;  %v8247_v53 = vadd.f32 %v7912_v15, %v2104_v42  ;;  %vm8264_vm8 = vmor %vm2712_vm4, %vm2713_vm6 }
 0x432   :  { %v5540_v46 = vpop.eup %5539  ;;  %v2709_v21 = vsub.f32 1.0, %v2708_v37  ;;  %v8244_v20 = vadd.f32 1.0, %v5538_v24  ;;  %vm2522_vm7 = vcmp.eq.f32.partialorder %v2521_v58, 8.507059e+37  ;;  %5545 = vpow2.f32 %v5351_v27  ;;  %3420 = vst.msk [vmem:[#allocation2 + $0x8] sm:$0xff] %vm3418_vm2, %v8145_v26  ;;  %v3193_v30 = vld [vmem:[#allocation3 + $0xd8] sm:$0xff] }
 0x433   :  { %3156 = vst.msk [vmem:[#allocation3 + $0xe3] sm:$0xff] %vm23_vm11, %v3120_v23  ;;  %v2520_v19 = vsel %vm2519_vm5, %v8180_v6, %v2516_v49  ;;  %v8251_v60 = vadd.f32 1.0, %v5540_v46  ;;  %v2536_v41 = vand.u32 2147483647, %v8223_v12  ;;  %v2538_v36 = vand.u32 2147483648, %v8223_v12 }
 0x434   :  { %v2525_v9 = vsel %vm2522_vm7, %v2524_v18, %v2520_v19  ;;  %v2710_v28 = vmul.f32 %v8219_v32, %v2709_v21  ;;  %v3253_v1 = vld [vmem:[#allocation3 + $0x79] sm:$0xff]  ;;  %vm8268_vm9 = vcmp.eq.f32.partialorder %v2716_v31, 8.507059e+37  ;;  %v2719_v14 = vor.u32 1.1754944e-38, %v2718_v48  ;;  %3229 = vst.msk [vmem:[#allocation2 + $0xd8] sm:$0xff] %vm23_vm11, %v3193_v30 }
 0x435   :  { %v3181_v7 = vld [vmem:[#allocation3 + $0x78] sm:$0xff]  ;;  %v2856_v6 = vmul.f32 %v2525_v9, %v7999_v22  ;;  %5547 = vrcp.f32 %v8244_v20  ;;  %3340 = vrot.lane.b32.xlu1 %v3253_v1, %s5585_s15  ;;  %v5364_v16 = vmul.f32 -1.442695, %v8237_v3  ;;  %v5352_v18 = vmul.f32 -1.442695, %v8247_v53 }
 0x436   :  { %v5542_v11 = vpop.eup %5541  ;;  %v2711_v45 = vadd.f32 %v8219_v32, %v2710_v28  ;;  %5549 = vrcp.f32 %v8251_v60  ;;  %vm2532_vm12 = vweird.f32 %v8223_v12  ;;  %v2731_v63 = vand.u32 2147483647, %v8244_v20  ;;  %3217 = vst.msk [vmem:[#allocation2 + $0x78] sm:$0xff] %vm23_vm11, %v3181_v7 }
 0x437   :  { %v5544_v0 = vpop.eup %5543  ;;  %v3108_v26 = vmul.f32 %v7694_v54, %v2856_v6  ;;  %v8288_v33 = vadd.f32 %v7912_v15, %v8212_v5  ;;  %vm8295_vm13 = vcmp.eq.f32.partialorder %v2536_v41, 8.507059e+37  ;;  %v2539_v54 = vor.u32 1.1754944e-38, %v2538_v36 }
 0x438   :  { %v3315_v22 = vpop.permute.xlu0 %3314  ;;  %v8276_v55 = vpop.f32.mrf.mxu3  ;;  %v2715_v17 = vsel %vm8264_vm8, %v8219_v32, %v2711_v45  ;;  %v2528_v27 = vmul.f32 %v5544_v0, %v8223_v12  ;;  %vm2727_vm10 = vweird.f32 %v8244_v20  ;;  %v2733_v37 = vand.u32 2147483648, %v8244_v20 }
 0x439   :  { %3421 = vst.msk [vmem:[#allocation2 + $0x10] sm:$0xff] %vm3418_vm2, %v3315_v22  ;;  %v5546_v24 = vpop.eup %5545  ;;  %v2720_v5 = vsel %vm8268_vm9, %v2719_v14, %v2715_v17  ;;  %v2551_v32 = vand.u32 2147483647, %v8251_v60  ;;  %v8306_v31 = vadd.f32 1.0, %v5542_v11  ;;  %5551 = vpow2.f32 %v5364_v16 }
 0x43a   :  { %3144 = vst.msk [vmem:[#allocation3 + $0x83] sm:$0xff] %vm23_vm11, %v3108_v26  ;;  %v2869_v48 = vmul.f32 %v2720_v5, %v8046_v56  ;;  %v2529_v23 = vsub.f32 1.0, %v2528_v27  ;;  %v8309_v49 = vadd.f32 1.0, %v5546_v24  ;;  %v3194_v46 = vld [vmem:[#allocation3 + $0xe0] sm:$0xff]  ;;  %vm8311_vm14 = vcmp.eq.f32.partialorder %v2731_v63, 8.507059e+37 }
 0x43b   :  { %v5548_v21 = vpop.eup %5547  ;;  %vm2547_vm15 = vweird.f32 %v8251_v60  ;;  %v2553_v2 = vand.u32 2147483648, %v8251_v60  ;;  %5553 = vrcp.f32 %v8306_v31  ;;  %3230 = vst.msk [vmem:[#allocation2 + $0xe0] sm:$0xff] %vm23_vm11, %v3194_v46  ;;  %vm2533_vm1 = vweird.f32 %v5544_v0 }
 0x43c   :  { %v8319_v9 = vpop.eup %5549  ;;  %v3121_v56 = vmul.f32 %v8040_v35, %v2869_v48  ;;  %v2530_v28 = vmul.f32 %v5544_v0, %v2529_v23  ;;  %v2723_v41 = vmul.f32 %v5548_v21, %v8244_v20  ;;  %v2734_v36 = vor.u32 1.1754944e-38, %v2733_v37  ;;  %vm2534_vm5 = vmor %vm2532_vm12, %vm2533_vm1 }
 0x43d   :  { %v2543_v1 = vmul.f32 %v8319_v9, %v8251_v60  ;;  %vm8325_vm3 = vcmp.eq.f32.partialorder %v2551_v32, 8.507059e+37  ;;  %v2746_v6 = vand.u32 2147483647, %v8306_v31  ;;  %vm2728_vm4 = vweird.f32 %v5548_v21 }
 0x43e   :  { %3157 = vst.msk [vmem:[#allocation3 + $0xeb] sm:$0xff] %vm23_vm11, %v3121_v56  ;;  %v2531_v50 = vadd.f32 %v5544_v0, %v2530_v28  ;;  %v2724_v35 = vsub.f32 1.0, %v2723_v41  ;;  %5555 = vrcp.f32 %v8309_v49  ;;  %v2554_v30 = vor.u32 1.1754944e-38, %v2553_v2  ;;  %vm8345_vm7 = vmor %vm2727_vm10, %vm2728_vm4 }
 0x43f   :  { %v2544_v22 = vsub.f32 1.0, %v2543_v1  ;;  %vm2742_vm6 = vweird.f32 %v8306_v31  ;;  %5557 = vpow2.f32 %v5352_v18  ;;  %v5552_v11 = vpop.eup %5551  ;;  %v2748_v26 = vand.u32 2147483648, %v8306_v31 }
 0x440   :  { %v8330_v58 = vpop.f32.mrf.mxu3  ;;  %v3317_v14 = vpop.permute.xlu1 %3316  ;;  %v2535_v45 = vsel %vm2534_vm5, %v5544_v0, %v2531_v50  ;;  %v2725_v16 = vmul.f32 %v5548_v21, %v2724_v35  ;;  %v5365_v63 = vmul.f32 -1.442695, %v8288_v33  ;;  %vm2548_vm8 = vweird.f32 %v8319_v9 }
 0x441   :  { %3422 = vst.msk [vmem:[#allocation2 + $0x18] sm:$0xff] %vm3418_vm2, %v3317_v14  ;;  %v3254_v17 = vld [vmem:[#allocation3 + $0x81] sm:$0xff]  ;;  %v5554_v24 = vpop.eup %5553  ;;  %v2540_v12 = vsel %vm8295_vm13, %v2539_v54, %v2535_v45  ;;  %v2545_v0 = vmul.f32 %v8319_v9, %v2544_v22  ;;  %v8354_v5 = vadd.f32 %v7912_v15, %v8276_v55  ;;  %vm8359_vm9 = vcmp.eq.f32.partialorder %v2746_v6, 8.507059e+37  ;;  %vm2549_vm12 = vmor %vm2547_vm15, %vm2548_vm8 }
 0x442   :  { %v3182_v27 = vld [vmem:[#allocation3 + $0x80] sm:$0xff]  ;;  %3342 = vrot.lane.b32.xlu2 %v3254_v17, %s5585_s15  ;;  %v2857_v42 = vmul.f32 %v2540_v12, %v8113_v29  ;;  %v2726_v54 = vadd.f32 %v5548_v21, %v2725_v16  ;;  %v2738_v20 = vmul.f32 %v5554_v24, %v8306_v31  ;;  %v2566_v48 = vand.u32 2147483647, %v8309_v49 }
 0x443   :  { %3218 = vst.msk [vmem:[#allocation2 + $0x80] sm:$0xff] %vm23_vm11, %v3182_v27  ;;  %v2546_v32 = vadd.f32 %v8319_v9, %v2545_v0  ;;  %v8365_v23 = vadd.f32 1.0, %v5552_v11  ;;  %5559 = vpow2.f32 %v5365_v63  ;;  %v3166_v55 = vld [vmem:[#allocation3] sm:$0xff]  ;;  %vm2743_vm13 = vweird.f32 %v5554_v24 }
 0x444   :  { %v8367_v46 = vpop.eup %5555  ;;  %v3109_v2 = vmul.f32 %v7753_v38, %v2857_v42  ;;  %v2730_v29 = vsel %vm8345_vm7, %v5548_v21, %v2726_v54  ;;  %v2739_v56 = vsub.f32 1.0, %v2738_v20  ;;  %3202 = vst.msk [vmem:[#allocation2] sm:$0xff] %vm23_vm11, %v3166_v55  ;;  %v5366_v21 = vmul.f32 -1.442695, %v8354_v5  ;;  %vm8394_vm10 = vmor %vm2742_vm6, %vm2743_vm13 }
 0x445   :  { %v5558_v28 = vpop.eup %5557  ;;  %v2735_v41 = vsel %vm8311_vm14, %v2734_v36, %v2730_v29  ;;  %v2550_v1 = vsel %vm2549_vm12, %v8319_v9, %v2546_v32  ;;  %v2558_v38 = vmul.f32 %v8367_v46, %v8309_v49  ;;  %3419 = vst.msk [vmem:[#allocation2] sm:$0xff] %vm3418_vm2, %v8257_v47  ;;  %v3195_v6 = vld [vmem:[#allocation3 + $0xe8] sm:$0xff]  ;;  %5561 = vrcp.f32 %v8365_v23 }
 0x446   :  { %3145 = vst.msk [vmem:[#allocation3 + $0x8b] sm:$0xff] %vm23_vm11, %v3109_v2  ;;  %v2870_v50 = vmul.f32 %v2735_v41, %v8136_v52  ;;  %v2555_v19 = vsel %vm8325_vm3, %v2554_v30, %v2550_v1  ;;  %v2740_v36 = vmul.f32 %v5554_v24, %v2739_v56  ;;  %v2749_v35 = vor.u32 1.1754944e-38, %v2748_v26 }
 0x447   :  { %v2858_v9 = vmul.f32 %v2555_v19, %v8139_v61  ;;  %v2559_v14 = vsub.f32 1.0, %v2558_v38  ;;  %v2568_v22 = vand.u32 2147483648, %v8309_v49  ;;  %v8401_v11 = vadd.f32 1.0, %v5558_v28  ;;  %3231 = vst.msk [vmem:[#allocation2 + $0xe8] sm:$0xff] %vm23_vm11, %v3195_v6 }
 0x448   :  { %v3325_v60 = vpop.permute.xlu2 %3324  ;;  %v2152_v52 = vpop.f32.mrf.mxu3  ;;  %v3122_v7 = vmul.f32 %v7890_v57, %v2870_v50  ;;  %v2741_v30 = vadd.f32 %v5554_v24, %v2740_v36  ;;  %v8405_v61 = vadd.f32 %v7912_v15, %v8330_v58  ;;  %vm2563_vm14 = vweird.f32 %v8367_v46 }
 0x449   :  { %3426 = vst.msk [vmem:[#allocation2 + $0x38] sm:$0xff] %vm3418_vm2, %v3325_v60  ;;  %v5560_v31 = vpop.eup %5559  ;;  %v3110_v45 = vmul.f32 %v7665_v34, %v2858_v9  ;;  %v2560_v16 = vmul.f32 %v8367_v46, %v2559_v14  ;;  %5563 = vpow2.f32 %v5366_v21  ;;  %vm2562_vm15 = vweird.f32 %v8309_v49  ;;  %v3260_v9 = vld [vmem:[#allocation3 + $0xb1] sm:$0xff] }
 0x44a   :  { %3158 = vst.msk [vmem:[#allocation3 + $0xf3] sm:$0xff] %vm23_vm11, %v3122_v7  ;;  %v2745_v57 = vsel %vm8394_vm10, %v5554_v24, %v2741_v30  ;;  %vm8415_vm1 = vcmp.eq.f32.partialorder %v2566_v48, 8.507059e+37  ;;  %5565 = vrcp.f32 %v8401_v11  ;;  %v2569_v63 = vor.u32 1.1754944e-38, %v2568_v22  ;;  %vm2564_vm4 = vmor %vm2562_vm15, %vm2563_vm14 }
 0x44b   :  { %3146 = vst.msk [vmem:[#allocation3 + $0x93] sm:$0xff] %vm23_vm11, %v3110_v45  ;;  %v2750_v34 = vsel %vm8359_vm9, %v2749_v35, %v2745_v57  ;;  %v2561_v26 = vadd.f32 %v8367_v46, %v2560_v16  ;;  %vm2757_vm3 = vweird.f32 %v8365_v23  ;;  %v8425_v17 = vpop.eup %5561  ;;  %v8428_v27 = vadd.f32 1.0, %v5560_v31 }
 0x44c   :  { %v2871_v49 = vmul.f32 %v2750_v34, %v8175_v13  ;;  %v5367_v24 = vmul.f32 -1.442695, %v8405_v61  ;;  %v8432_v12 = vadd.f32 %v7912_v15, %v2152_v52  ;;  %v2753_v0 = vmul.f32 %v8425_v17, %v8365_v23 }
 0x44d   :  { %v2565_v18 = vsel %vm2564_vm4, %v8367_v46, %v2561_v26  ;;  %v2761_v42 = vand.u32 2147483647, %v8365_v23  ;;  %v2763_v54 = vand.u32 2147483648, %v8365_v23  ;;  %v3255_v20 = vld [vmem:[#allocation3 + $0x89] sm:$0xff]  ;;  %v2581_v55 = vand.u32 2147483647, %v8401_v11 }
 0x44e   :  { %v3183_v13 = vld [vmem:[#allocation3 + $0x88] sm:$0xff]  ;;  %v3123_v32 = vmul.f32 %v8042_v39, %v2871_v49  ;;  %v2570_v48 = vsel %vm8415_vm1, %v2569_v63, %v2565_v18  ;;  %5567 = vrcp.f32 %v8428_v27  ;;  %3344 = vrot.lane.b32.xlu0 %v3255_v20, %s5585_s15  ;;  %v2754_v29 = vsub.f32 1.0, %v2753_v0 }
 0x44f   :  { %v5564_v46 = vpop.eup %5563  ;;  %v2859_v2 = vmul.f32 %v2570_v48, %v8210_v44  ;;  %vm2758_vm5 = vweird.f32 %v8425_v17  ;;  %v2583_v56 = vand.u32 2147483648, %v8401_v11  ;;  %3219 = vst.msk [vmem:[#allocation2 + $0x88] sm:$0xff] %vm23_vm11, %v3183_v13  ;;  %5569 = vpow2.f32 %v5367_v24 }
 0x450   :  { %v3321_v37 = vpop.permute.xlu0 %3320  ;;  %v5566_v39 = vpop.eup %5565  ;;  %3159 = vst.msk [vmem:[#allocation3 + $0xfb] sm:$0xff] %vm23_vm11, %v3123_v32  ;;  %v8451_v28 = vadd.f32 1.0, %v5564_v46  ;;  %v5368_v41 = vmul.f32 -1.442695, %v8432_v12  ;;  %v2755_v38 = vmul.f32 %v8425_v17, %v2754_v29  ;;  %vm8459_vm6 = vmor %vm2757_vm3, %vm2758_vm5  ;;  %vm8463_vm7 = vcmp.eq.f32.partialorder %v2761_v42, 8.507059e+37 }
 0x451   :  { %3424 = vst.msk [vmem:[#allocation2 + $0x28] sm:$0xff] %vm3418_vm2, %v3321_v37  ;;  %v3111_v1 = vmul.f32 %v7758_v43, %v2859_v2  ;;  %v2573_v44 = vmul.f32 %v5566_v39, %v8401_v11  ;;  %v2155_v21 = vpop.f32.mrf.mxu3  ;;  %v3196_v60 = vld [vmem:[#allocation3 + $0xf0] sm:$0xff]  ;;  %v2764_v19 = vor.u32 1.1754944e-38, %v2763_v54  ;;  %vm2577_vm8 = vweird.f32 %v8401_v11 }
 0x452   :  { %5571 = vrcp.f32 %v8451_v28  ;;  %v3256_v43 = vld [vmem:[#allocation3 + $0x91] sm:$0xff]  ;;  %3232 = vst.msk [vmem:[#allocation2 + $0xf0] sm:$0xff] %vm23_vm11, %v3196_v60  ;;  %v2756_v23 = vadd.f32 %v8425_v17, %v2755_v38  ;;  %vm8472_vm9 = vcmp.eq.f32.partialorder %v2581_v55, 8.507059e+37  ;;  %v2584_v47 = vor.u32 1.1754944e-38, %v2583_v56 }
 0x453   :  { %3147 = vst.msk [vmem:[#allocation3 + $0x9b] sm:$0xff] %vm23_vm11, %v3111_v1  ;;  %v2574_v36 = vsub.f32 1.0, %v2573_v44  ;;  %3346 = vrot.lane.b32.xlu1 %v3256_v43, %s5585_s15  ;;  %v3184_v35 = vld [vmem:[#allocation3 + $0x90] sm:$0xff]  ;;  %v2776_v22 = vand.u32 2147483647, %v8428_v27  ;;  %v2778_v52 = vand.u32 2147483648, %v8428_v27  ;;  %5573 = vpow2.f32 %v5368_v41 }
 0x454   :  { %v5568_v14 = vpop.eup %5567  ;;  %v8480_v7 = vadd.f32 %v7912_v15, %v2155_v21  ;;  %3220 = vst.msk [vmem:[#allocation2 + $0x90] sm:$0xff] %vm23_vm11, %v3184_v35  ;;  %v2760_v30 = vsel %vm8459_vm6, %v8425_v17, %v2756_v23  ;;  %vm2578_vm12 = vweird.f32 %v5566_v39  ;;  %vm2772_vm13 = vweird.f32 %v8428_v27 }
 0x455   :  { %v2575_v31 = vmul.f32 %v5566_v39, %v2574_v36  ;;  %v2768_v45 = vmul.f32 %v5568_v14, %v8428_v27  ;;  %v5570_v57 = vpop.eup %5569  ;;  %v2765_v58 = vsel %vm8463_vm7, %v2764_v19, %v2760_v30  ;;  %vm2773_vm10 = vweird.f32 %v5568_v14  ;;  %vm2579_vm14 = vmor %vm2577_vm8, %vm2578_vm12 }
 0x456   :  { %v5369_v15 = vmul.f32 -1.442695, %v8480_v7  ;;  %v2872_v34 = vmul.f32 %v2765_v58, %v8237_v3  ;;  %v8493_v17 = vadd.f32 1.0, %v5570_v57  ;;  %vm8498_vm15 = vcmp.eq.f32.partialorder %v2776_v22, 8.507059e+37  ;;  %vm8511_vm3 = vmor %vm2772_vm13, %vm2773_vm10 }
 0x457   :  { %v2576_v26 = vadd.f32 %v5566_v39, %v2575_v31  ;;  %v2769_v63 = vsub.f32 1.0, %v2768_v45  ;;  %v3197_v49 = vld [vmem:[#allocation3 + $0xf8] sm:$0xff]  ;;  %v2779_v0 = vor.u32 1.1754944e-38, %v2778_v52  ;;  %vm2787_vm1 = vweird.f32 %v8451_v28  ;;  %v8644_v45 = vld [vmem:[#allocation3 + $0x2a] sm:$0xff] }
 0x458   :  { %v3323_v16 = vpop.permute.xlu1 %3322  ;;  %v5572_v24 = vpop.eup %5571  ;;  %5575 = vpow2.f32 %v5369_v15  ;;  %3233 = vst.msk [vmem:[#allocation2 + $0xf8] sm:$0xff] %vm23_vm11, %v3197_v49  ;;  %v3124_v3 = vmul.f32 %v8130_v8, %v2872_v34  ;;  %v2791_v32 = vand.u32 2147483647, %v8451_v28  ;;  %v2793_v48 = vand.u32 2147483648, %v8451_v28 }
 0x459   :  { %3425 = vst.msk [vmem:[#allocation2 + $0x30] sm:$0xff] %vm3418_vm2, %v3323_v16  ;;  %v2580_v42 = vsel %vm2579_vm14, %v5566_v39, %v2576_v26  ;;  %v2770_v54 = vmul.f32 %v5568_v14, %v2769_v63  ;;  %v2783_v20 = vmul.f32 %v5572_v24, %v8451_v28  ;;  %v5574_v37 = vpop.eup %5573  ;;  %5577 = vrcp.f32 %v8493_v17  ;;  %v8670_v63 = vld [vmem:[#allocation3 + $0x5a] sm:$0xff] }
 0x45a   :  { %v2585_v11 = vsel %vm8472_vm9, %v2584_v47, %v2580_v42  ;;  %v3257_v8 = vld [vmem:[#allocation3 + $0x99] sm:$0xff]  ;;  %3160 = vst.msk [vmem:[#allocation3 + $0x103] sm:$0xff] %vm23_vm11, %v3124_v3  ;;  %vm2788_vm4 = vweird.f32 %v5572_v24  ;;  %v8521_v27 = vadd.f32 1.0, %v5574_v37  ;;  %vm2792_vm6 = vcmp.eq.f32.partialorder %v2791_v32, 8.507059e+37 }
 0x45b   :  { %v3185_v55 = vld [vmem:[#allocation3 + $0x98] sm:$0xff]  ;;  %v2860_v46 = vmul.f32 %v2585_v11, %v8247_v53  ;;  %v2771_v2 = vadd.f32 %v5568_v14, %v2770_v54  ;;  %v2784_v29 = vsub.f32 1.0, %v2783_v20  ;;  %3348 = vrot.lane.b32.xlu2 %v3257_v8, %s5585_s15  ;;  %vm2789_vm5 = vmor %vm2787_vm1, %vm2788_vm4  ;;  %v2794_v53 = vor.u32 1.1754944e-38, %v2793_v48  ;;  %v3263_v11 = vld [vmem:[#allocation3 + $0xc9] sm:$0xff] }
 0x45c   :  { %3221 = vst.msk [vmem:[#allocation2 + $0x98] sm:$0xff] %vm23_vm11, %v3185_v55  ;;  %5579 = vrcp.f32 %v8521_v27  ;;  %v2806_v23 = vand.u32 2147483647, %v8493_v17  ;;  %v2808_v36 = vand.u32 2147483648, %v8493_v17  ;;  %vm2802_vm7 = vweird.f32 %v8493_v17  ;;  %v8695_v54 = vld [vmem:[#allocation3 + $0x8a] sm:$0xff] }
 0x45d   :  { %v3112_v56 = vmul.f32 %v7812_v25, %v2860_v46  ;;  %v2775_v39 = vsel %vm8511_vm3, %v5568_v14, %v2771_v2  ;;  %v2785_v41 = vmul.f32 %v5572_v24, %v2784_v29  ;;  %v2821_v14 = vand.u32 2147483647, %v8521_v27  ;;  %v3261_v29 = vld [vmem:[#allocation3 + $0xb9] sm:$0xff] }
 0x45e   :  { %v5576_v1 = vpop.eup %5575  ;;  %v2780_v38 = vsel %vm8498_vm15, %v2779_v0, %v2775_v39  ;;  %v2823_v31 = vand.u32 2147483648, %v8521_v27  ;;  %vm8555_vm12 = vcmp.eq.f32.partialorder %v2806_v23, 8.507059e+37  ;;  %v2809_v57 = vor.u32 1.1754944e-38, %v2808_v36  ;;  %v3262_v39 = vld [vmem:[#allocation3 + $0xc1] sm:$0xff] }
 0x45f   :  { %3148 = vst.msk [vmem:[#allocation3 + $0xa3] sm:$0xff] %vm23_vm11, %v3112_v56  ;;  %v2873_v44 = vmul.f32 %v2780_v38, %v8288_v33  ;;  %v2786_v21 = vadd.f32 %v5572_v24, %v2785_v41  ;;  %v5578_v25 = vpop.eup %5577  ;;  %v8534_v60 = vadd.f32 1.0, %v5576_v1  ;;  %vm2817_vm13 = vweird.f32 %v8521_v27 }
 0x460   :  { %v2798_v19 = vmul.f32 %v5578_v25, %v8493_v17  ;;  %vm2803_vm8 = vweird.f32 %v5578_v25  ;;  %vm8564_vm14 = vcmp.eq.f32.partialorder %v2821_v14, 8.507059e+37  ;;  %v2824_v0 = vor.u32 1.1754944e-38, %v2823_v31  ;;  %v8625_v14 = vld [vmem:[#allocation3 + $0x22] sm:$0xff] }
 0x461   :  { %v3125_v6 = vmul.f32 %v7975_v59, %v2873_v44  ;;  %v2790_v50 = vsel %vm2789_vm5, %v5572_v24, %v2786_v21  ;;  %v3331_v43 = vpop.permute.xlu2 %3330  ;;  %5581 = vrcp.f32 %v8534_v60  ;;  %v3198_v59 = vld [vmem:[#allocation3 + $0x100] sm:$0xff]  ;;  %vm8551_vm9 = vmor %vm2802_vm7, %vm2803_vm8  ;;  %vm2832_vm1 = vweird.f32 %v8534_v60 }
 0x462   :  { %v2795_v28 = vsel %vm2792_vm6, %v2794_v53, %v2790_v50  ;;  %3429 = vst.msk [vmem:[#allocation2 + $0x50] sm:$0xff] %vm3418_vm2, %v3331_v43  ;;  %v2799_v47 = vsub.f32 1.0, %v2798_v19  ;;  %v5580_v35 = vpop.eup %5579  ;;  %v2836_v20 = vand.u32 2147483647, %v8534_v60  ;;  %v2838_v37 = vand.u32 2147483648, %v8534_v60  ;;  %v3264_v50 = vld [vmem:[#allocation3 + $0xd1] sm:$0xff] }
 0x463   :  { %3161 = vst.msk [vmem:[#allocation3 + $0x10b] sm:$0xff] %vm23_vm11, %v3125_v6  ;;  %v2874_v33 = vmul.f32 %v2795_v28, %v8354_v5  ;;  %3354 = vrot.lane.b32.xlu2 %v3260_v9, %s5585_s15  ;;  %v2813_v30 = vmul.f32 %v5580_v35, %v8521_v27  ;;  %vm2818_vm10 = vweird.f32 %v5580_v35  ;;  %v3265_v6 = vld [vmem:[#allocation3 + $0xd9] sm:$0xff]  ;;  %v3267_v28 = vld [vmem:[#allocation3 + $0xe9] sm:$0xff]  ;;  %v3270_v9 = vld [vmem:[#allocation3 + $0x101] sm:$0xff]  ;;  %vm4069_vm6 = vcmask 326912  }
 0x464   :  { %3234 = vst.msk [vmem:[#allocation2 + $0x100] sm:$0xff] %vm23_vm11, %v3198_v59  ;;  %v2800_v52 = vmul.f32 %v5578_v25, %v2799_v47  ;;  %vm8574_vm15 = vmor %vm2817_vm13, %vm2818_vm10  ;;  %v2839_v56 = vor.u32 1.1754944e-38, %v2838_v37  ;;  %vm2837_vm5 = vcmp.eq.f32.partialorder %v2836_v20, 8.507059e+37  ;;  %v3455_v47 = vld [vmem:[#allocation3 + $0x2] sm:$0xff]  ;;  %v8703_v37 = vld [vmem:[#allocation3 + $0xb2] sm:$0xff]  ;;  %vm4286_vm7 = vcmask 392512  }
 0x465   :  { %v3126_v22 = vmul.f32 %v8132_v10, %v2874_v33  ;;  %v2814_v34 = vsub.f32 1.0, %v2813_v30  ;;  %v3456_v33 = vld [vmem:[#allocation3 + $0xa] sm:$0xff]  ;;  %v8637_v30 = vld [vmem:[#allocation3 + $0x3a] sm:$0xff]  ;;  %vm4503_vm8 = vcmask 458112   ;;  %vm5023_vm13 = vcmask 588800  }
 0x466   :  { %v3259_v58 = vld [vmem:[#allocation3 + $0xa9] sm:$0xff]  ;;  %v3258_v15 = vld [vmem:[#allocation3 + $0xa1] sm:$0xff]  ;;  %v2801_v10 = vadd.f32 %v5578_v25, %v2800_v52  ;;  %v8631_v52 = vld [vmem:[#allocation3 + $0x12] sm:$0xff]  ;;  %vm64_vm10 = vcmask 62464  }
 0x467   :  { %3162 = vst.msk [vmem:[#allocation3 + $0x113] sm:$0xff] %vm23_vm11, %v3126_v22  ;;  %3352 = vrot.lane.b32.xlu1 %v3259_v58, %s5585_s15  ;;  %3350 = vrot.lane.b32.xlu0 %v3258_v15, %s5585_s15  ;;  %v5582_v26 = vpop.eup %5581  ;;  %v3187_v17 = vld [vmem:[#allocation3 + $0xa8] sm:$0xff]  ;;  %v3186_v49 = vld [vmem:[#allocation3 + $0xa0] sm:$0xff]  ;;  %v2815_v18 = vmul.f32 %v5580_v35, %v2814_v34 }
 0x468   :  { %v3327_v5 = vpop.permute.xlu0 %3326  ;;  %v2805_v24 = vsel %vm8551_vm9, %v5578_v25, %v2801_v10  ;;  %v2828_v3 = vmul.f32 %v5582_v26, %v8534_v60  ;;  %3223 = vst.msk [vmem:[#allocation2 + $0xa8] sm:$0xff] %vm23_vm11, %v3187_v17  ;;  %vm2833_vm3 = vweird.f32 %v5582_v26  ;;  %v3266_v25 = vld [vmem:[#allocation3 + $0xe1] sm:$0xff]  ;;  %v8655_v58 = vld [vmem:[#allocation3 + $0x4a] sm:$0xff]  ;;  %vm4720_vm9 = vcmask 523712  }
 0x469   :  { %3427 = vst.msk [vmem:[#allocation2 + $0x40] sm:$0xff] %vm3418_vm2, %v3327_v5  ;;  %v2810_v42 = vsel %vm8555_vm12, %v2809_v57, %v2805_v24  ;;  %v2816_v32 = vadd.f32 %v5580_v35, %v2815_v18  ;;  %vm8592_vm4 = vmor %vm2832_vm1, %vm2833_vm3  ;;  %v8629_v22 = vld [vmem:[#allocation3 + $0x1a] sm:$0xff]  ;;  %v8642_v5 = vld [vmem:[#allocation3 + $0x32] sm:$0xff]  ;;  %vm4937_vm12 = vcmask 589312  }
 0x46a   :  { %3222 = vst.msk [vmem:[#allocation2 + $0xa0] sm:$0xff] %vm23_vm11, %v3186_v49  ;;  %v2875_v13 = vmul.f32 %v2810_v42, %v8405_v61  ;;  %v2829_v48 = vsub.f32 1.0, %v2828_v3  ;;  %v3199_v8 = vld [vmem:[#allocation3 + $0x108] sm:$0xff]  ;;  %v8650_v57 = vld [vmem:[#allocation3 + $0x52] sm:$0xff]  ;;  %v8680_v24 = vld [vmem:[#allocation3 + $0x7a] sm:$0xff] }
 0x46b   :  { %3360 = vrot.lane.b32.xlu2 %v3263_v11, %s5585_s15  ;;  %3235 = vst.msk [vmem:[#allocation2 + $0x108] sm:$0xff] %vm23_vm11, %v3199_v8  ;;  %v2820_v46 = vsel %vm8574_vm15, %v5580_v35, %v2816_v32  ;;  %v3271_v36 = vld [vmem:[#allocation3 + $0x109] sm:$0xff]  ;;  %v8682_v18 = vld [vmem:[#allocation3 + $0x72] sm:$0xff]  ;;  %v8734_v61 = vld [vmem:[#allocation3 + $0xda] sm:$0xff] }
 0x46c   :  { %v3127_v55 = vmul.f32 %v8200_v4, %v2875_v13  ;;  %v2830_v2 = vmul.f32 %v5582_v26, %v2829_v48  ;;  %v2825_v27 = vsel %vm8564_vm14, %v2824_v0, %v2820_v46  ;;  %v8657_v15 = vld [vmem:[#allocation3 + $0x42] sm:$0xff]  ;;  %v8664_v34 = vld [vmem:[#allocation3 + $0x6a] sm:$0xff]  ;;  %v8689_v0 = vld [vmem:[#allocation3 + $0x9a] sm:$0xff]  ;;  %65 = vst.msk [vmem:[#allocation3 + $0x140] sm:$0x3f] %vm64_vm10, %v5593_v40 }
 0x46d   :  { %v2876_v4 = vmul.f32 %v2825_v27, %v8432_v12  ;;  %v8676_v17 = vld [vmem:[#allocation3 + $0x82] sm:$0xff]  ;;  %v8693_v42 = vld [vmem:[#allocation3 + $0x92] sm:$0xff]  ;;  %v8707_v32 = vld [vmem:[#allocation3 + $0xaa] sm:$0xff] }
 0x46e   :  { %v3200_v41 = vld [vmem:[#allocation3 + $0x110] sm:$0xff]  ;;  %3163 = vst.msk [vmem:[#allocation3 + $0x11b] sm:$0xff] %vm23_vm11, %v3127_v55  ;;  %v2831_v1 = vadd.f32 %v5582_v26, %v2830_v2  ;;  %v8709_v48 = vld [vmem:[#allocation3 + $0xa2] sm:$0xff]  ;;  %v8723_v2 = vld [vmem:[#allocation3 + $0xba] sm:$0xff] }
 0x46f   :  { %3358 = vrot.lane.b32.xlu1 %v3262_v39, %s5585_s15  ;;  %3356 = vrot.lane.b32.xlu0 %v3261_v29, %s5585_s15  ;;  %v3128_v53 = vmul.f32 %v8061_v62, %v2876_v4  ;;  %3236 = vst.msk [vmem:[#allocation2 + $0x110] sm:$0xff] %vm23_vm11, %v3200_v41  ;;  %v3269_v62 = vld [vmem:[#allocation3 + $0xf9] sm:$0xff]  ;;  %v3272_v23 = vld [vmem:[#allocation3 + $0x111] sm:$0xff]  ;;  %v8721_v46 = vld [vmem:[#allocation3 + $0xc2] sm:$0xff] }
 0x470   :  { %v2835_v44 = vsel %vm8592_vm4, %v5582_v26, %v2831_v1  ;;  %v8668_v26 = vld [vmem:[#allocation3 + $0x62] sm:$0xff]  ;;  %v8717_v8 = vld [vmem:[#allocation3 + $0xca] sm:$0xff]  ;;  %v8744_v4 = vld [vmem:[#allocation3 + $0xfa] sm:$0xff] }
 0x471   :  { %v2840_v21 = vsel %vm2837_vm5, %v2839_v56, %v2835_v44  ;;  %3164 = vst.msk [vmem:[#allocation3 + $0x123] sm:$0xff] %vm23_vm11, %v3128_v53  ;;  %v8730_v29 = vld [vmem:[#allocation3 + $0xe2] sm:$0xff]  ;;  %v8736_v56 = vld [vmem:[#allocation3 + $0xd2] sm:$0xff]  ;;  %v8751_v53 = vld [vmem:[#allocation3 + $0xea] sm:$0xff] }
 0x472   :  { %v3329_v38 = vpop.permute.xlu1 %3328  ;;  %v2877_v12 = vmul.f32 %v2840_v21, %v8480_v7  ;;  %v3268_v7 = vld [vmem:[#allocation3 + $0xf1] sm:$0xff] }
 0x473   :  { %3428 = vst.msk [vmem:[#allocation2 + $0x48] sm:$0xff] %vm3418_vm2, %v3329_v38  ;;  %3366 = vrot.lane.b32.xlu2 %v3266_v25, %s5585_s15  ;;  %v8749_v38 = vld [vmem:[#allocation3 + $0xf2] sm:$0xff] }
 0x474   :  { %v3129_v60 = vmul.f32 %v8202_v51, %v2877_v12  ;;  %v8759_v25 = vld [vmem:[#allocation3 + $0x112] sm:$0xff] }
 0x475   :  { %v3201_v19 = vld [vmem:[#allocation3 + $0x118] sm:$0xff] }
 0x476   :  { %3165 = vst.msk [vmem:[#allocation3 + $0x12b] sm:$0xff] %vm23_vm11, %v3129_v60  ;;  %v3273_v35 = vld [vmem:[#allocation3 + $0x119] sm:$0xff]  ;;  %v8764_v60 = vld [vmem:[#allocation3 + $0x10a] sm:$0xff] }
 0x477   :  { %3364 = vrot.lane.b32.xlu1 %v3265_v6, %s5585_s15  ;;  %3362 = vrot.lane.b32.xlu0 %v3264_v50, %s5585_s15  ;;  %3237 = vst.msk [vmem:[#allocation2 + $0x118] sm:$0xff] %vm23_vm11, %v3201_v19  ;;  %vm3635_vm11 = vcmask 195712   ;;  %v8766_v6 = vld [vmem:[#allocation3 + $0x102] sm:$0xff] }
 0x47b   :  { %3372 = vrot.lane.b32.xlu2 %v3269_v62, %s5585_s15 }
 0x47d   :  { %v3337_v43 = vpop.permute.xlu2 %3336  ;;  %v4790_v40 = vld [vmem:[#allocation3 + $0x12e] sm:$0xff] }
 0x47e   :  { %3432 = vst.msk [vmem:[#allocation2 + $0x68] sm:$0xff] %vm3418_vm2, %v3337_v43  ;;  %v8777_v43 = vld [vmem:[#allocation3 + $0x11a] sm:$0xff] }
 0x47f   :  { %3370 = vrot.lane.b32.xlu1 %v3268_v7, %s5585_s15  ;;  %3368 = vrot.lane.b32.xlu0 %v3267_v28, %s5585_s15 }
 0x481   :  { %v3333_v51 = vpop.permute.xlu0 %3332 }
 0x482   :  { %3430 = vst.msk [vmem:[#allocation2 + $0x58] sm:$0xff] %vm3418_vm2, %v3333_v51 }
 0x483   :  { %3378 = vrot.lane.b32.xlu2 %v3272_v23, %s5585_s15 }
 0x487   :  { %3376 = vrot.lane.b32.xlu1 %v3271_v36, %s5585_s15  ;;  %3374 = vrot.lane.b32.xlu0 %v3270_v9, %s5585_s15 }
 0x48b   :  { %3529 = vrot.lane.b32.xlu2 %v3456_v33, %s5587_s16 }
 0x48d   :  { %v3335_v59 = vpop.permute.xlu1 %3334 }
 0x48e   :  { %3431 = vst.msk [vmem:[#allocation2 + $0x60] sm:$0xff] %vm3418_vm2, %v3335_v59 }
 0x48f   :  { %3527 = vrot.lane.b32.xlu1 %v3455_v47, %s5587_s16  ;;  %3380 = vrot.lane.b32.xlu0 %v3273_v35, %s5585_s15  ;;  %s5595_s15 = smov 48  }
 0x493   :  { %3535 = vrot.lane.b32.xlu2 %v8625_v14, %s5587_s16 }
 0x497   :  { %3533 = vrot.lane.b32.xlu1 %v8629_v22, %s5587_s16  ;;  %3531 = vrot.lane.b32.xlu0 %v8631_v52, %s5587_s16 }
 0x49b   :  { %3541 = vrot.lane.b32.xlu2 %v8637_v30, %s5587_s16 }
 0x49c   :  { %v3343_v31 = vpop.permute.xlu2 %3342 }
 0x49d   :  { %3435 = vst.msk [vmem:[#allocation2 + $0x80] sm:$0xff] %vm3418_vm2, %v3343_v31 }
 0x49f   :  { %3539 = vrot.lane.b32.xlu1 %v8642_v5, %s5587_s16  ;;  %3537 = vrot.lane.b32.xlu0 %v8644_v45, %s5587_s16 }
 0x4a1   :  { %v3339_v16 = vpop.permute.xlu0 %3338 }
 0x4a2   :  { %3433 = vst.msk [vmem:[#allocation2 + $0x70] sm:$0xff] %vm3418_vm2, %v3339_v16 }
 0x4a3   :  { %3547 = vrot.lane.b32.xlu2 %v8650_v57, %s5587_s16 }
 0x4a7   :  { %3545 = vrot.lane.b32.xlu1 %v8655_v58, %s5587_s16  ;;  %3543 = vrot.lane.b32.xlu0 %v8657_v15, %s5587_s16  ;;  %v3341_v10 = vpop.permute.xlu1 %3340 }
 0x4a8   :  { %3434 = vst.msk [vmem:[#allocation2 + $0x78] sm:$0xff] %vm3418_vm2, %v3341_v10 }
 0x4ab   :  { %3553 = vrot.lane.b32.xlu2 %v8664_v34, %s5587_s16 }
 0x4af   :  { %3551 = vrot.lane.b32.xlu1 %v8668_v26, %s5587_s16  ;;  %3549 = vrot.lane.b32.xlu0 %v8670_v63, %s5587_s16 }
 0x4b3   :  { %3559 = vrot.lane.b32.xlu2 %v8676_v17, %s5587_s16 }
 0x4b5   :  { %v3349_v49 = vpop.permute.xlu2 %3348 }
 0x4b6   :  { %3438 = vst.msk [vmem:[#allocation2 + $0x98] sm:$0xff] %vm3418_vm2, %v3349_v49 }
 0x4b7   :  { %3557 = vrot.lane.b32.xlu1 %v8680_v24, %s5587_s16  ;;  %3555 = vrot.lane.b32.xlu0 %v8682_v18, %s5587_s16 }
 0x4bb   :  { %3565 = vrot.lane.b32.xlu2 %v8689_v0, %s5587_s16 }
 0x4bd   :  { %v3355_v3 = vpop.permute.xlu2 %3354 }
 0x4be   :  { %3441 = vst.msk [vmem:[#allocation2 + $0xb0] sm:$0xff] %vm3418_vm2, %v3355_v3 }
 0x4bf   :  { %3563 = vrot.lane.b32.xlu1 %v8693_v42, %s5587_s16  ;;  %3561 = vrot.lane.b32.xlu0 %v8695_v54, %s5587_s16 }
 0x4c0   :  { %v3345_v20 = vpop.permute.xlu0 %3344 }
 0x4c1   :  { %3436 = vst.msk [vmem:[#allocation2 + $0x88] sm:$0xff] %vm3418_vm2, %v3345_v20 }
 0x4c3   :  { %3571 = vrot.lane.b32.xlu2 %v8703_v37, %s5587_s16 }
 0x4c5   :  { %v3361_v11 = vpop.permute.xlu2 %3360  ;;  %v3347_v13 = vpop.permute.xlu1 %3346 }
 0x4c6   :  { %3444 = vst.msk [vmem:[#allocation2 + $0xc8] sm:$0xff] %vm3418_vm2, %v3361_v11 }
 0x4c7   :  { %3569 = vrot.lane.b32.xlu1 %v8707_v32, %s5587_s16  ;;  %3567 = vrot.lane.b32.xlu0 %v8709_v48, %s5587_s16  ;;  %3437 = vst.msk [vmem:[#allocation2 + $0x90] sm:$0xff] %vm3418_vm2, %v3347_v13  ;;  %v3890_v13 = vld [vmem:[#allocation3 + $0x1b] sm:$0xff] }
 0x4cb   :  { %3577 = vrot.lane.b32.xlu2 %v8717_v8, %s5587_s16 }
 0x4cd   :  { %v3367_v55 = vpop.permute.xlu2 %3366 }
 0x4ce   :  { %3447 = vst.msk [vmem:[#allocation2 + $0xe0] sm:$0xff] %vm3418_vm2, %v3367_v55 }
 0x4cf   :  { %3575 = vrot.lane.b32.xlu1 %v8721_v46, %s5587_s16  ;;  %3573 = vrot.lane.b32.xlu0 %v8723_v2, %s5587_s16 }
 0x4d3   :  { %3583 = vrot.lane.b32.xlu2 %v8730_v29, %s5587_s16 }
 0x4d5   :  { %v3373_v27 = vpop.permute.xlu2 %3372 }
 0x4d6   :  { %3450 = vst.msk [vmem:[#allocation2 + $0xf8] sm:$0xff] %vm3418_vm2, %v3373_v27  ;;  %v3892_v27 = vld [vmem:[#allocation3 + $0x2b] sm:$0xff] }
 0x4d7   :  { %3581 = vrot.lane.b32.xlu1 %v8734_v61, %s5587_s16  ;;  %3579 = vrot.lane.b32.xlu0 %v8736_v56, %s5587_s16 }
 0x4d9   :  { %v3353_v39 = vpop.permute.xlu1 %3352  ;;  %v3351_v41 = vpop.permute.xlu0 %3350 }
 0x4da   :  { %3440 = vst.msk [vmem:[#allocation2 + $0xa8] sm:$0xff] %vm3418_vm2, %v3353_v39 }
 0x4db   :  { %3439 = vst.msk [vmem:[#allocation2 + $0xa0] sm:$0xff] %vm3418_vm2, %v3351_v41  ;;  %3589 = vrot.lane.b32.xlu2 %v8744_v4, %s5587_s16  ;;  %v3896_v41 = vld [vmem:[#allocation3 + $0x4b] sm:$0xff] }
 0x4dd   :  { %v3379_v1 = vpop.permute.xlu2 %3378 }
 0x4de   :  { %3453 = vst.msk [vmem:[#allocation2 + $0x110] sm:$0xff] %vm3418_vm2, %v3379_v1  ;;  %v3895_v1 = vld [vmem:[#allocation3 + $0x43] sm:$0xff] }
 0x4df   :  { %3587 = vrot.lane.b32.xlu1 %v8749_v38, %s5587_s16  ;;  %3585 = vrot.lane.b32.xlu0 %v8751_v53, %s5587_s16 }
 0x4e1   :  { %v3359_v44 = vpop.permute.xlu1 %3358  ;;  %v3357_v21 = vpop.permute.xlu0 %3356 }
 0x4e2   :  { %3443 = vst.msk [vmem:[#allocation2 + $0xc0] sm:$0xff] %vm3418_vm2, %v3359_v44 }
 0x4e3   :  { %3442 = vst.msk [vmem:[#allocation2 + $0xb8] sm:$0xff] %vm3418_vm2, %v3357_v21  ;;  %3595 = vrot.lane.b32.xlu2 %v8759_v25, %s5587_s16  ;;  %v3899_v21 = vld [vmem:[#allocation3 + $0x63] sm:$0xff] }
 0x4e5   :  { %v3530_v12 = vpop.permute.xlu2 %3529 }
 0x4e6   :  { %3637 = vst.msk [vmem:[#allocation2 + $0x8] sm:$0xff] %vm3635_vm11, %v3530_v12  ;;  %v3898_v12 = vld [vmem:[#allocation3 + $0x5b] sm:$0xff] }
 0x4e7   :  { %3593 = vrot.lane.b32.xlu1 %v8764_v60, %s5587_s16  ;;  %3591 = vrot.lane.b32.xlu0 %v8766_v6, %s5587_s16 }
 0x4e9   :  { %v3365_v50 = vpop.permute.xlu1 %3364  ;;  %v3363_v19 = vpop.permute.xlu0 %3362 }
 0x4ea   :  { %3446 = vst.msk [vmem:[#allocation2 + $0xd8] sm:$0xff] %vm3418_vm2, %v3365_v50 }
 0x4eb   :  { %3445 = vst.msk [vmem:[#allocation2 + $0xd0] sm:$0xff] %vm3418_vm2, %v3363_v19  ;;  %3746 = vrot.lane.b32.xlu2 %v8629_v22, %s5589_s30  ;;  %v3902_v19 = vld [vmem:[#allocation3 + $0x7b] sm:$0xff] }
 0x4ed   :  { %v3536_v62 = vpop.permute.xlu2 %3535 }
 0x4ee   :  { %3640 = vst.msk [vmem:[#allocation2 + $0x20] sm:$0xff] %vm3635_vm11, %v3536_v62 }
 0x4ef   :  { %3744 = vrot.lane.b32.xlu1 %v8631_v52, %s5589_s30  ;;  %3597 = vrot.lane.b32.xlu0 %v8777_v43, %s5587_s16  ;;  %s5596_s16 = smov 64  }
 0x4f1   :  { %v3371_v7 = vpop.permute.xlu1 %3370  ;;  %v3369_v28 = vpop.permute.xlu0 %3368 }
 0x4f2   :  { %3449 = vst.msk [vmem:[#allocation2 + $0xf0] sm:$0xff] %vm3418_vm2, %v3371_v7  ;;  %v3900_v7 = vld [vmem:[#allocation3 + $0x6b] sm:$0xff] }
 0x4f3   :  { %3448 = vst.msk [vmem:[#allocation2 + $0xe8] sm:$0xff] %vm3418_vm2, %v3369_v28  ;;  %3752 = vrot.lane.b32.xlu2 %v8642_v5, %s5589_s30 }
 0x4f5   :  { %v3542_v51 = vpop.permute.xlu2 %3541 }
 0x4f6   :  { %3643 = vst.msk [vmem:[#allocation2 + $0x38] sm:$0xff] %vm3635_vm11, %v3542_v51 }
 0x4f7   :  { %3750 = vrot.lane.b32.xlu1 %v8644_v45, %s5589_s30  ;;  %3748 = vrot.lane.b32.xlu0 %v8625_v14, %s5589_s30 }
 0x4f9   :  { %v3377_v23 = vpop.permute.xlu1 %3376  ;;  %v3375_v36 = vpop.permute.xlu0 %3374 }
 0x4fa   :  { %3452 = vst.msk [vmem:[#allocation2 + $0x108] sm:$0xff] %vm3418_vm2, %v3377_v23  ;;  %v3905_v23 = vld [vmem:[#allocation3 + $0x93] sm:$0xff] }
 0x4fb   :  { %3451 = vst.msk [vmem:[#allocation2 + $0x100] sm:$0xff] %vm3418_vm2, %v3375_v36  ;;  %3758 = vrot.lane.b32.xlu2 %v8655_v58, %s5589_s30 }
 0x4fd   :  { %v3548_v9 = vpop.permute.xlu2 %3547 }
 0x4fe   :  { %3646 = vst.msk [vmem:[#allocation2 + $0x50] sm:$0xff] %vm3635_vm11, %v3548_v9  ;;  %v3904_v9 = vld [vmem:[#allocation3 + $0x8b] sm:$0xff] }
 0x4ff   :  { %3756 = vrot.lane.b32.xlu1 %v8657_v15, %s5589_s30  ;;  %3754 = vrot.lane.b32.xlu0 %v8637_v30, %s5589_s30 }
 0x501   :  { %v3528_v33 = vpop.permute.xlu1 %3527  ;;  %v3381_v47 = vpop.permute.xlu0 %3380 }
 0x502   :  { %3636 = vst.msk [vmem:[#allocation2] sm:$0xff] %vm3635_vm11, %v3528_v33  ;;  %v3903_v33 = vld [vmem:[#allocation3 + $0x83] sm:$0xff] }
 0x503   :  { %3454 = vst.msk [vmem:[#allocation2 + $0x118] sm:$0xff] %vm3418_vm2, %v3381_v47  ;;  %3764 = vrot.lane.b32.xlu2 %v8668_v26, %s5589_s30  ;;  %vm3852_vm2 = vcmask 261312  }
 0x505   :  { %v3554_v59 = vpop.permute.xlu2 %3553 }
 0x506   :  { %3649 = vst.msk [vmem:[#allocation2 + $0x68] sm:$0xff] %vm3635_vm11, %v3554_v59 }
 0x507   :  { %3762 = vrot.lane.b32.xlu1 %v8670_v63, %s5589_s30  ;;  %3760 = vrot.lane.b32.xlu0 %v8650_v57, %s5589_s30 }
 0x509   :  { %v3534_v35 = vpop.permute.xlu1 %3533  ;;  %v3532_v14 = vpop.permute.xlu0 %3531 }
 0x50a   :  { %3639 = vst.msk [vmem:[#allocation2 + $0x18] sm:$0xff] %vm3635_vm11, %v3534_v35  ;;  %v3908_v35 = vld [vmem:[#allocation3 + $0xab] sm:$0xff] }
 0x50b   :  { %3638 = vst.msk [vmem:[#allocation2 + $0x10] sm:$0xff] %vm3635_vm11, %v3532_v14  ;;  %3770 = vrot.lane.b32.xlu2 %v8680_v24, %s5589_s30 }
 0x50d   :  { %v3560_v22 = vpop.permute.xlu2 %3559 }
 0x50e   :  { %3652 = vst.msk [vmem:[#allocation2 + $0x80] sm:$0xff] %vm3635_vm11, %v3560_v22  ;;  %v3907_v22 = vld [vmem:[#allocation3 + $0xa3] sm:$0xff] }
 0x50f   :  { %3768 = vrot.lane.b32.xlu1 %v8682_v18, %s5589_s30  ;;  %3766 = vrot.lane.b32.xlu0 %v8664_v34, %s5589_s30 }
 0x511   :  { %v3540_v52 = vpop.permute.xlu1 %3539  ;;  %v3538_v30 = vpop.permute.xlu0 %3537 }
 0x512   :  { %3642 = vst.msk [vmem:[#allocation2 + $0x30] sm:$0xff] %vm3635_vm11, %v3540_v52  ;;  %v3906_v52 = vld [vmem:[#allocation3 + $0x9b] sm:$0xff] }
 0x513   :  { %3641 = vst.msk [vmem:[#allocation2 + $0x28] sm:$0xff] %vm3635_vm11, %v3538_v30  ;;  %3776 = vrot.lane.b32.xlu2 %v8693_v42, %s5589_s30 }
 0x515   :  { %v3566_v31 = vpop.permute.xlu2 %3565 }
 0x516   :  { %3655 = vst.msk [vmem:[#allocation2 + $0x98] sm:$0xff] %vm3635_vm11, %v3566_v31 }
 0x517   :  { %3774 = vrot.lane.b32.xlu1 %v8695_v54, %s5589_s30  ;;  %3772 = vrot.lane.b32.xlu0 %v8676_v17, %s5589_s30  ;;  %v3706_v54 = vld [vmem:[#allocation3 + $0x122] sm:$0xff] }
 0x519   :  { %v3546_v5 = vpop.permute.xlu1 %3545  ;;  %v3544_v45 = vpop.permute.xlu0 %3543 }
 0x51a   :  { %3645 = vst.msk [vmem:[#allocation2 + $0x48] sm:$0xff] %vm3635_vm11, %v3546_v5  ;;  %v3911_v5 = vld [vmem:[#allocation3 + $0xc3] sm:$0xff] }
 0x51b   :  { %3644 = vst.msk [vmem:[#allocation2 + $0x40] sm:$0xff] %vm3635_vm11, %v3544_v45  ;;  %3782 = vrot.lane.b32.xlu2 %v8707_v32, %s5589_s30 }
 0x51d   :  { %v3572_v16 = vpop.permute.xlu2 %3571 }
 0x51e   :  { %3658 = vst.msk [vmem:[#allocation2 + $0xb0] sm:$0xff] %vm3635_vm11, %v3572_v16  ;;  %v3910_v16 = vld [vmem:[#allocation3 + $0xbb] sm:$0xff] }
 0x51f   :  { %3780 = vrot.lane.b32.xlu1 %v8709_v48, %s5589_s30  ;;  %3778 = vrot.lane.b32.xlu0 %v8689_v0, %s5589_s30  ;;  %v3889_v48 = vld [vmem:[#allocation3 + $0x13] sm:$0xff] }
 0x521   :  { %v3552_v57 = vpop.permute.xlu1 %3551  ;;  %v3550_v58 = vpop.permute.xlu0 %3549 }
 0x522   :  { %3648 = vst.msk [vmem:[#allocation2 + $0x60] sm:$0xff] %vm3635_vm11, %v3552_v57  ;;  %v3909_v57 = vld [vmem:[#allocation3 + $0xb3] sm:$0xff] }
 0x523   :  { %3647 = vst.msk [vmem:[#allocation2 + $0x58] sm:$0xff] %vm3635_vm11, %v3550_v58  ;;  %3788 = vrot.lane.b32.xlu2 %v8721_v46, %s5589_s30 }
 0x525   :  { %v3578_v15 = vpop.permute.xlu2 %3577 }
 0x526   :  { %3661 = vst.msk [vmem:[#allocation2 + $0xc8] sm:$0xff] %vm3635_vm11, %v3578_v15 }
 0x527   :  { %3786 = vrot.lane.b32.xlu1 %v8723_v2, %s5589_s30  ;;  %3784 = vrot.lane.b32.xlu0 %v8703_v37, %s5589_s30  ;;  %v3893_v2 = vld [vmem:[#allocation3 + $0x33] sm:$0xff] }
 0x529   :  { %v3558_v10 = vpop.permute.xlu1 %3557  ;;  %v3556_v34 = vpop.permute.xlu0 %3555 }
 0x52a   :  { %3651 = vst.msk [vmem:[#allocation2 + $0x78] sm:$0xff] %vm3635_vm11, %v3558_v10  ;;  %v3914_v10 = vld [vmem:[#allocation3 + $0xdb] sm:$0xff] }
 0x52b   :  { %3650 = vst.msk [vmem:[#allocation2 + $0x70] sm:$0xff] %vm3635_vm11, %v3556_v34  ;;  %3794 = vrot.lane.b32.xlu2 %v8734_v61, %s5589_s30  ;;  %v3891_v61 = vld [vmem:[#allocation3 + $0x23] sm:$0xff] }
 0x52d   :  { %v3584_v26 = vpop.permute.xlu2 %3583 }
 0x52e   :  { %3664 = vst.msk [vmem:[#allocation2 + $0xe0] sm:$0xff] %vm3635_vm11, %v3584_v26  ;;  %v3913_v26 = vld [vmem:[#allocation3 + $0xd3] sm:$0xff] }
 0x52f   :  { %3792 = vrot.lane.b32.xlu1 %v8736_v56, %s5589_s30  ;;  %3790 = vrot.lane.b32.xlu0 %v8717_v8, %s5589_s30  ;;  %v3707_v8 = vld [vmem:[#allocation3 + $0x12a] sm:$0xff] }
 0x531   :  { %v3564_v63 = vpop.permute.xlu1 %3563  ;;  %v3562_v17 = vpop.permute.xlu0 %3561 }
 0x532   :  { %3654 = vst.msk [vmem:[#allocation2 + $0x90] sm:$0xff] %vm3635_vm11, %v3564_v63  ;;  %v3912_v63 = vld [vmem:[#allocation3 + $0xcb] sm:$0xff] }
 0x533   :  { %3653 = vst.msk [vmem:[#allocation2 + $0x88] sm:$0xff] %vm3635_vm11, %v3562_v17  ;;  %3800 = vrot.lane.b32.xlu2 %v8749_v38, %s5589_s30  ;;  %v3894_v38 = vld [vmem:[#allocation3 + $0x3b] sm:$0xff] }
 0x535   :  { %v3590_v49 = vpop.permute.xlu2 %3589 }
 0x536   :  { %3667 = vst.msk [vmem:[#allocation2 + $0xf8] sm:$0xff] %vm3635_vm11, %v3590_v49 }
 0x537   :  { %3798 = vrot.lane.b32.xlu1 %v8751_v53, %s5589_s30  ;;  %3796 = vrot.lane.b32.xlu0 %v8730_v29, %s5589_s30 }
 0x539   :  { %v3570_v24 = vpop.permute.xlu1 %3569  ;;  %v3568_v18 = vpop.permute.xlu0 %3567 }
 0x53a   :  { %3657 = vst.msk [vmem:[#allocation2 + $0xa8] sm:$0xff] %vm3635_vm11, %v3570_v24  ;;  %v3917_v24 = vld [vmem:[#allocation3 + $0xf3] sm:$0xff] }
 0x53b   :  { %3656 = vst.msk [vmem:[#allocation2 + $0xa0] sm:$0xff] %vm3635_vm11, %v3568_v18  ;;  %3806 = vrot.lane.b32.xlu2 %v8764_v60, %s5589_s30  ;;  %v3897_v60 = vld [vmem:[#allocation3 + $0x53] sm:$0xff] }
 0x53d   :  { %v3596_v0 = vpop.permute.xlu2 %3595 }
 0x53e   :  { %3670 = vst.msk [vmem:[#allocation2 + $0x110] sm:$0xff] %vm3635_vm11, %v3596_v0  ;;  %v3916_v0 = vld [vmem:[#allocation3 + $0xeb] sm:$0xff] }
 0x53f   :  { %3804 = vrot.lane.b32.xlu1 %v8766_v6, %s5589_s30  ;;  %3802 = vrot.lane.b32.xlu0 %v8744_v4, %s5589_s30 }
 0x541   :  { %v3576_v3 = vpop.permute.xlu1 %3575  ;;  %v3574_v42 = vpop.permute.xlu0 %3573 }
 0x542   :  { %3660 = vst.msk [vmem:[#allocation2 + $0xc0] sm:$0xff] %vm3635_vm11, %v3576_v3  ;;  %v3915_v3 = vld [vmem:[#allocation3 + $0xe3] sm:$0xff] }
 0x543   :  { %3659 = vst.msk [vmem:[#allocation2 + $0xb8] sm:$0xff] %vm3635_vm11, %v3574_v42  ;;  %3812 = vrot.lane.b32.xlu2 %v3706_v54, %s5589_s30 }
 0x545   :  { %v3747_v20 = vpop.permute.xlu2 %3746 }
 0x546   :  { %3854 = vst.msk [vmem:[#allocation2 + $0x8] sm:$0xff] %vm3852_vm2, %v3747_v20  ;;  %v3920_v20 = vld [vmem:[#allocation3 + $0x10b] sm:$0xff] }
 0x547   :  { %3810 = vrot.lane.b32.xlu1 %v8777_v43, %s5589_s30  ;;  %3808 = vrot.lane.b32.xlu0 %v8759_v25, %s5589_s30  ;;  %v3901_v43 = vld [vmem:[#allocation3 + $0x73] sm:$0xff] }
 0x549   :  { %v3582_v37 = vpop.permute.xlu1 %3581  ;;  %v3580_v11 = vpop.permute.xlu0 %3579 }
 0x54a   :  { %3663 = vst.msk [vmem:[#allocation2 + $0xd8] sm:$0xff] %vm3635_vm11, %v3582_v37 }
 0x54b   :  { %3662 = vst.msk [vmem:[#allocation2 + $0xd0] sm:$0xff] %vm3635_vm11, %v3580_v11  ;;  %3963 = vrot.lane.b32.xlu2 %v3890_v13, %s5591_s23  ;;  %v3919_v11 = vld [vmem:[#allocation3 + $0x103] sm:$0xff]  ;;  %v3918_v13 = vld [vmem:[#allocation3 + $0xfb] sm:$0xff] }
 0x54d   :  { %v3753_v32 = vpop.permute.xlu2 %3752 }
 0x54e   :  { %3857 = vst.msk [vmem:[#allocation2 + $0x20] sm:$0xff] %vm3852_vm2, %v3753_v32 }
 0x54f   :  { %3961 = vrot.lane.b32.xlu1 %v3889_v48, %s5591_s23  ;;  %3814 = vrot.lane.b32.xlu0 %v3707_v8, %s5589_s30  ;;  %v3923_v8 = vld [vmem:[#allocation3 + $0x123] sm:$0xff]  ;;  %s5597_s30 = smov 56  }
 0x551   :  { %v3588_v55 = vpop.permute.xlu1 %3587  ;;  %v3586_v46 = vpop.permute.xlu0 %3585 }
 0x552   :  { %3666 = vst.msk [vmem:[#allocation2 + $0xf0] sm:$0xff] %vm3635_vm11, %v3588_v55 }
 0x553   :  { %3665 = vst.msk [vmem:[#allocation2 + $0xe8] sm:$0xff] %vm3635_vm11, %v3586_v46  ;;  %3969 = vrot.lane.b32.xlu2 %v3893_v2, %s5591_s23  ;;  %v3922_v46 = vld [vmem:[#allocation3 + $0x11b] sm:$0xff]  ;;  %v3921_v2 = vld [vmem:[#allocation3 + $0x113] sm:$0xff] }
 0x555   :  { %v3759_v29 = vpop.permute.xlu2 %3758 }
 0x556   :  { %3860 = vst.msk [vmem:[#allocation2 + $0x38] sm:$0xff] %vm3852_vm2, %v3759_v29 }
 0x557   :  { %3967 = vrot.lane.b32.xlu1 %v3892_v27, %s5591_s23  ;;  %3965 = vrot.lane.b32.xlu0 %v3891_v61, %s5591_s23  ;;  %v4107_v61 = vld [vmem:[#allocation3 + $0x1c] sm:$0xff] }
 0x559   :  { %v3594_v56 = vpop.permute.xlu1 %3593  ;;  %v3592_v39 = vpop.permute.xlu0 %3591 }
 0x55a   :  { %3669 = vst.msk [vmem:[#allocation2 + $0x108] sm:$0xff] %vm3635_vm11, %v3594_v56 }
 0x55b   :  { %3668 = vst.msk [vmem:[#allocation2 + $0x100] sm:$0xff] %vm3635_vm11, %v3592_v39  ;;  %3975 = vrot.lane.b32.xlu2 %v3896_v41, %s5591_s23  ;;  %v4106_v39 = vld [vmem:[#allocation3 + $0x14] sm:$0xff]  ;;  %v3924_v41 = vld [vmem:[#allocation3 + $0x12b] sm:$0xff] }
 0x55d   :  { %v3765_v4 = vpop.permute.xlu2 %3764 }
 0x55e   :  { %3863 = vst.msk [vmem:[#allocation2 + $0x50] sm:$0xff] %vm3852_vm2, %v3765_v4 }
 0x55f   :  { %3973 = vrot.lane.b32.xlu1 %v3895_v1, %s5591_s23  ;;  %3971 = vrot.lane.b32.xlu0 %v3894_v38, %s5591_s23  ;;  %v8961_v38 = vld [vmem:[#allocation3 + $0x34] sm:$0xff] }
 0x561   :  { %v3745_v53 = vpop.permute.xlu1 %3744  ;;  %v3598_v44 = vpop.permute.xlu0 %3597 }
 0x562   :  { %3853 = vst.msk [vmem:[#allocation2] sm:$0xff] %vm3852_vm2, %v3745_v53 }
 0x563   :  { %3671 = vst.msk [vmem:[#allocation2 + $0x118] sm:$0xff] %vm3635_vm11, %v3598_v44  ;;  %3981 = vrot.lane.b32.xlu2 %v3899_v21, %s5591_s23  ;;  %v8966_v44 = vld [vmem:[#allocation3 + $0x2c] sm:$0xff]  ;;  %v8968_v21 = vld [vmem:[#allocation3 + $0x24] sm:$0xff] }
 0x565   :  { %v3771_v25 = vpop.permute.xlu2 %3770 }
 0x566   :  { %3866 = vst.msk [vmem:[#allocation2 + $0x68] sm:$0xff] %vm3852_vm2, %v3771_v25 }
 0x567   :  { %3979 = vrot.lane.b32.xlu1 %v3898_v12, %s5591_s23  ;;  %3977 = vrot.lane.b32.xlu0 %v3897_v60, %s5591_s23  ;;  %v8976_v60 = vld [vmem:[#allocation3 + $0x4c] sm:$0xff] }
 0x569   :  { %v3751_v6 = vpop.permute.xlu1 %3750  ;;  %v3749_v50 = vpop.permute.xlu0 %3748 }
 0x56a   :  { %3856 = vst.msk [vmem:[#allocation2 + $0x18] sm:$0xff] %vm3852_vm2, %v3751_v6 }
 0x56b   :  { %3855 = vst.msk [vmem:[#allocation2 + $0x10] sm:$0xff] %vm3852_vm2, %v3749_v50  ;;  %3987 = vrot.lane.b32.xlu2 %v3902_v19, %s5591_s23  ;;  %v8981_v50 = vld [vmem:[#allocation3 + $0x44] sm:$0xff]  ;;  %v8983_v19 = vld [vmem:[#allocation3 + $0x3c] sm:$0xff] }
 0x56d   :  { %v3777_v62 = vpop.permute.xlu2 %3776 }
 0x56e   :  { %3869 = vst.msk [vmem:[#allocation2 + $0x80] sm:$0xff] %vm3852_vm2, %v3777_v62 }
 0x56f   :  { %3985 = vrot.lane.b32.xlu1 %v3901_v43, %s5591_s23  ;;  %3983 = vrot.lane.b32.xlu0 %v3900_v7, %s5591_s23  ;;  %v8991_v7 = vld [vmem:[#allocation3 + $0x64] sm:$0xff] }
 0x571   :  { %v3757_v28 = vpop.permute.xlu1 %3756  ;;  %v3755_v51 = vpop.permute.xlu0 %3754 }
 0x572   :  { %3859 = vst.msk [vmem:[#allocation2 + $0x30] sm:$0xff] %vm3852_vm2, %v3757_v28 }
 0x573   :  { %3858 = vst.msk [vmem:[#allocation2 + $0x28] sm:$0xff] %vm3852_vm2, %v3755_v51  ;;  %3993 = vrot.lane.b32.xlu2 %v3905_v23, %s5591_s23  ;;  %v8996_v51 = vld [vmem:[#allocation3 + $0x5c] sm:$0xff]  ;;  %v8998_v23 = vld [vmem:[#allocation3 + $0x54] sm:$0xff] }
 0x575   :  { %v3783_v36 = vpop.permute.xlu2 %3782 }
 0x576   :  { %3872 = vst.msk [vmem:[#allocation2 + $0x98] sm:$0xff] %vm3852_vm2, %v3783_v36 }
 0x577   :  { %3991 = vrot.lane.b32.xlu1 %v3904_v9, %s5591_s23  ;;  %3989 = vrot.lane.b32.xlu0 %v3903_v33, %s5591_s23  ;;  %v9006_v33 = vld [vmem:[#allocation3 + $0x7c] sm:$0xff] }
 0x579   :  { %v3763_v47 = vpop.permute.xlu1 %3762  ;;  %v3761_v59 = vpop.permute.xlu0 %3760 }
 0x57a   :  { %3862 = vst.msk [vmem:[#allocation2 + $0x48] sm:$0xff] %vm3852_vm2, %v3763_v47 }
 0x57b   :  { %3861 = vst.msk [vmem:[#allocation2 + $0x40] sm:$0xff] %vm3852_vm2, %v3761_v59  ;;  %3999 = vrot.lane.b32.xlu2 %v3908_v35, %s5591_s23  ;;  %v9011_v59 = vld [vmem:[#allocation3 + $0x74] sm:$0xff]  ;;  %v9013_v35 = vld [vmem:[#allocation3 + $0x6c] sm:$0xff] }
 0x57d   :  { %v3789_v14 = vpop.permute.xlu2 %3788 }
 0x57e   :  { %3875 = vst.msk [vmem:[#allocation2 + $0xb0] sm:$0xff] %vm3852_vm2, %v3789_v14 }
 0x57f   :  { %3997 = vrot.lane.b32.xlu1 %v3907_v22, %s5591_s23  ;;  %3995 = vrot.lane.b32.xlu0 %v3906_v52, %s5591_s23  ;;  %v9021_v52 = vld [vmem:[#allocation3 + $0x94] sm:$0xff] }
 0x581   :  { %v3769_v30 = vpop.permute.xlu1 %3768  ;;  %v3767_v31 = vpop.permute.xlu0 %3766 }
 0x582   :  { %3865 = vst.msk [vmem:[#allocation2 + $0x60] sm:$0xff] %vm3852_vm2, %v3769_v30 }
 0x583   :  { %3864 = vst.msk [vmem:[#allocation2 + $0x58] sm:$0xff] %vm3852_vm2, %v3767_v31  ;;  %4005 = vrot.lane.b32.xlu2 %v3911_v5, %s5591_s23  ;;  %v9026_v31 = vld [vmem:[#allocation3 + $0x8c] sm:$0xff]  ;;  %v9028_v5 = vld [vmem:[#allocation3 + $0x84] sm:$0xff] }
 0x585   :  { %v3795_v45 = vpop.permute.xlu2 %3794 }
 0x586   :  { %3878 = vst.msk [vmem:[#allocation2 + $0xc8] sm:$0xff] %vm3852_vm2, %v3795_v45 }
 0x587   :  { %4003 = vrot.lane.b32.xlu1 %v3910_v16, %s5591_s23  ;;  %4001 = vrot.lane.b32.xlu0 %v3909_v57, %s5591_s23  ;;  %v4125_v57 = vld [vmem:[#allocation3 + $0xac] sm:$0xff] }
 0x589   :  { %v3775_v58 = vpop.permute.xlu1 %3774  ;;  %v3773_v15 = vpop.permute.xlu0 %3772 }
 0x58a   :  { %3868 = vst.msk [vmem:[#allocation2 + $0x78] sm:$0xff] %vm3852_vm2, %v3775_v58 }
 0x58b   :  { %3867 = vst.msk [vmem:[#allocation2 + $0x70] sm:$0xff] %vm3852_vm2, %v3773_v15  ;;  %4011 = vrot.lane.b32.xlu2 %v3914_v10, %s5591_s23  ;;  %v4124_v15 = vld [vmem:[#allocation3 + $0xa4] sm:$0xff]  ;;  %v9038_v10 = vld [vmem:[#allocation3 + $0x9c] sm:$0xff] }
 0x58d   :  { %v3801_v34 = vpop.permute.xlu2 %3800 }
 0x58e   :  { %3881 = vst.msk [vmem:[#allocation2 + $0xe0] sm:$0xff] %vm3852_vm2, %v3801_v34 }
 0x58f   :  { %4009 = vrot.lane.b32.xlu1 %v3913_v26, %s5591_s23  ;;  %4007 = vrot.lane.b32.xlu0 %v3912_v63, %s5591_s23  ;;  %v9045_v63 = vld [vmem:[#allocation3 + $0xc4] sm:$0xff] }
 0x591   :  { %v3781_v17 = vpop.permute.xlu1 %3780  ;;  %v3779_v49 = vpop.permute.xlu0 %3778 }
 0x592   :  { %3871 = vst.msk [vmem:[#allocation2 + $0x90] sm:$0xff] %vm3852_vm2, %v3781_v17 }
 0x593   :  { %3870 = vst.msk [vmem:[#allocation2 + $0x88] sm:$0xff] %vm3852_vm2, %v3779_v49  ;;  %4017 = vrot.lane.b32.xlu2 %v3917_v24, %s5591_s23  ;;  %v9050_v49 = vld [vmem:[#allocation3 + $0xbc] sm:$0xff]  ;;  %v9052_v24 = vld [vmem:[#allocation3 + $0xb4] sm:$0xff] }
 0x595   :  { %v3807_v18 = vpop.permute.xlu2 %3806 }
 0x596   :  { %3884 = vst.msk [vmem:[#allocation2 + $0xf8] sm:$0xff] %vm3852_vm2, %v3807_v18 }
 0x597   :  { %4015 = vrot.lane.b32.xlu1 %v3916_v0, %s5591_s23  ;;  %4013 = vrot.lane.b32.xlu0 %v3915_v3, %s5591_s23  ;;  %v9060_v3 = vld [vmem:[#allocation3 + $0xdc] sm:$0xff] }
 0x599   :  { %v3787_v42 = vpop.permute.xlu1 %3786  ;;  %v3785_v54 = vpop.permute.xlu0 %3784 }
 0x59a   :  { %3874 = vst.msk [vmem:[#allocation2 + $0xa8] sm:$0xff] %vm3852_vm2, %v3787_v42 }
 0x59b   :  { %3873 = vst.msk [vmem:[#allocation2 + $0xa0] sm:$0xff] %vm3852_vm2, %v3785_v54  ;;  %4023 = vrot.lane.b32.xlu2 %v3920_v20, %s5591_s23  ;;  %v9065_v54 = vld [vmem:[#allocation3 + $0xd4] sm:$0xff]  ;;  %v9067_v20 = vld [vmem:[#allocation3 + $0xcc] sm:$0xff] }
 0x59d   :  { %v3813_v37 = vpop.permute.xlu2 %3812 }
 0x59e   :  { %3887 = vst.msk [vmem:[#allocation2 + $0x110] sm:$0xff] %vm3852_vm2, %v3813_v37 }
 0x59f   :  { %4021 = vrot.lane.b32.xlu1 %v3919_v11, %s5591_s23  ;;  %4019 = vrot.lane.b32.xlu0 %v3918_v13, %s5591_s23  ;;  %v9075_v13 = vld [vmem:[#allocation3 + $0xf4] sm:$0xff] }
 0x5a1   :  { %v3793_v32 = vpop.permute.xlu1 %3792  ;;  %v3791_v48 = vpop.permute.xlu0 %3790 }
 0x5a2   :  { %3877 = vst.msk [vmem:[#allocation2 + $0xc0] sm:$0xff] %vm3852_vm2, %v3793_v32 }
 0x5a3   :  { %3876 = vst.msk [vmem:[#allocation2 + $0xb8] sm:$0xff] %vm3852_vm2, %v3791_v48  ;;  %4029 = vrot.lane.b32.xlu2 %v3923_v8, %s5591_s23  ;;  %v9080_v48 = vld [vmem:[#allocation3 + $0xec] sm:$0xff]  ;;  %v9082_v8 = vld [vmem:[#allocation3 + $0xe4] sm:$0xff] }
 0x5a5   :  { %v3964_v55 = vpop.permute.xlu2 %3963 }
 0x5a6   :  { %4071 = vst.msk [vmem:[#allocation2 + $0x8] sm:$0xff] %vm4069_vm6, %v3964_v55 }
 0x5a7   :  { %4027 = vrot.lane.b32.xlu1 %v3922_v46, %s5591_s23  ;;  %4025 = vrot.lane.b32.xlu0 %v3921_v2, %s5591_s23  ;;  %v9090_v2 = vld [vmem:[#allocation3 + $0x10c] sm:$0xff] }
 0x5a9   :  { %v3799_v29 = vpop.permute.xlu1 %3798  ;;  %v3797_v27 = vpop.permute.xlu0 %3796 }
 0x5aa   :  { %3880 = vst.msk [vmem:[#allocation2 + $0xd8] sm:$0xff] %vm3852_vm2, %v3799_v29 }
 0x5ab   :  { %3879 = vst.msk [vmem:[#allocation2 + $0xd0] sm:$0xff] %vm3852_vm2, %v3797_v27  ;;  %4180 = vrot.lane.b32.xlu2 %v4107_v61, %s5594_s3  ;;  %v9095_v27 = vld [vmem:[#allocation3 + $0x104] sm:$0xff]  ;;  %v9097_v61 = vld [vmem:[#allocation3 + $0xfc] sm:$0xff] }
 0x5ad   :  { %v3970_v56 = vpop.permute.xlu2 %3969 }
 0x5ae   :  { %4074 = vst.msk [vmem:[#allocation2 + $0x20] sm:$0xff] %vm4069_vm6, %v3970_v56 }
 0x5af   :  { %4178 = vrot.lane.b32.xlu1 %v4106_v39, %s5594_s3  ;;  %4031 = vrot.lane.b32.xlu0 %v3924_v41, %s5591_s23  ;;  %v9105_v41 = vld [vmem:[#allocation3 + $0x124] sm:$0xff] }
 0x5b1   :  { %v3805_v4 = vpop.permute.xlu1 %3804  ;;  %v3803_v1 = vpop.permute.xlu0 %3802 }
 0x5b2   :  { %3883 = vst.msk [vmem:[#allocation2 + $0xf0] sm:$0xff] %vm3852_vm2, %v3805_v4 }
 0x5b3   :  { %3882 = vst.msk [vmem:[#allocation2 + $0xe8] sm:$0xff] %vm3852_vm2, %v3803_v1  ;;  %4186 = vrot.lane.b32.xlu2 %v8961_v38, %s5594_s3  ;;  %v9110_v1 = vld [vmem:[#allocation3 + $0x11c] sm:$0xff] }
 0x5b5   :  { %v3976_v53 = vpop.permute.xlu2 %3975 }
 0x5b6   :  { %4077 = vst.msk [vmem:[#allocation2 + $0x38] sm:$0xff] %vm4069_vm6, %v3976_v53  ;;  %v9112_v53 = vld [vmem:[#allocation3 + $0x114] sm:$0xff] }
 0x5b7   :  { %4184 = vrot.lane.b32.xlu1 %v8966_v44, %s5594_s3  ;;  %4182 = vrot.lane.b32.xlu0 %v8968_v21, %s5594_s3 }
 0x5b9   :  { %v3811_v25 = vpop.permute.xlu1 %3810  ;;  %v3809_v12 = vpop.permute.xlu0 %3808 }
 0x5ba   :  { %3886 = vst.msk [vmem:[#allocation2 + $0x108] sm:$0xff] %vm3852_vm2, %v3811_v25 }
 0x5bb   :  { %3885 = vst.msk [vmem:[#allocation2 + $0x100] sm:$0xff] %vm3852_vm2, %v3809_v12  ;;  %4192 = vrot.lane.b32.xlu2 %v8976_v60, %s5594_s3 }
 0x5bd   :  { %v3982_v6 = vpop.permute.xlu2 %3981 }
 0x5be   :  { %4080 = vst.msk [vmem:[#allocation2 + $0x50] sm:$0xff] %vm4069_vm6, %v3982_v6 }
 0x5bf   :  { %4190 = vrot.lane.b32.xlu1 %v8981_v50, %s5594_s3  ;;  %4188 = vrot.lane.b32.xlu0 %v8983_v19, %s5594_s3 }
 0x5c1   :  { %v3962_v62 = vpop.permute.xlu1 %3961  ;;  %v3815_v43 = vpop.permute.xlu0 %3814 }
 0x5c2   :  { %4070 = vst.msk [vmem:[#allocation2] sm:$0xff] %vm4069_vm6, %v3962_v62  ;;  %v9123_v62 = vld [vmem:[#allocation3 + $0x12c] sm:$0xff] }
 0x5c3   :  { %3888 = vst.msk [vmem:[#allocation2 + $0x118] sm:$0xff] %vm3852_vm2, %v3815_v43  ;;  %4198 = vrot.lane.b32.xlu2 %v8991_v7, %s5594_s3 }
 0x5c5   :  { %v3988_v28 = vpop.permute.xlu2 %3987 }
 0x5c6   :  { %4083 = vst.msk [vmem:[#allocation2 + $0x68] sm:$0xff] %vm4069_vm6, %v3988_v28 }
 0x5c7   :  { %4196 = vrot.lane.b32.xlu1 %v8996_v51, %s5594_s3  ;;  %4194 = vrot.lane.b32.xlu0 %v8998_v23, %s5594_s3 }
 0x5c9   :  { %v3968_v36 = vpop.permute.xlu1 %3967  ;;  %v3966_v9 = vpop.permute.xlu0 %3965 }
 0x5ca   :  { %4073 = vst.msk [vmem:[#allocation2 + $0x18] sm:$0xff] %vm4069_vm6, %v3968_v36  ;;  %v4775_v36 = vld [vmem:[#allocation3 + $0xb6] sm:$0xff] }
 0x5cb   :  { %4072 = vst.msk [vmem:[#allocation2 + $0x10] sm:$0xff] %vm4069_vm6, %v3966_v9  ;;  %4204 = vrot.lane.b32.xlu2 %v9006_v33, %s5594_s3  ;;  %v4558_v9 = vld [vmem:[#allocation3 + $0xb5] sm:$0xff] }
 0x5cd   :  { %v3994_v47 = vpop.permute.xlu2 %3993 }
 0x5ce   :  { %4086 = vst.msk [vmem:[#allocation2 + $0x80] sm:$0xff] %vm4069_vm6, %v3994_v47 }
 0x5cf   :  { %4202 = vrot.lane.b32.xlu1 %v9011_v59, %s5594_s3  ;;  %4200 = vrot.lane.b32.xlu0 %v9013_v35, %s5594_s3 }
 0x5d1   :  { %v3974_v14 = vpop.permute.xlu1 %3973  ;;  %v3972_v22 = vpop.permute.xlu0 %3971 }
 0x5d2   :  { %4076 = vst.msk [vmem:[#allocation2 + $0x30] sm:$0xff] %vm4069_vm6, %v3974_v14  ;;  %v4757_v14 = vld [vmem:[#allocation3 + $0x26] sm:$0xff] }
 0x5d3   :  { %4075 = vst.msk [vmem:[#allocation2 + $0x28] sm:$0xff] %vm4069_vm6, %v3972_v22  ;;  %4210 = vrot.lane.b32.xlu2 %v9021_v52, %s5594_s3 }
 0x5d5   :  { %v4000_v30 = vpop.permute.xlu2 %3999 }
 0x5d6   :  { %4089 = vst.msk [vmem:[#allocation2 + $0x98] sm:$0xff] %vm4069_vm6, %v4000_v30  ;;  %v4540_v30 = vld [vmem:[#allocation3 + $0x25] sm:$0xff] }
 0x5d7   :  { %4208 = vrot.lane.b32.xlu1 %v9026_v31, %s5594_s3  ;;  %4206 = vrot.lane.b32.xlu0 %v9028_v5, %s5594_s3 }
 0x5d9   :  { %v3980_v45 = vpop.permute.xlu1 %3979  ;;  %v3978_v16 = vpop.permute.xlu0 %3977 }
 0x5da   :  { %4079 = vst.msk [vmem:[#allocation2 + $0x48] sm:$0xff] %vm4069_vm6, %v3980_v45 }
 0x5db   :  { %4078 = vst.msk [vmem:[#allocation2 + $0x40] sm:$0xff] %vm4069_vm6, %v3978_v16  ;;  %4216 = vrot.lane.b32.xlu2 %v4125_v57, %s5594_s3  ;;  %v4541_v57 = vld [vmem:[#allocation3 + $0x2d] sm:$0xff] }
 0x5dd   :  { %v4006_v58 = vpop.permute.xlu2 %4005 }
 0x5de   :  { %4092 = vst.msk [vmem:[#allocation2 + $0xb0] sm:$0xff] %vm4069_vm6, %v4006_v58 }
 0x5df   :  { %4214 = vrot.lane.b32.xlu1 %v4124_v15, %s5594_s3  ;;  %4212 = vrot.lane.b32.xlu0 %v9038_v10, %s5594_s3  ;;  %v4776_v15 = vld [vmem:[#allocation3 + $0xbe] sm:$0xff] }
 0x5e1   :  { %v3986_v34 = vpop.permute.xlu1 %3985  ;;  %v3984_v26 = vpop.permute.xlu0 %3983 }
 0x5e2   :  { %4082 = vst.msk [vmem:[#allocation2 + $0x60] sm:$0xff] %vm4069_vm6, %v3986_v34  ;;  %v4559_v34 = vld [vmem:[#allocation3 + $0xbd] sm:$0xff] }
 0x5e3   :  { %4081 = vst.msk [vmem:[#allocation2 + $0x58] sm:$0xff] %vm4069_vm6, %v3984_v26  ;;  %4222 = vrot.lane.b32.xlu2 %v9045_v63, %s5594_s3 }
 0x5e5   :  { %v4012_v17 = vpop.permute.xlu2 %4011 }
 0x5e6   :  { %4095 = vst.msk [vmem:[#allocation2 + $0xc8] sm:$0xff] %vm4069_vm6, %v4012_v17 }
 0x5e7   :  { %4220 = vrot.lane.b32.xlu1 %v9050_v49, %s5594_s3  ;;  %4218 = vrot.lane.b32.xlu0 %v9052_v24, %s5594_s3 }
 0x5e9   :  { %v3992_v18 = vpop.permute.xlu1 %3991  ;;  %v3990_v0 = vpop.permute.xlu0 %3989 }
 0x5ea   :  { %4085 = vst.msk [vmem:[#allocation2 + $0x78] sm:$0xff] %vm4069_vm6, %v3992_v18  ;;  %v4758_v18 = vld [vmem:[#allocation3 + $0x2e] sm:$0xff] }
 0x5eb   :  { %4084 = vst.msk [vmem:[#allocation2 + $0x70] sm:$0xff] %vm4069_vm6, %v3990_v0  ;;  %4228 = vrot.lane.b32.xlu2 %v9060_v3, %s5594_s3 }
 0x5ed   :  { %v4018_v42 = vpop.permute.xlu2 %4017 }
 0x5ee   :  { %4098 = vst.msk [vmem:[#allocation2 + $0xe0] sm:$0xff] %vm4069_vm6, %v4018_v42 }
 0x5ef   :  { %4226 = vrot.lane.b32.xlu1 %v9065_v54, %s5594_s3  ;;  %4224 = vrot.lane.b32.xlu0 %v9067_v20, %s5594_s3 }
 0x5f1   :  { %v3998_v37 = vpop.permute.xlu1 %3997  ;;  %v3996_v11 = vpop.permute.xlu0 %3995 }
 0x5f2   :  { %4088 = vst.msk [vmem:[#allocation2 + $0x90] sm:$0xff] %vm4069_vm6, %v3998_v37  ;;  %v4542_v37 = vld [vmem:[#allocation3 + $0x35] sm:$0xff] }
 0x5f3   :  { %4087 = vst.msk [vmem:[#allocation2 + $0x88] sm:$0xff] %vm4069_vm6, %v3996_v11  ;;  %4234 = vrot.lane.b32.xlu2 %v9075_v13, %s5594_s3 }
 0x5f5   :  { %v4024_v32 = vpop.permute.xlu2 %4023 }
 0x5f6   :  { %4101 = vst.msk [vmem:[#allocation2 + $0xf8] sm:$0xff] %vm4069_vm6, %v4024_v32  ;;  %v4777_v32 = vld [vmem:[#allocation3 + $0xc6] sm:$0xff] }
 0x5f7   :  { %4232 = vrot.lane.b32.xlu1 %v9080_v48, %s5594_s3  ;;  %4230 = vrot.lane.b32.xlu0 %v9082_v8, %s5594_s3 }
 0x5f9   :  { %v4004_v55 = vpop.permute.xlu1 %4003  ;;  %v4002_v46 = vpop.permute.xlu0 %4001 }
 0x5fa   :  { %4091 = vst.msk [vmem:[#allocation2 + $0xa8] sm:$0xff] %vm4069_vm6, %v4004_v55 }
 0x5fb   :  { %4090 = vst.msk [vmem:[#allocation2 + $0xa0] sm:$0xff] %vm4069_vm6, %v4002_v46  ;;  %4240 = vrot.lane.b32.xlu2 %v9090_v2, %s5594_s3  ;;  %v4561_v46 = vld [vmem:[#allocation3 + $0xcd] sm:$0xff] }
 0x5fd   :  { %v4030_v29 = vpop.permute.xlu2 %4029 }
 0x5fe   :  { %4104 = vst.msk [vmem:[#allocation2 + $0x110] sm:$0xff] %vm4069_vm6, %v4030_v29 }
 0x5ff   :  { %4238 = vrot.lane.b32.xlu1 %v9095_v27, %s5594_s3  ;;  %4236 = vrot.lane.b32.xlu0 %v9097_v61, %s5594_s3 }
 0x601   :  { %v4010_v56 = vpop.permute.xlu1 %4009  ;;  %v4008_v39 = vpop.permute.xlu0 %4007 }
 0x602   :  { %4094 = vst.msk [vmem:[#allocation2 + $0xc0] sm:$0xff] %vm4069_vm6, %v4010_v56  ;;  %v4759_v56 = vld [vmem:[#allocation3 + $0x36] sm:$0xff] }
 0x603   :  { %4093 = vst.msk [vmem:[#allocation2 + $0xb8] sm:$0xff] %vm4069_vm6, %v4008_v39  ;;  %4246 = vrot.lane.b32.xlu2 %v9105_v41, %s5594_s3 }
 0x605   :  { %v4181_v4 = vpop.permute.xlu2 %4180 }
 0x606   :  { %4288 = vst.msk [vmem:[#allocation2 + $0x8] sm:$0xff] %vm4286_vm7, %v4181_v4  ;;  %v4543_v4 = vld [vmem:[#allocation3 + $0x3d] sm:$0xff] }
 0x607   :  { %4244 = vrot.lane.b32.xlu1 %v9110_v1, %s5594_s3  ;;  %4242 = vrot.lane.b32.xlu0 %v9112_v53, %s5594_s3 }
 0x609   :  { %v4016_v25 = vpop.permute.xlu1 %4015  ;;  %v4014_v12 = vpop.permute.xlu0 %4013 }
 0x60a   :  { %4097 = vst.msk [vmem:[#allocation2 + $0xd8] sm:$0xff] %vm4069_vm6, %v4016_v25 }
 0x60b   :  { %4096 = vst.msk [vmem:[#allocation2 + $0xd0] sm:$0xff] %vm4069_vm6, %v4014_v12  ;;  %4397 = vrot.lane.b32.xlu2 %v8966_v44, %s5595_s15  ;;  %v4778_v12 = vld [vmem:[#allocation3 + $0xce] sm:$0xff] }
 0x60d   :  { %v4187_v6 = vpop.permute.xlu2 %4186 }
 0x60e   :  { %4291 = vst.msk [vmem:[#allocation2 + $0x20] sm:$0xff] %vm4286_vm7, %v4187_v6 }
 0x60f   :  { %4395 = vrot.lane.b32.xlu1 %v8968_v21, %s5595_s15  ;;  %4248 = vrot.lane.b32.xlu0 %v9123_v62, %s5594_s3 }
 0x611   :  { %v4022_v43 = vpop.permute.xlu1 %4021  ;;  %v4020_v28 = vpop.permute.xlu0 %4019 }
 0x612   :  { %4100 = vst.msk [vmem:[#allocation2 + $0xf0] sm:$0xff] %vm4069_vm6, %v4022_v43  ;;  %v4562_v43 = vld [vmem:[#allocation3 + $0xd5] sm:$0xff] }
 0x613   :  { %4099 = vst.msk [vmem:[#allocation2 + $0xe8] sm:$0xff] %vm4069_vm6, %v4020_v28  ;;  %4865 = vrot.lane.b32.xlu2 %v4775_v36, %s5596_s16  ;;  %v4760_v36 = vld [vmem:[#allocation3 + $0x3e] sm:$0xff] }
 0x615   :  { %v4193_v44 = vpop.permute.xlu2 %4192 }
 0x616   :  { %4294 = vst.msk [vmem:[#allocation2 + $0x38] sm:$0xff] %vm4286_vm7, %v4193_v44 }
 0x617   :  { %4648 = vrot.lane.b32.xlu1 %v4558_v9, %s5597_s30  ;;  %4431 = vrot.lane.b32.xlu0 %v9052_v24, %s5595_s15  ;;  %v4544_v9 = vld [vmem:[#allocation3 + $0x45] sm:$0xff] }
 0x619   :  { %v4028_v21 = vpop.permute.xlu1 %4027  ;;  %v4026_v47 = vpop.permute.xlu0 %4025 }
 0x61a   :  { %4103 = vst.msk [vmem:[#allocation2 + $0x108] sm:$0xff] %vm4069_vm6, %v4028_v21 }
 0x61b   :  { %4102 = vst.msk [vmem:[#allocation2 + $0x100] sm:$0xff] %vm4069_vm6, %v4026_v47  ;;  %4829 = vrot.lane.b32.xlu2 %v4757_v14, %s5596_s16  ;;  %v4779_v47 = vld [vmem:[#allocation3 + $0xd6] sm:$0xff] }
 0x61d   :  { %v4199_v22 = vpop.permute.xlu2 %4198 }
 0x61e   :  { %4297 = vst.msk [vmem:[#allocation2 + $0x50] sm:$0xff] %vm4286_vm7, %v4199_v22  ;;  %v4563_v22 = vld [vmem:[#allocation3 + $0xdd] sm:$0xff] }
 0x61f   :  { %4433 = vrot.lane.b32.xlu1 %v9050_v49, %s5595_s15  ;;  %4612 = vrot.lane.b32.xlu0 %v4540_v30, %s5597_s30  ;;  %v4560_v49 = vld [vmem:[#allocation3 + $0xc5] sm:$0xff] }
 0x621   :  { %v4179_v45 = vpop.permute.xlu1 %4178  ;;  %v4032_v16 = vpop.permute.xlu0 %4031 }
 0x622   :  { %4287 = vst.msk [vmem:[#allocation2] sm:$0xff] %vm4286_vm7, %v4179_v45  ;;  %v4761_v45 = vld [vmem:[#allocation3 + $0x46] sm:$0xff] }
 0x623   :  { %4105 = vst.msk [vmem:[#allocation2 + $0x118] sm:$0xff] %vm4069_vm6, %v4032_v16  ;;  %4614 = vrot.lane.b32.xlu2 %v4541_v57, %s5597_s30  ;;  %v4545_v57 = vld [vmem:[#allocation3 + $0x4d] sm:$0xff] }
 0x625   :  { %v4205_v58 = vpop.permute.xlu2 %4204 }
 0x626   :  { %4300 = vst.msk [vmem:[#allocation2 + $0x68] sm:$0xff] %vm4286_vm7, %v4205_v58  ;;  %v5018_v58 = vld [vmem:[%s9669_s4 + $0x40] sm:$0xff] }
 0x627   :  { %4867 = vrot.lane.b32.xlu1 %v4776_v15, %s5596_s16  ;;  %4650 = vrot.lane.b32.xlu0 %v4559_v34, %s5597_s30  ;;  %v5017_v15 = vld [vmem:[%s9669_s4 + $0x38] sm:$0xff]  ;;  %v5016_v34 = vld [vmem:[%s9669_s4 + $0x30] sm:$0xff] }
 0x628   :  { %5411 = vmatpush.msra.mxu2 %v5018_v58  ;;  %5139 = vmatpush.msra.mxu1 %v5018_v58 }
 0x629   :  { %v4185_v26 = vpop.permute.xlu1 %4184  ;;  %v4183_v17 = vpop.permute.xlu0 %4182 }
 0x62a   :  { %4290 = vst.msk [vmem:[#allocation2 + $0x18] sm:$0xff] %vm4286_vm7, %v4185_v26  ;;  %v4780_v26 = vld [vmem:[#allocation3 + $0xde] sm:$0xff]  ;;  %5412 = vmatpush.msra.mxu2 %v5017_v15  ;;  %5140 = vmatpush.msra.mxu1 %v5017_v15 }
 0x62b   :  { %4289 = vst.msk [vmem:[#allocation2 + $0x10] sm:$0xff] %vm4286_vm7, %v4183_v17  ;;  %4652 = vrot.lane.b32.xlu2 %v4560_v49, %s5597_s30  ;;  %v5015_v17 = vld [vmem:[%s9669_s4 + $0x28] sm:$0xff] }
 0x62c   :  { %5413 = vmatpush.msra.mxu2 %v5016_v34  ;;  %5141 = vmatpush.msra.mxu1 %v5016_v34 }
 0x62d   :  { %v4211_v24 = vpop.permute.xlu2 %4210 }
 0x62e   :  { %4303 = vst.msk [vmem:[#allocation2 + $0x80] sm:$0xff] %vm4286_vm7, %v4211_v24  ;;  %5414 = vmatpush.msra.mxu2 %v5015_v17  ;;  %5142 = vmatpush.msra.mxu1 %v5015_v17 }
 0x62f   :  { %4831 = vrot.lane.b32.xlu1 %v4758_v18, %s5596_s16  ;;  %4435 = vrot.lane.b32.xlu0 %v9045_v63, %s5595_s15  ;;  %v4564_v18 = vld [vmem:[#allocation3 + $0xe5] sm:$0xff] }
 0x631   :  { %v4191_v0 = vpop.permute.xlu1 %4190  ;;  %v4189_v42 = vpop.permute.xlu0 %4188 }
 0x632   :  { %4293 = vst.msk [vmem:[#allocation2 + $0x30] sm:$0xff] %vm4286_vm7, %v4191_v0 }
 0x633   :  { %4292 = vst.msk [vmem:[#allocation2 + $0x28] sm:$0xff] %vm4286_vm7, %v4189_v42  ;;  %4616 = vrot.lane.b32.xlu2 %v4542_v37, %s5597_s30  ;;  %v5013_v42 = vld [vmem:[%s9669_s4 + $0x18] sm:$0xff]  ;;  %v4762_v37 = vld [vmem:[#allocation3 + $0x4e] sm:$0xff] }
 0x635   :  { %v4217_v11 = vpop.permute.xlu2 %4216 }
 0x636   :  { %4306 = vst.msk [vmem:[#allocation2 + $0x98] sm:$0xff] %vm4286_vm7, %v4217_v11  ;;  %v5012_v11 = vld [vmem:[%s9669_s4 + $0x10] sm:$0xff] }
 0x637   :  { %4399 = vrot.lane.b32.xlu1 %v8961_v38, %s5595_s15  ;;  %4869 = vrot.lane.b32.xlu0 %v4777_v32, %s5596_s16 }
 0x639   :  { %v4197_v55 = vpop.permute.xlu1 %4196  ;;  %v4195_v63 = vpop.permute.xlu0 %4194 }
 0x63a   :  { %4296 = vst.msk [vmem:[#allocation2 + $0x48] sm:$0xff] %vm4286_vm7, %v4197_v55 }
 0x63b   :  { %4295 = vst.msk [vmem:[#allocation2 + $0x40] sm:$0xff] %vm4286_vm7, %v4195_v63  ;;  %4654 = vrot.lane.b32.xlu2 %v4561_v46, %s5597_s30  ;;  %v5011_v63 = vld [vmem:[%s9669_s4 + $0x8] sm:$0xff]  ;;  %v4546_v46 = vld [vmem:[#allocation3 + $0x55] sm:$0xff] }
 0x63d   :  { %v4223_v29 = vpop.permute.xlu2 %4222 }
 0x63e   :  { %4309 = vst.msk [vmem:[#allocation2 + $0xb0] sm:$0xff] %vm4286_vm7, %v4223_v29 }
 0x63f   :  { %4833 = vrot.lane.b32.xlu1 %v4759_v56, %s5596_s16  ;;  %4437 = vrot.lane.b32.xlu0 %v9067_v20, %s5595_s15  ;;  %v4781_v56 = vld [vmem:[#allocation3 + $0xe6] sm:$0xff] }
 0x641   :  { %v4203_v38 = vpop.permute.xlu1 %4202  ;;  %v4201_v39 = vpop.permute.xlu0 %4200 }
 0x642   :  { %4299 = vst.msk [vmem:[#allocation2 + $0x60] sm:$0xff] %vm4286_vm7, %v4203_v38 }
 0x643   :  { %4298 = vst.msk [vmem:[#allocation2 + $0x58] sm:$0xff] %vm4286_vm7, %v4201_v39  ;;  %4618 = vrot.lane.b32.xlu2 %v4543_v4, %s5597_s30  ;;  %v4565_v4 = vld [vmem:[#allocation3 + $0xed] sm:$0xff] }
 0x645   :  { %v4229_v25 = vpop.permute.xlu2 %4228 }
 0x646   :  { %4312 = vst.msk [vmem:[#allocation2 + $0xc8] sm:$0xff] %vm4286_vm7, %v4229_v25 }
 0x647   :  { %4401 = vrot.lane.b32.xlu1 %v8983_v19, %s5595_s15  ;;  %4871 = vrot.lane.b32.xlu0 %v4778_v12, %s5596_s16  ;;  %v4763_v12 = vld [vmem:[#allocation3 + $0x56] sm:$0xff] }
 0x649   :  { %v4209_v6 = vpop.permute.xlu1 %4208  ;;  %v4207_v20 = vpop.permute.xlu0 %4206 }
 0x64a   :  { %4302 = vst.msk [vmem:[#allocation2 + $0x78] sm:$0xff] %vm4286_vm7, %v4209_v6 }
 0x64b   :  { %4301 = vst.msk [vmem:[#allocation2 + $0x70] sm:$0xff] %vm4286_vm7, %v4207_v20  ;;  %4656 = vrot.lane.b32.xlu2 %v4562_v43, %s5597_s30  ;;  %v4547_v20 = vld [vmem:[#allocation3 + $0x5d] sm:$0xff] }
 0x64d   :  { %v4235_v28 = vpop.permute.xlu2 %4234 }
 0x64e   :  { %4315 = vst.msk [vmem:[#allocation2 + $0xe0] sm:$0xff] %vm4286_vm7, %v4235_v28  ;;  %v4782_v28 = vld [vmem:[#allocation3 + $0xee] sm:$0xff] }
 0x64f   :  { %4835 = vrot.lane.b32.xlu1 %v4760_v36, %s5596_s16  ;;  %4439 = vrot.lane.b32.xlu0 %v9065_v54, %s5595_s15 }
 0x651   :  { %v4215_v19 = vpop.permute.xlu1 %4214  ;;  %v4213_v44 = vpop.permute.xlu0 %4212 }
 0x652   :  { %4305 = vst.msk [vmem:[#allocation2 + $0x90] sm:$0xff] %vm4286_vm7, %v4215_v19 }
 0x653   :  { %4304 = vst.msk [vmem:[#allocation2 + $0x88] sm:$0xff] %vm4286_vm7, %v4213_v44  ;;  %4620 = vrot.lane.b32.xlu2 %v4544_v9, %s5597_s30  ;;  %v4764_v9 = vld [vmem:[#allocation3 + $0x5e] sm:$0xff] }
 0x655   :  { %v4241_v21 = vpop.permute.xlu2 %4240 }
 0x656   :  { %4318 = vst.msk [vmem:[#allocation2 + $0xf8] sm:$0xff] %vm4286_vm7, %v4241_v21 }
 0x657   :  { %4403 = vrot.lane.b32.xlu1 %v8981_v50, %s5595_s15  ;;  %4873 = vrot.lane.b32.xlu0 %v4779_v47, %s5596_s16  ;;  %v4548_v47 = vld [vmem:[#allocation3 + $0x65] sm:$0xff] }
 0x659   :  { %v4221_v14 = vpop.permute.xlu1 %4220  ;;  %v4219_v54 = vpop.permute.xlu0 %4218 }
 0x65a   :  { %4308 = vst.msk [vmem:[#allocation2 + $0xa8] sm:$0xff] %vm4286_vm7, %v4221_v14 }
 0x65b   :  { %4307 = vst.msk [vmem:[#allocation2 + $0xa0] sm:$0xff] %vm4286_vm7, %v4219_v54  ;;  %4658 = vrot.lane.b32.xlu2 %v4563_v22, %s5597_s30  ;;  %v4783_v22 = vld [vmem:[#allocation3 + $0xf6] sm:$0xff] }
 0x65d   :  { %v4247_v30 = vpop.permute.xlu2 %4246 }
 0x65e   :  { %4321 = vst.msk [vmem:[#allocation2 + $0x110] sm:$0xff] %vm4286_vm7, %v4247_v30 }
 0x65f   :  { %4837 = vrot.lane.b32.xlu1 %v4761_v45, %s5596_s16  ;;  %4441 = vrot.lane.b32.xlu0 %v9060_v3, %s5595_s15  ;;  %v4567_v45 = vld [vmem:[#allocation3 + $0xfd] sm:$0xff] }
 0x661   :  { %v4227_v50 = vpop.permute.xlu1 %4226  ;;  %v4225_v16 = vpop.permute.xlu0 %4224 }
 0x662   :  { %4311 = vst.msk [vmem:[#allocation2 + $0xc0] sm:$0xff] %vm4286_vm7, %v4227_v50 }
 0x663   :  { %4310 = vst.msk [vmem:[#allocation2 + $0xb8] sm:$0xff] %vm4286_vm7, %v4225_v16  ;;  %4622 = vrot.lane.b32.xlu2 %v4545_v57, %s5597_s30  ;;  %v4765_v57 = vld [vmem:[#allocation3 + $0x66] sm:$0xff] }
 0x665   :  { %v4398_v3 = vpop.permute.xlu2 %4397 }
 0x666   :  { %4505 = vst.msk [vmem:[#allocation2 + $0x8] sm:$0xff] %vm4503_vm8, %v4398_v3  ;;  %v4549_v3 = vld [vmem:[#allocation3 + $0x6d] sm:$0xff] }
 0x667   :  { %4405 = vrot.lane.b32.xlu1 %v8976_v60, %s5595_s15  ;;  %4875 = vrot.lane.b32.xlu0 %v4780_v26, %s5596_s16  ;;  %v5014_v60 = vld [vmem:[%s9669_s4 + $0x20] sm:$0xff] }
 0x668   :  { %5415 = vmatpush.msra.mxu2 %v5014_v60  ;;  %5143 = vmatpush.msra.mxu1 %v5014_v60  ;;  %v4784_v26 = vld [vmem:[#allocation3 + $0xfe] sm:$0xff]  ;;  %v4766_v60 = vld [vmem:[#allocation3 + $0x6e] sm:$0xff] }
 0x669   :  { %v4233_v49 = vpop.permute.xlu1 %4232  ;;  %v4231_v24 = vpop.permute.xlu0 %4230 }
 0x66a   :  { %4314 = vst.msk [vmem:[#allocation2 + $0xd8] sm:$0xff] %vm4286_vm7, %v4233_v49  ;;  %5416 = vmatpush.msra.mxu2 %v5013_v42  ;;  %5144 = vmatpush.msra.mxu1 %v5013_v42  ;;  %v4550_v42 = vld [vmem:[#allocation3 + $0x75] sm:$0xff] }
 0x66b   :  { %4313 = vst.msk [vmem:[#allocation2 + $0xd0] sm:$0xff] %vm4286_vm7, %v4231_v24  ;;  %4660 = vrot.lane.b32.xlu2 %v4564_v18, %s5597_s30  ;;  %v4568_v24 = vld [vmem:[#allocation3 + $0x105] sm:$0xff] }
 0x66c   :  { %5417 = vmatpush.msra.mxu2 %v5012_v11  ;;  %5145 = vmatpush.msra.mxu1 %v5012_v11 }
 0x66d   :  { %v4866_v0 = vpop.permute.xlu2 %4865 }
 0x66e   :  { %5418 = vmatpush.msra.mxu2 %v5011_v63  ;;  %5146 = vmatpush.msra.mxu1 %v5011_v63 }
 0x66f   :  { %4839 = vrot.lane.b32.xlu1 %v4762_v37, %s5596_s16  ;;  %4443 = vrot.lane.b32.xlu0 %v9082_v8, %s5595_s15  ;;  %v5010_v8 = vld [vmem:[%s9669_s4] sm:$0xff] }
 0x670   :  { %5419 = vmatpush.msra.mxu2 %v5010_v8  ;;  %5147 = vmatpush.msra.mxu1 %v5010_v8 }
 0x671   :  { %v4239_v32 = vpop.permute.xlu1 %4238  ;;  %v4237_v55 = vpop.permute.xlu0 %4236 }
 0x672   :  { %4317 = vst.msk [vmem:[#allocation2 + $0xf0] sm:$0xff] %vm4286_vm7, %v4239_v32  ;;  %v4785_v32 = vld [vmem:[#allocation3 + $0x106] sm:$0xff] }
 0x673   :  { %4316 = vst.msk [vmem:[#allocation2 + $0xe8] sm:$0xff] %vm4286_vm7, %v4237_v55  ;;  %4624 = vrot.lane.b32.xlu2 %v4546_v46, %s5597_s30  ;;  %v4569_v46 = vld [vmem:[#allocation3 + $0x10d] sm:$0xff] }
 0x675   :  { %v4830_v29 = vpop.permute.xlu2 %4829 }
 0x677   :  { %4407 = vrot.lane.b32.xlu1 %v8998_v23, %s5595_s15  ;;  %4877 = vrot.lane.b32.xlu0 %v4781_v56, %s5596_s16 }
 0x679   :  { %v4245_v38 = vpop.permute.xlu1 %4244  ;;  %v4243_v39 = vpop.permute.xlu0 %4242 }
 0x67a   :  { %4320 = vst.msk [vmem:[#allocation2 + $0x108] sm:$0xff] %vm4286_vm7, %v4245_v38  ;;  %v4551_v38 = vld [vmem:[#allocation3 + $0x7d] sm:$0xff] }
 0x67b   :  { %4319 = vst.msk [vmem:[#allocation2 + $0x100] sm:$0xff] %vm4286_vm7, %v4243_v39  ;;  %4662 = vrot.lane.b32.xlu2 %v4565_v4, %s5597_s30 }
 0x67d   :  { %v4615_v25 = vpop.permute.xlu2 %4614 }
 0x67e   :  { %4722 = vst.msk [vmem:[#allocation2 + $0x8] sm:$0xff] %vm4720_vm9, %v4615_v25  ;;  %v4786_v25 = vld [vmem:[#allocation3 + $0x10e] sm:$0xff] }
 0x67f   :  { %4841 = vrot.lane.b32.xlu1 %v4763_v12, %s5596_s16  ;;  %4445 = vrot.lane.b32.xlu0 %v9080_v48, %s5595_s15  ;;  %v4566_v48 = vld [vmem:[#allocation3 + $0xf5] sm:$0xff] }
 0x681   :  { %v4396_v23 = vpop.permute.xlu1 %4395  ;;  %v4249_v6 = vpop.permute.xlu0 %4248 }
 0x682   :  { %4504 = vst.msk [vmem:[#allocation2] sm:$0xff] %vm4503_vm8, %v4396_v23 }
 0x683   :  { %4322 = vst.msk [vmem:[#allocation2 + $0x118] sm:$0xff] %vm4286_vm7, %v4249_v6  ;;  %4626 = vrot.lane.b32.xlu2 %v4547_v20, %s5597_s30  ;;  %v4570_v6 = vld [vmem:[#allocation3 + $0x115] sm:$0xff] }
 0x685   :  { %v4653_v43 = vpop.permute.xlu2 %4652 }
 0x687   :  { %4409 = vrot.lane.b32.xlu1 %v8996_v51, %s5595_s15  ;;  %4879 = vrot.lane.b32.xlu0 %v4782_v28, %s5596_s16 }
 0x689   :  { %v4649_v36 = vpop.permute.xlu1 %4648  ;;  %v4432_v19 = vpop.permute.xlu0 %4431 }
 0x68a   :  { %4522 = vst.msk [vmem:[#allocation2 + $0x90] sm:$0xff] %vm4503_vm8, %v4432_v19 }
 0x68b   :  { %4739 = vst.msk [vmem:[#allocation2 + $0x90] sm:$0xff] %vm4720_vm9, %v4649_v36  ;;  %4664 = vrot.lane.b32.xlu2 %v4566_v48, %s5597_s30  ;;  %v4552_v36 = vld [vmem:[#allocation3 + $0x85] sm:$0xff] }
 0x68c   :  { %4956 = vst.msk [vmem:[#allocation2 + $0x90] sm:$0xff] %vm4937_vm12, %v4866_v0 }
 0x68d   :  { %v4617_v44 = vpop.permute.xlu2 %4616 }
 0x68f   :  { %4843 = vrot.lane.b32.xlu1 %v4764_v9, %s5596_s16  ;;  %4447 = vrot.lane.b32.xlu0 %v9075_v13, %s5595_s15 }
 0x691   :  { %v4434_v51 = vpop.permute.xlu1 %4433  ;;  %v4613_v21 = vpop.permute.xlu0 %4612 }
 0x692   :  { %4523 = vst.msk [vmem:[#allocation2 + $0x98] sm:$0xff] %vm4503_vm8, %v4434_v51 }
 0x693   :  { %4721 = vst.msk [vmem:[#allocation2] sm:$0xff] %vm4720_vm9, %v4613_v21  ;;  %v4992_v14 = vld [vmem:[#allocation2 + $0x90] sm:$0xff]  ;;  %4628 = vrot.lane.b32.xlu2 %v4548_v47, %s5597_s30  ;;  %v4571_v21 = vld [vmem:[#allocation3 + $0x11d] sm:$0xff] }
 0x694   :  { %4938 = vst.msk [vmem:[#allocation2] sm:$0xff] %vm4937_vm12, %v4830_v29  ;;  %5388 = vmatmul.msk.f32.vlgmr.msra.gmra.mxu2 %vm5023_vm13, %v4992_v14  ;;  %v4767_v29 = vld [vmem:[#allocation3 + $0x76] sm:$0xff]  ;;  %v4769_v14 = vld [vmem:[#allocation3 + $0x86] sm:$0xff] }
 0x695   :  { %v4655_v54 = vpop.permute.xlu2 %4654 }
 0x697   :  { %4411 = vrot.lane.b32.xlu1 %v8991_v7, %s5595_s15  ;;  %4881 = vrot.lane.b32.xlu0 %v4783_v22, %s5596_s16  ;;  %v4553_v22 = vld [vmem:[#allocation3 + $0x8d] sm:$0xff] }
 0x699   :  { %v4868_v13 = vpop.permute.xlu1 %4867  ;;  %v4651_v30 = vpop.permute.xlu0 %4650 }
 0x69a   :  { %4740 = vst.msk [vmem:[#allocation2 + $0x98] sm:$0xff] %vm4720_vm9, %v4651_v30 }
 0x69b   :  { %4957 = vst.msk [vmem:[#allocation2 + $0x98] sm:$0xff] %vm4937_vm12, %v4868_v13  ;;  %v4974_v50 = vld [vmem:[#allocation2] sm:$0xff]  ;;  %4666 = vrot.lane.b32.xlu2 %v4567_v45, %s5597_s30 }
 0x69c   :  { %5370 = vmatmul.msk.f32.vlgmr.msra.gmra.mxu1 %vm5023_vm13, %v4974_v50  ;;  %v4788_v45 = vld [vmem:[#allocation3 + $0x11e] sm:$0xff] }
 0x69d   :  { %v4619_v16 = vpop.permute.xlu2 %4618 }
 0x69f   :  { %4845 = vrot.lane.b32.xlu1 %v4765_v57, %s5596_s16  ;;  %4449 = vrot.lane.b32.xlu0 %v9097_v61, %s5595_s15  ;;  %v4572_v57 = vld [vmem:[#allocation3 + $0x125] sm:$0xff] }
 0x6a1   :  { %v4832_v7 = vpop.permute.xlu1 %4831  ;;  %v4436_v58 = vpop.permute.xlu0 %4435 }
 0x6a2   :  { %4939 = vst.msk [vmem:[#allocation2 + $0x8] sm:$0xff] %vm4937_vm12, %v4832_v7  ;;  %v4993_v15 = vld [vmem:[#allocation2 + $0x98] sm:$0xff] }
 0x6a3   :  { %4524 = vst.msk [vmem:[#allocation2 + $0xa0] sm:$0xff] %vm4503_vm8, %v4436_v58  ;;  %5389 = vmatmul.msk.f32.gmra.mxu2 %vm5023_vm13, %v4993_v15  ;;  %4630 = vrot.lane.b32.xlu2 %v4549_v3, %s5597_s30  ;;  %v4770_v58 = vld [vmem:[#allocation3 + $0x8e] sm:$0xff] }
 0x6a4   :  { %4741 = vst.msk [vmem:[#allocation2 + $0xa0] sm:$0xff] %vm4720_vm9, %v4653_v43  ;;  %v4768_v43 = vld [vmem:[#allocation3 + $0x7e] sm:$0xff]  ;;  %v4554_v3 = vld [vmem:[#allocation3 + $0x95] sm:$0xff] }
 0x6a5   :  { %v4657_v34 = vpop.permute.xlu2 %4656 }
 0x6a7   :  { %4413 = vrot.lane.b32.xlu1 %v9013_v35, %s5595_s15  ;;  %4883 = vrot.lane.b32.xlu0 %v4784_v26, %s5596_s16 }
 0x6a9   :  { %v4400_v61 = vpop.permute.xlu1 %4399  ;;  %v4870_v17 = vpop.permute.xlu0 %4869  ;;  %v4975_v49 = vld [vmem:[#allocation2 + $0x8] sm:$0xff] }
 0x6aa   :  { %4506 = vst.msk [vmem:[#allocation2 + $0x10] sm:$0xff] %vm4503_vm8, %v4400_v61  ;;  %5371 = vmatmul.msk.f32.gmra.mxu1 %vm5023_vm13, %v4975_v49  ;;  %v4789_v61 = vld [vmem:[#allocation3 + $0x126] sm:$0xff] }
 0x6ab   :  { %4723 = vst.msk [vmem:[#allocation2 + $0x10] sm:$0xff] %vm4720_vm9, %v4617_v44  ;;  %4668 = vrot.lane.b32.xlu2 %v4568_v24, %s5597_s30  ;;  %v4787_v44 = vld [vmem:[#allocation3 + $0x116] sm:$0xff]  ;;  %v4573_v24 = vld [vmem:[#allocation3 + $0x12d] sm:$0xff] }
 0x6ac   :  { %4958 = vst.msk [vmem:[#allocation2 + $0xa0] sm:$0xff] %vm4937_vm12, %v4870_v17 }
 0x6ad   :  { %v4621_v18 = vpop.permute.xlu2 %4620 }
 0x6af   :  { %4847 = vrot.lane.b32.xlu1 %v4766_v60, %s5596_s16  ;;  %4451 = vrot.lane.b32.xlu0 %v9095_v27, %s5595_s15 }
 0x6b1   :  { %v4834_v35 = vpop.permute.xlu1 %4833  ;;  %v4438_v0 = vpop.permute.xlu0 %4437 }
 0x6b2   :  { %4940 = vst.msk [vmem:[#allocation2 + $0x10] sm:$0xff] %vm4937_vm12, %v4834_v35 }
 0x6b3   :  { %4525 = vst.msk [vmem:[#allocation2 + $0xa8] sm:$0xff] %vm4503_vm8, %v4438_v0  ;;  %v4994_v37 = vld [vmem:[#allocation2 + $0xa0] sm:$0xff]  ;;  %4632 = vrot.lane.b32.xlu2 %v4550_v42, %s5597_s30 }
 0x6b4   :  { %4742 = vst.msk [vmem:[#allocation2 + $0xa8] sm:$0xff] %vm4720_vm9, %v4655_v54  ;;  %5390 = vmatmul.msk.f32.gmra.mxu2 %vm5023_vm13, %v4994_v37  ;;  %v4555_v0 = vld [vmem:[#allocation3 + $0x9d] sm:$0xff] }
 0x6b5   :  { %v4659_v11 = vpop.permute.xlu2 %4658 }
 0x6b7   :  { %4415 = vrot.lane.b32.xlu1 %v9011_v59, %s5595_s15  ;;  %4885 = vrot.lane.b32.xlu0 %v4785_v32, %s5596_s16 }
 0x6b9   :  { %v4402_v27 = vpop.permute.xlu1 %4401  ;;  %v4872_v55 = vpop.permute.xlu0 %4871  ;;  %v4976_v63 = vld [vmem:[#allocation2 + $0x10] sm:$0xff] }
 0x6ba   :  { %4507 = vst.msk [vmem:[#allocation2 + $0x18] sm:$0xff] %vm4503_vm8, %v4402_v27  ;;  %5372 = vmatmul.msk.f32.gmra.mxu1 %vm5023_vm13, %v4976_v63  ;;  %v4772_v63 = vld [vmem:[#allocation3 + $0x9e] sm:$0xff] }
 0x6bb   :  { %4724 = vst.msk [vmem:[#allocation2 + $0x18] sm:$0xff] %vm4720_vm9, %v4619_v16  ;;  %4670 = vrot.lane.b32.xlu2 %v4569_v46, %s5597_s30 }
 0x6bc   :  { %4959 = vst.msk [vmem:[#allocation2 + $0xa8] sm:$0xff] %vm4937_vm12, %v4872_v55  ;;  %v4357_v55 = vld [vmem:[#allocation3 + $0x134] sm:$0xff] }
 0x6bd   :  { %v4623_v8 = vpop.permute.xlu2 %4622 }
 0x6bf   :  { %4849 = vrot.lane.b32.xlu1 %v4767_v29, %s5596_s16  ;;  %4453 = vrot.lane.b32.xlu0 %v9090_v2, %s5595_s15  ;;  %v4556_v29 = vld [vmem:[#allocation3 + $0xa5] sm:$0xff] }
 0x6c1   :  { %v4836_v59 = vpop.permute.xlu1 %4835  ;;  %v4440_v56 = vpop.permute.xlu0 %4439 }
 0x6c2   :  { %4941 = vst.msk [vmem:[#allocation2 + $0x18] sm:$0xff] %vm4937_vm12, %v4836_v59 }
 0x6c3   :  { %4526 = vst.msk [vmem:[#allocation2 + $0xb0] sm:$0xff] %vm4503_vm8, %v4440_v56  ;;  %v4995_v39 = vld [vmem:[#allocation2 + $0xa8] sm:$0xff]  ;;  %4634 = vrot.lane.b32.xlu2 %v4551_v38, %s5597_s30  ;;  %v4791_v56 = vld [vmem:[#allocation3 + $0x136] sm:$0xff]  ;;  %v9402_v38 = vld [vmem:[%s9670_s5] ss:$0 sm:$0xff] }
 0x6c4   :  { %4743 = vst.msk [vmem:[#allocation2 + $0xb0] sm:$0xff] %vm4720_vm9, %v4657_v34  ;;  %5391 = vmatmul.msk.f32.gmra.mxu2 %vm5023_vm13, %v4995_v39  ;;  %v4339_v39 = vld [vmem:[#allocation3 + $0xa4] sm:$0xff] }
 0x6c5   :  { %v4661_v4 = vpop.permute.xlu2 %4660 }
 0x6c7   :  { %4417 = vrot.lane.b32.xlu1 %v9006_v33, %s5595_s15  ;;  %4887 = vrot.lane.b32.xlu0 %v4786_v25, %s5596_s16 }
 0x6c9   :  { %v4404_v2 = vpop.permute.xlu1 %4403  ;;  %v4874_v12 = vpop.permute.xlu0 %4873  ;;  %v4977_v23 = vld [vmem:[#allocation2 + $0x18] sm:$0xff] }
 0x6ca   :  { %4508 = vst.msk [vmem:[#allocation2 + $0x20] sm:$0xff] %vm4503_vm8, %v4404_v2  ;;  %5373 = vmatmul.msk.f32.gmra.mxu1 %vm5023_vm13, %v4977_v23  ;;  %v4575_v2 = vld [vmem:[#allocation3 + $0x13d] sm:$0xff] }
 0x6cb   :  { %4725 = vst.msk [vmem:[#allocation2 + $0x20] sm:$0xff] %vm4720_vm9, %v4621_v18  ;;  %4672 = vrot.lane.b32.xlu2 %v4570_v6, %s5597_s30 }
 0x6cc   :  { %4960 = vst.msk [vmem:[#allocation2 + $0xb0] sm:$0xff] %vm4937_vm12, %v4874_v12 }
 0x6cd   :  { %v4625_v20 = vpop.permute.xlu2 %4624 }
 0x6cf   :  { %4851 = vrot.lane.b32.xlu1 %v4768_v43, %s5596_s16  ;;  %4455 = vrot.lane.b32.xlu0 %v9112_v53, %s5595_s15 }
 0x6d1   :  { %v4838_v33 = vpop.permute.xlu1 %4837  ;;  %v4442_v28 = vpop.permute.xlu0 %4441 }
 0x6d2   :  { %4942 = vst.msk [vmem:[#allocation2 + $0x20] sm:$0xff] %vm4937_vm12, %v4838_v33 }
 0x6d3   :  { %4527 = vst.msk [vmem:[#allocation2 + $0xb8] sm:$0xff] %vm4503_vm8, %v4442_v28  ;;  %v4996_v19 = vld [vmem:[#allocation2 + $0xb0] sm:$0xff]  ;;  %4636 = vrot.lane.b32.xlu2 %v4552_v36, %s5597_s30  ;;  %v4358_v28 = vld [vmem:[#allocation3 + $0x13c] sm:$0xff]  ;;  %v4773_v36 = vld [vmem:[#allocation3 + $0xa6] sm:$0xff] }
 0x6d4   :  { %4744 = vst.msk [vmem:[#allocation2 + $0xb8] sm:$0xff] %vm4720_vm9, %v4659_v11  ;;  %5392 = vmatmul.msk.f32.gmra.mxu2 %vm5023_vm13, %v4996_v19 }
 0x6d5   :  { %v4663_v48 = vpop.permute.xlu2 %4662 }
 0x6d7   :  { %4419 = vrot.lane.b32.xlu1 %v9028_v5, %s5595_s15  ;;  %4889 = vrot.lane.b32.xlu0 %v4787_v44, %s5596_s16  ;;  %v4557_v44 = vld [vmem:[#allocation3 + $0xad] sm:$0xff] }
 0x6d9   :  { %v4406_v53 = vpop.permute.xlu1 %4405  ;;  %v4876_v9 = vpop.permute.xlu0 %4875  ;;  %v4978_v51 = vld [vmem:[#allocation2 + $0x20] sm:$0xff] }
 0x6da   :  { %4509 = vst.msk [vmem:[#allocation2 + $0x28] sm:$0xff] %vm4503_vm8, %v4406_v53  ;;  %5374 = vmatmul.msk.f32.gmra.mxu1 %vm5023_vm13, %v4978_v51 }
 0x6db   :  { %4726 = vst.msk [vmem:[#allocation2 + $0x28] sm:$0xff] %vm4720_vm9, %v4623_v8  ;;  %4674 = vrot.lane.b32.xlu2 %v4571_v21, %s5597_s30 }
 0x6dc   :  { %4961 = vst.msk [vmem:[#allocation2 + $0xb8] sm:$0xff] %vm4937_vm12, %v4876_v9  ;;  %v4792_v9 = vld [vmem:[#allocation3 + $0x13e] sm:$0xff] }
 0x6dd   :  { %v4627_v47 = vpop.permute.xlu2 %4626 }
 0x6df   :  { %4853 = vrot.lane.b32.xlu1 %v4769_v14, %s5596_s16  ;;  %4457 = vrot.lane.b32.xlu0 %v9110_v1, %s5595_s15 }
 0x6e1   :  { %v4840_v5 = vpop.permute.xlu1 %4839  ;;  %v4444_v54 = vpop.permute.xlu0 %4443 }
 0x6e2   :  { %4943 = vst.msk [vmem:[#allocation2 + $0x28] sm:$0xff] %vm4937_vm12, %v4840_v5 }
 0x6e3   :  { %4528 = vst.msk [vmem:[#allocation2 + $0xc0] sm:$0xff] %vm4503_vm8, %v4444_v54  ;;  %v4997_v13 = vld [vmem:[#allocation2 + $0xb8] sm:$0xff]  ;;  %4638 = vrot.lane.b32.xlu2 %v4553_v22, %s5597_s30 }
 0x6e4   :  { %4745 = vst.msk [vmem:[#allocation2 + $0xc0] sm:$0xff] %vm4720_vm9, %v4661_v4  ;;  %5393 = vmatmul.msk.f32.gmra.mxu2 %vm5023_vm13, %v4997_v13 }
 0x6e5   :  { %v4665_v30 = vpop.permute.xlu2 %4664 }
 0x6e7   :  { %4421 = vrot.lane.b32.xlu1 %v9026_v31, %s5595_s15  ;;  %4891 = vrot.lane.b32.xlu0 %v4788_v45, %s5596_s16 }
 0x6e9   :  { %v4408_v1 = vpop.permute.xlu1 %4407  ;;  %v4878_v50 = vpop.permute.xlu0 %4877  ;;  %v4979_v16 = vld [vmem:[#allocation2 + $0x28] sm:$0xff] }
 0x6ea   :  { %4510 = vst.msk [vmem:[#allocation2 + $0x30] sm:$0xff] %vm4503_vm8, %v4408_v1  ;;  %5375 = vmatmul.msk.f32.gmra.mxu1 %vm5023_vm13, %v4979_v16  ;;  %v4774_v1 = vld [vmem:[#allocation3 + $0xae] sm:$0xff] }
 0x6eb   :  { %4727 = vst.msk [vmem:[#allocation2 + $0x30] sm:$0xff] %vm4720_vm9, %v4625_v20  ;;  %4676 = vrot.lane.b32.xlu2 %v4572_v57, %s5597_s30 }
 0x6ec   :  { %4962 = vst.msk [vmem:[#allocation2 + $0xc0] sm:$0xff] %vm4937_vm12, %v4878_v50 }
 0x6ed   :  { %v4629_v7 = vpop.permute.xlu2 %4628 }
 0x6ef   :  { %4855 = vrot.lane.b32.xlu1 %v4770_v58, %s5596_s16  ;;  %4459 = vrot.lane.b32.xlu0 %v9105_v41, %s5595_s15 }
 0x6f1   :  { %v4842_v31 = vpop.permute.xlu1 %4841  ;;  %v4446_v15 = vpop.permute.xlu0 %4445 }
 0x6f2   :  { %4944 = vst.msk [vmem:[#allocation2 + $0x30] sm:$0xff] %vm4937_vm12, %v4842_v31 }
 0x6f3   :  { %4529 = vst.msk [vmem:[#allocation2 + $0xc8] sm:$0xff] %vm4503_vm8, %v4446_v15  ;;  %v4998_v34 = vld [vmem:[#allocation2 + $0xc0] sm:$0xff]  ;;  %4640 = vrot.lane.b32.xlu2 %v4554_v3, %s5597_s30 }
 0x6f4   :  { %4746 = vst.msk [vmem:[#allocation2 + $0xc8] sm:$0xff] %vm4720_vm9, %v4663_v48  ;;  %5394 = vmatmul.msk.f32.gmra.mxu2 %vm5023_vm13, %v4998_v34 }
 0x6f5   :  { %v4667_v26 = vpop.permute.xlu2 %4666 }
 0x6f7   :  { %4423 = vrot.lane.b32.xlu1 %v9021_v52, %s5595_s15  ;;  %4893 = vrot.lane.b32.xlu0 %v4789_v61, %s5596_s16  ;;  %v4771_v52 = vld [vmem:[#allocation3 + $0x96] sm:$0xff] }
 0x6f9   :  { %v4410_v41 = vpop.permute.xlu1 %4409  ;;  %v4880_v17 = vpop.permute.xlu0 %4879  ;;  %v4980_v49 = vld [vmem:[#allocation2 + $0x30] sm:$0xff] }
 0x6fa   :  { %4511 = vst.msk [vmem:[#allocation2 + $0x38] sm:$0xff] %vm4503_vm8, %v4410_v41  ;;  %5376 = vmatmul.msk.f32.gmra.mxu1 %vm5023_vm13, %v4980_v49 }
 0x6fb   :  { %4728 = vst.msk [vmem:[#allocation2 + $0x38] sm:$0xff] %vm4720_vm9, %v4627_v47  ;;  %4678 = vrot.lane.b32.xlu2 %v4573_v24, %s5597_s30  ;;  %v4340_v47 = vld [vmem:[#allocation3 + $0xac] sm:$0xff] }
 0x6fc   :  { %4963 = vst.msk [vmem:[#allocation2 + $0xc8] sm:$0xff] %vm4937_vm12, %v4880_v17 }
 0x6fd   :  { %v9373_v18 = vpop.permute.xlu2 %4630 }
 0x6ff   :  { %4857 = vrot.lane.b32.xlu1 %v4771_v52, %s5596_s16  ;;  %4461 = vrot.lane.b32.xlu0 %v9123_v62, %s5595_s15  ;;  %v4574_v62 = vld [vmem:[#allocation3 + $0x135] sm:$0xff] }
 0x701   :  { %v4844_v60 = vpop.permute.xlu1 %4843  ;;  %v4448_v35 = vpop.permute.xlu0 %4447 }
 0x702   :  { %4945 = vst.msk [vmem:[#allocation2 + $0x38] sm:$0xff] %vm4937_vm12, %v4844_v60 }
 0x703   :  { %4530 = vst.msk [vmem:[#allocation2 + $0xd0] sm:$0xff] %vm4503_vm8, %v4448_v35  ;;  %v4999_v42 = vld [vmem:[#allocation2 + $0xc8] sm:$0xff]  ;;  %4642 = vrot.lane.b32.xlu2 %v4555_v0, %s5597_s30 }
 0x704   :  { %4747 = vst.msk [vmem:[#allocation2 + $0xd0] sm:$0xff] %vm4720_vm9, %v4665_v30  ;;  %5395 = vmatmul.msk.f32.gmra.mxu2 %vm5023_vm13, %v4999_v42 }
 0x705   :  { %v4669_v37 = vpop.permute.xlu2 %4668 }
 0x707   :  { %4425 = vrot.lane.b32.xlu1 %v9038_v10, %s5595_s15  ;;  %4895 = vrot.lane.b32.xlu0 %v4790_v40, %s5596_s16 }
 0x709   :  { %v4412_v11 = vpop.permute.xlu1 %4411  ;;  %v4882_v32 = vpop.permute.xlu0 %4881  ;;  %v4981_v27 = vld [vmem:[#allocation2 + $0x38] sm:$0xff] }
 0x70a   :  { %4512 = vst.msk [vmem:[#allocation2 + $0x40] sm:$0xff] %vm4503_vm8, %v4412_v11  ;;  %5377 = vmatmul.msk.f32.gmra.mxu1 %vm5023_vm13, %v4981_v27 }
 0x70b   :  { %4729 = vst.msk [vmem:[#allocation2 + $0x40] sm:$0xff] %vm4720_vm9, %v4629_v7  ;;  %4680 = vrot.lane.b32.xlu2 %v4574_v62, %s5597_s30 }
 0x70c   :  { %4964 = vst.msk [vmem:[#allocation2 + $0xd0] sm:$0xff] %vm4937_vm12, %v4882_v32 }
 0x70d   :  { %v4633_v10 = vpop.permute.xlu2 %4632 }
 0x70f   :  { %4859 = vrot.lane.b32.xlu1 %v4772_v63, %s5596_s16  ;;  %4463 = vrot.lane.b32.xlu0 %v4357_v55, %s5595_s15 }
 0x711   :  { %v4846_v46 = vpop.permute.xlu1 %4845  ;;  %v4450_v8 = vpop.permute.xlu0 %4449 }
 0x712   :  { %4946 = vst.msk [vmem:[#allocation2 + $0x40] sm:$0xff] %vm4937_vm12, %v4846_v46 }
 0x713   :  { %4531 = vst.msk [vmem:[#allocation2 + $0xd8] sm:$0xff] %vm4503_vm8, %v4450_v8  ;;  %v5000_v59 = vld [vmem:[#allocation2 + $0xd0] sm:$0xff]  ;;  %4644 = vrot.lane.b32.xlu2 %v4556_v29, %s5597_s30 }
 0x714   :  { %4748 = vst.msk [vmem:[#allocation2 + $0xd8] sm:$0xff] %vm4720_vm9, %v4667_v26  ;;  %5396 = vmatmul.msk.f32.gmra.mxu2 %vm5023_vm13, %v5000_v59 }
 0x715   :  { %v4671_v43 = vpop.permute.xlu2 %4670 }
 0x717   :  { %4427 = vrot.lane.b32.xlu1 %v4339_v39, %s5595_s15  ;;  %4897 = vrot.lane.b32.xlu0 %v4791_v56, %s5596_s16  ;;  %v5203_v4 = vpop.f32.mrf.mxu2 }
 0x718   :  { %v5204_v25 = vadd.f32 %v9402_v38, %v5203_v4 }
 0x719   :  { %v5149_v12 = vpop.f32.mrf.mxu1  ;;  %v4414_v23 = vpop.permute.xlu1 %4413  ;;  %v4982_v6 = vld [vmem:[#allocation2 + $0x40] sm:$0xff] }
 0x71a   :  { %5275 = vst.msk [vmem:[%s9671_s6 + $0x90] sm:$0xff] %vm102_vm0, %v5204_v25  ;;  %v5150_v20 = vadd.f32 %v9402_v38, %v5149_v12  ;;  %v4884_v33 = vpop.permute.xlu0 %4883  ;;  %5378 = vmatmul.msk.f32.gmra.mxu1 %vm5023_vm13, %v4982_v6 }
 0x71b   :  { %4513 = vst.msk [vmem:[#allocation2 + $0x48] sm:$0xff] %vm4503_vm8, %v4414_v23  ;;  %4682 = vrot.lane.b32.xlu2 %v4575_v2, %s5597_s30 }
 0x71c   :  { %5257 = vst.msk [vmem:[%s9671_s6] sm:$0xff] %vm102_vm0, %v5150_v20 }
 0x71d   :  { %4730 = vst.msk [vmem:[#allocation2 + $0x48] sm:$0xff] %vm4720_vm9, %v9373_v18  ;;  %v4635_v53 = vpop.permute.xlu2 %4634 }
 0x71e   :  { %4965 = vst.msk [vmem:[#allocation2 + $0xd8] sm:$0xff] %vm4937_vm12, %v4884_v33 }
 0x71f   :  { %4861 = vrot.lane.b32.xlu1 %v4773_v36, %s5596_s16  ;;  %4465 = vrot.lane.b32.xlu0 %v4358_v28, %s5595_s15 }
 0x721   :  { %v4848_v19 = vpop.permute.xlu1 %4847 }
 0x722   :  { %4947 = vst.msk [vmem:[#allocation2 + $0x48] sm:$0xff] %vm4937_vm12, %v4848_v19  ;;  %v4452_v48 = vpop.permute.xlu0 %4451 }
 0x723   :  { %4532 = vst.msk [vmem:[#allocation2 + $0xe0] sm:$0xff] %vm4503_vm8, %v4452_v48  ;;  %4646 = vrot.lane.b32.xlu2 %v4557_v44, %s5597_s30 }
 0x724   :  { %4749 = vst.msk [vmem:[#allocation2 + $0xe0] sm:$0xff] %vm4720_vm9, %v4669_v37 }
 0x725   :  { %v5001_v51 = vld [vmem:[#allocation2 + $0xd8] sm:$0xff]  ;;  %v4673_v45 = vpop.permute.xlu2 %4672 }
 0x726   :  { %5397 = vmatmul.msk.f32.gmra.mxu2 %vm5023_vm13, %v5001_v51  ;;  %v5206_v21 = vpop.f32.mrf.mxu2 }
 0x727   :  { %v5207_v14 = vadd.f32 %v9402_v38, %v5206_v21  ;;  %4429 = vrot.lane.b32.xlu1 %v4340_v47, %s5595_s15  ;;  %4899 = vrot.lane.b32.xlu0 %v4792_v9, %s5596_s16  ;;  %v5152_v5 = vpop.f32.mrf.mxu1 }
 0x728   :  { %v5153_v54 = vadd.f32 %v9402_v38, %v5152_v5 }
 0x729   :  { %5276 = vst.msk [vmem:[%s9671_s6 + $0x98] sm:$0xff] %vm102_vm0, %v5207_v14  ;;  %v4416_v22 = vpop.permute.xlu1 %4415  ;;  %v4983_v13 = vld [vmem:[#allocation2 + $0x48] sm:$0xff] }
 0x72a   :  { %5258 = vst.msk [vmem:[%s9671_s6 + $0x8] sm:$0xff] %vm102_vm0, %v5153_v54  ;;  %v4886_v30 = vpop.permute.xlu0 %4885  ;;  %5379 = vmatmul.msk.f32.gmra.mxu1 %vm5023_vm13, %v4983_v13 }
 0x72b   :  { %4514 = vst.msk [vmem:[#allocation2 + $0x50] sm:$0xff] %vm4503_vm8, %v4416_v22 }
 0x72c   :  { %4731 = vst.msk [vmem:[#allocation2 + $0x50] sm:$0xff] %vm4720_vm9, %v4633_v10 }
 0x72d   :  { %4966 = vst.msk [vmem:[#allocation2 + $0xe0] sm:$0xff] %vm4937_vm12, %v4886_v30  ;;  %v4637_v31 = vpop.permute.xlu2 %4636 }
 0x72f   :  { %4863 = vrot.lane.b32.xlu0 %v4774_v1, %s5596_s16 }
 0x731   :  { %v4850_v50 = vpop.permute.xlu1 %4849 }
 0x732   :  { %4948 = vst.msk [vmem:[#allocation2 + $0x50] sm:$0xff] %vm4937_vm12, %v4850_v50  ;;  %v4454_v16 = vpop.permute.xlu0 %4453 }
 0x733   :  { %4533 = vst.msk [vmem:[#allocation2 + $0xe8] sm:$0xff] %vm4503_vm8, %v4454_v16 }
 0x734   :  { %4750 = vst.msk [vmem:[#allocation2 + $0xe8] sm:$0xff] %vm4720_vm9, %v4671_v43  ;;  %v5002_v57 = vld [vmem:[#allocation2 + $0xe0] sm:$0xff] }
 0x735   :  { %5398 = vmatmul.msk.f32.gmra.mxu2 %vm5023_vm13, %v5002_v57  ;;  %v4675_v17 = vpop.permute.xlu2 %4674 }
 0x737   :  { %v5209_v7 = vpop.f32.mrf.mxu2  ;;  %v5155_v58 = vpop.f32.mrf.mxu1 }
 0x738   :  { %v5210_v15 = vadd.f32 %v9402_v38, %v5209_v7  ;;  %v5156_v3 = vadd.f32 %v9402_v38, %v5155_v58 }
 0x739   :  { %v4418_v34 = vpop.permute.xlu1 %4417  ;;  %v4984_v26 = vld [vmem:[#allocation2 + $0x50] sm:$0xff] }
 0x73a   :  { %5277 = vst.msk [vmem:[%s9671_s6 + $0xa0] sm:$0xff] %vm102_vm0, %v5210_v15  ;;  %v4888_v61 = vpop.permute.xlu0 %4887  ;;  %5380 = vmatmul.msk.f32.gmra.mxu1 %vm5023_vm13, %v4984_v26 }
 0x73b   :  { %5259 = vst.msk [vmem:[%s9671_s6 + $0x10] sm:$0xff] %vm102_vm0, %v5156_v3 }
 0x73c   :  { %4515 = vst.msk [vmem:[#allocation2 + $0x58] sm:$0xff] %vm4503_vm8, %v4418_v34 }
 0x73d   :  { %4732 = vst.msk [vmem:[#allocation2 + $0x58] sm:$0xff] %vm4720_vm9, %v4635_v53  ;;  %v4639_v37 = vpop.permute.xlu2 %4638 }
 0x73e   :  { %4967 = vst.msk [vmem:[#allocation2 + $0xe8] sm:$0xff] %vm4937_vm12, %v4888_v61 }
 0x741   :  { %v4852_v41 = vpop.permute.xlu1 %4851 }
 0x742   :  { %4949 = vst.msk [vmem:[#allocation2 + $0x58] sm:$0xff] %vm4937_vm12, %v4852_v41  ;;  %v4456_v49 = vpop.permute.xlu0 %4455 }
 0x743   :  { %4534 = vst.msk [vmem:[#allocation2 + $0xf0] sm:$0xff] %vm4503_vm8, %v4456_v49 }
 0x744   :  { %4751 = vst.msk [vmem:[#allocation2 + $0xf0] sm:$0xff] %vm4720_vm9, %v4673_v45 }
 0x745   :  { %v5003_v24 = vld [vmem:[#allocation2 + $0xe8] sm:$0xff]  ;;  %v4677_v27 = vpop.permute.xlu2 %4676 }
 0x746   :  { %5399 = vmatmul.msk.f32.gmra.mxu2 %vm5023_vm13, %v5003_v24 }
 0x747   :  { %v5212_v18 = vpop.f32.mrf.mxu2  ;;  %v5158_v52 = vpop.f32.mrf.mxu1 }
 0x748   :  { %v5213_v60 = vadd.f32 %v9402_v38, %v5212_v18  ;;  %v5159_v35 = vadd.f32 %v9402_v38, %v5158_v52 }
 0x749   :  { %v4420_v0 = vpop.permute.xlu1 %4419  ;;  %v4985_v42 = vld [vmem:[#allocation2 + $0x58] sm:$0xff] }
 0x74a   :  { %5278 = vst.msk [vmem:[%s9671_s6 + $0xa8] sm:$0xff] %vm102_vm0, %v5213_v60  ;;  %v4890_v40 = vpop.permute.xlu0 %4889  ;;  %5381 = vmatmul.msk.f32.gmra.mxu1 %vm5023_vm13, %v4985_v42 }
 0x74b   :  { %5260 = vst.msk [vmem:[%s9671_s6 + $0x18] sm:$0xff] %vm102_vm0, %v5159_v35 }
 0x74c   :  { %4516 = vst.msk [vmem:[#allocation2 + $0x60] sm:$0xff] %vm4503_vm8, %v4420_v0 }
 0x74d   :  { %4733 = vst.msk [vmem:[#allocation2 + $0x60] sm:$0xff] %vm4720_vm9, %v4637_v31  ;;  %v4641_v56 = vpop.permute.xlu2 %4640 }
 0x74e   :  { %4968 = vst.msk [vmem:[#allocation2 + $0xf0] sm:$0xff] %vm4937_vm12, %v4890_v40 }
 0x751   :  { %v4854_v62 = vpop.permute.xlu1 %4853 }
 0x752   :  { %4950 = vst.msk [vmem:[#allocation2 + $0x60] sm:$0xff] %vm4937_vm12, %v4854_v62  ;;  %v4458_v11 = vpop.permute.xlu0 %4457 }
 0x753   :  { %4535 = vst.msk [vmem:[#allocation2 + $0xf8] sm:$0xff] %vm4503_vm8, %v4458_v11 }
 0x754   :  { %4752 = vst.msk [vmem:[#allocation2 + $0xf8] sm:$0xff] %vm4720_vm9, %v4675_v17 }
 0x755   :  { %v5004_v32 = vld [vmem:[#allocation2 + $0xf0] sm:$0xff]  ;;  %v4679_v33 = vpop.permute.xlu2 %4678 }
 0x756   :  { %5400 = vmatmul.msk.f32.gmra.mxu2 %vm5023_vm13, %v5004_v32 }
 0x757   :  { %v5215_v55 = vpop.f32.mrf.mxu2  ;;  %v5161_v63 = vpop.f32.mrf.mxu1 }
 0x758   :  { %v5216_v10 = vadd.f32 %v9402_v38, %v5215_v55  ;;  %v5162_v46 = vadd.f32 %v9402_v38, %v5161_v63 }
 0x759   :  { %v4422_v8 = vpop.permute.xlu1 %4421  ;;  %v4986_v29 = vld [vmem:[#allocation2 + $0x60] sm:$0xff] }
 0x75a   :  { %5279 = vst.msk [vmem:[%s9671_s6 + $0xb0] sm:$0xff] %vm102_vm0, %v5216_v10  ;;  %v4892_v59 = vpop.permute.xlu0 %4891  ;;  %5382 = vmatmul.msk.f32.gmra.mxu1 %vm5023_vm13, %v4986_v29 }
 0x75b   :  { %5261 = vst.msk [vmem:[%s9671_s6 + $0x20] sm:$0xff] %vm102_vm0, %v5162_v46 }
 0x75c   :  { %4517 = vst.msk [vmem:[#allocation2 + $0x68] sm:$0xff] %vm4503_vm8, %v4422_v8 }
 0x75d   :  { %4734 = vst.msk [vmem:[#allocation2 + $0x68] sm:$0xff] %vm4720_vm9, %v4639_v37  ;;  %v4643_v48 = vpop.permute.xlu2 %4642 }
 0x75e   :  { %4969 = vst.msk [vmem:[#allocation2 + $0xf8] sm:$0xff] %vm4937_vm12, %v4892_v59 }
 0x761   :  { %v4856_v39 = vpop.permute.xlu1 %4855 }
 0x762   :  { %4951 = vst.msk [vmem:[#allocation2 + $0x68] sm:$0xff] %vm4937_vm12, %v4856_v39  ;;  %v4460_v4 = vpop.permute.xlu0 %4459 }
 0x763   :  { %4536 = vst.msk [vmem:[#allocation2 + $0x100] sm:$0xff] %vm4503_vm8, %v4460_v4 }
 0x764   :  { %4753 = vst.msk [vmem:[#allocation2 + $0x100] sm:$0xff] %vm4720_vm9, %v4677_v27 }
 0x765   :  { %v5005_v25 = vld [vmem:[#allocation2 + $0xf8] sm:$0xff]  ;;  %v4681_v54 = vpop.permute.xlu2 %4680 }
 0x766   :  { %5401 = vmatmul.msk.f32.gmra.mxu2 %vm5023_vm13, %v5005_v25 }
 0x767   :  { %v5218_v2 = vpop.f32.mrf.mxu2  ;;  %v5164_v12 = vpop.f32.mrf.mxu1 }
 0x768   :  { %v5219_v23 = vadd.f32 %v9402_v38, %v5218_v2  ;;  %v5165_v6 = vadd.f32 %v9402_v38, %v5164_v12 }
 0x769   :  { %v4424_v20 = vpop.permute.xlu1 %4423  ;;  %v4987_v43 = vld [vmem:[#allocation2 + $0x68] sm:$0xff] }
 0x76a   :  { %5280 = vst.msk [vmem:[%s9671_s6 + $0xb8] sm:$0xff] %vm102_vm0, %v5219_v23  ;;  %v4894_v28 = vpop.permute.xlu0 %4893  ;;  %5383 = vmatmul.msk.f32.gmra.mxu1 %vm5023_vm13, %v4987_v43 }
 0x76b   :  { %5262 = vst.msk [vmem:[%s9671_s6 + $0x28] sm:$0xff] %vm102_vm0, %v5165_v6 }
 0x76c   :  { %4518 = vst.msk [vmem:[#allocation2 + $0x70] sm:$0xff] %vm4503_vm8, %v4424_v20 }
 0x76d   :  { %4735 = vst.msk [vmem:[#allocation2 + $0x70] sm:$0xff] %vm4720_vm9, %v4641_v56  ;;  %v4645_v50 = vpop.permute.xlu2 %4644 }
 0x76e   :  { %4970 = vst.msk [vmem:[#allocation2 + $0x100] sm:$0xff] %vm4937_vm12, %v4894_v28 }
 0x771   :  { %v4858_v36 = vpop.permute.xlu1 %4857 }
 0x772   :  { %4952 = vst.msk [vmem:[#allocation2 + $0x70] sm:$0xff] %vm4937_vm12, %v4858_v36  ;;  %v4462_v19 = vpop.permute.xlu0 %4461 }
 0x773   :  { %4537 = vst.msk [vmem:[#allocation2 + $0x108] sm:$0xff] %vm4503_vm8, %v4462_v19 }
 0x774   :  { %4754 = vst.msk [vmem:[#allocation2 + $0x108] sm:$0xff] %vm4720_vm9, %v4679_v33 }
 0x775   :  { %v5006_v44 = vld [vmem:[#allocation2 + $0x100] sm:$0xff]  ;;  %v4683_v3 = vpop.permute.xlu2 %4682 }
 0x776   :  { %5402 = vmatmul.msk.f32.gmra.mxu2 %vm5023_vm13, %v5006_v44 }
 0x777   :  { %v5221_v53 = vpop.f32.mrf.mxu2  ;;  %v5167_v9 = vpop.f32.mrf.mxu1 }
 0x778   :  { %v5222_v51 = vadd.f32 %v9402_v38, %v5221_v53  ;;  %v5168_v21 = vadd.f32 %v9402_v38, %v5167_v9 }
 0x779   :  { %v4426_v47 = vpop.permute.xlu1 %4425  ;;  %v4988_v14 = vld [vmem:[#allocation2 + $0x70] sm:$0xff] }
 0x77a   :  { %5281 = vst.msk [vmem:[%s9671_s6 + $0xc0] sm:$0xff] %vm102_vm0, %v5222_v51  ;;  %v4896_v5 = vpop.permute.xlu0 %4895  ;;  %5384 = vmatmul.msk.f32.gmra.mxu1 %vm5023_vm13, %v4988_v14 }
 0x77b   :  { %5263 = vst.msk [vmem:[%s9671_s6 + $0x30] sm:$0xff] %vm102_vm0, %v5168_v21 }
 0x77c   :  { %4519 = vst.msk [vmem:[#allocation2 + $0x78] sm:$0xff] %vm4503_vm8, %v4426_v47 }
 0x77d   :  { %4736 = vst.msk [vmem:[#allocation2 + $0x78] sm:$0xff] %vm4720_vm9, %v4643_v48  ;;  %v4647_v60 = vpop.permute.xlu2 %4646 }
 0x77e   :  { %4971 = vst.msk [vmem:[#allocation2 + $0x108] sm:$0xff] %vm4937_vm12, %v4896_v5 }
 0x781   :  { %v4860_v22 = vpop.permute.xlu1 %4859 }
 0x782   :  { %4953 = vst.msk [vmem:[#allocation2 + $0x78] sm:$0xff] %vm4937_vm12, %v4860_v22  ;;  %v4464_v13 = vpop.permute.xlu0 %4463 }
 0x783   :  { %4538 = vst.msk [vmem:[#allocation2 + $0x110] sm:$0xff] %vm4503_vm8, %v4464_v13 }
 0x784   :  { %4755 = vst.msk [vmem:[#allocation2 + $0x110] sm:$0xff] %vm4720_vm9, %v4681_v54 }
 0x785   :  { %v5007_v30 = vld [vmem:[#allocation2 + $0x108] sm:$0xff] }
 0x786   :  { %5403 = vmatmul.msk.f32.gmra.mxu2 %vm5023_vm13, %v5007_v30 }
 0x787   :  { %v5224_v45 = vpop.f32.mrf.mxu2  ;;  %v5170_v1 = vpop.f32.mrf.mxu1 }
 0x788   :  { %v5225_v16 = vadd.f32 %v9402_v38, %v5224_v45  ;;  %v5171_v57 = vadd.f32 %v9402_v38, %v5170_v1 }
 0x789   :  { %v4428_v7 = vpop.permute.xlu1 %4427  ;;  %v4989_v58 = vld [vmem:[#allocation2 + $0x78] sm:$0xff] }
 0x78a   :  { %5282 = vst.msk [vmem:[%s9671_s6 + $0xc8] sm:$0xff] %vm102_vm0, %v5225_v16  ;;  %v4898_v31 = vpop.permute.xlu0 %4897  ;;  %5385 = vmatmul.msk.f32.gmra.mxu1 %vm5023_vm13, %v4989_v58 }
 0x78b   :  { %5264 = vst.msk [vmem:[%s9671_s6 + $0x38] sm:$0xff] %vm102_vm0, %v5171_v57 }
 0x78c   :  { %4520 = vst.msk [vmem:[#allocation2 + $0x80] sm:$0xff] %vm4503_vm8, %v4428_v7 }
 0x78d   :  { %4737 = vst.msk [vmem:[#allocation2 + $0x80] sm:$0xff] %vm4720_vm9, %v4645_v50 }
 0x78e   :  { %4972 = vst.msk [vmem:[#allocation2 + $0x110] sm:$0xff] %vm4937_vm12, %v4898_v31 }
 0x791   :  { %v4862_v15 = vpop.permute.xlu1 %4861 }
 0x792   :  { %4954 = vst.msk [vmem:[#allocation2 + $0x80] sm:$0xff] %vm4937_vm12, %v4862_v15  ;;  %v4466_v34 = vpop.permute.xlu0 %4465 }
 0x793   :  { %4539 = vst.msk [vmem:[#allocation2 + $0x118] sm:$0xff] %vm4503_vm8, %v4466_v34 }
 0x794   :  { %4756 = vst.msk [vmem:[#allocation2 + $0x118] sm:$0xff] %vm4720_vm9, %v4683_v3 }
 0x795   :  { %v5008_v26 = vld [vmem:[#allocation2 + $0x110] sm:$0xff] }
 0x796   :  { %5404 = vmatmul.msk.f32.gmra.mxu2 %vm5023_vm13, %v5008_v26 }
 0x797   :  { %v5227_v61 = vpop.f32.mrf.mxu2  ;;  %v5173_v41 = vpop.f32.mrf.mxu1 }
 0x798   :  { %v5228_v17 = vadd.f32 %v9402_v38, %v5227_v61  ;;  %v5174_v49 = vadd.f32 %v9402_v38, %v5173_v41 }
 0x799   :  { %v4430_v24 = vpop.permute.xlu1 %4429  ;;  %v4990_v18 = vld [vmem:[#allocation2 + $0x80] sm:$0xff] }
 0x79a   :  { %5283 = vst.msk [vmem:[%s9671_s6 + $0xd0] sm:$0xff] %vm102_vm0, %v5228_v17  ;;  %v4900_v52 = vpop.permute.xlu0 %4899  ;;  %5386 = vmatmul.msk.f32.gmra.mxu1 %vm5023_vm13, %v4990_v18 }
 0x79b   :  { %5265 = vst.msk [vmem:[%s9671_s6 + $0x40] sm:$0xff] %vm102_vm0, %v5174_v49 }
 0x79c   :  { %4521 = vst.msk [vmem:[#allocation2 + $0x88] sm:$0xff] %vm4503_vm8, %v4430_v24 }
 0x79d   :  { %4738 = vst.msk [vmem:[#allocation2 + $0x88] sm:$0xff] %vm4720_vm9, %v4647_v60 }
 0x79e   :  { %4973 = vst.msk [vmem:[#allocation2 + $0x118] sm:$0xff] %vm4937_vm12, %v4900_v52 }
 0x7a2   :  { %v4864_v35 = vpop.permute.xlu0 %4863 }
 0x7a3   :  { %4955 = vst.msk [vmem:[#allocation2 + $0x88] sm:$0xff] %vm4937_vm12, %v4864_v35 }
 0x7a5   :  { %v5009_v0 = vld [vmem:[#allocation2 + $0x118] sm:$0xff] }
 0x7a6   :  { %5405 = vmatmul.msk.f32.gmra.mxu2 %vm5023_vm13, %v5009_v0 }
 0x7a7   :  { %v5176_v42 = vpop.f32.mrf.mxu1 }
 0x7a8   :  { %v5177_v40 = vadd.f32 %v9402_v38, %v5176_v42 }
 0x7a9   :  { %v5230_v37 = vpop.f32.mrf.mxu2 }
 0x7aa   :  { %v5231_v62 = vadd.f32 %v9402_v38, %v5230_v37  ;;  %5266 = vst.msk [vmem:[%s9671_s6 + $0x48] sm:$0xff] %vm102_vm0, %v5177_v40  ;;  %v4991_v11 = vld [vmem:[#allocation2 + $0x88] sm:$0xff] }
 0x7ab   :  { %5387 = vmatmul.msk.f32.gmra.mxu1 %vm5023_vm13, %v4991_v11 }
 0x7ac   :  { %5284 = vst.msk [vmem:[%s9671_s6 + $0xd8] sm:$0xff] %vm102_vm0, %v5231_v62 }
 0x7b7   :  { %v5179_v32 = vpop.f32.mrf.mxu1 }
 0x7b8   :  { %v5233_v27 = vpop.f32.mrf.mxu2  ;;  %v5180_v55 = vadd.f32 %v9402_v38, %v5179_v32 }
 0x7b9   :  { %v5234_v63 = vadd.f32 %v9402_v38, %v5233_v27 }
 0x7ba   :  { %5267 = vst.msk [vmem:[%s9671_s6 + $0x50] sm:$0xff] %vm102_vm0, %v5180_v55 }
 0x7bb   :  { %5285 = vst.msk [vmem:[%s9671_s6 + $0xe0] sm:$0xff] %vm102_vm0, %v5234_v63 }
 0x7c7   :  { %v5182_v10 = vpop.f32.mrf.mxu1 }
 0x7c8   :  { %v5183_v46 = vadd.f32 %v9402_v38, %v5182_v10 }
 0x7c9   :  { %v5236_v8 = vpop.f32.mrf.mxu2 }
 0x7ca   :  { %v5237_v29 = vadd.f32 %v9402_v38, %v5236_v8  ;;  %5268 = vst.msk [vmem:[%s9671_s6 + $0x58] sm:$0xff] %vm102_vm0, %v5183_v46 }
 0x7cc   :  { %5286 = vst.msk [vmem:[%s9671_s6 + $0xe8] sm:$0xff] %vm102_vm0, %v5237_v29 }
 0x7d7   :  { %v5185_v59 = vpop.f32.mrf.mxu1 }
 0x7d8   :  { %v5186_v56 = vadd.f32 %v9402_v38, %v5185_v59 }
 0x7d9   :  { %v5239_v39 = vpop.f32.mrf.mxu2 }
 0x7da   :  { %v5240_v4 = vadd.f32 %v9402_v38, %v5239_v39  ;;  %5269 = vst.msk [vmem:[%s9671_s6 + $0x60] sm:$0xff] %vm102_vm0, %v5186_v56 }
 0x7dc   :  { %5287 = vst.msk [vmem:[%s9671_s6 + $0xf0] sm:$0xff] %vm102_vm0, %v5240_v4 }
 0x7e7   :  { %v5188_v25 = vpop.f32.mrf.mxu1 }
 0x7e8   :  { %v5189_v2 = vadd.f32 %v9402_v38, %v5188_v25 }
 0x7e9   :  { %v5242_v12 = vpop.f32.mrf.mxu2 }
 0x7ea   :  { %v5243_v23 = vadd.f32 %v9402_v38, %v5242_v12  ;;  %5270 = vst.msk [vmem:[%s9671_s6 + $0x68] sm:$0xff] %vm102_vm0, %v5189_v2 }
 0x7ec   :  { %5288 = vst.msk [vmem:[%s9671_s6 + $0xf8] sm:$0xff] %vm102_vm0, %v5243_v23 }
 0x7f7   :  { %v5191_v6 = vpop.f32.mrf.mxu1 }
 0x7f8   :  { %v5192_v20 = vadd.f32 %v9402_v38, %v5191_v6 }
 0x7f9   :  { %v5245_v43 = vpop.f32.mrf.mxu2 }
 0x7fa   :  { %v5246_v33 = vadd.f32 %v9402_v38, %v5245_v43  ;;  %5271 = vst.msk [vmem:[%s9671_s6 + $0x70] sm:$0xff] %vm102_vm0, %v5192_v20 }
 0x7fc   :  { %5289 = vst.msk [vmem:[%s9671_s6 + $0x100] sm:$0xff] %vm102_vm0, %v5246_v33 }
 0x807   :  { %v5194_v28 = vpop.f32.mrf.mxu1 }
 0x808   :  { %v5195_v36 = vadd.f32 %v9402_v38, %v5194_v28 }
 0x809   :  { %v5248_v19 = vpop.f32.mrf.mxu2 }
 0x80a   :  { %v5249_v48 = vadd.f32 %v9402_v38, %v5248_v19  ;;  %5272 = vst.msk [vmem:[%s9671_s6 + $0x78] sm:$0xff] %vm102_vm0, %v5195_v36 }
 0x80c   :  { %5290 = vst.msk [vmem:[%s9671_s6 + $0x108] sm:$0xff] %vm102_vm0, %v5249_v48 }
 0x817   :  { %v5197_v44 = vpop.f32.mrf.mxu1 }
 0x818   :  { %v5198_v53 = vadd.f32 %v9402_v38, %v5197_v44 }
 0x819   :  { %v5251_v9 = vpop.f32.mrf.mxu2 }
 0x81a   :  { %v5252_v51 = vadd.f32 %v9402_v38, %v5251_v9  ;;  %5273 = vst.msk [vmem:[%s9671_s6 + $0x80] sm:$0xff] %vm102_vm0, %v5198_v53 }
 0x81c   :  { %5291 = vst.msk [vmem:[%s9671_s6 + $0x110] sm:$0xff] %vm102_vm0, %v5252_v51 }
 0x828   :  { %v5200_v21 = vpop.f32.mrf.mxu1 }
 0x829   :  { %v5254_v47 = vpop.f32.mrf.mxu2  ;;  %v5201_v14 = vadd.f32 %v9402_v38, %v5200_v21 }
 0x82a   :  { %v5255_v5 = vadd.f32 %v9402_v38, %v5254_v47 }
 0x82b   :  { %5274 = vst.msk [vmem:[%s9671_s6 + $0x88] sm:$0xff] %vm102_vm0, %v5201_v14 }
 0x82c   :  { %5292 = vst.msk [vmem:[%s9671_s6 + $0x118] sm:$0xff] %vm102_vm0, %v5255_v5 }

</bundles_post_ra>
